<compile_context>
chip_gen: v5e
topology: v5e:2x2
jax: 0.10.0
libtpu: 0.0.40
codegen_flags: <defaults>
</compile_context>

<pallas_src>
import jax
import jax.numpy as jnp
from jax import lax
from jax.experimental import pallas as pl
from jax.experimental.pallas import tpu as pltpu

# Kept so the Pallas kernel and the pure-JAX reference agree bit-closely at tiny
# sizes; in production drop this (or feed bf16 with f32 accumulation) once the
# batched matmuls are actually MXU-bound.
jax.config.update("jax_default_matmul_precision", "highest")

# ----------------------------- static configuration -----------------------------
LMAX = 2
MMAX = 1
SPHERE_CH = 8          # sphere_channels (C)
HIDDEN_CH = 16         # hidden_channels (H)
EDGE_DIM = 16          # edge_channels_list[0]
RAD_HIDDEN = 32        # edge_channels_list hidden width
CUTOFF = 5.0
NUM_NODES = 8
NUM_EDGES = 40
NODE_OFFSET = 0
TILE_E = 16            # edges per grid step (multiple of 8 sublanes)

NCOEF_FULL = (LMAX + 1) ** 2                                      # l-primary coefficient count
M_SIZES = [LMAX + 1] + [LMAX - m + 1 for m in range(1, MMAX + 1)]
M_RED = M_SIZES[0] + sum(2 * s for s in M_SIZES[1:])              # m-primary reduced count
EXTRA_M0 = LMAX * HIDDEN_CH                                       # gating scalars from so2_conv_1
NIN1 = 2 * SPHERE_CH                                              # so2_conv_1 input channels
NUM_RAD = M_SIZES[0] * NIN1 + sum(s * NIN1 for s in M_SIZES[1:])  # radial-function output width
OUT_W = NCOEF_FULL * SPHERE_CH                                    # flattened message width (72)
OUT_PAD = ((OUT_W + 127) // 128) * 128                            # lane-dense output width (128)

# l value of every m-primary coefficient: m=0 block (l=0..lmax), then (+m,-m) blocks
L_LIST = list(range(LMAX + 1))
for _m in range(1, MMAX + 1):
    L_LIST += list(range(_m, LMAX + 1)) * 2
assert len(L_LIST) == M_RED

# PolynomialEnvelope(exponent=5) coefficients
ENV_P = 5
ENV_A = -(ENV_P + 1) * (ENV_P + 2) / 2.0
ENV_B = float(ENV_P * (ENV_P + 2))
ENV_C = -ENV_P * (ENV_P + 1) / 2.0

N_WEIGHTS = 14 + 2 * MMAX


# ----------------------------- in-kernel helpers -----------------------------
def _layer_norm(h, gamma, beta):
    mu = jnp.mean(h, axis=-1, keepdims=True)
    var = jnp.mean((h - mu) ** 2, axis=-1, keepdims=True)
    return (h - mu) * lax.rsqrt(var + 1e-5) * gamma + beta


def _dot(a, b):
    return jnp.dot(a, b, preferred_element_type=jnp.float32)


# ----------------------------- the Pallas kernel -----------------------------
def edgewise_kernel(eidx_ref, x_ref, wig_ref, winv_ref, xe_ref, dist_ref, *rest):
    w_refs = rest[:N_WEIGHTS]
    out_ref = rest[N_WEIGHTS]
    xsrc_scr = rest[N_WEIGHTS + 1]
    xtgt_scr = rest[N_WEIGHTS + 2]

    (w_r1, b_r1, g_r1, be_r1, w_r2, b_r2, g_r2, be_r2, w_r3, b_r3,
     w_m0_1, b_m0_1) = w_refs[:12]
    w_m_1 = w_refs[12:12 + MMAX]
    w_m0_2 = w_refs[12 + MMAX]
    b_m0_2 = w_refs[13 + MMAX]
    w_m_2 = w_refs[14 + MMAX:14 + 2 * MMAX]

    C, H = SPHERE_CH, HIDDEN_CH
    base = pl.program_id(0) * TILE_E

    # gather x[edge_index[0]] / x[edge_index[1]] rows from the single VMEM-resident
    # copy of x, using the SMEM scalar-prefetched edge_index (no per-edge DMAs).
    for e in range(TILE_E):
        src = eidx_ref[0, base + e]
        tgt = eidx_ref[1, base + e]
        xsrc_scr[pl.ds(e, 1), :] = x_ref[pl.ds(src, 1), :]
        xtgt_scr[pl.ds(e, 1), :] = x_ref[pl.ds(tgt, 1), :]
    xs = xsrc_scr[...]                      # (TILE_E, NCOEF_FULL*C), layout [k*C + c]
    xt = xtgt_scr[...]
    wig = wig_ref[...]                      # (TILE_E, M_RED*NCOEF_FULL), layout [n*9 + k]
    winv = winv_ref[...]                    # (TILE_E, NCOEF_FULL*M_RED), layout [n*7 + k]

    # forward Wigner+M rotation: batched VPU FMAs over the TILE_E edges.
    # x_msg[:, n*2C + :] = sum_k wig[:, n, k] * concat(x_src, x_tgt)[:, k, :]
    xcat = [jnp.concatenate([xs[:, k * C:(k + 1) * C], xt[:, k * C:(k + 1) * C]], axis=-1)
            for k in range(NCOEF_FULL)]
    blocks = []
    for n in range(M_RED):
        acc = wig[:, n * NCOEF_FULL:n * NCOEF_FULL + 1] * xcat[0]
        for k in range(1, NCOEF_FULL):
            acc = acc + wig[:, n * NCOEF_FULL + k:n * NCOEF_FULL + k + 1] * xcat[k]
        blocks.append(acc)
    x_msg = jnp.concatenate(blocks, axis=-1)             # (TILE_E, M_RED*2C)

    # radial MLP (RadialFunction over edge_channels_list) -> per-edge input modulation
    h = jax.nn.silu(_layer_norm(_dot(xe_ref[...], w_r1[...]) + b_r1[...], g_r1[...], be_r1[...]))
    h = jax.nn.silu(_layer_norm(_dot(h, w_r2[...]) + b_r2[...], g_r2[...], be_r2[...]))
    rad = _dot(h, w_r3[...]) + b_r3[...]                 # (TILE_E, NUM_RAD)

    # SO2_Convolution #1 (2C -> H, extra m0 gating outputs, edge-modulated inputs)
    n0 = M_SIZES[0] * NIN1
    y0 = _dot(x_msg[:, :n0] * rad[:, :n0], w_m0_1[...]) + b_m0_1[...]
    gate = jax.nn.sigmoid(y0[:, :EXTRA_M0])              # (TILE_E, LMAX*H)
    hid = [y0[:, EXTRA_M0:]]                             # m=0 features, (TILE_E, (LMAX+1)*H)
    off_in, off_rad = n0, n0
    for m in range(1, MMAX + 1):
        msize = M_SIZES[m]
        width = msize * NIN1
        r = rad[:, off_rad:off_rad + width]
        y_r = _dot(x_msg[:, off_in:off_in + width] * r, w_m_1[m - 1][...])
        y_i = _dot(x_msg[:, off_in + width:off_in + 2 * width] * r, w_m_1[m - 1][...])
        half = msize * H
        hid.append(y_r[:, :half] - y_i[:, half:])        # real part
        hid.append(y_i[:, :half] + y_r[:, half:])        # imag part
        off_in += 2 * width
        off_rad += width
    x_hidden = jnp.concatenate(hid, axis=-1)             # (TILE_E, M_RED*H)

    # GateActivation (m_prime layout): SiLU on l=0 coefficient, sigmoid l-gates on l>=1
    gate_exp = jnp.concatenate([gate[:, (l - 1) * H:l * H] for l in L_LIST[1:]], axis=-1)
    x_act = jnp.concatenate([jax.nn.silu(x_hidden[:, :H]),
                             x_hidden[:, H:] * gate_exp], axis=-1)

    # SO2_Convolution #2 (H -> C, internal weights)
    n0h = M_SIZES[0] * H
    outb = [_dot(x_act[:, :n0h], w_m0_2[...]) + b_m0_2[...]]
    off_in = n0h
    for m in range(1, MMAX + 1):
        msize = M_SIZES[m]
        width = msize * H
        y_r = _dot(x_act[:, off_in:off_in + width], w_m_2[m - 1][...])
        y_i = _dot(x_act[:, off_in + width:off_in + 2 * width], w_m_2[m - 1][...])
        half = msize * C
        outb.append(y_r[:, :half] - y_i[:, half:])
        outb.append(y_i[:, :half] + y_r[:, half:])
        off_in += 2 * width
    x_out = jnp.concatenate(outb, axis=-1)               # (TILE_E, M_RED*C)

    # polynomial envelope (exponent=5) on edge_distance / cutoff
    d = dist_ref[...] / CUTOFF                           # (TILE_E, 1)
    d5 = d * d * d * d * d
    env = 1.0 + ENV_A * d5 + ENV_B * d5 * d + ENV_C * d5 * d * d
    env = jnp.where(d < 1.0, env, jnp.zeros_like(env))
    x_out = x_out * env

    # inverse Wigner+M rotation, emitted as a single lane-dense (TILE_E, OUT_PAD) slab
    res = []
    for n in range(NCOEF_FULL):
        acc = winv[:, n * M_RED:n * M_RED + 1] * x_out[:, 0:C]
        for k in range(1, M_RED):
            acc = acc + winv[:, n * M_RED + k:n * M_RED + k + 1] * x_out[:, k * C:(k + 1) * C]
        res.append(acc)
    if OUT_PAD > OUT_W:
        res.append(jnp.zeros((TILE_E, OUT_PAD - OUT_W), jnp.float32))
    out_ref[...] = jnp.concatenate(res, axis=-1)


# ----------------------------- wrapper -----------------------------
def weight_list(p):
    return [p["w_r1"], p["b_r1"], p["g_r1"], p["be_r1"],
            p["w_r2"], p["b_r2"], p["g_r2"], p["be_r2"],
            p["w_r3"], p["b_r3"],
            p["w_m0_1"], p["b_m0_1"], *p["w_m_1"],
            p["w_m0_2"], p["b_m0_2"], *p["w_m_2"]]


def edgewise_pallas(x, x_edge, edge_distance, edge_index, wigner, wigner_inv, params):
    n_nodes = x.shape[0]
    n_edges = edge_index.shape[1]
    n_pad = (-n_edges) % TILE_E
    e_pad = n_edges + n_pad

    # host-side validation: TPU VMEM refs have no bounds check, so clamp indices
    eidx = jnp.clip(edge_index, 0, n_nodes - 1).astype(jnp.int32)

    # layout plumbing: flatten coefficient/channel axes into lanes; pad the edge
    # axis to a TILE_E multiple (padded rows carry wigner_inv == 0 -> zero message).
    x_flat = x.reshape(n_nodes, OUT_W)
    wig_flat = wigner.reshape(n_edges, M_RED * NCOEF_FULL)
    winv_flat = wigner_inv.reshape(n_edges, NCOEF_FULL * M_RED)
    if n_pad:
        eidx = jnp.pad(eidx, ((0, 0), (0, n_pad)))
        wig_flat = jnp.pad(wig_flat, ((0, n_pad), (0, 0)))
        winv_flat = jnp.pad(winv_flat, ((0, n_pad), (0, 0)))
        x_edge = jnp.pad(x_edge, ((0, n_pad), (0, 0)))
        edge_distance = jnp.pad(edge_distance, (0, n_pad))
    dist2 = edge_distance.reshape(e_pad, 1)
    weights = weight_list(params)

    per_tile = lambda i, eref: (i, 0)
    resident = lambda i, eref: (0, 0)

    in_specs = [
        pl.BlockSpec((n_nodes, OUT_W), resident),                 # x: single VMEM-resident copy
        pl.BlockSpec((TILE_E, M_RED * NCOEF_FULL), per_tile),     # wigner+M (flattened)
        pl.BlockSpec((TILE_E, NCOEF_FULL * M_RED), per_tile),     # inverse (flattened)
        pl.BlockSpec((TILE_E, EDGE_DIM), per_tile),               # x_edge
        pl.BlockSpec((TILE_E, 1), per_tile),                      # edge_distance
    ] + [pl.BlockSpec(w.shape, resident) for w in weights]

    grid_spec = pltpu.PrefetchScalarGridSpec(
        num_scalar_prefetch=1,                 # edge_index in SMEM drives the in-kernel gather
        grid=(e_pad // TILE_E,),
        in_specs=in_specs,
        out_specs=pl.BlockSpec((TILE_E, OUT_PAD), per_tile),
        scratch_shapes=[pltpu.VMEM((TILE_E, OUT_W), jnp.float32),   # gathered x[src]
                        pltpu.VMEM((TILE_E, OUT_W), jnp.float32)],  # gathered x[tgt]
    )
    msg = pl.pallas_call(
        edgewise_kernel,
        out_shape=jax.ShapeDtypeStruct((e_pad, OUT_PAD), jnp.float32),
        grid_spec=grid_spec,
        compiler_params=pltpu.CompilerParams(
            dimension_semantics=("parallel",)),   # scatter removed -> edge tiles independent
    )(eidx, x_flat, wig_flat, winv_flat, x_edge, dist2, *weights)

    msg = msg[:n_edges, :OUT_W].reshape(n_edges, NCOEF_FULL, SPHERE_CH)
    # index_add_ done outside the kernel (segment sum over target nodes)
    return jnp.zeros((n_nodes, NCOEF_FULL, SPHERE_CH), jnp.float32).at[
        edge_index[1] - NODE_OFFSET].add(msg)


# ----------------------------- pure-JAX reference -----------------------------
def edgewise_reference(x, x_edge, edge_distance, edge_index, wigner, wigner_inv, p):
    C, H = SPHERE_CH, HIDDEN_CH
    E = edge_index.shape[1]
    N = x.shape[0]

    def layer_norm(h, g, b):
        mu = jnp.mean(h, axis=-1, keepdims=True)
        var = jnp.mean((h - mu) ** 2, axis=-1, keepdims=True)
        return (h - mu) / jnp.sqrt(var + 1e-5) * g + b

    x_msg = jnp.concatenate([x[edge_index[0]], x[edge_index[1]]], axis=2)
    x_msg = jnp.einsum("emn,enc->emc", wigner, x_msg)

    h = x_edge @ p["w_r1"] + p["b_r1"]
    h = jax.nn.silu(layer_norm(h, p["g_r1"], p["be_r1"]))
    h = h @ p["w_r2"] + p["b_r2"]
    h = jax.nn.silu(layer_norm(h, p["g_r2"], p["be_r2"]))
    rad = h @ p["w_r3"] + p["b_r3"]

    m0 = x_msg[:, :M_SIZES[0], :].reshape(E, M_SIZES[0] * NIN1) * rad[:, :M_SIZES[0] * NIN1]
    y0 = m0 @ p["w_m0_1"] + p["b_m0_1"]
    gate = y0[:, :EXTRA_M0]
    blocks = [y0[:, EXTRA_M0:].reshape(E, M_SIZES[0], H)]
    off, off_rad = M_SIZES[0], M_SIZES[0] * NIN1
    for m in range(1, MMAX + 1):
        msize = M_SIZES[m]
        xm = x_msg[:, off:off + 2 * msize, :].reshape(E, 2, msize * NIN1)
        xm = xm * rad[:, off_rad:off_rad + msize * NIN1][:, None, :]
        ym = jnp.einsum("eki,io->eko", xm, p["w_m_1"][m - 1])
        half = msize * H
        xr, xi = ym[..., :half], ym[..., half:]
        out_r, out_i = xr[:, 0] - xi[:, 1], xr[:, 1] + xi[:, 0]
        blocks.append(jnp.concatenate([out_r, out_i], axis=1).reshape(E, 2 * msize, H))
        off += 2 * msize
        off_rad += msize * NIN1
    x_hidden = jnp.concatenate(blocks, axis=1)

    g = jax.nn.sigmoid(gate).reshape(E, LMAX, H)
    expand = jnp.asarray([l - 1 for l in L_LIST[1:]], dtype=jnp.int32)
    x_act = jnp.concatenate(
        [jax.nn.silu(x_hidden[:, :1, :]), x_hidden[:, 1:, :] * g[:, expand, :]], axis=1)

    y0 = x_act[:, :M_SIZES[0], :].reshape(E, M_SIZES[0] * H) @ p["w_m0_2"] + p["b_m0_2"]
    blocks = [y0.reshape(E, M_SIZES[0], C)]
    off = M_SIZES[0]
    for m in range(1, MMAX + 1):
        msize = M_SIZES[m]
        xm = x_act[:, off:off + 2 * msize, :].reshape(E, 2, msize * H)
        ym = jnp.einsum("eki,io->eko", xm, p["w_m_2"][m - 1])
        half = msize * C
        xr, xi = ym[..., :half], ym[..., half:]
        out_r, out_i = xr[:, 0] - xi[:, 1], xr[:, 1] + xi[:, 0]
        blocks.append(jnp.concatenate([out_r, out_i], axis=1).reshape(E, 2 * msize, C))
        off += 2 * msize
    x_out = jnp.concatenate(blocks, axis=1)

    d = edge_distance / CUTOFF
    d5 = d * d * d * d * d
    env = 1.0 + ENV_A * d5 + ENV_B * d5 * d + ENV_C * d5 * d * d
    env = jnp.where(d < 1.0, env, 0.0)
    x_out = x_out * env[:, None, None]

    msg = jnp.einsum("enm,emc->enc", wigner_inv, x_out)
    return jnp.zeros((N, NCOEF_FULL, C), jnp.float32).at[edge_index[1] - NODE_OFFSET].add(msg)


# ----------------------------- deterministic parameter init -----------------------------
def init_params(key):
    ks = iter(jax.random.split(key, 24))
    f32 = jnp.float32

    def dense(shape):
        fan_in = shape[0] if len(shape) > 1 else shape[-1]
        return jax.random.normal(next(ks), shape, f32) / jnp.sqrt(jnp.asarray(fan_in, f32))

    p = {}
    # RadialFunction([EDGE_DIM, RAD_HIDDEN, RAD_HIDDEN, NUM_RAD]): (Linear, LN, SiLU) x2, Linear
    p["w_r1"], p["b_r1"] = dense((EDGE_DIM, RAD_HIDDEN)), 0.1 * dense((1, RAD_HIDDEN))
    p["g_r1"] = 1.0 + 0.05 * jax.random.normal(next(ks), (1, RAD_HIDDEN), f32)
    p["be_r1"] = 0.05 * jax.random.normal(next(ks), (1, RAD_HIDDEN), f32)
    p["w_r2"], p["b_r2"] = dense((RAD_HIDDEN, RAD_HIDDEN)), 0.1 * dense((1, RAD_HIDDEN))
    p["g_r2"] = 1.0 + 0.05 * jax.random.normal(next(ks), (1, RAD_HIDDEN), f32)
    p["be_r2"] = 0.05 * jax.random.normal(next(ks), (1, RAD_HIDDEN), f32)
    p["w_r3"], p["b_r3"] = dense((RAD_HIDDEN, NUM_RAD)), 0.1 * dense((1, NUM_RAD))
    # so2_conv_1 (2C -> H, extra m0 gating channels)
    p["w_m0_1"] = dense(((LMAX + 1) * NIN1, EXTRA_M0 + (LMAX + 1) * HIDDEN_CH))
    p["b_m0_1"] = 0.1 * dense((1, EXTRA_M0 + (LMAX + 1) * HIDDEN_CH))
    p["w_m_1"] = [dense((M_SIZES[m] * NIN1, 2 * M_SIZES[m] * HIDDEN_CH)) for m in range(1, MMAX + 1)]
    # so2_conv_2 (H -> C)
    p["w_m0_2"] = dense(((LMAX + 1) * HIDDEN_CH, (LMAX + 1) * SPHERE_CH))
    p["b_m0_2"] = 0.1 * dense((1, (LMAX + 1) * SPHERE_CH))
    p["w_m_2"] = [dense((M_SIZES[m] * HIDDEN_CH, 2 * M_SIZES[m] * SPHERE_CH)) for m in range(1, MMAX + 1)]
    return p


# ----------------------------- main -----------------------------
if __name__ == "__main__":
    key = jax.random.PRNGKey(0)
    k = jax.random.split(key, 8)
    x = jax.random.normal(k[0], (NUM_NODES, NCOEF_FULL, SPHERE_CH), jnp.float32)
    x_edge = jax.random.normal(k[1], (NUM_EDGES, EDGE_DIM), jnp.float32)
    edge_distance = jax.random.uniform(k[2], (NUM_EDGES,), jnp.float32, 0.5, 1.2 * CUTOFF)
    edge_index = jax.random.randint(k[3], (2, NUM_EDGES), 0, NUM_NODES, jnp.int32)
    wigner = 0.3 * jax.random.normal(k[4], (NUM_EDGES, M_RED, NCOEF_FULL), jnp.float32)
    wigner_inv = 0.3 * jax.random.normal(k[5], (NUM_EDGES, NCOEF_FULL, M_RED), jnp.float32)
    params = init_params(k[6])

    out = edgewise_pallas(x, x_edge, edge_distance, edge_index, wigner, wigner_inv, params)
    out = jax.block_until_ready(out)

    ref = edgewise_reference(x, x_edge, edge_distance, edge_index, wigner, wigner_inv, params)
    if not jnp.allclose(out, ref, atol=2e-3, rtol=2e-3):
        raise AssertionError("Pallas kernel does not match pure-JAX reference")
    print("KERNEL_OK")
</pallas_src>

<mosaic_0001>
module attributes {stable_mosaic.version = 11 : i64} {
  func.func @edgewise_kernel(%arg0: i32, %arg1: memref<2x48xi32, #tpu.memory_space<smem>>, %arg2: memref<8x72xf32, #tpu.memory_space<vmem>>, %arg3: memref<16x63xf32, #tpu.memory_space<vmem>>, %arg4: memref<16x63xf32, #tpu.memory_space<vmem>>, %arg5: memref<16x16xf32, #tpu.memory_space<vmem>>, %arg6: memref<16x1xf32, #tpu.memory_space<vmem>>, %arg7: memref<16x32xf32, #tpu.memory_space<vmem>>, %arg8: memref<1x32xf32, #tpu.memory_space<vmem>>, %arg9: memref<1x32xf32, #tpu.memory_space<vmem>>, %arg10: memref<1x32xf32, #tpu.memory_space<vmem>>, %arg11: memref<32x32xf32, #tpu.memory_space<vmem>>, %arg12: memref<1x32xf32, #tpu.memory_space<vmem>>, %arg13: memref<1x32xf32, #tpu.memory_space<vmem>>, %arg14: memref<1x32xf32, #tpu.memory_space<vmem>>, %arg15: memref<32x80xf32, #tpu.memory_space<vmem>>, %arg16: memref<1x80xf32, #tpu.memory_space<vmem>>, %arg17: memref<48x80xf32, #tpu.memory_space<vmem>>, %arg18: memref<1x80xf32, #tpu.memory_space<vmem>>, %arg19: memref<32x64xf32, #tpu.memory_space<vmem>>, %arg20: memref<48x24xf32, #tpu.memory_space<vmem>>, %arg21: memref<1x24xf32, #tpu.memory_space<vmem>>, %arg22: memref<32x32xf32, #tpu.memory_space<vmem>>, %arg23: memref<16x128xf32, #tpu.memory_space<vmem>>, %arg24: memref<16x72xf32, #tpu.memory_space<vmem>>, %arg25: memref<16x72xf32, #tpu.memory_space<vmem>>) attributes {dimension_semantics = [#tpu.dimension_semantics<parallel>], iteration_bounds = array<i64: 3>, scalar_prefetch = 1 : i64, scratch_operands = 2 : i64, tpu.core_type = #tpu.core_type<tc>, window_params = [{pipeline_mode = #tpu.pipeline_mode<synchronous>, transform_indices = @transform_0, window_bounds = array<i64: 8, 72>}, {transform_indices = @transform_1, window_bounds = array<i64: 16, 63>}, {transform_indices = @transform_2, window_bounds = array<i64: 16, 63>}, {transform_indices = @transform_3, window_bounds = array<i64: 16, 16>}, {transform_indices = @transform_4, window_bounds = array<i64: 16, 1>}, {pipeline_mode = #tpu.pipeline_mode<synchronous>, transform_indices = @transform_5, window_bounds = array<i64: 16, 32>}, {pipeline_mode = #tpu.pipeline_mode<synchronous>, transform_indices = @transform_6, window_bounds = array<i64: 1, 32>}, {pipeline_mode = #tpu.pipeline_mode<synchronous>, transform_indices = @transform_7, window_bounds = array<i64: 1, 32>}, {pipeline_mode = #tpu.pipeline_mode<synchronous>, transform_indices = @transform_8, window_bounds = array<i64: 1, 32>}, {pipeline_mode = #tpu.pipeline_mode<synchronous>, transform_indices = @transform_9, window_bounds = array<i64: 32, 32>}, {pipeline_mode = #tpu.pipeline_mode<synchronous>, transform_indices = @transform_10, window_bounds = array<i64: 1, 32>}, {pipeline_mode = #tpu.pipeline_mode<synchronous>, transform_indices = @transform_11, window_bounds = array<i64: 1, 32>}, {pipeline_mode = #tpu.pipeline_mode<synchronous>, transform_indices = @transform_12, window_bounds = array<i64: 1, 32>}, {pipeline_mode = #tpu.pipeline_mode<synchronous>, transform_indices = @transform_13, window_bounds = array<i64: 32, 80>}, {pipeline_mode = #tpu.pipeline_mode<synchronous>, transform_indices = @transform_14, window_bounds = array<i64: 1, 80>}, {pipeline_mode = #tpu.pipeline_mode<synchronous>, transform_indices = @transform_15, window_bounds = array<i64: 48, 80>}, {pipeline_mode = #tpu.pipeline_mode<synchronous>, transform_indices = @transform_16, window_bounds = array<i64: 1, 80>}, {pipeline_mode = #tpu.pipeline_mode<synchronous>, transform_indices = @transform_17, window_bounds = array<i64: 32, 64>}, {pipeline_mode = #tpu.pipeline_mode<synchronous>, transform_indices = @transform_18, window_bounds = array<i64: 48, 24>}, {pipeline_mode = #tpu.pipeline_mode<synchronous>, transform_indices = @transform_19, window_bounds = array<i64: 1, 24>}, {pipeline_mode = #tpu.pipeline_mode<synchronous>, transform_indices = @transform_20, window_bounds = array<i64: 32, 32>}, {transform_indices = @transform_21, window_bounds = array<i64: 16, 128>}]} {
    %c16_i32 = arith.constant 16 : i32
    %0 = arith.muli %arg0, %c16_i32 : i32
    %c0_i32 = arith.constant 0 : i32
    %1 = arith.addi %0, %c0_i32 : i32
    %c0 = arith.constant 0 : index
    %2 = arith.index_cast %1 : i32 to index
    %3 = memref.load %arg1[%c0, %2] : memref<2x48xi32, #tpu.memory_space<smem>>
    %c0_i32_0 = arith.constant 0 : i32
    %4 = arith.addi %0, %c0_i32_0 : i32
    %c1 = arith.constant 1 : index
    %5 = arith.index_cast %4 : i32 to index
    %6 = memref.load %arg1[%c1, %5] : memref<2x48xi32, #tpu.memory_space<smem>>
    %7 = arith.index_cast %3 : i32 to index
    %c0_1 = arith.constant 0 : index
    %8 = vector.load %arg2[%7, %c0_1] : memref<8x72xf32, #tpu.memory_space<vmem>>, vector<1x72xf32>
    %c0_2 = arith.constant 0 : index
    %c0_3 = arith.constant 0 : index
    %9 = vector.load %arg24[%c0_2, %c0_3] : memref<16x72xf32, #tpu.memory_space<vmem>>, vector<1x72xf32>
    tpu.vector_store %arg24[%c0_2, %c0_3], %8 {strides = array<i32>} : memref<16x72xf32, #tpu.memory_space<vmem>>, vector<1x72xf32>,
    %10 = arith.index_cast %6 : i32 to index
    %c0_4 = arith.constant 0 : index
    %11 = vector.load %arg2[%10, %c0_4] : memref<8x72xf32, #tpu.memory_space<vmem>>, vector<1x72xf32>
    %c0_5 = arith.constant 0 : index
    %c0_6 = arith.constant 0 : index
    %12 = vector.load %arg25[%c0_5, %c0_6] : memref<16x72xf32, #tpu.memory_space<vmem>>, vector<1x72xf32>
    tpu.vector_store %arg25[%c0_5, %c0_6], %11 {strides = array<i32>} : memref<16x72xf32, #tpu.memory_space<vmem>>, vector<1x72xf32>,
    %c1_i32 = arith.constant 1 : i32
    %13 = arith.addi %0, %c1_i32 : i32
    %c0_7 = arith.constant 0 : index
    %14 = arith.index_cast %13 : i32 to index
    %15 = memref.load %arg1[%c0_7, %14] : memref<2x48xi32, #tpu.memory_space<smem>>
    %c1_i32_8 = arith.constant 1 : i32
    %16 = arith.addi %0, %c1_i32_8 : i32
    %c1_9 = arith.constant 1 : index
    %17 = arith.index_cast %16 : i32 to index
    %18 = memref.load %arg1[%c1_9, %17] : memref<2x48xi32, #tpu.memory_space<smem>>
    %19 = arith.index_cast %15 : i32 to index
    %c0_10 = arith.constant 0 : index
    %20 = vector.load %arg2[%19, %c0_10] : memref<8x72xf32, #tpu.memory_space<vmem>>, vector<1x72xf32>
    %c1_11 = arith.constant 1 : index
    %c0_12 = arith.constant 0 : index
    %21 = vector.load %arg24[%c1_11, %c0_12] : memref<16x72xf32, #tpu.memory_space<vmem>>, vector<1x72xf32>
    tpu.vector_store %arg24[%c1_11, %c0_12], %20 {strides = array<i32>} : memref<16x72xf32, #tpu.memory_space<vmem>>, vector<1x72xf32>,
    %22 = arith.index_cast %18 : i32 to index
    %c0_13 = arith.constant 0 : index
    %23 = vector.load %arg2[%22, %c0_13] : memref<8x72xf32, #tpu.memory_space<vmem>>, vector<1x72xf32>
    %c1_14 = arith.constant 1 : index
    %c0_15 = arith.constant 0 : index
    %24 = vector.load %arg25[%c1_14, %c0_15] : memref<16x72xf32, #tpu.memory_space<vmem>>, vector<1x72xf32>
    tpu.vector_store %arg25[%c1_14, %c0_15], %23 {strides = array<i32>} : memref<16x72xf32, #tpu.memory_space<vmem>>, vector<1x72xf32>,
    %c2_i32 = arith.constant 2 : i32
    %25 = arith.addi %0, %c2_i32 : i32
    %c0_16 = arith.constant 0 : index
    %26 = arith.index_cast %25 : i32 to index
    %27 = memref.load %arg1[%c0_16, %26] : memref<2x48xi32, #tpu.memory_space<smem>>
    %c2_i32_17 = arith.constant 2 : i32
    %28 = arith.addi %0, %c2_i32_17 : i32
    %c1_18 = arith.constant 1 : index
    %29 = arith.index_cast %28 : i32 to index
    %30 = memref.load %arg1[%c1_18, %29] : memref<2x48xi32, #tpu.memory_space<smem>>
    %31 = arith.index_cast %27 : i32 to index
    %c0_19 = arith.constant 0 : index
    %32 = vector.load %arg2[%31, %c0_19] : memref<8x72xf32, #tpu.memory_space<vmem>>, vector<1x72xf32>
    %c2 = arith.constant 2 : index
    %c0_20 = arith.constant 0 : index
    %33 = vector.load %arg24[%c2, %c0_20] : memref<16x72xf32, #tpu.memory_space<vmem>>, vector<1x72xf32>
    tpu.vector_store %arg24[%c2, %c0_20], %32 {strides = array<i32>} : memref<16x72xf32, #tpu.memory_space<vmem>>, vector<1x72xf32>,
    %34 = arith.index_cast %30 : i32 to index
    %c0_21 = arith.constant 0 : index
    %35 = vector.load %arg2[%34, %c0_21] : memref<8x72xf32, #tpu.memory_space<vmem>>, vector<1x72xf32>
    %c2_22 = arith.constant 2 : index
    %c0_23 = arith.constant 0 : index
    %36 = vector.load %arg25[%c2_22, %c0_23] : memref<16x72xf32, #tpu.memory_space<vmem>>, vector<1x72xf32>
    tpu.vector_store %arg25[%c2_22, %c0_23], %35 {strides = array<i32>} : memref<16x72xf32, #tpu.memory_space<vmem>>, vector<1x72xf32>,
    %c3_i32 = arith.constant 3 : i32
    %37 = arith.addi %0, %c3_i32 : i32
    %c0_24 = arith.constant 0 : index
    %38 = arith.index_cast %37 : i32 to index
    %39 = memref.load %arg1[%c0_24, %38] : memref<2x48xi32, #tpu.memory_space<smem>>
    %c3_i32_25 = arith.constant 3 : i32
    %40 = arith.addi %0, %c3_i32_25 : i32
    %c1_26 = arith.constant 1 : index
    %41 = arith.index_cast %40 : i32 to index
    %42 = memref.load %arg1[%c1_26, %41] : memref<2x48xi32, #tpu.memory_space<smem>>
    %43 = arith.index_cast %39 : i32 to index
    %c0_27 = arith.constant 0 : index
    %44 = vector.load %arg2[%43, %c0_27] : memref<8x72xf32, #tpu.memory_space<vmem>>, vector<1x72xf32>
    %c3 = arith.constant 3 : index
    %c0_28 = arith.constant 0 : index
    %45 = vector.load %arg24[%c3, %c0_28] : memref<16x72xf32, #tpu.memory_space<vmem>>, vector<1x72xf32>
    tpu.vector_store %arg24[%c3, %c0_28], %44 {strides = array<i32>} : memref<16x72xf32, #tpu.memory_space<vmem>>, vector<1x72xf32>,
    %46 = arith.index_cast %42 : i32 to index
    %c0_29 = arith.constant 0 : index
    %47 = vector.load %arg2[%46, %c0_29] : memref<8x72xf32, #tpu.memory_space<vmem>>, vector<1x72xf32>
    %c3_30 = arith.constant 3 : index
    %c0_31 = arith.constant 0 : index
    %48 = vector.load %arg25[%c3_30, %c0_31] : memref<16x72xf32, #tpu.memory_space<vmem>>, vector<1x72xf32>
    tpu.vector_store %arg25[%c3_30, %c0_31], %47 {strides = array<i32>} : memref<16x72xf32, #tpu.memory_space<vmem>>, vector<1x72xf32>,
    %c4_i32 = arith.constant 4 : i32
    %49 = arith.addi %0, %c4_i32 : i32
    %c0_32 = arith.constant 0 : index
    %50 = arith.index_cast %49 : i32 to index
    %51 = memref.load %arg1[%c0_32, %50] : memref<2x48xi32, #tpu.memory_space<smem>>
    %c4_i32_33 = arith.constant 4 : i32
    %52 = arith.addi %0, %c4_i32_33 : i32
    %c1_34 = arith.constant 1 : index
    %53 = arith.index_cast %52 : i32 to index
    %54 = memref.load %arg1[%c1_34, %53] : memref<2x48xi32, #tpu.memory_space<smem>>
    %55 = arith.index_cast %51 : i32 to index
    %c0_35 = arith.constant 0 : index
    %56 = vector.load %arg2[%55, %c0_35] : memref<8x72xf32, #tpu.memory_space<vmem>>, vector<1x72xf32>
    %c4 = arith.constant 4 : index
    %c0_36 = arith.constant 0 : index
    %57 = vector.load %arg24[%c4, %c0_36] : memref<16x72xf32, #tpu.memory_space<vmem>>, vector<1x72xf32>
    tpu.vector_store %arg24[%c4, %c0_36], %56 {strides = array<i32>} : memref<16x72xf32, #tpu.memory_space<vmem>>, vector<1x72xf32>,
    %58 = arith.index_cast %54 : i32 to index
    %c0_37 = arith.constant 0 : index
    %59 = vector.load %arg2[%58, %c0_37] : memref<8x72xf32, #tpu.memory_space<vmem>>, vector<1x72xf32>
    %c4_38 = arith.constant 4 : index
    %c0_39 = arith.constant 0 : index
    %60 = vector.load %arg25[%c4_38, %c0_39] : memref<16x72xf32, #tpu.memory_space<vmem>>, vector<1x72xf32>
    tpu.vector_store %arg25[%c4_38, %c0_39], %59 {strides = array<i32>} : memref<16x72xf32, #tpu.memory_space<vmem>>, vector<1x72xf32>,
    %c5_i32 = arith.constant 5 : i32
    %61 = arith.addi %0, %c5_i32 : i32
    %c0_40 = arith.constant 0 : index
    %62 = arith.index_cast %61 : i32 to index
    %63 = memref.load %arg1[%c0_40, %62] : memref<2x48xi32, #tpu.memory_space<smem>>
    %c5_i32_41 = arith.constant 5 : i32
    %64 = arith.addi %0, %c5_i32_41 : i32
    %c1_42 = arith.constant 1 : index
    %65 = arith.index_cast %64 : i32 to index
    %66 = memref.load %arg1[%c1_42, %65] : memref<2x48xi32, #tpu.memory_space<smem>>
    %67 = arith.index_cast %63 : i32 to index
    %c0_43 = arith.constant 0 : index
    %68 = vector.load %arg2[%67, %c0_43] : memref<8x72xf32, #tpu.memory_space<vmem>>, vector<1x72xf32>
    %c5 = arith.constant 5 : index
    %c0_44 = arith.constant 0 : index
    %69 = vector.load %arg24[%c5, %c0_44] : memref<16x72xf32, #tpu.memory_space<vmem>>, vector<1x72xf32>
    tpu.vector_store %arg24[%c5, %c0_44], %68 {strides = array<i32>} : memref<16x72xf32, #tpu.memory_space<vmem>>, vector<1x72xf32>,
    %70 = arith.index_cast %66 : i32 to index
    %c0_45 = arith.constant 0 : index
    %71 = vector.load %arg2[%70, %c0_45] : memref<8x72xf32, #tpu.memory_space<vmem>>, vector<1x72xf32>
    %c5_46 = arith.constant 5 : index
    %c0_47 = arith.constant 0 : index
    %72 = vector.load %arg25[%c5_46, %c0_47] : memref<16x72xf32, #tpu.memory_space<vmem>>, vector<1x72xf32>
    tpu.vector_store %arg25[%c5_46, %c0_47], %71 {strides = array<i32>} : memref<16x72xf32, #tpu.memory_space<vmem>>, vector<1x72xf32>,
    %c6_i32 = arith.constant 6 : i32
    %73 = arith.addi %0, %c6_i32 : i32
    %c0_48 = arith.constant 0 : index
    %74 = arith.index_cast %73 : i32 to index
    %75 = memref.load %arg1[%c0_48, %74] : memref<2x48xi32, #tpu.memory_space<smem>>
    %c6_i32_49 = arith.constant 6 : i32
    %76 = arith.addi %0, %c6_i32_49 : i32
    %c1_50 = arith.constant 1 : index
    %77 = arith.index_cast %76 : i32 to index
    %78 = memref.load %arg1[%c1_50, %77] : memref<2x48xi32, #tpu.memory_space<smem>>
    %79 = arith.index_cast %75 : i32 to index
    %c0_51 = arith.constant 0 : index
    %80 = vector.load %arg2[%79, %c0_51] : memref<8x72xf32, #tpu.memory_space<vmem>>, vector<1x72xf32>
    %c6 = arith.constant 6 : index
    %c0_52 = arith.constant 0 : index
    %81 = vector.load %arg24[%c6, %c0_52] : memref<16x72xf32, #tpu.memory_space<vmem>>, vector<1x72xf32>
    tpu.vector_store %arg24[%c6, %c0_52], %80 {strides = array<i32>} : memref<16x72xf32, #tpu.memory_space<vmem>>, vector<1x72xf32>,
    %82 = arith.index_cast %78 : i32 to index
    %c0_53 = arith.constant 0 : index
    %83 = vector.load %arg2[%82, %c0_53] : memref<8x72xf32, #tpu.memory_space<vmem>>, vector<1x72xf32>
    %c6_54 = arith.constant 6 : index
    %c0_55 = arith.constant 0 : index
    %84 = vector.load %arg25[%c6_54, %c0_55] : memref<16x72xf32, #tpu.memory_space<vmem>>, vector<1x72xf32>
    tpu.vector_store %arg25[%c6_54, %c0_55], %83 {strides = array<i32>} : memref<16x72xf32, #tpu.memory_space<vmem>>, vector<1x72xf32>,
    %c7_i32 = arith.constant 7 : i32
    %85 = arith.addi %0, %c7_i32 : i32
    %c0_56 = arith.constant 0 : index
    %86 = arith.index_cast %85 : i32 to index
    %87 = memref.load %arg1[%c0_56, %86] : memref<2x48xi32, #tpu.memory_space<smem>>
    %c7_i32_57 = arith.constant 7 : i32
    %88 = arith.addi %0, %c7_i32_57 : i32
    %c1_58 = arith.constant 1 : index
    %89 = arith.index_cast %88 : i32 to index
    %90 = memref.load %arg1[%c1_58, %89] : memref<2x48xi32, #tpu.memory_space<smem>>
    %91 = arith.index_cast %87 : i32 to index
    %c0_59 = arith.constant 0 : index
    %92 = vector.load %arg2[%91, %c0_59] : memref<8x72xf32, #tpu.memory_space<vmem>>, vector<1x72xf32>
    %c7 = arith.constant 7 : index
    %c0_60 = arith.constant 0 : index
    %93 = vector.load %arg24[%c7, %c0_60] : memref<16x72xf32, #tpu.memory_space<vmem>>, vector<1x72xf32>
    tpu.vector_store %arg24[%c7, %c0_60], %92 {strides = array<i32>} : memref<16x72xf32, #tpu.memory_space<vmem>>, vector<1x72xf32>,
    %94 = arith.index_cast %90 : i32 to index
    %c0_61 = arith.constant 0 : index
    %95 = vector.load %arg2[%94, %c0_61] : memref<8x72xf32, #tpu.memory_space<vmem>>, vector<1x72xf32>
    %c7_62 = arith.constant 7 : index
    %c0_63 = arith.constant 0 : index
    %96 = vector.load %arg25[%c7_62, %c0_63] : memref<16x72xf32, #tpu.memory_space<vmem>>, vector<1x72xf32>
    tpu.vector_store %arg25[%c7_62, %c0_63], %95 {strides = array<i32>} : memref<16x72xf32, #tpu.memory_space<vmem>>, vector<1x72xf32>,
    %c8_i32 = arith.constant 8 : i32
    %97 = arith.addi %0, %c8_i32 : i32
    %c0_64 = arith.constant 0 : index
    %98 = arith.index_cast %97 : i32 to index
    %99 = memref.load %arg1[%c0_64, %98] : memref<2x48xi32, #tpu.memory_space<smem>>
    %c8_i32_65 = arith.constant 8 : i32
    %100 = arith.addi %0, %c8_i32_65 : i32
    %c1_66 = arith.constant 1 : index
    %101 = arith.index_cast %100 : i32 to index
    %102 = memref.load %arg1[%c1_66, %101] : memref<2x48xi32, #tpu.memory_space<smem>>
    %103 = arith.index_cast %99 : i32 to index
    %c0_67 = arith.constant 0 : index
    %104 = vector.load %arg2[%103, %c0_67] : memref<8x72xf32, #tpu.memory_space<vmem>>, vector<1x72xf32>
    %c8 = arith.constant 8 : index
    %c0_68 = arith.constant 0 : index
    %105 = vector.load %arg24[%c8, %c0_68] : memref<16x72xf32, #tpu.memory_space<vmem>>, vector<1x72xf32>
    tpu.vector_store %arg24[%c8, %c0_68], %104 {strides = array<i32>} : memref<16x72xf32, #tpu.memory_space<vmem>>, vector<1x72xf32>,
    %106 = arith.index_cast %102 : i32 to index
    %c0_69 = arith.constant 0 : index
    %107 = vector.load %arg2[%106, %c0_69] : memref<8x72xf32, #tpu.memory_space<vmem>>, vector<1x72xf32>
    %c8_70 = arith.constant 8 : index
    %c0_71 = arith.constant 0 : index
    %108 = vector.load %arg25[%c8_70, %c0_71] : memref<16x72xf32, #tpu.memory_space<vmem>>, vector<1x72xf32>
    tpu.vector_store %arg25[%c8_70, %c0_71], %107 {strides = array<i32>} : memref<16x72xf32, #tpu.memory_space<vmem>>, vector<1x72xf32>,
    %c9_i32 = arith.constant 9 : i32
    %109 = arith.addi %0, %c9_i32 : i32
    %c0_72 = arith.constant 0 : index
    %110 = arith.index_cast %109 : i32 to index
    %111 = memref.load %arg1[%c0_72, %110] : memref<2x48xi32, #tpu.memory_space<smem>>
    %c9_i32_73 = arith.constant 9 : i32
    %112 = arith.addi %0, %c9_i32_73 : i32
    %c1_74 = arith.constant 1 : index
    %113 = arith.index_cast %112 : i32 to index
    %114 = memref.load %arg1[%c1_74, %113] : memref<2x48xi32, #tpu.memory_space<smem>>
    %115 = arith.index_cast %111 : i32 to index
    %c0_75 = arith.constant 0 : index
    %116 = vector.load %arg2[%115, %c0_75] : memref<8x72xf32, #tpu.memory_space<vmem>>, vector<1x72xf32>
    %c9 = arith.constant 9 : index
    %c0_76 = arith.constant 0 : index
    %117 = vector.load %arg24[%c9, %c0_76] : memref<16x72xf32, #tpu.memory_space<vmem>>, vector<1x72xf32>
    tpu.vector_store %arg24[%c9, %c0_76], %116 {strides = array<i32>} : memref<16x72xf32, #tpu.memory_space<vmem>>, vector<1x72xf32>,
    %118 = arith.index_cast %114 : i32 to index
    %c0_77 = arith.constant 0 : index
    %119 = vector.load %arg2[%118, %c0_77] : memref<8x72xf32, #tpu.memory_space<vmem>>, vector<1x72xf32>
    %c9_78 = arith.constant 9 : index
    %c0_79 = arith.constant 0 : index
    %120 = vector.load %arg25[%c9_78, %c0_79] : memref<16x72xf32, #tpu.memory_space<vmem>>, vector<1x72xf32>
    tpu.vector_store %arg25[%c9_78, %c0_79], %119 {strides = array<i32>} : memref<16x72xf32, #tpu.memory_space<vmem>>, vector<1x72xf32>,
    %c10_i32 = arith.constant 10 : i32
    %121 = arith.addi %0, %c10_i32 : i32
    %c0_80 = arith.constant 0 : index
    %122 = arith.index_cast %121 : i32 to index
    %123 = memref.load %arg1[%c0_80, %122] : memref<2x48xi32, #tpu.memory_space<smem>>
    %c10_i32_81 = arith.constant 10 : i32
    %124 = arith.addi %0, %c10_i32_81 : i32
    %c1_82 = arith.constant 1 : index
    %125 = arith.index_cast %124 : i32 to index
    %126 = memref.load %arg1[%c1_82, %125] : memref<2x48xi32, #tpu.memory_space<smem>>
    %127 = arith.index_cast %123 : i32 to index
    %c0_83 = arith.constant 0 : index
    %128 = vector.load %arg2[%127, %c0_83] : memref<8x72xf32, #tpu.memory_space<vmem>>, vector<1x72xf32>
    %c10 = arith.constant 10 : index
    %c0_84 = arith.constant 0 : index
    %129 = vector.load %arg24[%c10, %c0_84] : memref<16x72xf32, #tpu.memory_space<vmem>>, vector<1x72xf32>
    tpu.vector_store %arg24[%c10, %c0_84], %128 {strides = array<i32>} : memref<16x72xf32, #tpu.memory_space<vmem>>, vector<1x72xf32>,
    %130 = arith.index_cast %126 : i32 to index
    %c0_85 = arith.constant 0 : index
    %131 = vector.load %arg2[%130, %c0_85] : memref<8x72xf32, #tpu.memory_space<vmem>>, vector<1x72xf32>
    %c10_86 = arith.constant 10 : index
    %c0_87 = arith.constant 0 : index
    %132 = vector.load %arg25[%c10_86, %c0_87] : memref<16x72xf32, #tpu.memory_space<vmem>>, vector<1x72xf32>
    tpu.vector_store %arg25[%c10_86, %c0_87], %131 {strides = array<i32>} : memref<16x72xf32, #tpu.memory_space<vmem>>, vector<1x72xf32>,
    %c11_i32 = arith.constant 11 : i32
    %133 = arith.addi %0, %c11_i32 : i32
    %c0_88 = arith.constant 0 : index
    %134 = arith.index_cast %133 : i32 to index
    %135 = memref.load %arg1[%c0_88, %134] : memref<2x48xi32, #tpu.memory_space<smem>>
    %c11_i32_89 = arith.constant 11 : i32
    %136 = arith.addi %0, %c11_i32_89 : i32
    %c1_90 = arith.constant 1 : index
    %137 = arith.index_cast %136 : i32 to index
    %138 = memref.load %arg1[%c1_90, %137] : memref<2x48xi32, #tpu.memory_space<smem>>
    %139 = arith.index_cast %135 : i32 to index
    %c0_91 = arith.constant 0 : index
    %140 = vector.load %arg2[%139, %c0_91] : memref<8x72xf32, #tpu.memory_space<vmem>>, vector<1x72xf32>
    %c11 = arith.constant 11 : index
    %c0_92 = arith.constant 0 : index
    %141 = vector.load %arg24[%c11, %c0_92] : memref<16x72xf32, #tpu.memory_space<vmem>>, vector<1x72xf32>
    tpu.vector_store %arg24[%c11, %c0_92], %140 {strides = array<i32>} : memref<16x72xf32, #tpu.memory_space<vmem>>, vector<1x72xf32>,
    %142 = arith.index_cast %138 : i32 to index
    %c0_93 = arith.constant 0 : index
    %143 = vector.load %arg2[%142, %c0_93] : memref<8x72xf32, #tpu.memory_space<vmem>>, vector<1x72xf32>
    %c11_94 = arith.constant 11 : index
    %c0_95 = arith.constant 0 : index
    %144 = vector.load %arg25[%c11_94, %c0_95] : memref<16x72xf32, #tpu.memory_space<vmem>>, vector<1x72xf32>
    tpu.vector_store %arg25[%c11_94, %c0_95], %143 {strides = array<i32>} : memref<16x72xf32, #tpu.memory_space<vmem>>, vector<1x72xf32>,
    %c12_i32 = arith.constant 12 : i32
    %145 = arith.addi %0, %c12_i32 : i32
    %c0_96 = arith.constant 0 : index
    %146 = arith.index_cast %145 : i32 to index
    %147 = memref.load %arg1[%c0_96, %146] : memref<2x48xi32, #tpu.memory_space<smem>>
    %c12_i32_97 = arith.constant 12 : i32
    %148 = arith.addi %0, %c12_i32_97 : i32
    %c1_98 = arith.constant 1 : index
    %149 = arith.index_cast %148 : i32 to index
    %150 = memref.load %arg1[%c1_98, %149] : memref<2x48xi32, #tpu.memory_space<smem>>
    %151 = arith.index_cast %147 : i32 to index
    %c0_99 = arith.constant 0 : index
    %152 = vector.load %arg2[%151, %c0_99] : memref<8x72xf32, #tpu.memory_space<vmem>>, vector<1x72xf32>
    %c12 = arith.constant 12 : index
    %c0_100 = arith.constant 0 : index
    %153 = vector.load %arg24[%c12, %c0_100] : memref<16x72xf32, #tpu.memory_space<vmem>>, vector<1x72xf32>
    tpu.vector_store %arg24[%c12, %c0_100], %152 {strides = array<i32>} : memref<16x72xf32, #tpu.memory_space<vmem>>, vector<1x72xf32>,
    %154 = arith.index_cast %150 : i32 to index
    %c0_101 = arith.constant 0 : index
    %155 = vector.load %arg2[%154, %c0_101] : memref<8x72xf32, #tpu.memory_space<vmem>>, vector<1x72xf32>
    %c12_102 = arith.constant 12 : index
    %c0_103 = arith.constant 0 : index
    %156 = vector.load %arg25[%c12_102, %c0_103] : memref<16x72xf32, #tpu.memory_space<vmem>>, vector<1x72xf32>
    tpu.vector_store %arg25[%c12_102, %c0_103], %155 {strides = array<i32>} : memref<16x72xf32, #tpu.memory_space<vmem>>, vector<1x72xf32>,
    %c13_i32 = arith.constant 13 : i32
    %157 = arith.addi %0, %c13_i32 : i32
    %c0_104 = arith.constant 0 : index
    %158 = arith.index_cast %157 : i32 to index
    %159 = memref.load %arg1[%c0_104, %158] : memref<2x48xi32, #tpu.memory_space<smem>>
    %c13_i32_105 = arith.constant 13 : i32
    %160 = arith.addi %0, %c13_i32_105 : i32
    %c1_106 = arith.constant 1 : index
    %161 = arith.index_cast %160 : i32 to index
    %162 = memref.load %arg1[%c1_106, %161] : memref<2x48xi32, #tpu.memory_space<smem>>
    %163 = arith.index_cast %159 : i32 to index
    %c0_107 = arith.constant 0 : index
    %164 = vector.load %arg2[%163, %c0_107] : memref<8x72xf32, #tpu.memory_space<vmem>>, vector<1x72xf32>
    %c13 = arith.constant 13 : index
    %c0_108 = arith.constant 0 : index
    %165 = vector.load %arg24[%c13, %c0_108] : memref<16x72xf32, #tpu.memory_space<vmem>>, vector<1x72xf32>
    tpu.vector_store %arg24[%c13, %c0_108], %164 {strides = array<i32>} : memref<16x72xf32, #tpu.memory_space<vmem>>, vector<1x72xf32>,
    %166 = arith.index_cast %162 : i32 to index
    %c0_109 = arith.constant 0 : index
    %167 = vector.load %arg2[%166, %c0_109] : memref<8x72xf32, #tpu.memory_space<vmem>>, vector<1x72xf32>
    %c13_110 = arith.constant 13 : index
    %c0_111 = arith.constant 0 : index
    %168 = vector.load %arg25[%c13_110, %c0_111] : memref<16x72xf32, #tpu.memory_space<vmem>>, vector<1x72xf32>
    tpu.vector_store %arg25[%c13_110, %c0_111], %167 {strides = array<i32>} : memref<16x72xf32, #tpu.memory_space<vmem>>, vector<1x72xf32>,
    %c14_i32 = arith.constant 14 : i32
    %169 = arith.addi %0, %c14_i32 : i32
    %c0_112 = arith.constant 0 : index
    %170 = arith.index_cast %169 : i32 to index
    %171 = memref.load %arg1[%c0_112, %170] : memref<2x48xi32, #tpu.memory_space<smem>>
    %c14_i32_113 = arith.constant 14 : i32
    %172 = arith.addi %0, %c14_i32_113 : i32
    %c1_114 = arith.constant 1 : index
    %173 = arith.index_cast %172 : i32 to index
    %174 = memref.load %arg1[%c1_114, %173] : memref<2x48xi32, #tpu.memory_space<smem>>
    %175 = arith.index_cast %171 : i32 to index
    %c0_115 = arith.constant 0 : index
    %176 = vector.load %arg2[%175, %c0_115] : memref<8x72xf32, #tpu.memory_space<vmem>>, vector<1x72xf32>
    %c14 = arith.constant 14 : index
    %c0_116 = arith.constant 0 : index
    %177 = vector.load %arg24[%c14, %c0_116] : memref<16x72xf32, #tpu.memory_space<vmem>>, vector<1x72xf32>
    tpu.vector_store %arg24[%c14, %c0_116], %176 {strides = array<i32>} : memref<16x72xf32, #tpu.memory_space<vmem>>, vector<1x72xf32>,
    %178 = arith.index_cast %174 : i32 to index
    %c0_117 = arith.constant 0 : index
    %179 = vector.load %arg2[%178, %c0_117] : memref<8x72xf32, #tpu.memory_space<vmem>>, vector<1x72xf32>
    %c14_118 = arith.constant 14 : index
    %c0_119 = arith.constant 0 : index
    %180 = vector.load %arg25[%c14_118, %c0_119] : memref<16x72xf32, #tpu.memory_space<vmem>>, vector<1x72xf32>
    tpu.vector_store %arg25[%c14_118, %c0_119], %179 {strides = array<i32>} : memref<16x72xf32, #tpu.memory_space<vmem>>, vector<1x72xf32>,
    %c15_i32 = arith.constant 15 : i32
    %181 = arith.addi %0, %c15_i32 : i32
    %c0_120 = arith.constant 0 : index
    %182 = arith.index_cast %181 : i32 to index
    %183 = memref.load %arg1[%c0_120, %182] : memref<2x48xi32, #tpu.memory_space<smem>>
    %c15_i32_121 = arith.constant 15 : i32
    %184 = arith.addi %0, %c15_i32_121 : i32
    %c1_122 = arith.constant 1 : index
    %185 = arith.index_cast %184 : i32 to index
    %186 = memref.load %arg1[%c1_122, %185] : memref<2x48xi32, #tpu.memory_space<smem>>
    %187 = arith.index_cast %183 : i32 to index
    %c0_123 = arith.constant 0 : index
    %188 = vector.load %arg2[%187, %c0_123] : memref<8x72xf32, #tpu.memory_space<vmem>>, vector<1x72xf32>
    %c15 = arith.constant 15 : index
    %c0_124 = arith.constant 0 : index
    %189 = vector.load %arg24[%c15, %c0_124] : memref<16x72xf32, #tpu.memory_space<vmem>>, vector<1x72xf32>
    tpu.vector_store %arg24[%c15, %c0_124], %188 {strides = array<i32>} : memref<16x72xf32, #tpu.memory_space<vmem>>, vector<1x72xf32>,
    %190 = arith.index_cast %186 : i32 to index
    %c0_125 = arith.constant 0 : index
    %191 = vector.load %arg2[%190, %c0_125] : memref<8x72xf32, #tpu.memory_space<vmem>>, vector<1x72xf32>
    %c15_126 = arith.constant 15 : index
    %c0_127 = arith.constant 0 : index
    %192 = vector.load %arg25[%c15_126, %c0_127] : memref<16x72xf32, #tpu.memory_space<vmem>>, vector<1x72xf32>
    tpu.vector_store %arg25[%c15_126, %c0_127], %191 {strides = array<i32>} : memref<16x72xf32, #tpu.memory_space<vmem>>, vector<1x72xf32>,
    %c0_128 = arith.constant 0 : index
    %c0_129 = arith.constant 0 : index
    %193 = vector.load %arg24[%c0_128, %c0_129] : memref<16x72xf32, #tpu.memory_space<vmem>>, vector<16x72xf32>
    %c0_130 = arith.constant 0 : index
    %c0_131 = arith.constant 0 : index
    %194 = vector.load %arg25[%c0_130, %c0_131] : memref<16x72xf32, #tpu.memory_space<vmem>>, vector<16x72xf32>
    %c0_132 = arith.constant 0 : index
    %c0_133 = arith.constant 0 : index
    %195 = vector.load %arg3[%c0_132, %c0_133] : memref<16x63xf32, #tpu.memory_space<vmem>>, vector<16x63xf32>
    %c0_134 = arith.constant 0 : index
    %c0_135 = arith.constant 0 : index
    %196 = vector.load %arg4[%c0_134, %c0_135] : memref<16x63xf32, #tpu.memory_space<vmem>>, vector<16x63xf32>
    %197 = vector.extract_strided_slice %193 {offsets = [0, 0], sizes = [16, 8], strides = [1, 1]} : vector<16x72xf32> to vector<16x8xf32>
    %198 = vector.extract_strided_slice %194 {offsets = [0, 0], sizes = [16, 8], strides = [1, 1]} : vector<16x72xf32> to vector<16x8xf32>
    %199 = tpu.concatenate %197, %198 in 1 : vector<16x8xf32>, vector<16x8xf32> -> vector<16x16xf32>
    %200 = vector.extract_strided_slice %193 {offsets = [0, 8], sizes = [16, 8], strides = [1, 1]} : vector<16x72xf32> to vector<16x8xf32>
    %201 = vector.extract_strided_slice %194 {offsets = [0, 8], sizes = [16, 8], strides = [1, 1]} : vector<16x72xf32> to vector<16x8xf32>
    %202 = tpu.concatenate %200, %201 in 1 : vector<16x8xf32>, vector<16x8xf32> -> vector<16x16xf32>
    %203 = vector.extract_strided_slice %193 {offsets = [0, 16], sizes = [16, 8], strides = [1, 1]} : vector<16x72xf32> to vector<16x8xf32>
    %204 = vector.extract_strided_slice %194 {offsets = [0, 16], sizes = [16, 8], strides = [1, 1]} : vector<16x72xf32> to vector<16x8xf32>
    %205 = tpu.concatenate %203, %204 in 1 : vector<16x8xf32>, vector<16x8xf32> -> vector<16x16xf32>
    %206 = vector.extract_strided_slice %193 {offsets = [0, 24], sizes = [16, 8], strides = [1, 1]} : vector<16x72xf32> to vector<16x8xf32>
    %207 = vector.extract_strided_slice %194 {offsets = [0, 24], sizes = [16, 8], strides = [1, 1]} : vector<16x72xf32> to vector<16x8xf32>
    %208 = tpu.concatenate %206, %207 in 1 : vector<16x8xf32>, vector<16x8xf32> -> vector<16x16xf32>
    %209 = vector.extract_strided_slice %193 {offsets = [0, 32], sizes = [16, 8], strides = [1, 1]} : vector<16x72xf32> to vector<16x8xf32>
    %210 = vector.extract_strided_slice %194 {offsets = [0, 32], sizes = [16, 8], strides = [1, 1]} : vector<16x72xf32> to vector<16x8xf32>
    %211 = tpu.concatenate %209, %210 in 1 : vector<16x8xf32>, vector<16x8xf32> -> vector<16x16xf32>
    %212 = vector.extract_strided_slice %193 {offsets = [0, 40], sizes = [16, 8], strides = [1, 1]} : vector<16x72xf32> to vector<16x8xf32>
    %213 = vector.extract_strided_slice %194 {offsets = [0, 40], sizes = [16, 8], strides = [1, 1]} : vector<16x72xf32> to vector<16x8xf32>
    %214 = tpu.concatenate %212, %213 in 1 : vector<16x8xf32>, vector<16x8xf32> -> vector<16x16xf32>
    %215 = vector.extract_strided_slice %193 {offsets = [0, 48], sizes = [16, 8], strides = [1, 1]} : vector<16x72xf32> to vector<16x8xf32>
    %216 = vector.extract_strided_slice %194 {offsets = [0, 48], sizes = [16, 8], strides = [1, 1]} : vector<16x72xf32> to vector<16x8xf32>
    %217 = tpu.concatenate %215, %216 in 1 : vector<16x8xf32>, vector<16x8xf32> -> vector<16x16xf32>
    %218 = vector.extract_strided_slice %193 {offsets = [0, 56], sizes = [16, 8], strides = [1, 1]} : vector<16x72xf32> to vector<16x8xf32>
    %219 = vector.extract_strided_slice %194 {offsets = [0, 56], sizes = [16, 8], strides = [1, 1]} : vector<16x72xf32> to vector<16x8xf32>
    %220 = tpu.concatenate %218, %219 in 1 : vector<16x8xf32>, vector<16x8xf32> -> vector<16x16xf32>
    %221 = vector.extract_strided_slice %193 {offsets = [0, 64], sizes = [16, 8], strides = [1, 1]} : vector<16x72xf32> to vector<16x8xf32>
    %222 = vector.extract_strided_slice %194 {offsets = [0, 64], sizes = [16, 8], strides = [1, 1]} : vector<16x72xf32> to vector<16x8xf32>
    %223 = tpu.concatenate %221, %222 in 1 : vector<16x8xf32>, vector<16x8xf32> -> vector<16x16xf32>
    %224 = vector.extract_strided_slice %195 {offsets = [0, 0], sizes = [16, 1], strides = [1, 1]} : vector<16x63xf32> to vector<16x1xf32>
    %225 = vector.broadcast %224 : vector<16x1xf32> to vector<16x16xf32>
    %226 = arith.mulf %225, %199 : vector<16x16xf32>
    %227 = vector.extract_strided_slice %195 {offsets = [0, 1], sizes = [16, 1], strides = [1, 1]} : vector<16x63xf32> to vector<16x1xf32>
    %228 = vector.broadcast %227 : vector<16x1xf32> to vector<16x16xf32>
    %229 = arith.mulf %228, %202 : vector<16x16xf32>
    %230 = arith.addf %226, %229 : vector<16x16xf32>
    %231 = vector.extract_strided_slice %195 {offsets = [0, 2], sizes = [16, 1], strides = [1, 1]} : vector<16x63xf32> to vector<16x1xf32>
    %232 = vector.broadcast %231 : vector<16x1xf32> to vector<16x16xf32>
    %233 = arith.mulf %232, %205 : vector<16x16xf32>
    %234 = arith.addf %230, %233 : vector<16x16xf32>
    %235 = vector.extract_strided_slice %195 {offsets = [0, 3], sizes = [16, 1], strides = [1, 1]} : vector<16x63xf32> to vector<16x1xf32>
    %236 = vector.broadcast %235 : vector<16x1xf32> to vector<16x16xf32>
    %237 = arith.mulf %236, %208 : vector<16x16xf32>
    %238 = arith.addf %234, %237 : vector<16x16xf32>
    %239 = vector.extract_strided_slice %195 {offsets = [0, 4], sizes = [16, 1], strides = [1, 1]} : vector<16x63xf32> to vector<16x1xf32>
    %240 = vector.broadcast %239 : vector<16x1xf32> to vector<16x16xf32>
    %241 = arith.mulf %240, %211 : vector<16x16xf32>
    %242 = arith.addf %238, %241 : vector<16x16xf32>
    %243 = vector.extract_strided_slice %195 {offsets = [0, 5], sizes = [16, 1], strides = [1, 1]} : vector<16x63xf32> to vector<16x1xf32>
    %244 = vector.broadcast %243 : vector<16x1xf32> to vector<16x16xf32>
    %245 = arith.mulf %244, %214 : vector<16x16xf32>
    %246 = arith.addf %242, %245 : vector<16x16xf32>
    %247 = vector.extract_strided_slice %195 {offsets = [0, 6], sizes = [16, 1], strides = [1, 1]} : vector<16x63xf32> to vector<16x1xf32>
    %248 = vector.broadcast %247 : vector<16x1xf32> to vector<16x16xf32>
    %249 = arith.mulf %248, %217 : vector<16x16xf32>
    %250 = arith.addf %246, %249 : vector<16x16xf32>
    %251 = vector.extract_strided_slice %195 {offsets = [0, 7], sizes = [16, 1], strides = [1, 1]} : vector<16x63xf32> to vector<16x1xf32>
    %252 = vector.broadcast %251 : vector<16x1xf32> to vector<16x16xf32>
    %253 = arith.mulf %252, %220 : vector<16x16xf32>
    %254 = arith.addf %250, %253 : vector<16x16xf32>
    %255 = vector.extract_strided_slice %195 {offsets = [0, 8], sizes = [16, 1], strides = [1, 1]} : vector<16x63xf32> to vector<16x1xf32>
    %256 = vector.broadcast %255 : vector<16x1xf32> to vector<16x16xf32>
    %257 = arith.mulf %256, %223 : vector<16x16xf32>
    %258 = arith.addf %254, %257 : vector<16x16xf32>
    %259 = vector.extract_strided_slice %195 {offsets = [0, 9], sizes = [16, 1], strides = [1, 1]} : vector<16x63xf32> to vector<16x1xf32>
    %260 = vector.broadcast %259 : vector<16x1xf32> to vector<16x16xf32>
    %261 = arith.mulf %260, %199 : vector<16x16xf32>
    %262 = vector.extract_strided_slice %195 {offsets = [0, 10], sizes = [16, 1], strides = [1, 1]} : vector<16x63xf32> to vector<16x1xf32>
    %263 = vector.broadcast %262 : vector<16x1xf32> to vector<16x16xf32>
    %264 = arith.mulf %263, %202 : vector<16x16xf32>
    %265 = arith.addf %261, %264 : vector<16x16xf32>
    %266 = vector.extract_strided_slice %195 {offsets = [0, 11], sizes = [16, 1], strides = [1, 1]} : vector<16x63xf32> to vector<16x1xf32>
    %267 = vector.broadcast %266 : vector<16x1xf32> to vector<16x16xf32>
    %268 = arith.mulf %267, %205 : vector<16x16xf32>
    %269 = arith.addf %265, %268 : vector<16x16xf32>
    %270 = vector.extract_strided_slice %195 {offsets = [0, 12], sizes = [16, 1], strides = [1, 1]} : vector<16x63xf32> to vector<16x1xf32>
    %271 = vector.broadcast %270 : vector<16x1xf32> to vector<16x16xf32>
    %272 = arith.mulf %271, %208 : vector<16x16xf32>
    %273 = arith.addf %269, %272 : vector<16x16xf32>
    %274 = vector.extract_strided_slice %195 {offsets = [0, 13], sizes = [16, 1], strides = [1, 1]} : vector<16x63xf32> to vector<16x1xf32>
    %275 = vector.broadcast %274 : vector<16x1xf32> to vector<16x16xf32>
    %276 = arith.mulf %275, %211 : vector<16x16xf32>
    %277 = arith.addf %273, %276 : vector<16x16xf32>
    %278 = vector.extract_strided_slice %195 {offsets = [0, 14], sizes = [16, 1], strides = [1, 1]} : vector<16x63xf32> to vector<16x1xf32>
    %279 = vector.broadcast %278 : vector<16x1xf32> to vector<16x16xf32>
    %280 = arith.mulf %279, %214 : vector<16x16xf32>
    %281 = arith.addf %277, %280 : vector<16x16xf32>
    %282 = vector.extract_strided_slice %195 {offsets = [0, 15], sizes = [16, 1], strides = [1, 1]} : vector<16x63xf32> to vector<16x1xf32>
    %283 = vector.broadcast %282 : vector<16x1xf32> to vector<16x16xf32>
    %284 = arith.mulf %283, %217 : vector<16x16xf32>
    %285 = arith.addf %281, %284 : vector<16x16xf32>
    %286 = vector.extract_strided_slice %195 {offsets = [0, 16], sizes = [16, 1], strides = [1, 1]} : vector<16x63xf32> to vector<16x1xf32>
    %287 = vector.broadcast %286 : vector<16x1xf32> to vector<16x16xf32>
    %288 = arith.mulf %287, %220 : vector<16x16xf32>
    %289 = arith.addf %285, %288 : vector<16x16xf32>
    %290 = vector.extract_strided_slice %195 {offsets = [0, 17], sizes = [16, 1], strides = [1, 1]} : vector<16x63xf32> to vector<16x1xf32>
    %291 = vector.broadcast %290 : vector<16x1xf32> to vector<16x16xf32>
    %292 = arith.mulf %291, %223 : vector<16x16xf32>
    %293 = arith.addf %289, %292 : vector<16x16xf32>
    %294 = vector.extract_strided_slice %195 {offsets = [0, 18], sizes = [16, 1], strides = [1, 1]} : vector<16x63xf32> to vector<16x1xf32>
    %295 = vector.broadcast %294 : vector<16x1xf32> to vector<16x16xf32>
    %296 = arith.mulf %295, %199 : vector<16x16xf32>
    %297 = vector.extract_strided_slice %195 {offsets = [0, 19], sizes = [16, 1], strides = [1, 1]} : vector<16x63xf32> to vector<16x1xf32>
    %298 = vector.broadcast %297 : vector<16x1xf32> to vector<16x16xf32>
    %299 = arith.mulf %298, %202 : vector<16x16xf32>
    %300 = arith.addf %296, %299 : vector<16x16xf32>
    %301 = vector.extract_strided_slice %195 {offsets = [0, 20], sizes = [16, 1], strides = [1, 1]} : vector<16x63xf32> to vector<16x1xf32>
    %302 = vector.broadcast %301 : vector<16x1xf32> to vector<16x16xf32>
    %303 = arith.mulf %302, %205 : vector<16x16xf32>
    %304 = arith.addf %300, %303 : vector<16x16xf32>
    %305 = vector.extract_strided_slice %195 {offsets = [0, 21], sizes = [16, 1], strides = [1, 1]} : vector<16x63xf32> to vector<16x1xf32>
    %306 = vector.broadcast %305 : vector<16x1xf32> to vector<16x16xf32>
    %307 = arith.mulf %306, %208 : vector<16x16xf32>
    %308 = arith.addf %304, %307 : vector<16x16xf32>
    %309 = vector.extract_strided_slice %195 {offsets = [0, 22], sizes = [16, 1], strides = [1, 1]} : vector<16x63xf32> to vector<16x1xf32>
    %310 = vector.broadcast %309 : vector<16x1xf32> to vector<16x16xf32>
    %311 = arith.mulf %310, %211 : vector<16x16xf32>
    %312 = arith.addf %308, %311 : vector<16x16xf32>
    %313 = vector.extract_strided_slice %195 {offsets = [0, 23], sizes = [16, 1], strides = [1, 1]} : vector<16x63xf32> to vector<16x1xf32>
    %314 = vector.broadcast %313 : vector<16x1xf32> to vector<16x16xf32>
    %315 = arith.mulf %314, %214 : vector<16x16xf32>
    %316 = arith.addf %312, %315 : vector<16x16xf32>
    %317 = vector.extract_strided_slice %195 {offsets = [0, 24], sizes = [16, 1], strides = [1, 1]} : vector<16x63xf32> to vector<16x1xf32>
    %318 = vector.broadcast %317 : vector<16x1xf32> to vector<16x16xf32>
    %319 = arith.mulf %318, %217 : vector<16x16xf32>
    %320 = arith.addf %316, %319 : vector<16x16xf32>
    %321 = vector.extract_strided_slice %195 {offsets = [0, 25], sizes = [16, 1], strides = [1, 1]} : vector<16x63xf32> to vector<16x1xf32>
    %322 = vector.broadcast %321 : vector<16x1xf32> to vector<16x16xf32>
    %323 = arith.mulf %322, %220 : vector<16x16xf32>
    %324 = arith.addf %320, %323 : vector<16x16xf32>
    %325 = vector.extract_strided_slice %195 {offsets = [0, 26], sizes = [16, 1], strides = [1, 1]} : vector<16x63xf32> to vector<16x1xf32>
    %326 = vector.broadcast %325 : vector<16x1xf32> to vector<16x16xf32>
    %327 = arith.mulf %326, %223 : vector<16x16xf32>
    %328 = arith.addf %324, %327 : vector<16x16xf32>
    %329 = vector.extract_strided_slice %195 {offsets = [0, 27], sizes = [16, 1], strides = [1, 1]} : vector<16x63xf32> to vector<16x1xf32>
    %330 = vector.broadcast %329 : vector<16x1xf32> to vector<16x16xf32>
    %331 = arith.mulf %330, %199 : vector<16x16xf32>
    %332 = vector.extract_strided_slice %195 {offsets = [0, 28], sizes = [16, 1], strides = [1, 1]} : vector<16x63xf32> to vector<16x1xf32>
    %333 = vector.broadcast %332 : vector<16x1xf32> to vector<16x16xf32>
    %334 = arith.mulf %333, %202 : vector<16x16xf32>
    %335 = arith.addf %331, %334 : vector<16x16xf32>
    %336 = vector.extract_strided_slice %195 {offsets = [0, 29], sizes = [16, 1], strides = [1, 1]} : vector<16x63xf32> to vector<16x1xf32>
    %337 = vector.broadcast %336 : vector<16x1xf32> to vector<16x16xf32>
    %338 = arith.mulf %337, %205 : vector<16x16xf32>
    %339 = arith.addf %335, %338 : vector<16x16xf32>
    %340 = vector.extract_strided_slice %195 {offsets = [0, 30], sizes = [16, 1], strides = [1, 1]} : vector<16x63xf32> to vector<16x1xf32>
    %341 = vector.broadcast %340 : vector<16x1xf32> to vector<16x16xf32>
    %342 = arith.mulf %341, %208 : vector<16x16xf32>
    %343 = arith.addf %339, %342 : vector<16x16xf32>
    %344 = vector.extract_strided_slice %195 {offsets = [0, 31], sizes = [16, 1], strides = [1, 1]} : vector<16x63xf32> to vector<16x1xf32>
    %345 = vector.broadcast %344 : vector<16x1xf32> to vector<16x16xf32>
    %346 = arith.mulf %345, %211 : vector<16x16xf32>
    %347 = arith.addf %343, %346 : vector<16x16xf32>
    %348 = vector.extract_strided_slice %195 {offsets = [0, 32], sizes = [16, 1], strides = [1, 1]} : vector<16x63xf32> to vector<16x1xf32>
    %349 = vector.broadcast %348 : vector<16x1xf32> to vector<16x16xf32>
    %350 = arith.mulf %349, %214 : vector<16x16xf32>
    %351 = arith.addf %347, %350 : vector<16x16xf32>
    %352 = vector.extract_strided_slice %195 {offsets = [0, 33], sizes = [16, 1], strides = [1, 1]} : vector<16x63xf32> to vector<16x1xf32>
    %353 = vector.broadcast %352 : vector<16x1xf32> to vector<16x16xf32>
    %354 = arith.mulf %353, %217 : vector<16x16xf32>
    %355 = arith.addf %351, %354 : vector<16x16xf32>
    %356 = vector.extract_strided_slice %195 {offsets = [0, 34], sizes = [16, 1], strides = [1, 1]} : vector<16x63xf32> to vector<16x1xf32>
    %357 = vector.broadcast %356 : vector<16x1xf32> to vector<16x16xf32>
    %358 = arith.mulf %357, %220 : vector<16x16xf32>
    %359 = arith.addf %355, %358 : vector<16x16xf32>
    %360 = vector.extract_strided_slice %195 {offsets = [0, 35], sizes = [16, 1], strides = [1, 1]} : vector<16x63xf32> to vector<16x1xf32>
    %361 = vector.broadcast %360 : vector<16x1xf32> to vector<16x16xf32>
    %362 = arith.mulf %361, %223 : vector<16x16xf32>
    %363 = arith.addf %359, %362 : vector<16x16xf32>
    %364 = vector.extract_strided_slice %195 {offsets = [0, 36], sizes = [16, 1], strides = [1, 1]} : vector<16x63xf32> to vector<16x1xf32>
    %365 = vector.broadcast %364 : vector<16x1xf32> to vector<16x16xf32>
    %366 = arith.mulf %365, %199 : vector<16x16xf32>
    %367 = vector.extract_strided_slice %195 {offsets = [0, 37], sizes = [16, 1], strides = [1, 1]} : vector<16x63xf32> to vector<16x1xf32>
    %368 = vector.broadcast %367 : vector<16x1xf32> to vector<16x16xf32>
    %369 = arith.mulf %368, %202 : vector<16x16xf32>
    %370 = arith.addf %366, %369 : vector<16x16xf32>
    %371 = vector.extract_strided_slice %195 {offsets = [0, 38], sizes = [16, 1], strides = [1, 1]} : vector<16x63xf32> to vector<16x1xf32>
    %372 = vector.broadcast %371 : vector<16x1xf32> to vector<16x16xf32>
    %373 = arith.mulf %372, %205 : vector<16x16xf32>
    %374 = arith.addf %370, %373 : vector<16x16xf32>
    %375 = vector.extract_strided_slice %195 {offsets = [0, 39], sizes = [16, 1], strides = [1, 1]} : vector<16x63xf32> to vector<16x1xf32>
    %376 = vector.broadcast %375 : vector<16x1xf32> to vector<16x16xf32>
    %377 = arith.mulf %376, %208 : vector<16x16xf32>
    %378 = arith.addf %374, %377 : vector<16x16xf32>
    %379 = vector.extract_strided_slice %195 {offsets = [0, 40], sizes = [16, 1], strides = [1, 1]} : vector<16x63xf32> to vector<16x1xf32>
    %380 = vector.broadcast %379 : vector<16x1xf32> to vector<16x16xf32>
    %381 = arith.mulf %380, %211 : vector<16x16xf32>
    %382 = arith.addf %378, %381 : vector<16x16xf32>
    %383 = vector.extract_strided_slice %195 {offsets = [0, 41], sizes = [16, 1], strides = [1, 1]} : vector<16x63xf32> to vector<16x1xf32>
    %384 = vector.broadcast %383 : vector<16x1xf32> to vector<16x16xf32>
    %385 = arith.mulf %384, %214 : vector<16x16xf32>
    %386 = arith.addf %382, %385 : vector<16x16xf32>
    %387 = vector.extract_strided_slice %195 {offsets = [0, 42], sizes = [16, 1], strides = [1, 1]} : vector<16x63xf32> to vector<16x1xf32>
    %388 = vector.broadcast %387 : vector<16x1xf32> to vector<16x16xf32>
    %389 = arith.mulf %388, %217 : vector<16x16xf32>
    %390 = arith.addf %386, %389 : vector<16x16xf32>
    %391 = vector.extract_strided_slice %195 {offsets = [0, 43], sizes = [16, 1], strides = [1, 1]} : vector<16x63xf32> to vector<16x1xf32>
    %392 = vector.broadcast %391 : vector<16x1xf32> to vector<16x16xf32>
    %393 = arith.mulf %392, %220 : vector<16x16xf32>
    %394 = arith.addf %390, %393 : vector<16x16xf32>
    %395 = vector.extract_strided_slice %195 {offsets = [0, 44], sizes = [16, 1], strides = [1, 1]} : vector<16x63xf32> to vector<16x1xf32>
    %396 = vector.broadcast %395 : vector<16x1xf32> to vector<16x16xf32>
    %397 = arith.mulf %396, %223 : vector<16x16xf32>
    %398 = arith.addf %394, %397 : vector<16x16xf32>
    %399 = vector.extract_strided_slice %195 {offsets = [0, 45], sizes = [16, 1], strides = [1, 1]} : vector<16x63xf32> to vector<16x1xf32>
    %400 = vector.broadcast %399 : vector<16x1xf32> to vector<16x16xf32>
    %401 = arith.mulf %400, %199 : vector<16x16xf32>
    %402 = vector.extract_strided_slice %195 {offsets = [0, 46], sizes = [16, 1], strides = [1, 1]} : vector<16x63xf32> to vector<16x1xf32>
    %403 = vector.broadcast %402 : vector<16x1xf32> to vector<16x16xf32>
    %404 = arith.mulf %403, %202 : vector<16x16xf32>
    %405 = arith.addf %401, %404 : vector<16x16xf32>
    %406 = vector.extract_strided_slice %195 {offsets = [0, 47], sizes = [16, 1], strides = [1, 1]} : vector<16x63xf32> to vector<16x1xf32>
    %407 = vector.broadcast %406 : vector<16x1xf32> to vector<16x16xf32>
    %408 = arith.mulf %407, %205 : vector<16x16xf32>
    %409 = arith.addf %405, %408 : vector<16x16xf32>
    %410 = vector.extract_strided_slice %195 {offsets = [0, 48], sizes = [16, 1], strides = [1, 1]} : vector<16x63xf32> to vector<16x1xf32>
    %411 = vector.broadcast %410 : vector<16x1xf32> to vector<16x16xf32>
    %412 = arith.mulf %411, %208 : vector<16x16xf32>
    %413 = arith.addf %409, %412 : vector<16x16xf32>
    %414 = vector.extract_strided_slice %195 {offsets = [0, 49], sizes = [16, 1], strides = [1, 1]} : vector<16x63xf32> to vector<16x1xf32>
    %415 = vector.broadcast %414 : vector<16x1xf32> to vector<16x16xf32>
    %416 = arith.mulf %415, %211 : vector<16x16xf32>
    %417 = arith.addf %413, %416 : vector<16x16xf32>
    %418 = vector.extract_strided_slice %195 {offsets = [0, 50], sizes = [16, 1], strides = [1, 1]} : vector<16x63xf32> to vector<16x1xf32>
    %419 = vector.broadcast %418 : vector<16x1xf32> to vector<16x16xf32>
    %420 = arith.mulf %419, %214 : vector<16x16xf32>
    %421 = arith.addf %417, %420 : vector<16x16xf32>
    %422 = vector.extract_strided_slice %195 {offsets = [0, 51], sizes = [16, 1], strides = [1, 1]} : vector<16x63xf32> to vector<16x1xf32>
    %423 = vector.broadcast %422 : vector<16x1xf32> to vector<16x16xf32>
    %424 = arith.mulf %423, %217 : vector<16x16xf32>
    %425 = arith.addf %421, %424 : vector<16x16xf32>
    %426 = vector.extract_strided_slice %195 {offsets = [0, 52], sizes = [16, 1], strides = [1, 1]} : vector<16x63xf32> to vector<16x1xf32>
    %427 = vector.broadcast %426 : vector<16x1xf32> to vector<16x16xf32>
    %428 = arith.mulf %427, %220 : vector<16x16xf32>
    %429 = arith.addf %425, %428 : vector<16x16xf32>
    %430 = vector.extract_strided_slice %195 {offsets = [0, 53], sizes = [16, 1], strides = [1, 1]} : vector<16x63xf32> to vector<16x1xf32>
    %431 = vector.broadcast %430 : vector<16x1xf32> to vector<16x16xf32>
    %432 = arith.mulf %431, %223 : vector<16x16xf32>
    %433 = arith.addf %429, %432 : vector<16x16xf32>
    %434 = vector.extract_strided_slice %195 {offsets = [0, 54], sizes = [16, 1], strides = [1, 1]} : vector<16x63xf32> to vector<16x1xf32>
    %435 = vector.broadcast %434 : vector<16x1xf32> to vector<16x16xf32>
    %436 = arith.mulf %435, %199 : vector<16x16xf32>
    %437 = vector.extract_strided_slice %195 {offsets = [0, 55], sizes = [16, 1], strides = [1, 1]} : vector<16x63xf32> to vector<16x1xf32>
    %438 = vector.broadcast %437 : vector<16x1xf32> to vector<16x16xf32>
    %439 = arith.mulf %438, %202 : vector<16x16xf32>
    %440 = arith.addf %436, %439 : vector<16x16xf32>
    %441 = vector.extract_strided_slice %195 {offsets = [0, 56], sizes = [16, 1], strides = [1, 1]} : vector<16x63xf32> to vector<16x1xf32>
    %442 = vector.broadcast %441 : vector<16x1xf32> to vector<16x16xf32>
    %443 = arith.mulf %442, %205 : vector<16x16xf32>
    %444 = arith.addf %440, %443 : vector<16x16xf32>
    %445 = vector.extract_strided_slice %195 {offsets = [0, 57], sizes = [16, 1], strides = [1, 1]} : vector<16x63xf32> to vector<16x1xf32>
    %446 = vector.broadcast %445 : vector<16x1xf32> to vector<16x16xf32>
    %447 = arith.mulf %446, %208 : vector<16x16xf32>
    %448 = arith.addf %444, %447 : vector<16x16xf32>
    %449 = vector.extract_strided_slice %195 {offsets = [0, 58], sizes = [16, 1], strides = [1, 1]} : vector<16x63xf32> to vector<16x1xf32>
    %450 = vector.broadcast %449 : vector<16x1xf32> to vector<16x16xf32>
    %451 = arith.mulf %450, %211 : vector<16x16xf32>
    %452 = arith.addf %448, %451 : vector<16x16xf32>
    %453 = vector.extract_strided_slice %195 {offsets = [0, 59], sizes = [16, 1], strides = [1, 1]} : vector<16x63xf32> to vector<16x1xf32>
    %454 = vector.broadcast %453 : vector<16x1xf32> to vector<16x16xf32>
    %455 = arith.mulf %454, %214 : vector<16x16xf32>
    %456 = arith.addf %452, %455 : vector<16x16xf32>
    %457 = vector.extract_strided_slice %195 {offsets = [0, 60], sizes = [16, 1], strides = [1, 1]} : vector<16x63xf32> to vector<16x1xf32>
    %458 = vector.broadcast %457 : vector<16x1xf32> to vector<16x16xf32>
    %459 = arith.mulf %458, %217 : vector<16x16xf32>
    %460 = arith.addf %456, %459 : vector<16x16xf32>
    %461 = vector.extract_strided_slice %195 {offsets = [0, 61], sizes = [16, 1], strides = [1, 1]} : vector<16x63xf32> to vector<16x1xf32>
    %462 = vector.broadcast %461 : vector<16x1xf32> to vector<16x16xf32>
    %463 = arith.mulf %462, %220 : vector<16x16xf32>
    %464 = arith.addf %460, %463 : vector<16x16xf32>
    %465 = vector.extract_strided_slice %195 {offsets = [0, 62], sizes = [16, 1], strides = [1, 1]} : vector<16x63xf32> to vector<16x1xf32>
    %466 = vector.broadcast %465 : vector<16x1xf32> to vector<16x16xf32>
    %467 = arith.mulf %466, %223 : vector<16x16xf32>
    %468 = arith.addf %464, %467 : vector<16x16xf32>
    %469 = tpu.concatenate %258, %293, %328, %363, %398, %433, %468 in 1 : vector<16x16xf32>, vector<16x16xf32>, vector<16x16xf32>, vector<16x16xf32>, vector<16x16xf32>, vector<16x16xf32>, vector<16x16xf32> -> vector<16x112xf32>
    %c0_136 = arith.constant 0 : index
    %c0_137 = arith.constant 0 : index
    %470 = vector.load %arg5[%c0_136, %c0_137] : memref<16x16xf32, #tpu.memory_space<vmem>>, vector<16x16xf32>
    %c0_138 = arith.constant 0 : index
    %c0_139 = arith.constant 0 : index
    %471 = vector.load %arg7[%c0_138, %c0_139] : memref<16x32xf32, #tpu.memory_space<vmem>>, vector<16x32xf32>
    %cst = arith.constant dense<0.000000e+00> : vector<16x32xf32>
    %472 = tpu.matmul %470, %471, %cst {dimension_numbers = #tpu.dot_dimension_numbers<[1], [0], [0], [1], [0, 0, 1, 1], [], []>, precision = #tpu.contract_precision<fp32>} : vector<16x16xf32>, vector<16x32xf32>, vector<16x32xf32> -> vector<16x32xf32>
    %c0_140 = arith.constant 0 : index
    %c0_141 = arith.constant 0 : index
    %473 = vector.load %arg8[%c0_140, %c0_141] : memref<1x32xf32, #tpu.memory_space<vmem>>, vector<1x32xf32>
    %474 = vector.broadcast %473 : vector<1x32xf32> to vector<16x32xf32>
    %475 = arith.addf %472, %474 : vector<16x32xf32>
    %c0_142 = arith.constant 0 : index
    %c0_143 = arith.constant 0 : index
    %476 = vector.load %arg9[%c0_142, %c0_143] : memref<1x32xf32, #tpu.memory_space<vmem>>, vector<1x32xf32>
    %c0_144 = arith.constant 0 : index
    %c0_145 = arith.constant 0 : index
    %477 = vector.load %arg10[%c0_144, %c0_145] : memref<1x32xf32, #tpu.memory_space<vmem>>, vector<1x32xf32>
    %cst_146 = arith.constant dense<0.000000e+00> : vector<16xf32>
    %478 = vector.multi_reduction <add>, %475, %cst_146 [1] : vector<16x32xf32> to vector<16xf32>
    %479 = vector.shape_cast %478 : vector<16xf32> to vector<16x1xf32>
    %cst_147 = arith.constant 3.200000e+01 : f32
    %480 = vector.broadcast %cst_147 : f32 to vector<16x1xf32>
    %481 = arith.divf %479, %480 : vector<16x1xf32>
    %482 = vector.broadcast %481 : vector<16x1xf32> to vector<16x32xf32>
    %483 = arith.subf %475, %482 : vector<16x32xf32>
    %484 = arith.mulf %483, %483 : vector<16x32xf32>
    %cst_148 = arith.constant dense<0.000000e+00> : vector<16xf32>
    %485 = vector.multi_reduction <add>, %484, %cst_148 [1] : vector<16x32xf32> to vector<16xf32>
    %486 = vector.shape_cast %485 : vector<16xf32> to vector<16x1xf32>
    %cst_149 = arith.constant 3.200000e+01 : f32
    %487 = vector.broadcast %cst_149 : f32 to vector<16x1xf32>
    %488 = arith.divf %486, %487 : vector<16x1xf32>
    %489 = vector.broadcast %481 : vector<16x1xf32> to vector<16x32xf32>
    %490 = arith.subf %475, %489 : vector<16x32xf32>
    %cst_150 = arith.constant 9.99999974E-6 : f32
    %491 = vector.broadcast %cst_150 : f32 to vector<16x1xf32>
    %492 = arith.addf %488, %491 : vector<16x1xf32>
    %493 = math.rsqrt %492 : vector<16x1xf32>
    %494 = vector.broadcast %493 : vector<16x1xf32> to vector<16x32xf32>
    %495 = arith.mulf %490, %494 : vector<16x32xf32>
    %496 = vector.broadcast %476 : vector<1x32xf32> to vector<16x32xf32>
    %497 = arith.mulf %495, %496 : vector<16x32xf32>
    %498 = vector.broadcast %477 : vector<1x32xf32> to vector<16x32xf32>
    %499 = arith.addf %497, %498 : vector<16x32xf32>
    %500 = arith.negf %499 : vector<16x32xf32>
    %501 = math.exp %500 : vector<16x32xf32>
    %cst_151 = arith.constant 1.000000e+00 : f32
    %502 = vector.broadcast %cst_151 : f32 to vector<16x32xf32>
    %503 = arith.addf %502, %501 : vector<16x32xf32>
    %504 = arith.divf %502, %503 : vector<16x32xf32>
    %505 = arith.mulf %499, %504 : vector<16x32xf32>
    %c0_152 = arith.constant 0 : index
    %c0_153 = arith.constant 0 : index
    %506 = vector.load %arg11[%c0_152, %c0_153] : memref<32x32xf32, #tpu.memory_space<vmem>>, vector<32x32xf32>
    %cst_154 = arith.constant dense<0.000000e+00> : vector<16x32xf32>
    %507 = tpu.matmul %505, %506, %cst_154 {dimension_numbers = #tpu.dot_dimension_numbers<[1], [0], [0], [1], [0, 0, 1, 1], [], []>, precision = #tpu.contract_precision<fp32>} : vector<16x32xf32>, vector<32x32xf32>, vector<16x32xf32> -> vector<16x32xf32>
    %c0_155 = arith.constant 0 : index
    %c0_156 = arith.constant 0 : index
    %508 = vector.load %arg12[%c0_155, %c0_156] : memref<1x32xf32, #tpu.memory_space<vmem>>, vector<1x32xf32>
    %509 = vector.broadcast %508 : vector<1x32xf32> to vector<16x32xf32>
    %510 = arith.addf %507, %509 : vector<16x32xf32>
    %c0_157 = arith.constant 0 : index
    %c0_158 = arith.constant 0 : index
    %511 = vector.load %arg13[%c0_157, %c0_158] : memref<1x32xf32, #tpu.memory_space<vmem>>, vector<1x32xf32>
    %c0_159 = arith.constant 0 : index
    %c0_160 = arith.constant 0 : index
    %512 = vector.load %arg14[%c0_159, %c0_160] : memref<1x32xf32, #tpu.memory_space<vmem>>, vector<1x32xf32>
    %cst_161 = arith.constant dense<0.000000e+00> : vector<16xf32>
    %513 = vector.multi_reduction <add>, %510, %cst_161 [1] : vector<16x32xf32> to vector<16xf32>
    %514 = vector.shape_cast %513 : vector<16xf32> to vector<16x1xf32>
    %cst_162 = arith.constant 3.200000e+01 : f32
    %515 = vector.broadcast %cst_162 : f32 to vector<16x1xf32>
    %516 = arith.divf %514, %515 : vector<16x1xf32>
    %517 = vector.broadcast %516 : vector<16x1xf32> to vector<16x32xf32>
    %518 = arith.subf %510, %517 : vector<16x32xf32>
    %519 = arith.mulf %518, %518 : vector<16x32xf32>
    %cst_163 = arith.constant dense<0.000000e+00> : vector<16xf32>
    %520 = vector.multi_reduction <add>, %519, %cst_163 [1] : vector<16x32xf32> to vector<16xf32>
    %521 = vector.shape_cast %520 : vector<16xf32> to vector<16x1xf32>
    %cst_164 = arith.constant 3.200000e+01 : f32
    %522 = vector.broadcast %cst_164 : f32 to vector<16x1xf32>
    %523 = arith.divf %521, %522 : vector<16x1xf32>
    %524 = vector.broadcast %516 : vector<16x1xf32> to vector<16x32xf32>
    %525 = arith.subf %510, %524 : vector<16x32xf32>
    %cst_165 = arith.constant 9.99999974E-6 : f32
    %526 = vector.broadcast %cst_165 : f32 to vector<16x1xf32>
    %527 = arith.addf %523, %526 : vector<16x1xf32>
    %528 = math.rsqrt %527 : vector<16x1xf32>
    %529 = vector.broadcast %528 : vector<16x1xf32> to vector<16x32xf32>
    %530 = arith.mulf %525, %529 : vector<16x32xf32>
    %531 = vector.broadcast %511 : vector<1x32xf32> to vector<16x32xf32>
    %532 = arith.mulf %530, %531 : vector<16x32xf32>
    %533 = vector.broadcast %512 : vector<1x32xf32> to vector<16x32xf32>
    %534 = arith.addf %532, %533 : vector<16x32xf32>
    %535 = arith.negf %534 : vector<16x32xf32>
    %536 = math.exp %535 : vector<16x32xf32>
    %cst_166 = arith.constant 1.000000e+00 : f32
    %537 = vector.broadcast %cst_166 : f32 to vector<16x32xf32>
    %538 = arith.addf %537, %536 : vector<16x32xf32>
    %539 = arith.divf %537, %538 : vector<16x32xf32>
    %540 = arith.mulf %534, %539 : vector<16x32xf32>
    %c0_167 = arith.constant 0 : index
    %c0_168 = arith.constant 0 : index
    %541 = vector.load %arg15[%c0_167, %c0_168] : memref<32x80xf32, #tpu.memory_space<vmem>>, vector<32x80xf32>
    %cst_169 = arith.constant dense<0.000000e+00> : vector<16x80xf32>
    %542 = tpu.matmul %540, %541, %cst_169 {dimension_numbers = #tpu.dot_dimension_numbers<[1], [0], [0], [1], [0, 0, 1, 1], [], []>, precision = #tpu.contract_precision<fp32>} : vector<16x32xf32>, vector<32x80xf32>, vector<16x80xf32> -> vector<16x80xf32>
    %c0_170 = arith.constant 0 : index
    %c0_171 = arith.constant 0 : index
    %543 = vector.load %arg16[%c0_170, %c0_171] : memref<1x80xf32, #tpu.memory_space<vmem>>, vector<1x80xf32>
    %544 = vector.broadcast %543 : vector<1x80xf32> to vector<16x80xf32>
    %545 = arith.addf %542, %544 : vector<16x80xf32>
    %546 = vector.extract_strided_slice %469 {offsets = [0, 0], sizes = [16, 48], strides = [1, 1]} : vector<16x112xf32> to vector<16x48xf32>
    %547 = vector.extract_strided_slice %545 {offsets = [0, 0], sizes = [16, 48], strides = [1, 1]} : vector<16x80xf32> to vector<16x48xf32>
    %548 = arith.mulf %546, %547 : vector<16x48xf32>
    %c0_172 = arith.constant 0 : index
    %c0_173 = arith.constant 0 : index
    %549 = vector.load %arg17[%c0_172, %c0_173] : memref<48x80xf32, #tpu.memory_space<vmem>>, vector<48x80xf32>
    %cst_174 = arith.constant dense<0.000000e+00> : vector<16x80xf32>
    %550 = tpu.matmul %548, %549, %cst_174 {dimension_numbers = #tpu.dot_dimension_numbers<[1], [0], [0], [1], [0, 0, 1, 1], [], []>, precision = #tpu.contract_precision<fp32>} : vector<16x48xf32>, vector<48x80xf32>, vector<16x80xf32> -> vector<16x80xf32>
    %c0_175 = arith.constant 0 : index
    %c0_176 = arith.constant 0 : index
    %551 = vector.load %arg18[%c0_175, %c0_176] : memref<1x80xf32, #tpu.memory_space<vmem>>, vector<1x80xf32>
    %552 = vector.broadcast %551 : vector<1x80xf32> to vector<16x80xf32>
    %553 = arith.addf %550, %552 : vector<16x80xf32>
    %554 = vector.extract_strided_slice %553 {offsets = [0, 0], sizes = [16, 32], strides = [1, 1]} : vector<16x80xf32> to vector<16x32xf32>
    %555 = arith.negf %554 : vector<16x32xf32>
    %556 = math.exp %555 : vector<16x32xf32>
    %cst_177 = arith.constant 1.000000e+00 : f32
    %557 = vector.broadcast %cst_177 : f32 to vector<16x32xf32>
    %558 = arith.addf %557, %556 : vector<16x32xf32>
    %559 = arith.divf %557, %558 : vector<16x32xf32>
    %560 = vector.extract_strided_slice %553 {offsets = [0, 32], sizes = [16, 48], strides = [1, 1]} : vector<16x80xf32> to vector<16x48xf32>
    %561 = vector.extract_strided_slice %545 {offsets = [0, 48], sizes = [16, 32], strides = [1, 1]} : vector<16x80xf32> to vector<16x32xf32>
    %562 = vector.extract_strided_slice %469 {offsets = [0, 48], sizes = [16, 32], strides = [1, 1]} : vector<16x112xf32> to vector<16x32xf32>
    %563 = arith.mulf %562, %561 : vector<16x32xf32>
    %c0_178 = arith.constant 0 : index
    %c0_179 = arith.constant 0 : index
    %564 = vector.load %arg19[%c0_178, %c0_179] : memref<32x64xf32, #tpu.memory_space<vmem>>, vector<32x64xf32>
    %cst_180 = arith.constant dense<0.000000e+00> : vector<16x64xf32>
    %565 = tpu.matmul %563, %564, %cst_180 {dimension_numbers = #tpu.dot_dimension_numbers<[1], [0], [0], [1], [0, 0, 1, 1], [], []>, precision = #tpu.contract_precision<fp32>} : vector<16x32xf32>, vector<32x64xf32>, vector<16x64xf32> -> vector<16x64xf32>
    %566 = vector.extract_strided_slice %469 {offsets = [0, 80], sizes = [16, 32], strides = [1, 1]} : vector<16x112xf32> to vector<16x32xf32>
    %567 = arith.mulf %566, %561 : vector<16x32xf32>
    %c0_181 = arith.constant 0 : index
    %c0_182 = arith.constant 0 : index
    %568 = vector.load %arg19[%c0_181, %c0_182] : memref<32x64xf32, #tpu.memory_space<vmem>>, vector<32x64xf32>
    %cst_183 = arith.constant dense<0.000000e+00> : vector<16x64xf32>
    %569 = tpu.matmul %567, %568, %cst_183 {dimension_numbers = #tpu.dot_dimension_numbers<[1], [0], [0], [1], [0, 0, 1, 1], [], []>, precision = #tpu.contract_precision<fp32>} : vector<16x32xf32>, vector<32x64xf32>, vector<16x64xf32> -> vector<16x64xf32>
    %570 = vector.extract_strided_slice %565 {offsets = [0, 0], sizes = [16, 32], strides = [1, 1]} : vector<16x64xf32> to vector<16x32xf32>
    %571 = vector.extract_strided_slice %569 {offsets = [0, 32], sizes = [16, 32], strides = [1, 1]} : vector<16x64xf32> to vector<16x32xf32>
    %572 = arith.subf %570, %571 : vector<16x32xf32>
    %573 = vector.extract_strided_slice %569 {offsets = [0, 0], sizes = [16, 32], strides = [1, 1]} : vector<16x64xf32> to vector<16x32xf32>
    %574 = vector.extract_strided_slice %565 {offsets = [0, 32], sizes = [16, 32], strides = [1, 1]} : vector<16x64xf32> to vector<16x32xf32>
    %575 = arith.addf %573, %574 : vector<16x32xf32>
    %576 = tpu.concatenate %560, %572, %575 in 1 : vector<16x48xf32>, vector<16x32xf32>, vector<16x32xf32> -> vector<16x112xf32>
    %577 = vector.extract_strided_slice %559 {offsets = [0, 0], sizes = [16, 16], strides = [1, 1]} : vector<16x32xf32> to vector<16x16xf32>
    %578 = vector.extract_strided_slice %559 {offsets = [0, 16], sizes = [16, 16], strides = [1, 1]} : vector<16x32xf32> to vector<16x16xf32>
    %579 = vector.extract_strided_slice %559 {offsets = [0, 0], sizes = [16, 16], strides = [1, 1]} : vector<16x32xf32> to vector<16x16xf32>
    %580 = vector.extract_strided_slice %559 {offsets = [0, 16], sizes = [16, 16], strides = [1, 1]} : vector<16x32xf32> to vector<16x16xf32>
    %581 = vector.extract_strided_slice %559 {offsets = [0, 0], sizes = [16, 16], strides = [1, 1]} : vector<16x32xf32> to vector<16x16xf32>
    %582 = vector.extract_strided_slice %559 {offsets = [0, 16], sizes = [16, 16], strides = [1, 1]} : vector<16x32xf32> to vector<16x16xf32>
    %583 = tpu.concatenate %577, %578, %579, %580, %581, %582 in 1 : vector<16x16xf32>, vector<16x16xf32>, vector<16x16xf32>, vector<16x16xf32>, vector<16x16xf32>, vector<16x16xf32> -> vector<16x96xf32>
    %584 = vector.extract_strided_slice %576 {offsets = [0, 0], sizes = [16, 16], strides = [1, 1]} : vector<16x112xf32> to vector<16x16xf32>
    %585 = arith.negf %584 : vector<16x16xf32>
    %586 = math.exp %585 : vector<16x16xf32>
    %cst_184 = arith.constant 1.000000e+00 : f32
    %587 = vector.broadcast %cst_184 : f32 to vector<16x16xf32>
    %588 = arith.addf %587, %586 : vector<16x16xf32>
    %589 = arith.divf %587, %588 : vector<16x16xf32>
    %590 = arith.mulf %584, %589 : vector<16x16xf32>
    %591 = vector.extract_strided_slice %576 {offsets = [0, 16], sizes = [16, 96], strides = [1, 1]} : vector<16x112xf32> to vector<16x96xf32>
    %592 = arith.mulf %591, %583 : vector<16x96xf32>
    %593 = tpu.concatenate %590, %592 in 1 : vector<16x16xf32>, vector<16x96xf32> -> vector<16x112xf32>
    %594 = vector.extract_strided_slice %593 {offsets = [0, 0], sizes = [16, 48], strides = [1, 1]} : vector<16x112xf32> to vector<16x48xf32>
    %c0_185 = arith.constant 0 : index
    %c0_186 = arith.constant 0 : index
    %595 = vector.load %arg20[%c0_185, %c0_186] : memref<48x24xf32, #tpu.memory_space<vmem>>, vector<48x24xf32>
    %cst_187 = arith.constant dense<0.000000e+00> : vector<16x24xf32>
    %596 = tpu.matmul %594, %595, %cst_187 {dimension_numbers = #tpu.dot_dimension_numbers<[1], [0], [0], [1], [0, 0, 1, 1], [], []>, precision = #tpu.contract_precision<fp32>} : vector<16x48xf32>, vector<48x24xf32>, vector<16x24xf32> -> vector<16x24xf32>
    %c0_188 = arith.constant 0 : index
    %c0_189 = arith.constant 0 : index
    %597 = vector.load %arg21[%c0_188, %c0_189] : memref<1x24xf32, #tpu.memory_space<vmem>>, vector<1x24xf32>
    %598 = vector.broadcast %597 : vector<1x24xf32> to vector<16x24xf32>
    %599 = arith.addf %596, %598 : vector<16x24xf32>
    %600 = vector.extract_strided_slice %593 {offsets = [0, 48], sizes = [16, 32], strides = [1, 1]} : vector<16x112xf32> to vector<16x32xf32>
    %c0_190 = arith.constant 0 : index
    %c0_191 = arith.constant 0 : index
    %601 = vector.load %arg22[%c0_190, %c0_191] : memref<32x32xf32, #tpu.memory_space<vmem>>, vector<32x32xf32>
    %cst_192 = arith.constant dense<0.000000e+00> : vector<16x32xf32>
    %602 = tpu.matmul %600, %601, %cst_192 {dimension_numbers = #tpu.dot_dimension_numbers<[1], [0], [0], [1], [0, 0, 1, 1], [], []>, precision = #tpu.contract_precision<fp32>} : vector<16x32xf32>, vector<32x32xf32>, vector<16x32xf32> -> vector<16x32xf32>
    %603 = vector.extract_strided_slice %593 {offsets = [0, 80], sizes = [16, 32], strides = [1, 1]} : vector<16x112xf32> to vector<16x32xf32>
    %c0_193 = arith.constant 0 : index
    %c0_194 = arith.constant 0 : index
    %604 = vector.load %arg22[%c0_193, %c0_194] : memref<32x32xf32, #tpu.memory_space<vmem>>, vector<32x32xf32>
    %cst_195 = arith.constant dense<0.000000e+00> : vector<16x32xf32>
    %605 = tpu.matmul %603, %604, %cst_195 {dimension_numbers = #tpu.dot_dimension_numbers<[1], [0], [0], [1], [0, 0, 1, 1], [], []>, precision = #tpu.contract_precision<fp32>} : vector<16x32xf32>, vector<32x32xf32>, vector<16x32xf32> -> vector<16x32xf32>
    %606 = vector.extract_strided_slice %602 {offsets = [0, 0], sizes = [16, 16], strides = [1, 1]} : vector<16x32xf32> to vector<16x16xf32>
    %607 = vector.extract_strided_slice %605 {offsets = [0, 16], sizes = [16, 16], strides = [1, 1]} : vector<16x32xf32> to vector<16x16xf32>
    %608 = arith.subf %606, %607 : vector<16x16xf32>
    %609 = vector.extract_strided_slice %605 {offsets = [0, 0], sizes = [16, 16], strides = [1, 1]} : vector<16x32xf32> to vector<16x16xf32>
    %610 = vector.extract_strided_slice %602 {offsets = [0, 16], sizes = [16, 16], strides = [1, 1]} : vector<16x32xf32> to vector<16x16xf32>
    %611 = arith.addf %609, %610 : vector<16x16xf32>
    %612 = tpu.concatenate %599, %608, %611 in 1 : vector<16x24xf32>, vector<16x16xf32>, vector<16x16xf32> -> vector<16x56xf32>
    %c0_196 = arith.constant 0 : index
    %c0_197 = arith.constant 0 : index
    %613 = vector.load %arg6[%c0_196, %c0_197] : memref<16x1xf32, #tpu.memory_space<vmem>>, vector<16x1xf32>
    %cst_198 = arith.constant 5.000000e+00 : f32
    %614 = vector.broadcast %cst_198 : f32 to vector<16x1xf32>
    %615 = arith.divf %613, %614 : vector<16x1xf32>
    %616 = arith.mulf %615, %615 : vector<16x1xf32>
    %617 = arith.mulf %616, %615 : vector<16x1xf32>
    %618 = arith.mulf %617, %615 : vector<16x1xf32>
    %619 = arith.mulf %618, %615 : vector<16x1xf32>
    %cst_199 = arith.constant -2.100000e+01 : f32
    %620 = vector.broadcast %cst_199 : f32 to vector<16x1xf32>
    %621 = arith.mulf %620, %619 : vector<16x1xf32>
    %cst_200 = arith.constant 1.000000e+00 : f32
    %622 = vector.broadcast %cst_200 : f32 to vector<16x1xf32>
    %623 = arith.addf %622, %621 : vector<16x1xf32>
    %cst_201 = arith.constant 3.500000e+01 : f32
    %624 = vector.broadcast %cst_201 : f32 to vector<16x1xf32>
    %625 = arith.mulf %624, %619 : vector<16x1xf32>
    %626 = arith.mulf %625, %615 : vector<16x1xf32>
    %627 = arith.addf %623, %626 : vector<16x1xf32>
    %cst_202 = arith.constant -1.500000e+01 : f32
    %628 = vector.broadcast %cst_202 : f32 to vector<16x1xf32>
    %629 = arith.mulf %628, %619 : vector<16x1xf32>
    %630 = arith.mulf %629, %615 : vector<16x1xf32>
    %631 = arith.mulf %630, %615 : vector<16x1xf32>
    %632 = arith.addf %627, %631 : vector<16x1xf32>
    %cst_203 = arith.constant 1.000000e+00 : f32
    %633 = vector.broadcast %cst_203 : f32 to vector<16x1xf32>
    %634 = arith.cmpf olt, %615, %633 : vector<16x1xf32>
    %cst_204 = arith.constant 0.000000e+00 : f32
    %635 = vector.broadcast %cst_204 : f32 to vector<16x1xf32>
    %636 = arith.select %634, %632, %635 : vector<16x1xi1>, vector<16x1xf32>
    %637 = vector.broadcast %636 : vector<16x1xf32> to vector<16x56xf32>
    %638 = arith.mulf %612, %637 : vector<16x56xf32>
    %639 = vector.extract_strided_slice %196 {offsets = [0, 0], sizes = [16, 1], strides = [1, 1]} : vector<16x63xf32> to vector<16x1xf32>
    %640 = vector.extract_strided_slice %638 {offsets = [0, 0], sizes = [16, 8], strides = [1, 1]} : vector<16x56xf32> to vector<16x8xf32>
    %641 = vector.broadcast %639 : vector<16x1xf32> to vector<16x8xf32>
    %642 = arith.mulf %641, %640 : vector<16x8xf32>
    %643 = vector.extract_strided_slice %196 {offsets = [0, 1], sizes = [16, 1], strides = [1, 1]} : vector<16x63xf32> to vector<16x1xf32>
    %644 = vector.extract_strided_slice %638 {offsets = [0, 8], sizes = [16, 8], strides = [1, 1]} : vector<16x56xf32> to vector<16x8xf32>
    %645 = vector.broadcast %643 : vector<16x1xf32> to vector<16x8xf32>
    %646 = arith.mulf %645, %644 : vector<16x8xf32>
    %647 = arith.addf %642, %646 : vector<16x8xf32>
    %648 = vector.extract_strided_slice %196 {offsets = [0, 2], sizes = [16, 1], strides = [1, 1]} : vector<16x63xf32> to vector<16x1xf32>
    %649 = vector.extract_strided_slice %638 {offsets = [0, 16], sizes = [16, 8], strides = [1, 1]} : vector<16x56xf32> to vector<16x8xf32>
    %650 = vector.broadcast %648 : vector<16x1xf32> to vector<16x8xf32>
    %651 = arith.mulf %650, %649 : vector<16x8xf32>
    %652 = arith.addf %647, %651 : vector<16x8xf32>
    %653 = vector.extract_strided_slice %196 {offsets = [0, 3], sizes = [16, 1], strides = [1, 1]} : vector<16x63xf32> to vector<16x1xf32>
    %654 = vector.extract_strided_slice %638 {offsets = [0, 24], sizes = [16, 8], strides = [1, 1]} : vector<16x56xf32> to vector<16x8xf32>
    %655 = vector.broadcast %653 : vector<16x1xf32> to vector<16x8xf32>
    %656 = arith.mulf %655, %654 : vector<16x8xf32>
    %657 = arith.addf %652, %656 : vector<16x8xf32>
    %658 = vector.extract_strided_slice %196 {offsets = [0, 4], sizes = [16, 1], strides = [1, 1]} : vector<16x63xf32> to vector<16x1xf32>
    %659 = vector.extract_strided_slice %638 {offsets = [0, 32], sizes = [16, 8], strides = [1, 1]} : vector<16x56xf32> to vector<16x8xf32>
    %660 = vector.broadcast %658 : vector<16x1xf32> to vector<16x8xf32>
    %661 = arith.mulf %660, %659 : vector<16x8xf32>
    %662 = arith.addf %657, %661 : vector<16x8xf32>
    %663 = vector.extract_strided_slice %196 {offsets = [0, 5], sizes = [16, 1], strides = [1, 1]} : vector<16x63xf32> to vector<16x1xf32>
    %664 = vector.extract_strided_slice %638 {offsets = [0, 40], sizes = [16, 8], strides = [1, 1]} : vector<16x56xf32> to vector<16x8xf32>
    %665 = vector.broadcast %663 : vector<16x1xf32> to vector<16x8xf32>
    %666 = arith.mulf %665, %664 : vector<16x8xf32>
    %667 = arith.addf %662, %666 : vector<16x8xf32>
    %668 = vector.extract_strided_slice %196 {offsets = [0, 6], sizes = [16, 1], strides = [1, 1]} : vector<16x63xf32> to vector<16x1xf32>
    %669 = vector.extract_strided_slice %638 {offsets = [0, 48], sizes = [16, 8], strides = [1, 1]} : vector<16x56xf32> to vector<16x8xf32>
    %670 = vector.broadcast %668 : vector<16x1xf32> to vector<16x8xf32>
    %671 = arith.mulf %670, %669 : vector<16x8xf32>
    %672 = arith.addf %667, %671 : vector<16x8xf32>
    %673 = vector.extract_strided_slice %196 {offsets = [0, 7], sizes = [16, 1], strides = [1, 1]} : vector<16x63xf32> to vector<16x1xf32>
    %674 = vector.extract_strided_slice %638 {offsets = [0, 0], sizes = [16, 8], strides = [1, 1]} : vector<16x56xf32> to vector<16x8xf32>
    %675 = vector.broadcast %673 : vector<16x1xf32> to vector<16x8xf32>
    %676 = arith.mulf %675, %674 : vector<16x8xf32>
    %677 = vector.extract_strided_slice %196 {offsets = [0, 8], sizes = [16, 1], strides = [1, 1]} : vector<16x63xf32> to vector<16x1xf32>
    %678 = vector.extract_strided_slice %638 {offsets = [0, 8], sizes = [16, 8], strides = [1, 1]} : vector<16x56xf32> to vector<16x8xf32>
    %679 = vector.broadcast %677 : vector<16x1xf32> to vector<16x8xf32>
    %680 = arith.mulf %679, %678 : vector<16x8xf32>
    %681 = arith.addf %676, %680 : vector<16x8xf32>
    %682 = vector.extract_strided_slice %196 {offsets = [0, 9], sizes = [16, 1], strides = [1, 1]} : vector<16x63xf32> to vector<16x1xf32>
    %683 = vector.extract_strided_slice %638 {offsets = [0, 16], sizes = [16, 8], strides = [1, 1]} : vector<16x56xf32> to vector<16x8xf32>
    %684 = vector.broadcast %682 : vector<16x1xf32> to vector<16x8xf32>
    %685 = arith.mulf %684, %683 : vector<16x8xf32>
    %686 = arith.addf %681, %685 : vector<16x8xf32>
    %687 = vector.extract_strided_slice %196 {offsets = [0, 10], sizes = [16, 1], strides = [1, 1]} : vector<16x63xf32> to vector<16x1xf32>
    %688 = vector.extract_strided_slice %638 {offsets = [0, 24], sizes = [16, 8], strides = [1, 1]} : vector<16x56xf32> to vector<16x8xf32>
    %689 = vector.broadcast %687 : vector<16x1xf32> to vector<16x8xf32>
    %690 = arith.mulf %689, %688 : vector<16x8xf32>
    %691 = arith.addf %686, %690 : vector<16x8xf32>
    %692 = vector.extract_strided_slice %196 {offsets = [0, 11], sizes = [16, 1], strides = [1, 1]} : vector<16x63xf32> to vector<16x1xf32>
    %693 = vector.extract_strided_slice %638 {offsets = [0, 32], sizes = [16, 8], strides = [1, 1]} : vector<16x56xf32> to vector<16x8xf32>
    %694 = vector.broadcast %692 : vector<16x1xf32> to vector<16x8xf32>
    %695 = arith.mulf %694, %693 : vector<16x8xf32>
    %696 = arith.addf %691, %695 : vector<16x8xf32>
    %697 = vector.extract_strided_slice %196 {offsets = [0, 12], sizes = [16, 1], strides = [1, 1]} : vector<16x63xf32> to vector<16x1xf32>
    %698 = vector.extract_strided_slice %638 {offsets = [0, 40], sizes = [16, 8], strides = [1, 1]} : vector<16x56xf32> to vector<16x8xf32>
    %699 = vector.broadcast %697 : vector<16x1xf32> to vector<16x8xf32>
    %700 = arith.mulf %699, %698 : vector<16x8xf32>
    %701 = arith.addf %696, %700 : vector<16x8xf32>
    %702 = vector.extract_strided_slice %196 {offsets = [0, 13], sizes = [16, 1], strides = [1, 1]} : vector<16x63xf32> to vector<16x1xf32>
    %703 = vector.extract_strided_slice %638 {offsets = [0, 48], sizes = [16, 8], strides = [1, 1]} : vector<16x56xf32> to vector<16x8xf32>
    %704 = vector.broadcast %702 : vector<16x1xf32> to vector<16x8xf32>
    %705 = arith.mulf %704, %703 : vector<16x8xf32>
    %706 = arith.addf %701, %705 : vector<16x8xf32>
    %707 = vector.extract_strided_slice %196 {offsets = [0, 14], sizes = [16, 1], strides = [1, 1]} : vector<16x63xf32> to vector<16x1xf32>
    %708 = vector.extract_strided_slice %638 {offsets = [0, 0], sizes = [16, 8], strides = [1, 1]} : vector<16x56xf32> to vector<16x8xf32>
    %709 = vector.broadcast %707 : vector<16x1xf32> to vector<16x8xf32>
    %710 = arith.mulf %709, %708 : vector<16x8xf32>
    %711 = vector.extract_strided_slice %196 {offsets = [0, 15], sizes = [16, 1], strides = [1, 1]} : vector<16x63xf32> to vector<16x1xf32>
    %712 = vector.extract_strided_slice %638 {offsets = [0, 8], sizes = [16, 8], strides = [1, 1]} : vector<16x56xf32> to vector<16x8xf32>
    %713 = vector.broadcast %711 : vector<16x1xf32> to vector<16x8xf32>
    %714 = arith.mulf %713, %712 : vector<16x8xf32>
    %715 = arith.addf %710, %714 : vector<16x8xf32>
    %716 = vector.extract_strided_slice %196 {offsets = [0, 16], sizes = [16, 1], strides = [1, 1]} : vector<16x63xf32> to vector<16x1xf32>
    %717 = vector.extract_strided_slice %638 {offsets = [0, 16], sizes = [16, 8], strides = [1, 1]} : vector<16x56xf32> to vector<16x8xf32>
    %718 = vector.broadcast %716 : vector<16x1xf32> to vector<16x8xf32>
    %719 = arith.mulf %718, %717 : vector<16x8xf32>
    %720 = arith.addf %715, %719 : vector<16x8xf32>
    %721 = vector.extract_strided_slice %196 {offsets = [0, 17], sizes = [16, 1], strides = [1, 1]} : vector<16x63xf32> to vector<16x1xf32>
    %722 = vector.extract_strided_slice %638 {offsets = [0, 24], sizes = [16, 8], strides = [1, 1]} : vector<16x56xf32> to vector<16x8xf32>
    %723 = vector.broadcast %721 : vector<16x1xf32> to vector<16x8xf32>
    %724 = arith.mulf %723, %722 : vector<16x8xf32>
    %725 = arith.addf %720, %724 : vector<16x8xf32>
    %726 = vector.extract_strided_slice %196 {offsets = [0, 18], sizes = [16, 1], strides = [1, 1]} : vector<16x63xf32> to vector<16x1xf32>
    %727 = vector.extract_strided_slice %638 {offsets = [0, 32], sizes = [16, 8], strides = [1, 1]} : vector<16x56xf32> to vector<16x8xf32>
    %728 = vector.broadcast %726 : vector<16x1xf32> to vector<16x8xf32>
    %729 = arith.mulf %728, %727 : vector<16x8xf32>
    %730 = arith.addf %725, %729 : vector<16x8xf32>
    %731 = vector.extract_strided_slice %196 {offsets = [0, 19], sizes = [16, 1], strides = [1, 1]} : vector<16x63xf32> to vector<16x1xf32>
    %732 = vector.extract_strided_slice %638 {offsets = [0, 40], sizes = [16, 8], strides = [1, 1]} : vector<16x56xf32> to vector<16x8xf32>
    %733 = vector.broadcast %731 : vector<16x1xf32> to vector<16x8xf32>
    %734 = arith.mulf %733, %732 : vector<16x8xf32>
    %735 = arith.addf %730, %734 : vector<16x8xf32>
    %736 = vector.extract_strided_slice %196 {offsets = [0, 20], sizes = [16, 1], strides = [1, 1]} : vector<16x63xf32> to vector<16x1xf32>
    %737 = vector.extract_strided_slice %638 {offsets = [0, 48], sizes = [16, 8], strides = [1, 1]} : vector<16x56xf32> to vector<16x8xf32>
    %738 = vector.broadcast %736 : vector<16x1xf32> to vector<16x8xf32>
    %739 = arith.mulf %738, %737 : vector<16x8xf32>
    %740 = arith.addf %735, %739 : vector<16x8xf32>
    %741 = vector.extract_strided_slice %196 {offsets = [0, 21], sizes = [16, 1], strides = [1, 1]} : vector<16x63xf32> to vector<16x1xf32>
    %742 = vector.extract_strided_slice %638 {offsets = [0, 0], sizes = [16, 8], strides = [1, 1]} : vector<16x56xf32> to vector<16x8xf32>
    %743 = vector.broadcast %741 : vector<16x1xf32> to vector<16x8xf32>
    %744 = arith.mulf %743, %742 : vector<16x8xf32>
    %745 = vector.extract_strided_slice %196 {offsets = [0, 22], sizes = [16, 1], strides = [1, 1]} : vector<16x63xf32> to vector<16x1xf32>
    %746 = vector.extract_strided_slice %638 {offsets = [0, 8], sizes = [16, 8], strides = [1, 1]} : vector<16x56xf32> to vector<16x8xf32>
    %747 = vector.broadcast %745 : vector<16x1xf32> to vector<16x8xf32>
    %748 = arith.mulf %747, %746 : vector<16x8xf32>
    %749 = arith.addf %744, %748 : vector<16x8xf32>
    %750 = vector.extract_strided_slice %196 {offsets = [0, 23], sizes = [16, 1], strides = [1, 1]} : vector<16x63xf32> to vector<16x1xf32>
    %751 = vector.extract_strided_slice %638 {offsets = [0, 16], sizes = [16, 8], strides = [1, 1]} : vector<16x56xf32> to vector<16x8xf32>
    %752 = vector.broadcast %750 : vector<16x1xf32> to vector<16x8xf32>
    %753 = arith.mulf %752, %751 : vector<16x8xf32>
    %754 = arith.addf %749, %753 : vector<16x8xf32>
    %755 = vector.extract_strided_slice %196 {offsets = [0, 24], sizes = [16, 1], strides = [1, 1]} : vector<16x63xf32> to vector<16x1xf32>
    %756 = vector.extract_strided_slice %638 {offsets = [0, 24], sizes = [16, 8], strides = [1, 1]} : vector<16x56xf32> to vector<16x8xf32>
    %757 = vector.broadcast %755 : vector<16x1xf32> to vector<16x8xf32>
    %758 = arith.mulf %757, %756 : vector<16x8xf32>
    %759 = arith.addf %754, %758 : vector<16x8xf32>
    %760 = vector.extract_strided_slice %196 {offsets = [0, 25], sizes = [16, 1], strides = [1, 1]} : vector<16x63xf32> to vector<16x1xf32>
    %761 = vector.extract_strided_slice %638 {offsets = [0, 32], sizes = [16, 8], strides = [1, 1]} : vector<16x56xf32> to vector<16x8xf32>
    %762 = vector.broadcast %760 : vector<16x1xf32> to vector<16x8xf32>
    %763 = arith.mulf %762, %761 : vector<16x8xf32>
    %764 = arith.addf %759, %763 : vector<16x8xf32>
    %765 = vector.extract_strided_slice %196 {offsets = [0, 26], sizes = [16, 1], strides = [1, 1]} : vector<16x63xf32> to vector<16x1xf32>
    %766 = vector.extract_strided_slice %638 {offsets = [0, 40], sizes = [16, 8], strides = [1, 1]} : vector<16x56xf32> to vector<16x8xf32>
    %767 = vector.broadcast %765 : vector<16x1xf32> to vector<16x8xf32>
    %768 = arith.mulf %767, %766 : vector<16x8xf32>
    %769 = arith.addf %764, %768 : vector<16x8xf32>
    %770 = vector.extract_strided_slice %196 {offsets = [0, 27], sizes = [16, 1], strides = [1, 1]} : vector<16x63xf32> to vector<16x1xf32>
    %771 = vector.extract_strided_slice %638 {offsets = [0, 48], sizes = [16, 8], strides = [1, 1]} : vector<16x56xf32> to vector<16x8xf32>
    %772 = vector.broadcast %770 : vector<16x1xf32> to vector<16x8xf32>
    %773 = arith.mulf %772, %771 : vector<16x8xf32>
    %774 = arith.addf %769, %773 : vector<16x8xf32>
    %775 = vector.extract_strided_slice %196 {offsets = [0, 28], sizes = [16, 1], strides = [1, 1]} : vector<16x63xf32> to vector<16x1xf32>
    %776 = vector.extract_strided_slice %638 {offsets = [0, 0], sizes = [16, 8], strides = [1, 1]} : vector<16x56xf32> to vector<16x8xf32>
    %777 = vector.broadcast %775 : vector<16x1xf32> to vector<16x8xf32>
    %778 = arith.mulf %777, %776 : vector<16x8xf32>
    %779 = vector.extract_strided_slice %196 {offsets = [0, 29], sizes = [16, 1], strides = [1, 1]} : vector<16x63xf32> to vector<16x1xf32>
    %780 = vector.extract_strided_slice %638 {offsets = [0, 8], sizes = [16, 8], strides = [1, 1]} : vector<16x56xf32> to vector<16x8xf32>
    %781 = vector.broadcast %779 : vector<16x1xf32> to vector<16x8xf32>
    %782 = arith.mulf %781, %780 : vector<16x8xf32>
    %783 = arith.addf %778, %782 : vector<16x8xf32>
    %784 = vector.extract_strided_slice %196 {offsets = [0, 30], sizes = [16, 1], strides = [1, 1]} : vector<16x63xf32> to vector<16x1xf32>
    %785 = vector.extract_strided_slice %638 {offsets = [0, 16], sizes = [16, 8], strides = [1, 1]} : vector<16x56xf32> to vector<16x8xf32>
    %786 = vector.broadcast %784 : vector<16x1xf32> to vector<16x8xf32>
    %787 = arith.mulf %786, %785 : vector<16x8xf32>
    %788 = arith.addf %783, %787 : vector<16x8xf32>
    %789 = vector.extract_strided_slice %196 {offsets = [0, 31], sizes = [16, 1], strides = [1, 1]} : vector<16x63xf32> to vector<16x1xf32>
    %790 = vector.extract_strided_slice %638 {offsets = [0, 24], sizes = [16, 8], strides = [1, 1]} : vector<16x56xf32> to vector<16x8xf32>
    %791 = vector.broadcast %789 : vector<16x1xf32> to vector<16x8xf32>
    %792 = arith.mulf %791, %790 : vector<16x8xf32>
    %793 = arith.addf %788, %792 : vector<16x8xf32>
    %794 = vector.extract_strided_slice %196 {offsets = [0, 32], sizes = [16, 1], strides = [1, 1]} : vector<16x63xf32> to vector<16x1xf32>
    %795 = vector.extract_strided_slice %638 {offsets = [0, 32], sizes = [16, 8], strides = [1, 1]} : vector<16x56xf32> to vector<16x8xf32>
    %796 = vector.broadcast %794 : vector<16x1xf32> to vector<16x8xf32>
    %797 = arith.mulf %796, %795 : vector<16x8xf32>
    %798 = arith.addf %793, %797 : vector<16x8xf32>
    %799 = vector.extract_strided_slice %196 {offsets = [0, 33], sizes = [16, 1], strides = [1, 1]} : vector<16x63xf32> to vector<16x1xf32>
    %800 = vector.extract_strided_slice %638 {offsets = [0, 40], sizes = [16, 8], strides = [1, 1]} : vector<16x56xf32> to vector<16x8xf32>
    %801 = vector.broadcast %799 : vector<16x1xf32> to vector<16x8xf32>
    %802 = arith.mulf %801, %800 : vector<16x8xf32>
    %803 = arith.addf %798, %802 : vector<16x8xf32>
    %804 = vector.extract_strided_slice %196 {offsets = [0, 34], sizes = [16, 1], strides = [1, 1]} : vector<16x63xf32> to vector<16x1xf32>
    %805 = vector.extract_strided_slice %638 {offsets = [0, 48], sizes = [16, 8], strides = [1, 1]} : vector<16x56xf32> to vector<16x8xf32>
    %806 = vector.broadcast %804 : vector<16x1xf32> to vector<16x8xf32>
    %807 = arith.mulf %806, %805 : vector<16x8xf32>
    %808 = arith.addf %803, %807 : vector<16x8xf32>
    %809 = vector.extract_strided_slice %196 {offsets = [0, 35], sizes = [16, 1], strides = [1, 1]} : vector<16x63xf32> to vector<16x1xf32>
    %810 = vector.extract_strided_slice %638 {offsets = [0, 0], sizes = [16, 8], strides = [1, 1]} : vector<16x56xf32> to vector<16x8xf32>
    %811 = vector.broadcast %809 : vector<16x1xf32> to vector<16x8xf32>
    %812 = arith.mulf %811, %810 : vector<16x8xf32>
    %813 = vector.extract_strided_slice %196 {offsets = [0, 36], sizes = [16, 1], strides = [1, 1]} : vector<16x63xf32> to vector<16x1xf32>
    %814 = vector.extract_strided_slice %638 {offsets = [0, 8], sizes = [16, 8], strides = [1, 1]} : vector<16x56xf32> to vector<16x8xf32>
    %815 = vector.broadcast %813 : vector<16x1xf32> to vector<16x8xf32>
    %816 = arith.mulf %815, %814 : vector<16x8xf32>
    %817 = arith.addf %812, %816 : vector<16x8xf32>
    %818 = vector.extract_strided_slice %196 {offsets = [0, 37], sizes = [16, 1], strides = [1, 1]} : vector<16x63xf32> to vector<16x1xf32>
    %819 = vector.extract_strided_slice %638 {offsets = [0, 16], sizes = [16, 8], strides = [1, 1]} : vector<16x56xf32> to vector<16x8xf32>
    %820 = vector.broadcast %818 : vector<16x1xf32> to vector<16x8xf32>
    %821 = arith.mulf %820, %819 : vector<16x8xf32>
    %822 = arith.addf %817, %821 : vector<16x8xf32>
    %823 = vector.extract_strided_slice %196 {offsets = [0, 38], sizes = [16, 1], strides = [1, 1]} : vector<16x63xf32> to vector<16x1xf32>
    %824 = vector.extract_strided_slice %638 {offsets = [0, 24], sizes = [16, 8], strides = [1, 1]} : vector<16x56xf32> to vector<16x8xf32>
    %825 = vector.broadcast %823 : vector<16x1xf32> to vector<16x8xf32>
    %826 = arith.mulf %825, %824 : vector<16x8xf32>
    %827 = arith.addf %822, %826 : vector<16x8xf32>
    %828 = vector.extract_strided_slice %196 {offsets = [0, 39], sizes = [16, 1], strides = [1, 1]} : vector<16x63xf32> to vector<16x1xf32>
    %829 = vector.extract_strided_slice %638 {offsets = [0, 32], sizes = [16, 8], strides = [1, 1]} : vector<16x56xf32> to vector<16x8xf32>
    %830 = vector.broadcast %828 : vector<16x1xf32> to vector<16x8xf32>
    %831 = arith.mulf %830, %829 : vector<16x8xf32>
    %832 = arith.addf %827, %831 : vector<16x8xf32>
    %833 = vector.extract_strided_slice %196 {offsets = [0, 40], sizes = [16, 1], strides = [1, 1]} : vector<16x63xf32> to vector<16x1xf32>
    %834 = vector.extract_strided_slice %638 {offsets = [0, 40], sizes = [16, 8], strides = [1, 1]} : vector<16x56xf32> to vector<16x8xf32>
    %835 = vector.broadcast %833 : vector<16x1xf32> to vector<16x8xf32>
    %836 = arith.mulf %835, %834 : vector<16x8xf32>
    %837 = arith.addf %832, %836 : vector<16x8xf32>
    %838 = vector.extract_strided_slice %196 {offsets = [0, 41], sizes = [16, 1], strides = [1, 1]} : vector<16x63xf32> to vector<16x1xf32>
    %839 = vector.extract_strided_slice %638 {offsets = [0, 48], sizes = [16, 8], strides = [1, 1]} : vector<16x56xf32> to vector<16x8xf32>
    %840 = vector.broadcast %838 : vector<16x1xf32> to vector<16x8xf32>
    %841 = arith.mulf %840, %839 : vector<16x8xf32>
    %842 = arith.addf %837, %841 : vector<16x8xf32>
    %843 = vector.extract_strided_slice %196 {offsets = [0, 42], sizes = [16, 1], strides = [1, 1]} : vector<16x63xf32> to vector<16x1xf32>
    %844 = vector.extract_strided_slice %638 {offsets = [0, 0], sizes = [16, 8], strides = [1, 1]} : vector<16x56xf32> to vector<16x8xf32>
    %845 = vector.broadcast %843 : vector<16x1xf32> to vector<16x8xf32>
    %846 = arith.mulf %845, %844 : vector<16x8xf32>
    %847 = vector.extract_strided_slice %196 {offsets = [0, 43], sizes = [16, 1], strides = [1, 1]} : vector<16x63xf32> to vector<16x1xf32>
    %848 = vector.extract_strided_slice %638 {offsets = [0, 8], sizes = [16, 8], strides = [1, 1]} : vector<16x56xf32> to vector<16x8xf32>
    %849 = vector.broadcast %847 : vector<16x1xf32> to vector<16x8xf32>
    %850 = arith.mulf %849, %848 : vector<16x8xf32>
    %851 = arith.addf %846, %850 : vector<16x8xf32>
    %852 = vector.extract_strided_slice %196 {offsets = [0, 44], sizes = [16, 1], strides = [1, 1]} : vector<16x63xf32> to vector<16x1xf32>
    %853 = vector.extract_strided_slice %638 {offsets = [0, 16], sizes = [16, 8], strides = [1, 1]} : vector<16x56xf32> to vector<16x8xf32>
    %854 = vector.broadcast %852 : vector<16x1xf32> to vector<16x8xf32>
    %855 = arith.mulf %854, %853 : vector<16x8xf32>
    %856 = arith.addf %851, %855 : vector<16x8xf32>
    %857 = vector.extract_strided_slice %196 {offsets = [0, 45], sizes = [16, 1], strides = [1, 1]} : vector<16x63xf32> to vector<16x1xf32>
    %858 = vector.extract_strided_slice %638 {offsets = [0, 24], sizes = [16, 8], strides = [1, 1]} : vector<16x56xf32> to vector<16x8xf32>
    %859 = vector.broadcast %857 : vector<16x1xf32> to vector<16x8xf32>
    %860 = arith.mulf %859, %858 : vector<16x8xf32>
    %861 = arith.addf %856, %860 : vector<16x8xf32>
    %862 = vector.extract_strided_slice %196 {offsets = [0, 46], sizes = [16, 1], strides = [1, 1]} : vector<16x63xf32> to vector<16x1xf32>
    %863 = vector.extract_strided_slice %638 {offsets = [0, 32], sizes = [16, 8], strides = [1, 1]} : vector<16x56xf32> to vector<16x8xf32>
    %864 = vector.broadcast %862 : vector<16x1xf32> to vector<16x8xf32>
    %865 = arith.mulf %864, %863 : vector<16x8xf32>
    %866 = arith.addf %861, %865 : vector<16x8xf32>
    %867 = vector.extract_strided_slice %196 {offsets = [0, 47], sizes = [16, 1], strides = [1, 1]} : vector<16x63xf32> to vector<16x1xf32>
    %868 = vector.extract_strided_slice %638 {offsets = [0, 40], sizes = [16, 8], strides = [1, 1]} : vector<16x56xf32> to vector<16x8xf32>
    %869 = vector.broadcast %867 : vector<16x1xf32> to vector<16x8xf32>
    %870 = arith.mulf %869, %868 : vector<16x8xf32>
    %871 = arith.addf %866, %870 : vector<16x8xf32>
    %872 = vector.extract_strided_slice %196 {offsets = [0, 48], sizes = [16, 1], strides = [1, 1]} : vector<16x63xf32> to vector<16x1xf32>
    %873 = vector.extract_strided_slice %638 {offsets = [0, 48], sizes = [16, 8], strides = [1, 1]} : vector<16x56xf32> to vector<16x8xf32>
    %874 = vector.broadcast %872 : vector<16x1xf32> to vector<16x8xf32>
    %875 = arith.mulf %874, %873 : vector<16x8xf32>
    %876 = arith.addf %871, %875 : vector<16x8xf32>
    %877 = vector.extract_strided_slice %196 {offsets = [0, 49], sizes = [16, 1], strides = [1, 1]} : vector<16x63xf32> to vector<16x1xf32>
    %878 = vector.extract_strided_slice %638 {offsets = [0, 0], sizes = [16, 8], strides = [1, 1]} : vector<16x56xf32> to vector<16x8xf32>
    %879 = vector.broadcast %877 : vector<16x1xf32> to vector<16x8xf32>
    %880 = arith.mulf %879, %878 : vector<16x8xf32>
    %881 = vector.extract_strided_slice %196 {offsets = [0, 50], sizes = [16, 1], strides = [1, 1]} : vector<16x63xf32> to vector<16x1xf32>
    %882 = vector.extract_strided_slice %638 {offsets = [0, 8], sizes = [16, 8], strides = [1, 1]} : vector<16x56xf32> to vector<16x8xf32>
    %883 = vector.broadcast %881 : vector<16x1xf32> to vector<16x8xf32>
    %884 = arith.mulf %883, %882 : vector<16x8xf32>
    %885 = arith.addf %880, %884 : vector<16x8xf32>
    %886 = vector.extract_strided_slice %196 {offsets = [0, 51], sizes = [16, 1], strides = [1, 1]} : vector<16x63xf32> to vector<16x1xf32>
    %887 = vector.extract_strided_slice %638 {offsets = [0, 16], sizes = [16, 8], strides = [1, 1]} : vector<16x56xf32> to vector<16x8xf32>
    %888 = vector.broadcast %886 : vector<16x1xf32> to vector<16x8xf32>
    %889 = arith.mulf %888, %887 : vector<16x8xf32>
    %890 = arith.addf %885, %889 : vector<16x8xf32>
    %891 = vector.extract_strided_slice %196 {offsets = [0, 52], sizes = [16, 1], strides = [1, 1]} : vector<16x63xf32> to vector<16x1xf32>
    %892 = vector.extract_strided_slice %638 {offsets = [0, 24], sizes = [16, 8], strides = [1, 1]} : vector<16x56xf32> to vector<16x8xf32>
    %893 = vector.broadcast %891 : vector<16x1xf32> to vector<16x8xf32>
    %894 = arith.mulf %893, %892 : vector<16x8xf32>
    %895 = arith.addf %890, %894 : vector<16x8xf32>
    %896 = vector.extract_strided_slice %196 {offsets = [0, 53], sizes = [16, 1], strides = [1, 1]} : vector<16x63xf32> to vector<16x1xf32>
    %897 = vector.extract_strided_slice %638 {offsets = [0, 32], sizes = [16, 8], strides = [1, 1]} : vector<16x56xf32> to vector<16x8xf32>
    %898 = vector.broadcast %896 : vector<16x1xf32> to vector<16x8xf32>
    %899 = arith.mulf %898, %897 : vector<16x8xf32>
    %900 = arith.addf %895, %899 : vector<16x8xf32>
    %901 = vector.extract_strided_slice %196 {offsets = [0, 54], sizes = [16, 1], strides = [1, 1]} : vector<16x63xf32> to vector<16x1xf32>
    %902 = vector.extract_strided_slice %638 {offsets = [0, 40], sizes = [16, 8], strides = [1, 1]} : vector<16x56xf32> to vector<16x8xf32>
    %903 = vector.broadcast %901 : vector<16x1xf32> to vector<16x8xf32>
    %904 = arith.mulf %903, %902 : vector<16x8xf32>
    %905 = arith.addf %900, %904 : vector<16x8xf32>
    %906 = vector.extract_strided_slice %196 {offsets = [0, 55], sizes = [16, 1], strides = [1, 1]} : vector<16x63xf32> to vector<16x1xf32>
    %907 = vector.extract_strided_slice %638 {offsets = [0, 48], sizes = [16, 8], strides = [1, 1]} : vector<16x56xf32> to vector<16x8xf32>
    %908 = vector.broadcast %906 : vector<16x1xf32> to vector<16x8xf32>
    %909 = arith.mulf %908, %907 : vector<16x8xf32>
    %910 = arith.addf %905, %909 : vector<16x8xf32>
    %911 = vector.extract_strided_slice %196 {offsets = [0, 56], sizes = [16, 1], strides = [1, 1]} : vector<16x63xf32> to vector<16x1xf32>
    %912 = vector.extract_strided_slice %638 {offsets = [0, 0], sizes = [16, 8], strides = [1, 1]} : vector<16x56xf32> to vector<16x8xf32>
    %913 = vector.broadcast %911 : vector<16x1xf32> to vector<16x8xf32>
    %914 = arith.mulf %913, %912 : vector<16x8xf32>
    %915 = vector.extract_strided_slice %196 {offsets = [0, 57], sizes = [16, 1], strides = [1, 1]} : vector<16x63xf32> to vector<16x1xf32>
    %916 = vector.extract_strided_slice %638 {offsets = [0, 8], sizes = [16, 8], strides = [1, 1]} : vector<16x56xf32> to vector<16x8xf32>
    %917 = vector.broadcast %915 : vector<16x1xf32> to vector<16x8xf32>
    %918 = arith.mulf %917, %916 : vector<16x8xf32>
    %919 = arith.addf %914, %918 : vector<16x8xf32>
    %920 = vector.extract_strided_slice %196 {offsets = [0, 58], sizes = [16, 1], strides = [1, 1]} : vector<16x63xf32> to vector<16x1xf32>
    %921 = vector.extract_strided_slice %638 {offsets = [0, 16], sizes = [16, 8], strides = [1, 1]} : vector<16x56xf32> to vector<16x8xf32>
    %922 = vector.broadcast %920 : vector<16x1xf32> to vector<16x8xf32>
    %923 = arith.mulf %922, %921 : vector<16x8xf32>
    %924 = arith.addf %919, %923 : vector<16x8xf32>
    %925 = vector.extract_strided_slice %196 {offsets = [0, 59], sizes = [16, 1], strides = [1, 1]} : vector<16x63xf32> to vector<16x1xf32>
    %926 = vector.extract_strided_slice %638 {offsets = [0, 24], sizes = [16, 8], strides = [1, 1]} : vector<16x56xf32> to vector<16x8xf32>
    %927 = vector.broadcast %925 : vector<16x1xf32> to vector<16x8xf32>
    %928 = arith.mulf %927, %926 : vector<16x8xf32>
    %929 = arith.addf %924, %928 : vector<16x8xf32>
    %930 = vector.extract_strided_slice %196 {offsets = [0, 60], sizes = [16, 1], strides = [1, 1]} : vector<16x63xf32> to vector<16x1xf32>
    %931 = vector.extract_strided_slice %638 {offsets = [0, 32], sizes = [16, 8], strides = [1, 1]} : vector<16x56xf32> to vector<16x8xf32>
    %932 = vector.broadcast %930 : vector<16x1xf32> to vector<16x8xf32>
    %933 = arith.mulf %932, %931 : vector<16x8xf32>
    %934 = arith.addf %929, %933 : vector<16x8xf32>
    %935 = vector.extract_strided_slice %196 {offsets = [0, 61], sizes = [16, 1], strides = [1, 1]} : vector<16x63xf32> to vector<16x1xf32>
    %936 = vector.extract_strided_slice %638 {offsets = [0, 40], sizes = [16, 8], strides = [1, 1]} : vector<16x56xf32> to vector<16x8xf32>
    %937 = vector.broadcast %935 : vector<16x1xf32> to vector<16x8xf32>
    %938 = arith.mulf %937, %936 : vector<16x8xf32>
    %939 = arith.addf %934, %938 : vector<16x8xf32>
    %940 = vector.extract_strided_slice %196 {offsets = [0, 62], sizes = [16, 1], strides = [1, 1]} : vector<16x63xf32> to vector<16x1xf32>
    %941 = vector.extract_strided_slice %638 {offsets = [0, 48], sizes = [16, 8], strides = [1, 1]} : vector<16x56xf32> to vector<16x8xf32>
    %942 = vector.broadcast %940 : vector<16x1xf32> to vector<16x8xf32>
    %943 = arith.mulf %942, %941 : vector<16x8xf32>
    %944 = arith.addf %939, %943 : vector<16x8xf32>
    %cst_205 = arith.constant 0.000000e+00 : f32
    %945 = vector.broadcast %cst_205 : f32 to vector<16x56xf32>
    %946 = tpu.concatenate %672, %706, %740, %774, %808, %842, %876, %910, %944, %945 in 1 : vector<16x8xf32>, vector<16x8xf32>, vector<16x8xf32>, vector<16x8xf32>, vector<16x8xf32>, vector<16x8xf32>, vector<16x8xf32>, vector<16x8xf32>, vector<16x8xf32>, vector<16x56xf32> -> vector<16x128xf32>
    %c0_206 = arith.constant 0 : index
    %c0_207 = arith.constant 0 : index
    %947 = vector.load %arg23[%c0_206, %c0_207] : memref<16x128xf32, #tpu.memory_space<vmem>>, vector<16x128xf32>
    tpu.vector_store %arg23[%c0_206, %c0_207], %946 {strides = array<i32>} : memref<16x128xf32, #tpu.memory_space<vmem>>, vector<16x128xf32>,
    return
  }
  func.func @transform_0(%arg0: i32, %arg1: memref<2x48xi32, #tpu.memory_space<smem>>) -> (i32, i32) {
    %c0_i32 = arith.constant 0 : i32
    %c0_i32_0 = arith.constant 0 : i32
    %c0_i32_1 = arith.constant 0 : i32
    return %c0_i32, %c0_i32_0 : i32, i32
  }
  func.func @transform_1(%arg0: i32, %arg1: memref<2x48xi32, #tpu.memory_space<smem>>) -> (i32, i32) {
    %c0_i32 = arith.constant 0 : i32
    %c0_i32_0 = arith.constant 0 : i32
    return %arg0, %c0_i32 : i32, i32
  }
  func.func @transform_2(%arg0: i32, %arg1: memref<2x48xi32, #tpu.memory_space<smem>>) -> (i32, i32) {
    %c0_i32 = arith.constant 0 : i32
    %c0_i32_0 = arith.constant 0 : i32
    return %arg0, %c0_i32 : i32, i32
  }
  func.func @transform_3(%arg0: i32, %arg1: memref<2x48xi32, #tpu.memory_space<smem>>) -> (i32, i32) {
    %c0_i32 = arith.constant 0 : i32
    %c0_i32_0 = arith.constant 0 : i32
    return %arg0, %c0_i32 : i32, i32
  }
  func.func @transform_4(%arg0: i32, %arg1: memref<2x48xi32, #tpu.memory_space<smem>>) -> (i32, i32) {
    %c0_i32 = arith.constant 0 : i32
    %c0_i32_0 = arith.constant 0 : i32
    return %arg0, %c0_i32 : i32, i32
  }
  func.func @transform_5(%arg0: i32, %arg1: memref<2x48xi32, #tpu.memory_space<smem>>) -> (i32, i32) {
    %c0_i32 = arith.constant 0 : i32
    %c0_i32_0 = arith.constant 0 : i32
    %c0_i32_1 = arith.constant 0 : i32
    return %c0_i32, %c0_i32_0 : i32, i32
  }
  func.func @transform_6(%arg0: i32, %arg1: memref<2x48xi32, #tpu.memory_space<smem>>) -> (i32, i32) {
    %c0_i32 = arith.constant 0 : i32
    %c0_i32_0 = arith.constant 0 : i32
    %c0_i32_1 = arith.constant 0 : i32
    return %c0_i32, %c0_i32_0 : i32, i32
  }
  func.func @transform_7(%arg0: i32, %arg1: memref<2x48xi32, #tpu.memory_space<smem>>) -> (i32, i32) {
    %c0_i32 = arith.constant 0 : i32
    %c0_i32_0 = arith.constant 0 : i32
    %c0_i32_1 = arith.constant 0 : i32
    return %c0_i32, %c0_i32_0 : i32, i32
  }
  func.func @transform_8(%arg0: i32, %arg1: memref<2x48xi32, #tpu.memory_space<smem>>) -> (i32, i32) {
    %c0_i32 = arith.constant 0 : i32
    %c0_i32_0 = arith.constant 0 : i32
    %c0_i32_1 = arith.constant 0 : i32
    return %c0_i32, %c0_i32_0 : i32, i32
  }
  func.func @transform_9(%arg0: i32, %arg1: memref<2x48xi32, #tpu.memory_space<smem>>) -> (i32, i32) {
    %c0_i32 = arith.constant 0 : i32
    %c0_i32_0 = arith.constant 0 : i32
    %c0_i32_1 = arith.constant 0 : i32
    return %c0_i32, %c0_i32_0 : i32, i32
  }
  func.func @transform_10(%arg0: i32, %arg1: memref<2x48xi32, #tpu.memory_space<smem>>) -> (i32, i32) {
    %c0_i32 = arith.constant 0 : i32
    %c0_i32_0 = arith.constant 0 : i32
    %c0_i32_1 = arith.constant 0 : i32
    return %c0_i32, %c0_i32_0 : i32, i32
  }
  func.func @transform_11(%arg0: i32, %arg1: memref<2x48xi32, #tpu.memory_space<smem>>) -> (i32, i32) {
    %c0_i32 = arith.constant 0 : i32
    %c0_i32_0 = arith.constant 0 : i32
    %c0_i32_1 = arith.constant 0 : i32
    return %c0_i32, %c0_i32_0 : i32, i32
  }
  func.func @transform_12(%arg0: i32, %arg1: memref<2x48xi32, #tpu.memory_space<smem>>) -> (i32, i32) {
    %c0_i32 = arith.constant 0 : i32
    %c0_i32_0 = arith.constant 0 : i32
    %c0_i32_1 = arith.constant 0 : i32
    return %c0_i32, %c0_i32_0 : i32, i32
  }
  func.func @transform_13(%arg0: i32, %arg1: memref<2x48xi32, #tpu.memory_space<smem>>) -> (i32, i32) {
    %c0_i32 = arith.constant 0 : i32
    %c0_i32_0 = arith.constant 0 : i32
    %c0_i32_1 = arith.constant 0 : i32
    return %c0_i32, %c0_i32_0 : i32, i32
  }
  func.func @transform_14(%arg0: i32, %arg1: memref<2x48xi32, #tpu.memory_space<smem>>) -> (i32, i32) {
    %c0_i32 = arith.constant 0 : i32
    %c0_i32_0 = arith.constant 0 : i32
    %c0_i32_1 = arith.constant 0 : i32
    return %c0_i32, %c0_i32_0 : i32, i32
  }
  func.func @transform_15(%arg0: i32, %arg1: memref<2x48xi32, #tpu.memory_space<smem>>) -> (i32, i32) {
    %c0_i32 = arith.constant 0 : i32
    %c0_i32_0 = arith.constant 0 : i32
    %c0_i32_1 = arith.constant 0 : i32
    return %c0_i32, %c0_i32_0 : i32, i32
  }
  func.func @transform_16(%arg0: i32, %arg1: memref<2x48xi32, #tpu.memory_space<smem>>) -> (i32, i32) {
    %c0_i32 = arith.constant 0 : i32
    %c0_i32_0 = arith.constant 0 : i32
    %c0_i32_1 = arith.constant 0 : i32
    return %c0_i32, %c0_i32_0 : i32, i32
  }
  func.func @transform_17(%arg0: i32, %arg1: memref<2x48xi32, #tpu.memory_space<smem>>) -> (i32, i32) {
    %c0_i32 = arith.constant 0 : i32
    %c0_i32_0 = arith.constant 0 : i32
    %c0_i32_1 = arith.constant 0 : i32
    return %c0_i32, %c0_i32_0 : i32, i32
  }
  func.func @transform_18(%arg0: i32, %arg1: memref<2x48xi32, #tpu.memory_space<smem>>) -> (i32, i32) {
    %c0_i32 = arith.constant 0 : i32
    %c0_i32_0 = arith.constant 0 : i32
    %c0_i32_1 = arith.constant 0 : i32
    return %c0_i32, %c0_i32_0 : i32, i32
  }
  func.func @transform_19(%arg0: i32, %arg1: memref<2x48xi32, #tpu.memory_space<smem>>) -> (i32, i32) {
    %c0_i32 = arith.constant 0 : i32
    %c0_i32_0 = arith.constant 0 : i32
    %c0_i32_1 = arith.constant 0 : i32
    return %c0_i32, %c0_i32_0 : i32, i32
  }
  func.func @transform_20(%arg0: i32, %arg1: memref<2x48xi32, #tpu.memory_space<smem>>) -> (i32, i32) {
    %c0_i32 = arith.constant 0 : i32
    %c0_i32_0 = arith.constant 0 : i32
    %c0_i32_1 = arith.constant 0 : i32
    return %c0_i32, %c0_i32_0 : i32, i32
  }
  func.func @transform_21(%arg0: i32, %arg1: memref<2x48xi32, #tpu.memory_space<smem>>) -> (i32, i32) {
    %c0_i32 = arith.constant 0 : i32
    %c0_i32_0 = arith.constant 0 : i32
    return %arg0, %c0_i32 : i32, i32
  }
}

</mosaic_0001>

<bundles_post_ra>
// kernel: tpu_custom_call.1
= control target key start
LH: loop header
LB: loop body
LE: loop exit
PB: predicated region body
PF: predicated region fallthrough
CT: control target
= control target key end

     0   :  { %s7371_s30 = smov [#allocation5]   ;;  %s10434_s0 = inlined_call_operand.hbm [shape: s32[2,48], index: 0, kind: input, shape index: {}]   ;;  %s10435_s1 = inlined_call_operand.hbm [shape: f32[8,72], index: 1, kind: input, shape index: {}]   ;;  %s10436_s2 = inlined_call_operand.vmem [shape: f32[48,63], index: 2, kind: input, shape index: {}]   ;;  %s10437_s3 = inlined_call_operand.vmem [shape: f32[48,63], index: 3, kind: input, shape index: {}]   ;;  %s10438_s4 = inlined_call_operand.vmem [shape: f32[48,16], index: 4, kind: input, shape index: {}]   ;;  %s10439_s5 = inlined_call_operand.vmem [shape: f32[48,1], index: 5, kind: input, shape index: {}]   ;;  %s10440_s6 = inlined_call_operand.hbm [shape: f32[16,32], index: 6, kind: input, shape index: {}]   ;;  %s10441_s7 = inlined_call_operand.vmem [shape: f32[1,32], index: 7, kind: input, shape index: {}]   ;;  %s10442_s8 = inlined_call_operand.hbm [shape: f32[1,32], index: 8, kind: input, shape index: {}]   ;;  %s10443_s9 = inlined_call_operand.hbm [shape: f32[1,32], index: 9, kind: input, shape index: {}]   ;;  %s10444_s10 = inlined_call_operand.hbm [shape: f32[32,32], index: 10, kind: input, shape index: {}]   ;;  %s10445_s11 = inlined_call_operand.hbm [shape: f32[1,32], index: 11, kind: input, shape index: {}]   ;;  %s10446_s12 = inlined_call_operand.hbm [shape: f32[1,32], index: 12, kind: input, shape index: {}]   ;;  %s10447_s13 = inlined_call_operand.hbm [shape: f32[1,32], index: 13, kind: input, shape index: {}]   ;;  %s10448_s14 = inlined_call_operand.hbm [shape: f32[32,80], index: 14, kind: input, shape index: {}]   ;;  %s10449_s15 = inlined_call_operand.hbm [shape: f32[1,80], index: 15, kind: input, shape index: {}]   ;;  %s10450_s16 = inlined_call_operand.vmem [shape: f32[48,80], index: 16, kind: input, shape index: {}]   ;;  %s10451_s17 = inlined_call_operand.hbm [shape: f32[1,80], index: 17, kind: input, shape index: {}]   ;;  %s10452_s18 = inlined_call_operand.vmem [shape: f32[32,64], index: 18, kind: input, shape index: {}]   ;;  %s10453_s19 = inlined_call_operand.vmem [shape: f32[48,24], index: 19, kind: input, shape index: {}]   ;;  %s10454_s20 = inlined_call_operand.hbm [shape: f32[1,24], index: 20, kind: input, shape index: {}]   ;;  %s10455_s21 = inlined_call_operand.hbm [shape: f32[32,32], index: 21, kind: input, shape index: {}]   ;;  %s10456_s22 = inlined_call_operand.hbm [shape: f32[48,128], index: 22, kind: output, shape index: {}]  }
   0x1   :  { %10598 = sst [smem:[#allocation127_spill]] %s10434_s0 }
   0x2   :  { %10599 = sst [smem:[#allocation128_spill]] %s10435_s1 }
   0x3   :  { %10600 = sst [smem:[#allocation129_spill]] %s10436_s2 }
   0x4   :  { %10601 = sst [smem:[#allocation130_spill]] %s10437_s3 }
   0x5   :  { %10602 = sst [smem:[#allocation131_spill]] %s10438_s4 }
   0x6   :  { %10603 = sst [smem:[#allocation132_spill]] %s10439_s5 }
   0x7   :  { %10604 = sst [smem:[#allocation133_spill]] %s10440_s6 }
   0x8   :  { %10605 = sst [smem:[#allocation134_spill]] %s10442_s8 }
   0x9   :  { %10606 = sst [smem:[#allocation135_spill]] %s10443_s9 }
   0xa   :  { %10607 = sst [smem:[#allocation136_spill]] %s10444_s10 }
   0xb   :  { %10608 = sst [smem:[#allocation137_spill]] %s10445_s11 }
   0xc   :  { %10609 = sst [smem:[#allocation138_spill]] %s10446_s12 }
   0xd   :  { %10610 = sst [smem:[#allocation139_spill]] %s10447_s13 }
   0xe   :  { %10611 = sst [smem:[#allocation140_spill]] %s10448_s14 }
   0xf   :  { %10612 = sst [smem:[#allocation141_spill]] %s10449_s15 }
  0x10   :  { %10613 = sst [smem:[#allocation142_spill]] %s10450_s16 }
  0x11   :  { %10614 = sst [smem:[#allocation143_spill]] %s10451_s17 }
  0x12   :  { %10615 = sst [smem:[#allocation144_spill]] %s10454_s20 }
  0x13   :  { %10616 = sst [smem:[#allocation145_spill]] %s10455_s21 }
  0x14   :  { %10617 = sst [smem:[#allocation146_spill]] %s10456_s22 }
  0x15   :  { %s10618_s29 = sld [smem:[#allocation127_spill]] }
  0x1b   :  { %s28_s16 = sshll.u32 %s10618_s29, 4  ;;  %s29_s16 = int_to_ptr.hbm [resolvable:$true] %s28_s16 }
  0x1c   :  { %31 = dma.hbm_to_smem %s29_s16, 32, %s7371_s30, [#allocation4] }
  0x1d   :  { %7321 = dma.done.wait [#allocation4], 32 }
  0x1e   :  { %7322 = vsyncadd [#allocation4], 4294967264 }
  0x1f   :  { %34 = sfence }
  0x20   :  { %35 = vsyncpa [#allocation7], 0 }
  0x21   :  { %36 = vsyncpa [#allocation10], 0 }
  0x22   :  { %37 = vsyncpa [#allocation13], 0 }
  0x23   :  { %38 = vsyncpa [#allocation16], 0 }
  0x24   :  { %39 = vsyncpa [#allocation19], 0 }
  0x25   :  { %40 = vsyncpa [#allocation22], 0 }
  0x26   :  { %41 = vsyncpa [#allocation25], 0 }
  0x27   :  { %42 = vsyncpa [#allocation8], 0 }
  0x28   :  { %44 = vsyncpa [#allocation8 + $0x1], 0  ;;  %s7586_s4 = smov 0   ;;  %s7588_s0 = smov 0  }
  0x29   :  { %s7590_s23 = smov 0   ;;  %s7592_s1 = smov 0  }
  0x2a LB: > { %10619 = sst [smem:[#allocation37_spill]] %s7357_s4  ;;  %s7607_s16 = sadd.s32 4294967295, %s7369_s1   ;;  %s7369_s1 = sphi %s7592_s1, %s11012_s1   ;;  %s7365_s23 = sphi %s7590_s23, %s11015_s23   ;;  %s7361_s0 = sphi %s7588_s0, %s11014_s0   ;;  %s7357_s4 = sphi %s7586_s4, %s11013_s4  }
  0x2b   : > { %10620 = sst [smem:[#allocation38_spill]] %s7361_s0  ;;  %s6206_s5 = sadd.s32 4294967294, %s7369_s1  }
  0x2c   : > { %10621 = sst [smem:[#allocation39_spill]] %s7365_s23  ;;  %s7611_s24 = sadd.s32 1, %s7369_s1  }
  0x2d   : > { %10622 = sst [smem:[#allocation40_spill]] %s7369_s1  ;;  %s518_s6 = sadd.s32 1, %s7365_s23 }
  0x2e   : > { %10623 = sst [smem:[#allocation41_spill]] %s7611_s24  ;;  %s515_s25 = ssub.s32 %s7369_s1, %s7611_s24 }
  0x2f   : > { %p528_p0 = scmp.ne.s32.totalorder %s7365_s23, %s7361_s0  ;;  %p516_p1 = scmp.eq.s32.totalorder %s515_s25, 0 }
  0x30   : > { %p529_p2 = scmp.eq.s32.totalorder %s7607_s16, 2  ;;  %p534_p3 = scmp.ne.s32.totalorder %s7361_s0, %s7357_s4 }
  0x31   : > { %p535_p4 = scmp.eq.s32.totalorder %s6206_s5, 2  ;;  %p6207_p7 = scmp.ge.s32.totalorder %s7369_s1, 1 }
  0x32   : > { %s7622_s26 = scalar_select %p516_p1, %s7365_s23, %s518_s6  }
  0x33   : > { %p7624_p5 = por %p529_p2, %p528_p0  ;;  %p7628_p6 = por %p535_p4, %p534_p3 }
  0x34   : > { %10624 = sst [smem:[#allocation42_spill]] %s7622_s26  ;;  %p542_p8 = scmp.lt.s32.totalorder %s7369_s1, 4 }
  0x35   : > { %s10625_s2 = scalar_select %p7624_p5, 1, 0 }
  0x36   : > { %s10627_s27 = scalar_select %p7628_p6, 1, 0 }
  0x37   : > { %10626 = sst [smem:[#allocation43_spill]] %s10625_s2  ;;  %p6410_p9 = scmp.eq.s32.totalorder %s7607_s16, 0 }
  0x38   : > { %10628 = sst [smem:[#allocation44_spill]] %s10627_s27  ;;  %p7635_p10 = pnand %p6207_p7, %p542_p8 }
  0x39   : > { %s10630_s30 = sld [smem:[#allocation133_spill]]  ;;  %s7372_s6 = smov [#allocation9]  }
  0x3a   : > { %p6366_p11 = pneg %p7635_p10  ;;  %s567_s25 = sshll.u32 %s7372_s6, 4  ;;  %s568_s25 = int_to_ptr.vmem [resolvable:$true] %s567_s25 }
  0x3b   : > { %s10632_s9 = sld [smem:[#allocation135_spill]]  ;;  %s10469_s28 = smov 128  }
  0x3c   : > { %p7646_p12 = pnand %p6410_p9, %p6366_p11  ;;  %s7374_s29 = smov 8  }
  0x3d   : > { %s10633_s11 = sld [smem:[#allocation137_spill]]  ;;  %s7376_s22 = smov [#allocation15]  }
  0x3e   : > { %s10634_s13 = sld [smem:[#allocation139_spill]]  ;;  %s623_s0 = sshll.u32 %s7376_s22, 4  ;;  %s624_s0 = int_to_ptr.vmem [resolvable:$true] %s623_s0 }
  0x3f   : > { %s565_s5 = sshll.u32 %s10630_s30, 4  ;;  %s7375_s30 = smov [#allocation12]   ;;  %s566_s5 = int_to_ptr.hbm [resolvable:$true] %s565_s5 }
  0x40   : > { %6372 = dma.hbm_to_vmem [thread:$0]  (!%p7646_p12), %s566_s5, 256, %s568_s25, [#allocation10], %s10469_s28, %s10469_s28, %s7374_s29  }
  0x41   : > { %s595_s27 = sshll.u32 %s10632_s9, 4  ;;  %s597_s6 = sshll.u32 %s7375_s30, 4  ;;  %s596_s27 = int_to_ptr.hbm [resolvable:$true] %s595_s27  ;;  %s598_s6 = int_to_ptr.vmem [resolvable:$true] %s597_s6 }
  0x42   : > { %6378 = dma.hbm_to_vmem [thread:$0]  (!%p7646_p12), %s596_s27, 16, %s598_s6, [#allocation13]  }
  0x43   : > { %s621_s2 = sshll.u32 %s10633_s11, 4  ;;  %s7377_s5 = smov [#allocation18]   ;;  %s622_s2 = int_to_ptr.hbm [resolvable:$true] %s621_s2 }
  0x44   : > { %s645_s9 = sshll.u32 %s10634_s13, 4  ;;  %s647_s25 = sshll.u32 %s7377_s5, 4  ;;  %s646_s9 = int_to_ptr.hbm [resolvable:$true] %s645_s9  ;;  %s648_s25 = int_to_ptr.vmem [resolvable:$true] %s647_s25 }
  0x45   : > { %6384 = dma.hbm_to_vmem [thread:$0]  (!%p7646_p12), %s622_s2, 16, %s624_s0, [#allocation16]  }
  0x46   : > { %s10635_s15 = sld [smem:[#allocation141_spill]]  ;;  %s7378_s22 = smov [#allocation21]  }
  0x47   : > { %6390 = dma.hbm_to_vmem [thread:$0]  (!%p7646_p12), %s646_s9, 16, %s648_s25, [#allocation19]  }
  0x48   : > { %s10636_s20 = sld [smem:[#allocation144_spill]]  ;;  %s673_s24 = sshll.u32 %s7378_s22, 4  ;;  %s674_s24 = int_to_ptr.vmem [resolvable:$true] %s673_s24 }
  0x49   : > { %s7379_s0 = smov [#allocation24]   ;;  %s10637_s1 = sld [smem:[#allocation128_spill]] }
  0x4a   : > { %s706_s2 = sshll.u32 %s7379_s0, 4  ;;  %s10638_s8 = sld [smem:[#allocation134_spill]]  ;;  %s707_s2 = int_to_ptr.vmem [resolvable:$true] %s706_s2 }
  0x4b   : > { %s7380_s6 = smov [#allocation6]   ;;  %s10639_s10 = sld [smem:[#allocation136_spill]] }
  0x4c   : > { %s671_s30 = sshll.u32 %s10635_s15, 4  ;;  %s556_s22 = sshll.u32 %s7380_s6, 4  ;;  %s672_s30 = int_to_ptr.hbm [resolvable:$true] %s671_s30  ;;  %s557_s22 = int_to_ptr.vmem [resolvable:$true] %s556_s22 }
  0x4d   : > { %6396 = dma.hbm_to_vmem [thread:$0]  (!%p7646_p12), %s672_s30, 16, %s674_s24, [#allocation22]  }
  0x4e   : > { %s704_s23 = sshll.u32 %s10636_s20, 4  ;;  %s7381_s30 = smov [#allocation11]   ;;  %s705_s23 = int_to_ptr.hbm [resolvable:$true] %s704_s23 }
  0x4f   : > { %s554_s28 = sshll.u32 %s10637_s1, 4  ;;  %s585_s24 = sshll.u32 %s7381_s30, 4  ;;  %s555_s28 = int_to_ptr.hbm [resolvable:$true] %s554_s28  ;;  %s586_s24 = int_to_ptr.vmem [resolvable:$true] %s585_s24 }
  0x50   : > { %6402 = dma.hbm_to_vmem [thread:$0]  (!%p7646_p12), %s705_s23, 16, %s707_s2, [#allocation25]  }
  0x51   : > { %s583_s27 = sshll.u32 %s10638_s8, 4  ;;  %s606_s4 = sshll.u32 %s10639_s10, 4  ;;  %s584_s27 = int_to_ptr.hbm [resolvable:$true] %s583_s27  ;;  %s607_s4 = int_to_ptr.hbm [resolvable:$true] %s606_s4 }
  0x52   : > { %6369 = dma.hbm_to_vmem [thread:$0]  (!%p7646_p12), %s555_s28, 128, %s557_s22, [#allocation7]  }
  0x53   : > { %6375 = dma.hbm_to_vmem [thread:$0]  (!%p7646_p12), %s584_s27, 16, %s586_s24, [#allocation10]  }
  0x54   : > { %s10640_s12 = sld [smem:[#allocation138_spill]]  ;;  %s7382_s9 = smov [#allocation14]  }
  0x55   : > { %s608_s25 = sshll.u32 %s7382_s9, 4  ;;  %s10641_s28 = smov 128   ;;  %s609_s25 = int_to_ptr.vmem [resolvable:$true] %s608_s25 }
  0x56   : > { %6381 = dma.hbm_to_vmem [thread:$0]  (!%p7646_p12), %s607_s4, 512, %s609_s25, [#allocation13], %s10641_s28, %s10641_s28, %s7374_s29  }
  0x57   : > { %s7383_s6 = smov [#allocation17]   ;;  %s10642_s14 = sld [smem:[#allocation140_spill]] }
  0x58   : > { %s635_s22 = sshll.u32 %s7383_s6, 4  ;;  %s10643_s17 = sld [smem:[#allocation143_spill]]  ;;  %s636_s22 = int_to_ptr.vmem [resolvable:$true] %s635_s22 }
  0x59   : > { %s7384_s2 = smov [#allocation20]   ;;  %s7385_s4 = smov [#allocation23]  }
  0x5a   : > { %s633_s1 = sshll.u32 %s10640_s12, 4  ;;  %s658_s9 = sshll.u32 %s7384_s2, 4  ;;  %s634_s1 = int_to_ptr.hbm [resolvable:$true] %s633_s1  ;;  %s659_s9 = int_to_ptr.vmem [resolvable:$true] %s658_s9 }
  0x5b   : > { %6387 = dma.hbm_to_vmem [thread:$0]  (!%p7646_p12), %s634_s1, 16, %s636_s22, [#allocation16]  }
  0x5c   : > { %s688_s25 = sshll.u32 %s7385_s4, 4  ;;  %s10644_s21 = sld [smem:[#allocation145_spill]]  ;;  %s689_s25 = int_to_ptr.vmem [resolvable:$true] %s688_s25 }
  0x5d   : > { %s656_s27 = sshll.u32 %s10642_s14, 4  ;;  %s7386_s22 = smov [#allocation26]   ;;  %s657_s27 = int_to_ptr.hbm [resolvable:$true] %s656_s27 }
  0x5e   : > { %s686_s23 = sshll.u32 %s10643_s17, 4  ;;  %s717_s0 = sshll.u32 %s7386_s22, 4  ;;  %s687_s23 = int_to_ptr.hbm [resolvable:$true] %s686_s23  ;;  %s718_s0 = int_to_ptr.vmem [resolvable:$true] %s717_s0 }
  0x5f   : > { %6393 = dma.hbm_to_vmem [thread:$0]  (!%p7646_p12), %s657_s27, 512, %s659_s9, [#allocation19], %s10641_s28, %s10641_s28, %s7374_s29  }
  0x60   : > { %6399 = dma.hbm_to_vmem [thread:$0]  (!%p7646_p12), %s687_s23, 16, %s689_s25, [#allocation22]  }
  0x61   : > { %769 = sbr.rel (%p7635_p10) target bundleno = 3463 (0xd87), region = 104 }
  0x62   : > { %s715_s1 = sshll.u32 %s10644_s21, 4  ;;  %s716_s1 = int_to_ptr.hbm [resolvable:$true] %s715_s1 }
  0x63   : > { %6405 = dma.hbm_to_vmem [thread:$0]  (!%p7646_p12), %s716_s1, 512, %s718_s0, [#allocation25], %s10641_s28, %s10641_s28, %s7374_s29  }
  0x66   : > { %7324 = dma.done.wait (%p6410_p9), [#allocation7], 128  }
  0x67   : > { %7326 = vsyncadd (%p6410_p9), [#allocation7], 4294967168 }
  0x68   : > { %7328 = dma.done.wait (%p6410_p9), [#allocation10], 272  }
  0x69   : > { %7330 = vsyncadd (%p6410_p9), [#allocation10], 4294967024 }
  0x6a   : > { %7332 = dma.done.wait (%p6410_p9), [#allocation13], 528  }
  0x6b   : > { %7334 = vsyncadd (%p6410_p9), [#allocation13], 4294966768 }
  0x6c   : > { %7336 = dma.done.wait (%p6410_p9), [#allocation16], 32  }
  0x6d   : > { %7338 = vsyncadd (%p6410_p9), [#allocation16], 4294967264 }
  0x6e   : > { %7340 = dma.done.wait (%p6410_p9), [#allocation19], 528  }
  0x6f   : > { %7342 = vsyncadd (%p6410_p9), [#allocation19], 4294966768 }
  0x70   : > { %7344 = dma.done.wait (%p6410_p9), [#allocation22], 32  }
  0x71   : > { %7346 = vsyncadd (%p6410_p9), [#allocation22], 4294967264 }
  0x72   : > { %7348 = dma.done.wait (%p6410_p9), [#allocation25], 528  }
  0x73   : > { %7350 = vsyncadd (%p6410_p9), [#allocation25], 4294966768  ;;  %s7755_s26 = sshll.u32 %s7607_s16, 4  ;;  %vm942_vm0 = vcmask 581632   ;;  %v10497_v36 = vmov 1   ;;  %v10487_v37 = vmov 8  }
  0x74   : > { %s931_s3 = sld [smem:[#allocation5 + %s7755_s26]]  ;;  %s7759_s29 = sadd.s32 1, %s7755_s26  ;;  %6566 = vset.pattern.permute.xlu1 %v10497_v36  ;;  %6567 = vset.pattern.permute.xlu2 %v10497_v36  ;;  %v10493_v40 = vmov 2   ;;  %v10491_v43 = vmov 4   ;;  %v10515_v45 = vmov 5   ;;  %v10507_v46 = vmov 10  }
  0x75   : > { %s948_s28 = sld [smem:[#allocation5 + %s7759_s29]]  ;;  %s7763_s27 = sadd.s32 2, %s7755_s26  ;;  %6578 = vset.pattern.permute.xlu0 %v10487_v37  ;;  %v10517_v47 = vmov 3   ;;  %v10489_v49 = vmov 6   ;;  %v2127_v50 = vld [vmem:[#allocation9 + $0x8] sm:$0xff]  ;;  %vm2106_vm1 = vcmask 130048  }
  0x76   : > { %s964_s24 = sld [smem:[#allocation5 + %s7763_s27]]  ;;  %s7767_s5 = sadd.s32 3, %s7755_s26  ;;  %v2152_v52 = vand.u32 4294901760, %v2127_v50  ;;  %v2126_v55 = vld [vmem:[#allocation9] sm:$0xff]  ;;  %v10481_v60 = vmov 13   ;;  %vm2109_vm2 = vcmask 261120  }
  0x77   : > { %s980_s23 = sld [smem:[#allocation5 + %s7767_s5]]  ;;  %s7771_s2 = sadd.s32 4, %s7755_s26  ;;  %v2154_v57 = vand.u32 4294901760, %v2126_v55  ;;  %vm1203_vm3 = vcmask 64512  }
  0x78   : > { %s996_s9 = sld [smem:[#allocation5 + %s7771_s2]]  ;;  %s7775_s4 = sadd.s32 5, %s7755_s26  ;;  %6308 = vmatpush.msra.mxu2 %v2152_v52  ;;  %v2188_v58 = vsub.f32 %v2127_v50, %v2152_v52  ;;  %2153 = vmatpush.msra.mxu0 %v2152_v52  ;;  %v10499_v50 = vmov 14  }
  0x79   : > { %s1012_s25 = sld [smem:[#allocation5 + %s7775_s4]]  ;;  %s7779_s6 = sadd.s32 6, %s7755_s26  ;;  %v2194_v62 = vsub.f32 %v2126_v55, %v2154_v57 }
  0x7a   : > { %s1028_s30 = sld [smem:[#allocation5 + %s7779_s6]]  ;;  %s940_s1 = scalar_lea.vmem [#allocation6], %s931_s3  ;;  %6309 = vmatpush.msra.mxu2 %v2154_v57  ;;  %v2189_v61 = vand.u32 4294901760, %v2188_v58  ;;  %2155 = vmatpush.msra.mxu0 %v2154_v57 }
  0x7b   : > { %v941_v0 = vld [vmem:[%s940_s1] sm:$0x1]  ;;  %s7783_s22 = sadd.s32 7, %s7755_s26  ;;  %s957_s0 = scalar_lea.vmem [#allocation6], %s948_s28 }
  0x7c   : > { %943 = vst.msk [vmem:[#allocation2] sm:$0x1] %vm942_vm0, %v941_v0  ;;  %v958_v1 = vld [vmem:[%s957_s0] sm:$0x1]  ;;  %s1044_s8 = sld [smem:[#allocation5 + %s7783_s22]]  ;;  %s973_s10 = scalar_lea.vmem [#allocation6], %s964_s24  ;;  %2224 = vmatpush.msrb.mxu2 %v2188_v58  ;;  %2287 = vmatpush.msrb.mxu0 %v2189_v61 }
  0x7d   : > { %959 = vst.msk [vmem:[#allocation2 + $0x1] sm:$0x1] %vm942_vm0, %v958_v1  ;;  %v974_v2 = vld [vmem:[%s973_s10] sm:$0x1]  ;;  %s989_s11 = scalar_lea.vmem [#allocation6], %s980_s23  ;;  %s932_s3 = sshra.s32 %s7755_s26, 7  ;;  %v2190_v1 = vsub.f32 %v2188_v58, %v2189_v61 }
  0x7e   : > { %975 = vst.msk [vmem:[#allocation2 + $0x2] sm:$0x1] %vm942_vm0, %v974_v2  ;;  %v990_v3 = vld [vmem:[%s989_s11] sm:$0x1]  ;;  %s1005_s1 = scalar_lea.vmem [#allocation6], %s996_s9  ;;  %s6275_s12 = sshll.u32 %s932_s3, 7  ;;  %2227 = vmatpush.msrb.mxu2 %v2194_v62 }
  0x7f   : > { %991 = vst.msk [vmem:[#allocation2 + $0x3] sm:$0x1] %vm942_vm0, %v990_v3  ;;  %v1006_v4 = vld [vmem:[%s1005_s1] sm:$0x1]  ;;  %s1021_s28 = scalar_lea.vmem [#allocation6], %s1012_s25  ;;  %s6276_s0 = sadd.s32 128, %s6275_s12 }
  0x80   : > { %1007 = vst.msk [vmem:[#allocation2 + $0x4] sm:$0x1] %vm942_vm0, %v1006_v4  ;;  %v1022_v5 = vld [vmem:[%s1021_s28] sm:$0x1]  ;;  %s1037_s10 = scalar_lea.vmem [#allocation6], %s1028_s30  ;;  %s937_s24 = sand.u32 127, %s7755_s26 }
  0x81   : > { %1023 = vst.msk [vmem:[#allocation2 + $0x5] sm:$0x1] %vm942_vm0, %v1022_v5  ;;  %v1038_v6 = vld [vmem:[%s1037_s10] sm:$0x1]  ;;  %s949_s11 = sshra.s32 %s7759_s29, 7  ;;  %s938_s23 = sadd.s32 %s6276_s0, %s937_s24  ;;  %v2195_v2 = vand.u32 4294901760, %v2194_v62 }
  0x82   : > { %1039 = vst.msk [vmem:[#allocation2 + $0x6] sm:$0x1] %vm942_vm0, %v1038_v6  ;;  %s1053_s9 = scalar_lea.vmem [#allocation6], %s1044_s8  ;;  %s939_s3 = sld [smem:[#allocation5 + %s938_s23]]  ;;  %v10513_v4 = vmov 7   ;;  %v2191_v5 = vand.u32 4294901760, %v2190_v1 }
  0x83   : > { %v1054_v7 = vld [vmem:[%s1053_s9] sm:$0x1]  ;;  %s6277_s1 = sshll.u32 %s949_s11, 7  ;;  %s954_s25 = sand.u32 127, %s7759_s29  ;;  %v2196_v6 = vsub.f32 %v2194_v62, %v2195_v2  ;;  %2291 = vmatpush.msrb.mxu0 %v2195_v2  ;;  %v10477_v58 = vmov 16   ;;  %v10539_v61 = vmov 33  }
  0x84   : > { %1055 = vst.msk [vmem:[#allocation2 + $0x7] sm:$0x1] %vm942_vm0, %v1054_v7  ;;  %s6278_s12 = sadd.s32 128, %s6277_s1  ;;  %s965_s30 = sshra.s32 %s7763_s27, 7  ;;  %6310 = vmatpush.msra.mxu3 %v2191_v5  ;;  %2192 = vmatpush.msra.mxu1 %v2191_v5  ;;  %v10541_v1 = vmov 35   ;;  %v10485_v5 = vmov 19  }
  0x85   : > { %s955_s28 = sadd.s32 %s6278_s12, %s954_s25  ;;  %s6279_s13 = sshll.u32 %s965_s30, 7 }
  0x86   : > { %s956_s10 = sld [smem:[#allocation5 + %s955_s28]]  ;;  %s6280_s14 = sadd.s32 128, %s6279_s13 }
  0x87   : > { %s970_s15 = sand.u32 127, %s7763_s27  ;;  %s981_s20 = sshra.s32 %s7767_s5, 7 }
  0x88   : > { %s971_s17 = sadd.s32 %s6280_s14, %s970_s15  ;;  %s944_s0 = scalar_lea.vmem [#allocation6], %s939_s3 }
  0x89   : > { %s972_s21 = sld [smem:[#allocation5 + %s971_s17]]  ;;  %v945_v8 = vld [vmem:[%s944_s0] sm:$0x1]  ;;  %s6281_s8 = sshll.u32 %s981_s20, 7 }
  0x8a   : > { %s986_s24 = sand.u32 127, %s7767_s5  ;;  %946 = vst.msk [vmem:[#allocation3] sm:$0x1] %vm942_vm0, %v945_v8  ;;  %s6282_s29 = sadd.s32 128, %s6281_s8 }
  0x8b   : > { %v7802_v9 = vld [vmem:[#allocation2] sm:$0xff]  ;;  %s997_s11 = sshra.s32 %s7771_s2, 7  ;;  %s7387_s23 = smov 112  }
  0x8c   : > { %1216 = vrot.lane.b32.xlu2 %v7802_v9, %s7387_s23  ;;  %s7388_s13 = smov 120   ;;  %s987_s14 = sadd.s32 %s6282_s29, %s986_s24 }
  0x8d   : > { %1208 = vrot.lane.b32.xlu1 %v7802_v9, %s7388_s13  ;;  %s960_s15 = scalar_lea.vmem [#allocation6], %s956_s10  ;;  %s988_s17 = sld [smem:[#allocation5 + %s987_s14]] }
  0x8e   : > { %v961_v10 = vld [vmem:[%s960_s15] sm:$0x1]  ;;  %s6283_s20 = sshll.u32 %s997_s11, 7  ;;  %s1002_s5 = sand.u32 127, %s7771_s2 }
  0x8f   : > { %962 = vst.msk [vmem:[#allocation3 + $0x1] sm:$0x1] %vm942_vm0, %v961_v10  ;;  %s6284_s27 = sadd.s32 128, %s6283_s20  ;;  %s976_s3 = scalar_lea.vmem [#allocation6], %s972_s21 }
  0x90   : > { %s1003_s9 = sadd.s32 %s6284_s27, %s1002_s5  ;;  %v977_v11 = vld [vmem:[%s976_s3] sm:$0x1]  ;;  %s1013_s12 = sshra.s32 %s7775_s4, 7 }
  0x91   : > { %s1004_s1 = sld [smem:[#allocation5 + %s1003_s9]]  ;;  %978 = vst.msk [vmem:[#allocation3 + $0x2] sm:$0x1] %vm942_vm0, %v977_v11  ;;  %s6285_s25 = sshll.u32 %s1013_s12, 7 }
  0x92   : > { %s1018_s28 = sand.u32 127, %s7775_s4  ;;  %s6286_s30 = sadd.s32 128, %s6285_s25 }
  0x93   : > { %s1029_s10 = sshra.s32 %s7779_s6, 7  ;;  %s1019_s0 = sadd.s32 %s6286_s30, %s1018_s28 }
  0x94   : > { %s992_s8 = scalar_lea.vmem [#allocation6], %s988_s17  ;;  %s1020_s24 = sld [smem:[#allocation5 + %s1019_s0]] }
  0x95   : > { %v993_v12 = vld [vmem:[%s992_s8] sm:$0x1]  ;;  %s6287_s29 = sshll.u32 %s1029_s10, 7  ;;  %s1034_s2 = sand.u32 127, %s7779_s6 }
  0x96   : > { %994 = vst.msk [vmem:[#allocation3 + $0x3] sm:$0x1] %vm942_vm0, %v993_v12  ;;  %s6288_s21 = sadd.s32 128, %s6287_s29  ;;  %s1045_s20 = sshra.s32 %s7783_s22, 7 }
  0x97   : > { %s1035_s11 = sadd.s32 %s6288_s21, %s1034_s2  ;;  %s1008_s14 = scalar_lea.vmem [#allocation6], %s1004_s1 }
  0x98   : > { %v1009_v13 = vld [vmem:[%s1008_s14] sm:$0x1]  ;;  %s1036_s15 = sld [smem:[#allocation5 + %s1035_s11]]  ;;  %s6289_s4 = sshll.u32 %s1045_s20, 7 }
  0x99   : > { %1010 = vst.msk [vmem:[#allocation3 + $0x4] sm:$0x1] %vm942_vm0, %v1009_v13  ;;  %s1050_s17 = sand.u32 127, %s7783_s22  ;;  %s6290_s27 = sadd.s32 128, %s6289_s4  ;;  %v10479_v13 = vmov 15  }
  0x9a   : > { %s1051_s5 = sadd.s32 %s6290_s27, %s1050_s17  ;;  %s1024_s9 = scalar_lea.vmem [#allocation6], %s1020_s24 }
  0x9b   : > { %v1025_v14 = vld [vmem:[%s1024_s9] sm:$0x1]  ;;  %s1052_s3 = sld [smem:[#allocation5 + %s1051_s5]]  ;;  %s7822_s6 = sadd.s32 8, %s7755_s26 }
  0x9c   : > { %1026 = vst.msk [vmem:[#allocation3 + $0x5] sm:$0x1] %vm942_vm0, %v1025_v14  ;;  %s1060_s1 = sld [smem:[#allocation5 + %s7822_s6]]  ;;  %s7827_s12 = sadd.s32 9, %s7755_s26 }
  0x9d   : > { %s1076_s25 = sld [smem:[#allocation5 + %s7827_s12]]  ;;  %s7831_s22 = sadd.s32 10, %s7755_s26 }
  0x9e   : > { %s1040_s28 = scalar_lea.vmem [#allocation6], %s1036_s15  ;;  %s7834_s30 = sadd.s32 11, %s7755_s26 }
  0x9f   : > { %v1041_v15 = vld [vmem:[%s1040_s28] sm:$0x1]  ;;  %s1092_s10 = sld [smem:[#allocation5 + %s7831_s22]]  ;;  %s7839_s0 = sadd.s32 12, %s7755_s26 }
  0xa0   : > { %1042 = vst.msk [vmem:[#allocation3 + $0x6] sm:$0x1] %vm942_vm0, %v1041_v15  ;;  %s1108_s8 = sld [smem:[#allocation5 + %s7834_s30]]  ;;  %s7843_s24 = sadd.s32 13, %s7755_s26 }
  0xa1   : > { %s1124_s29 = sld [smem:[#allocation5 + %s7839_s0]]  ;;  %s1056_s21 = scalar_lea.vmem [#allocation6], %s1052_s3 }
  0xa2   : > { %v1057_v16 = vld [vmem:[%s1056_s21] sm:$0x1]  ;;  %s1140_s2 = sld [smem:[#allocation5 + %s7843_s24]]  ;;  %s1069_s11 = scalar_lea.vmem [#allocation6], %s1060_s1 }
  0xa3   : > { %1058 = vst.msk [vmem:[#allocation3 + $0x7] sm:$0x1] %vm942_vm0, %v1057_v16  ;;  %v1070_v17 = vld [vmem:[%s1069_s11] sm:$0x1]  ;;  %s7849_s14 = sadd.s32 14, %s7755_s26  ;;  %s1085_s15 = scalar_lea.vmem [#allocation6], %s1076_s25 }
  0xa4   : > { %1071 = vst.msk [vmem:[#allocation2 + $0x8] sm:$0x1] %vm942_vm0, %v1070_v17  ;;  %v1086_v18 = vld [vmem:[%s1085_s15] sm:$0x1]  ;;  %s1156_s20 = sld [smem:[#allocation5 + %s7849_s14]]  ;;  %s7854_s4 = sadd.s32 15, %s7755_s26 }
  0xa5   : > { %1087 = vst.msk [vmem:[#allocation2 + $0x9] sm:$0x1] %vm942_vm0, %v1086_v18  ;;  %s1172_s17 = sld [smem:[#allocation5 + %s7854_s4]]  ;;  %s1101_s27 = scalar_lea.vmem [#allocation6], %s1092_s10  ;;  %v10509_v17 = vmov 9  }
  0xa6   : > { %v1102_v19 = vld [vmem:[%s1101_s27] sm:$0x1]  ;;  %s1061_s5 = sshra.s32 %s7822_s6, 7  ;;  %s1117_s9 = scalar_lea.vmem [#allocation6], %s1108_s8 }
  0xa7   : > { %1103 = vst.msk [vmem:[#allocation2 + $0xa] sm:$0x1] %vm942_vm0, %v1102_v19  ;;  %v1118_v20 = vld [vmem:[%s1117_s9] sm:$0x1]  ;;  %s6291_s3 = sshll.u32 %s1061_s5, 7  ;;  %s1133_s1 = scalar_lea.vmem [#allocation6], %s1124_s29 }
  0xa8   : > { %1119 = vst.msk [vmem:[#allocation2 + $0xb] sm:$0x1] %vm942_vm0, %v1118_v20  ;;  %v1134_v21 = vld [vmem:[%s1133_s1] sm:$0x1]  ;;  %s6292_s25 = sadd.s32 128, %s6291_s3  ;;  %s1149_s28 = scalar_lea.vmem [#allocation6], %s1140_s2 }
  0xa9   : > { %1135 = vst.msk [vmem:[#allocation2 + $0xc] sm:$0x1] %vm942_vm0, %v1134_v21  ;;  %v1150_v22 = vld [vmem:[%s1149_s28] sm:$0x1]  ;;  %s1066_s21 = sand.u32 127, %s7822_s6  ;;  %s1077_s11 = sshra.s32 %s7827_s12, 7 }
  0xaa   : > { %v7864_v23 = vld [vmem:[#allocation3] sm:$0xff]  ;;  %1151 = vst.msk [vmem:[#allocation2 + $0xd] sm:$0x1] %vm942_vm0, %v1150_v22  ;;  %s1067_s10 = sadd.s32 %s6292_s25, %s1066_s21  ;;  %s7389_s8 = smov 8   ;;  %v10475_v21 = vmov 18  }
  0xab   : > { %1197 = vrot.lane.b32.xlu0 %v7864_v23, %s7389_s8  ;;  %s1165_s29 = scalar_lea.vmem [#allocation6], %s1156_s20  ;;  %s1068_s15 = sld [smem:[#allocation5 + %s1067_s10]] }
  0xac   : > { %v1166_v24 = vld [vmem:[%s1165_s29] sm:$0x1]  ;;  %s1181_s2 = scalar_lea.vmem [#allocation6], %s1172_s17  ;;  %s6293_s6 = sshll.u32 %s1077_s11, 7 }
  0xad   : > { %1167 = vst.msk [vmem:[#allocation2 + $0xe] sm:$0x1] %vm942_vm0, %v1166_v24  ;;  %v1182_v25 = vld [vmem:[%s1181_s2] sm:$0x1]  ;;  %s1082_s27 = sand.u32 127, %s7827_s12  ;;  %s6294_s5 = sadd.s32 128, %s6293_s6 }
  0xae   : > { %1183 = vst.msk [vmem:[#allocation2 + $0xf] sm:$0x1] %vm942_vm0, %v1182_v25  ;;  %s1093_s9 = sshra.s32 %s7831_s22, 7  ;;  %s1083_s3 = sadd.s32 %s6294_s5, %s1082_s27  ;;  %v10471_v25 = vmov 20  }
  0xaf   : > { %s6295_s1 = sshll.u32 %s1093_s9, 7  ;;  %s1084_s25 = sld [smem:[#allocation5 + %s1083_s3]] }
  0xb0   : > { %s6296_s28 = sadd.s32 128, %s6295_s1  ;;  %s1098_s20 = sand.u32 127, %s7831_s22 }
  0xb1   : > { %s1109_s21 = sshra.s32 %s7834_s30, 7  ;;  %s1099_s29 = sadd.s32 %s6296_s28, %s1098_s20 }
  0xb2   : > { %s1072_s10 = scalar_lea.vmem [#allocation6], %s1068_s15  ;;  %s1100_s17 = sld [smem:[#allocation5 + %s1099_s29]] }
  0xb3   : > { %v1073_v26 = vld [vmem:[%s1072_s10] sm:$0x1]  ;;  %s6297_s2 = sshll.u32 %s1109_s21, 7  ;;  %s1114_s11 = sand.u32 127, %s7834_s30 }
  0xb4   : > { %1074 = vst.msk [vmem:[#allocation3 + $0x8] sm:$0x1] %vm942_vm0, %v1073_v26  ;;  %s6298_s12 = sadd.s32 128, %s6297_s2  ;;  %s1125_s27 = sshra.s32 %s7839_s0, 7  ;;  %v10483_v26 = vmov 11  }
  0xb5   : > { %v7877_v27 = vld [vmem:[#allocation2 + $0x8] sm:$0xff]  ;;  %s1115_s6 = sadd.s32 %s6298_s12, %s1114_s11  ;;  %s1088_s15 = scalar_lea.vmem [#allocation6], %s1084_s25 }
  0xb6   : > { %1218 = vrot.lane.b32.xlu2 %v7877_v27, %s7387_s23  ;;  %1210 = vrot.lane.b32.xlu1 %v7877_v27, %s7388_s13  ;;  %s1116_s22 = sld [smem:[#allocation5 + %s1115_s6]]  ;;  %v1089_v28 = vld [vmem:[%s1088_s15] sm:$0x1]  ;;  %s6299_s5 = sshll.u32 %s1125_s27, 7 }
  0xb7   : > { %s1130_s9 = sand.u32 127, %s7839_s0  ;;  %1090 = vst.msk [vmem:[#allocation3 + $0x9] sm:$0x1] %vm942_vm0, %v1089_v28  ;;  %s6300_s30 = sadd.s32 128, %s6299_s5 }
  0xb8   : > { %s1141_s3 = sshra.s32 %s7843_s24, 7  ;;  %s1131_s1 = sadd.s32 %s6300_s30, %s1130_s9 }
  0xb9   : > { %s1104_s28 = scalar_lea.vmem [#allocation6], %s1100_s17  ;;  %s1132_s20 = sld [smem:[#allocation5 + %s1131_s1]] }
  0xba   : > { %v1105_v29 = vld [vmem:[%s1104_s28] sm:$0x1]  ;;  %s6301_s21 = sshll.u32 %s1141_s3, 7  ;;  %s1146_s10 = sand.u32 127, %s7843_s24 }
  0xbb   : > { %1106 = vst.msk [vmem:[#allocation3 + $0xa] sm:$0x1] %vm942_vm0, %v1105_v29  ;;  %s6302_s29 = sadd.s32 128, %s6301_s21  ;;  %s1157_s12 = sshra.s32 %s7849_s14, 7  ;;  %v10511_v29 = vmov 23  }
  0xbc   : > { %s1147_s25 = sadd.s32 %s6302_s29, %s1146_s10  ;;  %s1120_s2 = scalar_lea.vmem [#allocation6], %s1116_s22 }
  0xbd   : > { %v1121_v30 = vld [vmem:[%s1120_s2] sm:$0x1]  ;;  %s1148_s0 = sld [smem:[#allocation5 + %s1147_s25]]  ;;  %s6303_s11 = sshll.u32 %s1157_s12, 7 }
  0xbe   : > { %1122 = vst.msk [vmem:[#allocation3 + $0xb] sm:$0x1] %vm942_vm0, %v1121_v30  ;;  %s1162_s6 = sand.u32 127, %s7849_s14  ;;  %s6304_s27 = sadd.s32 128, %s6303_s11  ;;  %v10501_v30 = vmov 12  }
  0xbf   : > { %s1173_s17 = sshra.s32 %s7854_s4, 7  ;;  %s1163_s15 = sadd.s32 %s6304_s27, %s1162_s6 }
  0xc0   : > { %s1136_s5 = scalar_lea.vmem [#allocation6], %s1132_s20  ;;  %s1164_s9 = sld [smem:[#allocation5 + %s1163_s15]] }
  0xc1   : > { %v1137_v31 = vld [vmem:[%s1136_s5] sm:$0x1]  ;;  %s6305_s30 = sshll.u32 %s1173_s17, 7  ;;  %s1178_s3 = sand.u32 127, %s7854_s4 }
  0xc2   : > { %1138 = vst.msk [vmem:[#allocation3 + $0xc] sm:$0x1] %vm942_vm0, %v1137_v31  ;;  %s6306_s24 = sadd.s32 128, %s6305_s30  ;;  %s7390_s21 = smov 104  }
  0xc3   : > { %s1179_s22 = sadd.s32 %s6306_s24, %s1178_s3  ;;  %s1152_s1 = scalar_lea.vmem [#allocation6], %s1148_s0  ;;  %1230 = vrot.lane.b32.xlu2 %v7802_v9, %s7390_s21 }
  0xc4   : > { %v1153_v32 = vld [vmem:[%s1152_s1] sm:$0x1]  ;;  %s1180_s28 = sld [smem:[#allocation5 + %s1179_s22]]  ;;  %s7391_s4 = smov 96  }
  0xc5   : > { %1154 = vst.msk [vmem:[#allocation3 + $0xd] sm:$0x1] %vm942_vm0, %v1153_v32  ;;  %s7392_s29 = smov 88   ;;  %s7393_s10 = smov 80  }
  0xc6   : > { %s1168_s14 = scalar_lea.vmem [#allocation6], %s1164_s9  ;;  %s6237_s25 = sshll.u32 %s7607_s16, 1 }
  0xc7   : > { %v1169_v33 = vld [vmem:[%s1168_s14] sm:$0x1]  ;;  %p906_p13 = scmp.lt.s32.totalorder %s6237_s25, 5  ;;  %s7396_s2 = smov 72  }
  0xc8   : > { %1170 = vst.msk [vmem:[#allocation3 + $0xe] sm:$0x1] %vm942_vm0, %v1169_v33  ;;  %s7397_s0 = smov 64   ;;  %s10645_s6 = sld [smem:[#allocation129_spill]]  ;;  %v10505_v33 = vmov 25  }
  0xc9   : > { %s11017_s25 = smov (!%p906_p13, %s6237_s25), 5  ;;  %s10646_s5 = sld [smem:[#allocation131_spill]] }
  0xca   : > { %s1184_s20 = scalar_lea.vmem [#allocation6], %s1180_s28  ;;  %s7945_s16 = sshll.u32 %s11017_s25, 3 }
  0xcb   : > { %v1185_v34 = vld [vmem:[%s1184_s20] sm:$0x1]  ;;  %s7447_s3 = smov 32   ;;  %s7454_s22 = smov 48  }
  0xcc   : > { %1186 = vst.msk [vmem:[#allocation3 + $0xf] sm:$0x1] %vm942_vm0, %v1185_v34  ;;  %s7461_s1 = smov 16   ;;  %s10760_s20 = sld [smem:[#allocation130_spill]] }
  0xcd   : > { %s10769_s11 = sld [smem:[#allocation132_spill]] }
  0xce   : > { %s7953_s27 = scalar_lea.vmem %s10645_s6, %s7945_s16  ;;  %s10783_s17 = sld [smem:[#allocation142_spill]] }
  0xcf   : > { %v7956_v38 = vld [vmem:[%s7953_s27 + $0x8] sm:$0xff]  ;;  %v7970_v41 = vld [vmem:[%s7953_s27] sm:$0xff]  ;;  %s7992_s9 = scalar_lea.vmem %s10646_s5, %s7945_s16 }
  0xd0   : > { %v2125_v51 = vld [vmem:[%s7992_s9 + $0x8] sm:$0xff]  ;;  %v2124_v8 = vld [vmem:[%s7992_s9] sm:$0xff]  ;;  %s7465_s9 = smov 24  }
  0xd1   : > { %v2136_v53 = vsel %vm2106_vm1, %v2125_v51, 0  ;;  %v2133_v10 = vsel %vm2106_vm1, %v2124_v8, 0  ;;  %v10531_v8 = vmov 38  }
  0xd2   : > { %v8003_v56 = vand.u32 4294901760, %v2136_v53  ;;  %v2156_v12 = vand.u32 4294901760, %v2133_v10  ;;  %s8883_s25 = scalar_lea.vmem %s10760_s20, %s7945_s16 }
  0xd3   : > { %v7900_v35 = vld [vmem:[#allocation3 + $0x8] sm:$0xff]  ;;  %s8928_s6 = scalar_lea.vmem %s10769_s11, %s7945_s16 }
  0xd4   : > { %1199 = vrot.lane.b32.xlu0 %v7900_v35, %s7389_s8  ;;  %1224 = vrot.lane.b32.xlu1 %v7900_v35, %s7388_s13  ;;  %v8006_v59 = vsub.f32 %v2136_v53, %v8003_v56  ;;  %v2157_v14 = vsub.f32 %v2133_v10, %v2156_v12 }
  0xd5   : > { %1238 = vrot.lane.b32.xlu2 %v7900_v35, %s7387_s23 }
  0xd6   : > { %v2166_v63 = vand.u32 4294901760, %v8006_v59  ;;  %v2158_v15 = vand.u32 4294901760, %v2157_v14 }
  0xd8   : > { %v2167_v3 = vsub.f32 %v8006_v59, %v2166_v63  ;;  %v2159_v18 = vsub.f32 %v2157_v14, %v2158_v15 }
  0xda   : > { %v2168_v7 = vand.u32 4294901760, %v2167_v3  ;;  %v2160_v19 = vand.u32 4294901760, %v2159_v18  ;;  %v10495_v18 = vmov 21  }
  0xdc   : > { %1222 = vrot.lane.b32.xlu0 %v7864_v23, %s7388_s13  ;;  %1236 = vrot.lane.b32.xlu1 %v7864_v23, %s7387_s23 }
  0xdd   : > { %1250 = vrot.lane.b32.xlu2 %v7864_v23, %s7390_s21  ;;  %2169 = vmatmul.f32.vlgmr.msra.gmra.mxu2 %v2168_v7 }
  0xde   : > { %2161 = vmatmul.f32.vlgmr.msra.gmra.mxu0 %v2160_v19 }
  0xe4   : > { %1232 = vrot.lane.b32.xlu0 %v7877_v27, %s7390_s21  ;;  %1246 = vrot.lane.b32.xlu1 %v7877_v27, %s7391_s4 }
  0xe5   : > { %1260 = vrot.lane.b32.xlu2 %v7877_v27, %s7392_s29  ;;  %2230 = vmatmul.f32.vlgmr.msrb.gmra.mxu2 %v2157_v14  ;;  %v10537_v14 = vmov 40  }
  0xe6   : > { %v7962_v39 = vpop.permute.xlu2 %1216  ;;  %2293 = vmatmul.f32.vlgmr.msrb.gmra.mxu0 %v2156_v12 }
  0xec   : > { %1244 = vrot.lane.b32.xlu0 %v7802_v9, %s7391_s4  ;;  %1258 = vrot.lane.b32.xlu1 %v7802_v9, %s7392_s29 }
  0xed   : > { %1272 = vrot.lane.b32.xlu2 %v7802_v9, %s7393_s10  ;;  %2235 = vmatmul.f32.gmra.mxu2 %v8006_v59 }
  0xee   : > { %2297 = vmatmul.f32.gmra.mxu0 %v8003_v56 }
  0xf4   : > { %1252 = vrot.lane.b32.xlu0 %v7900_v35, %s7390_s21  ;;  %1266 = vrot.lane.b32.xlu1 %v7900_v35, %s7391_s4 }
  0xf5   : > { %1280 = vrot.lane.b32.xlu2 %v7900_v35, %s7392_s29 }
  0xfc   : > { %1264 = vrot.lane.b32.xlu0 %v7864_v23, %s7391_s4  ;;  %1278 = vrot.lane.b32.xlu1 %v7864_v23, %s7392_s29 }
  0xfd   : > { %1292 = vrot.lane.b32.xlu2 %v7864_v23, %s7393_s10 }
  0xff   : > { %v8001_v54 = vpop.permute.xlu1 %1208 }
 0x104   : > { %1274 = vrot.lane.b32.xlu0 %v7877_v27, %s7393_s10  ;;  %1288 = vrot.lane.b32.xlu1 %v7877_v27, %s7396_s2 }
 0x105   : > { %1302 = vrot.lane.b32.xlu2 %v7877_v27, %s7397_s0 }
 0x10c   : > { %1286 = vrot.lane.b32.xlu0 %v7802_v9, %s7396_s2  ;;  %1300 = vrot.lane.b32.xlu1 %v7802_v9, %s7397_s0  ;;  %v2197_v9 = vand.u32 4294901760, %v2196_v6 }
 0x10d   : > { %1331 = vperm.xlu2 %6567, %v7956_v38  }
 0x10e   : > { %6311 = vmatpush.msra.mxu3 %v2197_v9  ;;  %2198 = vmatpush.msra.mxu1 %v2197_v9 }
 0x10f   : > { %2204 = vmatmul.f32.vlgmr.msra.gmra.mxu3 %v8003_v56  ;;  %2200 = vmatmul.f32.vlgmr.msra.gmra.mxu1 %v2156_v12 }
 0x110   : > { %v7972_v42 = vpop.permute.xlu2 %1218  ;;  %2254 = vmatpush.msrb.mxu3 %v2152_v52  ;;  %2316 = vmatpush.msrb.mxu1 %v2152_v52  ;;  %v10547_v52 = vmov 28  }
 0x112   : > { %2256 = vmatpush.msrb.mxu3 %v2154_v57  ;;  %2318 = vmatpush.msrb.mxu1 %v2154_v57 }
 0x114   : > { %1294 = vrot.lane.b32.xlu0 %v7900_v35, %s7393_s10  ;;  %1308 = vrot.lane.b32.xlu1 %v7900_v35, %s7396_s2 }
 0x115   : > { %6569 = vset.pattern.permute.xlu2 %v10493_v40 }
 0x116   : > { %1343 = vperm.xlu2 %6569, %v7956_v38  }
 0x117   : > { %2260 = vmatmul.f32.vlgmr.msrb.gmra.mxu3 %v2158_v15  ;;  %2320 = vmatmul.f32.vlgmr.msrb.gmra.mxu1 %v2156_v12 }
 0x11c   : > { %1306 = vrot.lane.b32.xlu0 %v7864_v23, %s7396_s2  ;;  %1327 = vperm.xlu1 %6566, %v7970_v41  }
 0x11d   : > { %v7981_v44 = vpop.permute.xlu2 %1230  ;;  %v8114_v6 = vpop.permute.xlu0 %1197 }
 0x11e   : > { %6571 = vset.pattern.permute.xlu2 %v10491_v43 }
 0x11f   : > { %1363 = vperm.xlu2 %6571, %v7970_v41   ;;  %2266 = vmatmul.f32.gmra.mxu3 %v2166_v63  ;;  %v10473_v63 = vmov 17  }
 0x120   : > { %2324 = vmatmul.f32.gmra.mxu1 %v8003_v56  ;;  %v10549_v56 = vmov 30  }
 0x124   : > { %1411 = vperm.xlu0 %6578, %v7970_v41   ;;  %6568 = vset.pattern.permute.xlu1 %v10493_v40 }
 0x125   : > { %1339 = vperm.xlu1 %6568, %v7970_v41  }
 0x127   : > { %6573 = vset.pattern.permute.xlu2 %v10515_v45 }
 0x128   : > { %1375 = vperm.xlu2 %6573, %v7970_v41   ;;  %v8020_v11 = vpop.permute.xlu1 %1210 }
 0x12c   : > { %6583 = vset.pattern.permute.xlu0 %v10507_v46 }
 0x12d   : > { %1437 = vperm.xlu0 %6583, %v7956_v38   ;;  %6570 = vset.pattern.permute.xlu1 %v10517_v47 }
 0x12e   : > { %1355 = vperm.xlu1 %6570, %v7956_v38  }
 0x12f   : > { %v7995_v48 = vpop.permute.xlu2 %1238 }
 0x130   : > { %6575 = vset.pattern.permute.xlu2 %v10489_v49 }
 0x131   : > { %1391 = vperm.xlu2 %6575, %v7956_v38  }
 0x135   : > { %6588 = vset.pattern.permute.xlu0 %v10481_v60 }
 0x136   : > { %1469 = vperm.xlu0 %6588, %v7970_v41   ;;  %6572 = vset.pattern.permute.xlu1 %v10491_v43  ;;  %v10519_v43 = vmov 48  }
 0x137   : > { %1367 = vperm.xlu1 %6572, %v7956_v38   ;;  %v8013_v0 = vpop.permute.xlu2 %1250 }
 0x139   : > { %6577 = vset.pattern.permute.xlu2 %v10513_v4 }
 0x13a   : > { %1403 = vperm.xlu2 %6577, %v7956_v38  }
 0x13e   : > { %6593 = vset.pattern.permute.xlu0 %v10479_v13 }
 0x13f   : > { %1497 = vperm.xlu0 %6593, %v7956_v38   ;;  %6574 = vset.pattern.permute.xlu1 %v10489_v49  ;;  %v8027_v16 = vpop.permute.xlu2 %1260 }
 0x140   : > { %1387 = vperm.xlu1 %6574, %v7970_v41  }
 0x142   : > { %6580 = vset.pattern.permute.xlu2 %v10509_v17 }
 0x143   : > { %1423 = vperm.xlu2 %6580, %v7970_v41  }
 0x146   : > { %v8031_v20 = vpop.permute.xlu1 %1224  ;;  %v8126_v10 = vpop.permute.xlu0 %1199 }
 0x147   : > { %6598 = vset.pattern.permute.xlu0 %v10475_v21  ;;  %v8037_v22 = vpop.permute.xlu2 %1272 }
 0x148   : > { %1529 = vperm.xlu0 %6598, %v7970_v41   ;;  %6576 = vset.pattern.permute.xlu1 %v10513_v4  ;;  %v10545_v4 = vmov 27  }
 0x149   : > { %1399 = vperm.xlu1 %6576, %v7970_v41  }
 0x14b   : > { %6582 = vset.pattern.permute.xlu2 %v10507_v46 }
 0x14c   : > { %1433 = vperm.xlu2 %6582, %v7970_v41  }
 0x14e   : > { %v8042_v24 = vpop.permute.xlu1 %1236  ;;  %v8138_v19 = vpop.permute.xlu0 %1222 }
 0x14f   : > { %v8050_v27 = vpop.permute.xlu2 %1280 }
 0x150   : > { %6603 = vset.pattern.permute.xlu0 %v10471_v25 }
 0x151   : > { %1555 = vperm.xlu0 %6603, %v7956_v38   ;;  %6579 = vset.pattern.permute.xlu1 %v10487_v37 }
 0x152   : > { %1415 = vperm.xlu1 %6579, %v7956_v38  }
 0x154   : > { %6585 = vset.pattern.permute.xlu2 %v10483_v26 }
 0x155   : > { %1449 = vperm.xlu2 %6585, %v7956_v38  }
 0x156   : > { %v8053_v28 = vpop.permute.xlu1 %1246 }
 0x157   : > { %v8064_v32 = vpop.permute.xlu2 %1292 }
 0x159   : > { %6608 = vset.pattern.permute.xlu0 %v10511_v29 }
 0x15a   : > { %1587 = vperm.xlu0 %6608, %v7970_v41   ;;  %6581 = vset.pattern.permute.xlu1 %v10509_v17  ;;  %v10523_v17 = vmov 53  }
 0x15b   : > { %1427 = vperm.xlu1 %6581, %v7956_v38  }
 0x15d   : > { %6587 = vset.pattern.permute.xlu2 %v10501_v30 }
 0x15e   : > { %v8061_v31 = vpop.permute.xlu1 %1258  ;;  %1461 = vperm.xlu2 %6587, %v7956_v38  }
 0x15f   : > { %v8074_v51 = vpop.permute.xlu2 %1302 }
 0x162   : > { %6613 = vset.pattern.permute.xlu0 %v10505_v33 }
 0x163   : > { %1615 = vperm.xlu0 %6613, %v7956_v38   ;;  %6584 = vset.pattern.permute.xlu1 %v10483_v26  ;;  %v10529_v26 = vmov 45  }
 0x164   : > { %1445 = vperm.xlu1 %6584, %v7970_v41  }
 0x166   : > { %v8070_v34 = vpop.permute.xlu1 %1266  ;;  %6590 = vset.pattern.permute.xlu2 %v10499_v50 }
 0x167   : > { %1481 = vperm.xlu2 %6590, %v7970_v41   ;;  %v8084_v55 = vpop.permute.xlu2 %1331 }
 0x168   : > { %10647 = vst [vmem:[#allocation45_spill] sm:$0xff] %v8084_v55  ;;  %v10553_v55 = vmov 60  }
 0x16b   : > { %6618 = vset.pattern.permute.xlu0 %v10547_v52 }
 0x16c   : > { %1645 = vperm.xlu0 %6618, %v7970_v41   ;;  %6586 = vset.pattern.permute.xlu1 %v10501_v30 }
 0x16d   : > { %1457 = vperm.xlu1 %6586, %v7970_v41  }
 0x16e   : > { %v8080_v53 = vpop.permute.xlu1 %1278 }
 0x16f   : > { %6592 = vset.pattern.permute.xlu2 %v10479_v13 }
 0x170   : > { %1493 = vperm.xlu2 %6592, %v7970_v41   ;;  %v8094_v59 = vpop.permute.xlu2 %1343 }
 0x171   : > { %10648 = vst [vmem:[#allocation46_spill] sm:$0xff] %v8094_v59 }
 0x174   : > { %6623 = vset.pattern.permute.xlu0 %v10549_v56 }
 0x175   : > { %1673 = vperm.xlu0 %6623, %v7956_v38   ;;  %6589 = vset.pattern.permute.xlu1 %v10481_v60  ;;  %v8152_v60 = vpop.permute.xlu0 %1232 }
 0x176   : > { %1473 = vperm.xlu1 %6589, %v7956_v38   ;;  %v8090_v57 = vpop.permute.xlu1 %1288 }
 0x178   : > { %6595 = vset.pattern.permute.xlu2 %v10477_v58 }
 0x179   : > { %1509 = vperm.xlu2 %6595, %v7956_v38   ;;  %v8107_v3 = vpop.permute.xlu2 %1363 }
 0x17a   : > { %10649 = vst [vmem:[#allocation47_spill] sm:$0xff] %v8107_v3 }
 0x17d   : > { %6628 = vset.pattern.permute.xlu0 %v10539_v61  ;;  %v8165_v40 = vpop.permute.xlu0 %1244 }
 0x17e   : > { %1705 = vperm.xlu0 %6628, %v7970_v41   ;;  %6591 = vset.pattern.permute.xlu1 %v10499_v50  ;;  %v8099_v62 = vpop.permute.xlu1 %1300  ;;  %v10525_v50 = vmov 50  }
 0x17f   : > { %1485 = vperm.xlu1 %6591, %v7956_v38  }
 0x181   : > { %6597 = vset.pattern.permute.xlu2 %v10473_v63 }
 0x182   : > { %1521 = vperm.xlu2 %6597, %v7956_v38   ;;  %v8121_v9 = vpop.permute.xlu2 %1375 }
 0x183   : > { %10651 = vst [vmem:[#allocation49_spill] sm:$0xff] %v8121_v9 }
 0x185   : > { %v8179_v30 = vpop.permute.xlu0 %1252 }
 0x186   : > { %6633 = vset.pattern.permute.xlu0 %v10541_v1  ;;  %v8105_v2 = vpop.permute.xlu1 %1308 }
 0x187   : > { %1733 = vperm.xlu0 %6633, %v7956_v38   ;;  %6594 = vset.pattern.permute.xlu1 %v10477_v58  ;;  %v10503_v58 = vmov 22  }
 0x188   : > { %1505 = vperm.xlu1 %6594, %v7970_v41  }
 0x18a   : > { %6600 = vset.pattern.permute.xlu2 %v10485_v5 }
 0x18b   : > { %1539 = vperm.xlu2 %6600, %v7970_v41   ;;  %v8134_v15 = vpop.permute.xlu2 %1391 }
 0x18c   : > { %10653 = vst [vmem:[#allocation51_spill] sm:$0xff] %v8134_v15  ;;  %v8223_v61 = vpop.f32.mrf.mxu1 }
 0x18e   : > { %v8116_v7 = vpop.permute.xlu1 %1327 }
 0x18f   : > { %10650 = vst [vmem:[#allocation48_spill] sm:$0xff] %v8116_v7  ;;  %6638 = vset.pattern.permute.xlu0 %v10531_v8 }
 0x190   : > { %1763 = vperm.xlu0 %6638, %v7970_v41   ;;  %6596 = vset.pattern.permute.xlu1 %v10473_v63  ;;  %v10527_v63 = vmov 43  }
 0x191   : > { %1517 = vperm.xlu1 %6596, %v7970_v41  }
 0x193   : > { %6602 = vset.pattern.permute.xlu2 %v10471_v25 }
 0x194   : > { %1551 = vperm.xlu2 %6602, %v7970_v41  }
 0x197   : > { %v8128_v12 = vpop.permute.xlu1 %1339 }
 0x198   : > { %10652 = vst [vmem:[#allocation50_spill] sm:$0xff] %v8128_v12  ;;  %6643 = vset.pattern.permute.xlu0 %v10537_v14  ;;  %v8221_v14 = vld [vmem:[%s10441_s7] ss:$0 sm:$0xff] }
 0x199   : > { %1791 = vperm.xlu0 %6643, %v7956_v38   ;;  %6599 = vset.pattern.permute.xlu1 %v10475_v21  ;;  %v8146_v21 = vpop.permute.xlu2 %1403 }
 0x19a   : > { %1533 = vperm.xlu1 %6599, %v7956_v38   ;;  %10655 = vst [vmem:[#allocation53_spill] sm:$0xff] %v8146_v21  ;;  %v10664_v21 = vmov 28  }
 0x19c   : > { %6605 = vset.pattern.permute.xlu2 %v10495_v18 }
 0x19d   : > { %1567 = vperm.xlu2 %6605, %v7956_v38  }
 0x1a0   : > { %v8140_v25 = vpop.permute.xlu1 %1355 }
 0x1a1   : > { %10654 = vst [vmem:[#allocation52_spill] sm:$0xff] %v8140_v25  ;;  %6648 = vset.pattern.permute.xlu0 %v10527_v63  ;;  %v8159_v37 = vpop.permute.xlu2 %1423  ;;  %v2205_v63 = vpop.f32.mrf.mxu3 }
 0x1a2   : > { %1823 = vperm.xlu0 %6648, %v7970_v41   ;;  %6601 = vset.pattern.permute.xlu1 %v10485_v5  ;;  %v10521_v5 = vmov 24  }
 0x1a3   : > { %1543 = vperm.xlu1 %6601, %v7956_v38  }
 0x1a5   : > { %6607 = vset.pattern.permute.xlu2 %v10503_v58 }
 0x1a6   : > { %1579 = vperm.xlu2 %6607, %v7956_v38  }
 0x1a9   : > { %v8150_v13 = vpop.permute.xlu1 %1367 }
 0x1aa   : > { %10656 = vst [vmem:[#allocation54_spill] sm:$0xff] %v8150_v13  ;;  %6653 = vset.pattern.permute.xlu0 %v10529_v26  ;;  %v10551_v13 = vmov 31  }
 0x1ab   : > { %1851 = vperm.xlu0 %6653, %v7956_v38   ;;  %6604 = vset.pattern.permute.xlu1 %v10495_v18  ;;  %v8172_v18 = vpop.permute.xlu2 %1433 }
 0x1ac   : > { %1563 = vperm.xlu1 %6604, %v7970_v41  }
 0x1ae   : > { %6610 = vset.pattern.permute.xlu2 %v10521_v5 }
 0x1af   : > { %1599 = vperm.xlu2 %6610, %v7970_v41  }
 0x1b2   : > { %v8162_v49 = vpop.permute.xlu1 %1387 }
 0x1b3   : > { %10657 = vst [vmem:[#allocation55_spill] sm:$0xff] %v8162_v49  ;;  %6658 = vset.pattern.permute.xlu0 %v10519_v43  ;;  %v10533_v43 = vmov 55   ;;  %v8241_v49 = vpop.f32.mrf.mxu1 }
 0x1b4   : > { %1881 = vperm.xlu0 %6658, %v7970_v41   ;;  %6606 = vset.pattern.permute.xlu1 %v10503_v58  ;;  %v10535_v58 = vmov 26  }
 0x1b5   : > { %1575 = vperm.xlu1 %6606, %v7970_v41  }
 0x1b7   : > { %6612 = vset.pattern.permute.xlu2 %v10505_v33  ;;  %v8184_v33 = vpop.permute.xlu2 %1449 }
 0x1b8   : > { %1611 = vperm.xlu2 %6612, %v7970_v41   ;;  %10659 = vst [vmem:[#allocation57_spill] sm:$0xff] %v8184_v33  ;;  %v10569_v33 = vmov 42  }
 0x1bb   : > { %v8174_v36 = vpop.permute.xlu1 %1399 }
 0x1bc   : > { %10658 = vst [vmem:[#allocation56_spill] sm:$0xff] %v8174_v36  ;;  %6663 = vset.pattern.permute.xlu0 %v10525_v50  ;;  %v10543_v50 = vmov 29  }
 0x1bd   : > { %1909 = vperm.xlu0 %6663, %v7956_v38   ;;  %6609 = vset.pattern.permute.xlu1 %v10511_v29  ;;  %v8192_v29 = vpop.permute.xlu0 %1264 }
 0x1be   : > { %1591 = vperm.xlu1 %6609, %v7956_v38  }
 0x1bf   : > { %v8196_v45 = vpop.permute.xlu2 %1461 }
 0x1c0   : > { %6615 = vset.pattern.permute.xlu2 %v10535_v58  ;;  %10661 = vst [vmem:[#allocation59_spill] sm:$0xff] %v8196_v45 }
 0x1c1   : > { %1627 = vperm.xlu2 %6615, %v7956_v38  }
 0x1c4   : > { %v8186_v46 = vpop.permute.xlu1 %1415 }
 0x1c5   : > { %10660 = vst [vmem:[#allocation58_spill] sm:$0xff] %v8186_v46  ;;  %6668 = vset.pattern.permute.xlu0 %v10523_v17  ;;  %v8204_v17 = vpop.permute.xlu0 %1274 }
 0x1c6   : > { %1941 = vperm.xlu0 %6668, %v7970_v41   ;;  %6611 = vset.pattern.permute.xlu1 %v10521_v5  ;;  %v2170_v5 = vpop.f32.mrf.mxu2 }
 0x1c7   : > { %1603 = vperm.xlu1 %6611, %v7956_v38   ;;  %v8210_v8 = vpop.permute.xlu2 %1481 }
 0x1c8   : > { %10662 = vst [vmem:[#allocation60_spill] sm:$0xff] %v8210_v8 }
 0x1c9   : > { %6617 = vset.pattern.permute.xlu2 %v10545_v4 }
 0x1ca   : > { %1639 = vperm.xlu2 %6617, %v7956_v38  }
 0x1cd   : > { %v8198_v47 = vpop.permute.xlu1 %1427  ;;  %v8226_v1 = vpop.permute.xlu0 %1286 }
 0x1ce   : > { %6673 = vset.pattern.permute.xlu0 %v10533_v43  ;;  %v8212_v43 = vpop.f32.mrf.mxu0 }
 0x1cf   : > { %1967 = vperm.xlu0 %6673, %v7956_v38   ;;  %6614 = vset.pattern.permute.xlu1 %v10535_v58  ;;  %v8216_v58 = vpop.f32.mrf.mxu2  ;;  %v8234_v46 = vpop.permute.xlu2 %1493 }
 0x1d0   : > { %1623 = vperm.xlu1 %6614, %v7970_v41   ;;  %10663 = vst [vmem:[#allocation61_spill] sm:$0xff] %v8234_v46 }
 0x1d2   : > { %6620 = vset.pattern.permute.xlu2 %v10543_v50  ;;  %v8229_v50 = vpop.f32.mrf.mxu3 }
 0x1d3   : > { %1657 = vperm.xlu2 %6620, %v7970_v41  }
 0x1d6   : > { %v8208_v26 = vpop.permute.xlu1 %1445  ;;  %v8237_v15 = vpop.f32.mrf.mxu0 }
 0x1d7   : > { %6680 = vset.pattern.permute.xlu0 %v10553_v55 }
 0x1d8   : > { %6616 = vset.pattern.permute.xlu1 %v10545_v4  ;;  %v2171_v4 = vadd.f32 %v8221_v14, %v2170_v5  ;;  %v8244_v5 = vpop.permute.xlu0 %1294 }
 0x1d9   : > { %1635 = vperm.xlu1 %6616, %v7970_v41  }
 0x1da   : > { %v2206_v36 = vadd.f32 %v2205_v63, %v2171_v4  ;;  %v2267_v9 = vpop.f32.mrf.mxu3  ;;  %v8249_v4 = vpop.permute.xlu2 %1509 }
 0x1db   : > { %6622 = vset.pattern.permute.xlu2 %v10549_v56  ;;  %v2236_v56 = vpop.f32.mrf.mxu2  ;;  %10667 = vst [vmem:[#allocation63_spill] sm:$0xff] %v8249_v4 }
 0x1dc   : > { %1669 = vperm.xlu2 %6622, %v7970_v41   ;;  %v2237_v25 = vadd.f32 %v2236_v56, %v2206_v36  ;;  %v2325_v36 = vpop.f32.mrf.mxu1 }
 0x1de   : > { %v2268_v3 = vadd.f32 %v2267_v9, %v2237_v25  ;;  %v2298_v63 = vpop.f32.mrf.mxu0  ;;  %v10669_v9 = vmov 31  }
 0x1df   : > { %v8232_v52 = vpop.permute.xlu1 %1457 }
 0x1e0   : > { %v2299_v12 = vadd.f32 %v2298_v63, %v2268_v3  ;;  %v8255_v56 = vpop.permute.xlu0 %1306  ;;  %v10555_v3 = vmov 34  }
 0x1e1   : > { %6619 = vset.pattern.permute.xlu1 %v10664_v21  ;;  %v10666_v21 = vmov 29  }
 0x1e2   : > { %1649 = vperm.xlu1 %6619, %v7956_v38   ;;  %v8259_v25 = vadd.f32 %v2325_v36, %v2299_v12 }
 0x1e4   : > { %6625 = vset.pattern.permute.xlu2 %v10551_v13  ;;  %v10557_v13 = vmov 32   ;;  %v2333_v55 = vsel %vm2109_vm2, %v8259_v25, 0.0 }
 0x1e5   : > { %1685 = vperm.xlu2 %6625, %v7956_v38  }
 0x1e8   : > { %v8246_v59 = vpop.permute.xlu1 %1473  ;;  %v8269_v63 = vpop.permute.xlu0 %1411 }
 0x1e9   : > { %10665 = vst [vmem:[#allocation62_spill] sm:$0xff] %v8246_v59  ;;  %v10686_v59 = vmov 38  }
 0x1ea   : > { %6621 = vset.pattern.permute.xlu1 %v10666_v21  ;;  %v8263_v21 = vpop.permute.xlu2 %1521  ;;  %10671 = vst [vmem:[#allocation66_spill] sm:$0xff] %v8269_v63 }
 0x1eb   : > { %1661 = vperm.xlu1 %6621, %v7956_v38   ;;  %10670 = vst [vmem:[#allocation65_spill] sm:$0xff] %v8263_v21 }
 0x1ed   : > { %6627 = vset.pattern.permute.xlu2 %v10557_v13 }
 0x1ee   : > { %1697 = vperm.xlu2 %6627, %v7956_v38  }
 0x1f0   : > { %v8277_v21 = vpop.permute.xlu0 %1437 }
 0x1f1   : > { %v8257_v7 = vpop.permute.xlu1 %1485 }
 0x1f2   : > { %10668 = vst [vmem:[#allocation64_spill] sm:$0xff] %v8257_v7  ;;  %v1540_v36 = vpop.permute.xlu2 %1539 }
 0x1f3   : > { %6624 = vset.pattern.permute.xlu1 %v10669_v9  ;;  %v10673_v9 = vmov 35  }
 0x1f4   : > { %1681 = vperm.xlu1 %6624, %v7970_v41  }
 0x1f6   : > { %6630 = vset.pattern.permute.xlu2 %v10555_v3  ;;  %v10675_v3 = vmov 33  }
 0x1f7   : > { %1717 = vperm.xlu2 %6630, %v7970_v41  }
 0x1f9   : > { %2334 = vadd.xlane.f32.xlu0 %v2333_v55  ;;  %v10559_v55 = vmov 36  }
 0x1fa   : > { %v8271_v12 = vpop.permute.xlu1 %1505  ;;  %v1552_v63 = vpop.permute.xlu2 %1551 }
 0x1fb   : > { %10672 = vst [vmem:[#allocation67_spill] sm:$0xff] %v8271_v12  ;;  %v10678_v12 = vmov 34  }
 0x1fc   : > { %6626 = vset.pattern.permute.xlu1 %v10557_v13 }
 0x1fd   : > { %1693 = vperm.xlu1 %6626, %v7970_v41  }
 0x1ff   : > { %6632 = vset.pattern.permute.xlu2 %v10673_v9  ;;  %v8288_v9 = vpop.permute.xlu0 %1469 }
 0x200   : > { %1729 = vperm.xlu2 %6632, %v7970_v41   ;;  %10677 = vst [vmem:[#allocation70_spill] sm:$0xff] %v8288_v9  ;;  %v8332_v9 = vsel %vm1203_vm3, %v7962_v39, %v8138_v19  ;;  %v10689_v39 = vmov 39  }
 0x203   : > { %v8279_v4 = vpop.permute.xlu1 %1517 }
 0x204   : > { %10674 = vst [vmem:[#allocation68_spill] sm:$0xff] %v8279_v4  ;;  %v10561_v4 = vmov 37  }
 0x205   : > { %6629 = vset.pattern.permute.xlu1 %v10675_v3  ;;  %v8294_v3 = vpop.permute.xlu2 %1567 }
 0x206   : > { %1709 = vperm.xlu1 %6629, %v7956_v38   ;;  %10679 = vst [vmem:[#allocation71_spill] sm:$0xff] %v8294_v3 }
 0x207   : > { %v8301_v7 = vpop.permute.xlu0 %1497 }
 0x208   : > { %6635 = vset.pattern.permute.xlu2 %v10559_v55  ;;  %v10563_v55 = vmov 62   ;;  %10682 = vst [vmem:[#allocation73_spill] sm:$0xff] %v8301_v7 }
 0x209   : > { %1745 = vperm.xlu2 %6635, %v7956_v38  }
 0x20c   : > { %v8285_v13 = vpop.permute.xlu1 %1533 }
 0x20d   : > { %10676 = vst [vmem:[#allocation69_spill] sm:$0xff] %v8285_v13  ;;  %2023 = vperm.xlu0 %6680, %v7970_v41   ;;  %v10681_v13 = vmov 36  }
 0x20e   : > { %6631 = vset.pattern.permute.xlu1 %v10678_v12  ;;  %v10565_v12 = vmov 39  }
 0x20f   : > { %1721 = vperm.xlu1 %6631, %v7956_v38   ;;  %v1530_v8 = vpop.permute.xlu0 %1529 }
 0x211   : > { %6637 = vset.pattern.permute.xlu2 %v10561_v4  ;;  %v8306_v4 = vpop.permute.xlu2 %1579 }
 0x212   : > { %1755 = vperm.xlu2 %6637, %v7956_v38   ;;  %10683 = vst [vmem:[#allocation74_spill] sm:$0xff] %v8306_v4  ;;  %v10567_v4 = vmov 41  }
 0x215   : > { %6685 = vset.pattern.permute.xlu0 %v10563_v55  ;;  %v8297_v46 = vpop.permute.xlu1 %1543  ;;  %v10684_v55 = vmov 37  }
 0x216   : > { %10680 = vst [vmem:[#allocation72_spill] sm:$0xff] %v8297_v46  ;;  %2051 = vperm.xlu0 %6685, %v7956_v38   ;;  %v10685_v46 = vmov 40  }
 0x217   : > { %6634 = vset.pattern.permute.xlu1 %v10681_v13  ;;  %v8313_v45 = vpop.permute.xlu0 %1555 }
 0x218   : > { %1741 = vperm.xlu1 %6634, %v7970_v41   ;;  %10687 = vst [vmem:[#allocation75_spill] sm:$0xff] %v8313_v45 }
 0x219   : > { %v1600_v13 = vpop.permute.xlu2 %1599 }
 0x21a   : > { %6640 = vset.pattern.permute.xlu2 %v10565_v12  ;;  %v8319_v12 = vsel %vm1203_vm3, %v8001_v54, %v7864_v23  ;;  %v1558_v23 = vmul.f32 %v1552_v63, %v8332_v9  ;;  %v8338_v54 = vsel %vm1203_vm3, %v7981_v44, %v8042_v24 }
 0x21b   : > { %1775 = vperm.xlu2 %6640, %v7970_v41   ;;  %v1546_v45 = vmul.f32 %v1540_v36, %v8319_v12 }
 0x21e   : > { %v1564_v3 = vpop.permute.xlu1 %1563 }
 0x21f   : > { %v1570_v36 = vmul.f32 %v1564_v3, %v8338_v54  ;;  %v1588_v44 = vpop.permute.xlu0 %1587 }
 0x220   : > { %6636 = vset.pattern.permute.xlu1 %v10684_v55  ;;  %v6867_v55 = vld [vmem:[#allocation2] sm:$0xff] }
 0x221   : > { %1751 = vperm.xlu1 %6636, %v7970_v41  }
 0x223   : > { %6642 = vset.pattern.permute.xlu2 %v10685_v46  ;;  %v8323_v46 = vsel %vm1203_vm3, %v6867_v55, %v8114_v6 }
 0x224   : > { %1787 = vperm.xlu2 %6642, %v7970_v41  }
 0x227   : > { %v1576_v7 = vpop.permute.xlu1 %1575 }
 0x229   : > { %6639 = vset.pattern.permute.xlu1 %v10686_v59  ;;  %v1536_v59 = vmul.f32 %v1530_v8, %v8323_v46  ;;  %v1612_v8 = vpop.permute.xlu2 %1611 }
 0x22a   : > { %1767 = vperm.xlu1 %6639, %v7956_v38  }
 0x22b   : > { %v1548_v55 = vadd.f32 %v1546_v45, %v1536_v59 }
 0x22c   : > { %6645 = vset.pattern.permute.xlu2 %v10567_v4  ;;  %v8346_v4 = vsel %vm1203_vm3, %v8165_v40, %v8013_v0  ;;  %v8356_v40 = vsel %vm1203_vm3, %v8061_v31, %v8192_v29  ;;  %v8371_v29 = vpop.permute.xlu0 %1615  ;;  %v10571_v31 = vmov 44  }
 0x22d   : > { %1803 = vperm.xlu2 %6645, %v7956_v38   ;;  %v1560_v19 = vadd.f32 %v1558_v23, %v1548_v55  ;;  %v1582_v63 = vmul.f32 %v1576_v7, %v8346_v4  ;;  %v1594_v0 = vmul.f32 %v1588_v44, %v8356_v40  ;;  %v10692_v23 = vmov 41   ;;  %10693 = vst [vmem:[#allocation79_spill] sm:$0xff] %v8371_v29 }
 0x22e   : > { %v8367_v55 = vsel %vm1203_vm3, %v8037_v22, %v8080_v53  ;;  %v8384_v53 = vsel %vm1203_vm3, %v8099_v62, %v8255_v56  ;;  %v10695_v56 = vmov 43  }
 0x22f   : > { %v1572_v24 = vadd.f32 %v1570_v36, %v1560_v19  ;;  %v1606_v36 = vmul.f32 %v1600_v13, %v8367_v55 }
 0x230   : > { %v8340_v6 = vpop.permute.xlu1 %1591 }
 0x231   : > { %10688 = vst [vmem:[#allocation76_spill] sm:$0xff] %v8340_v6  ;;  %v1584_v45 = vadd.f32 %v1582_v63, %v1572_v24  ;;  %v8361_v7 = vpop.permute.xlu2 %1627  ;;  %v8378_v63 = vsel %vm1203_vm3, %v8226_v1, %v8064_v32  ;;  %v10694_v32 = vmov 45  }
 0x232   : > { %6641 = vset.pattern.permute.xlu1 %v10689_v39  ;;  %10691 = vst [vmem:[#allocation78_spill] sm:$0xff] %v8361_v7  ;;  %v1618_v22 = vmul.f32 %v1612_v8, %v8378_v63  ;;  %v6868_v39 = vld [vmem:[#allocation2 + $0x8] sm:$0xff] }
 0x233   : > { %1779 = vperm.xlu1 %6641, %v7956_v38   ;;  %v1596_v3 = vadd.f32 %v1594_v0, %v1584_v45  ;;  %v8428_v7 = vsel %vm1203_vm3, %v6868_v39, %v8126_v10  ;;  %v10579_v39 = vmov 51  }
 0x234   : > { %v8391_v1 = vpop.permute.xlu0 %1645 }
 0x235   : > { %6647 = vset.pattern.permute.xlu2 %v10569_v33  ;;  %v1608_v19 = vadd.f32 %v1606_v36, %v1596_v3  ;;  %v10573_v3 = vmov 46  }
 0x236   : > { %1815 = vperm.xlu2 %6647, %v7956_v38  }
 0x237   : > { %v1620_v44 = vadd.f32 %v1618_v22, %v1608_v19 }
 0x239   : > { %v8359_v59 = vpop.permute.xlu1 %1603  ;;  %v1640_v45 = vpop.permute.xlu2 %1639 }
 0x23a   : > { %10690 = vst [vmem:[#allocation77_spill] sm:$0xff] %v8359_v59  ;;  %v10698_v59 = vmov 48  }
 0x23b   : > { %6644 = vset.pattern.permute.xlu1 %v10692_v23 }
 0x23c   : > { %1799 = vperm.xlu1 %6644, %v7970_v41   ;;  %v1674_v36 = vpop.permute.xlu0 %1673 }
 0x23e   : > { %6650 = vset.pattern.permute.xlu2 %v10571_v31 }
 0x23f   : > { %1835 = vperm.xlu2 %6650, %v7970_v41  }
 0x241   : > { %v8398_v8 = vpop.permute.xlu2 %1657 }
 0x242   : > { %v1624_v13 = vpop.permute.xlu1 %1623 }
 0x243   : > { %v1630_v24 = vmul.f32 %v1624_v13, %v8384_v53  ;;  %v10577_v13 = vmov 47  }
 0x244   : > { %6646 = vset.pattern.permute.xlu1 %v10569_v33 }
 0x245   : > { %v1632_v0 = vadd.f32 %v1630_v24, %v1620_v44  ;;  %1811 = vperm.xlu1 %6646, %v7970_v41   ;;  %v8408_v44 = vpop.permute.xlu0 %1705 }
 0x247   : > { %2068 = vrot.lane.b32.xlu0 %v1632_v0, %s7447_s3  ;;  %6652 = vset.pattern.permute.xlu2 %v10694_v32  ;;  %v10575_v0 = vmov 49  }
 0x248   : > { %1847 = vperm.xlu2 %6652, %v7970_v41  }
 0x249   : > { %v8404_v22 = vpop.permute.xlu2 %1669 }
 0x24b   : > { %v8394_v62 = vpop.permute.xlu1 %1635 }
 0x24d   : > { %6649 = vset.pattern.permute.xlu1 %v10695_v56  ;;  %v10696_v56 = vmov 50  }
 0x24e   : > { %1827 = vperm.xlu1 %6649, %v7956_v38  }
 0x250   : > { %6655 = vset.pattern.permute.xlu2 %v10573_v3 }
 0x251   : > { %1861 = vperm.xlu2 %6655, %v7956_v38   ;;  %v1686_v33 = vpop.permute.xlu2 %1685 }
 0x254   : > { %v1650_v19 = vpop.permute.xlu1 %1649 }
 0x256   : > { %6651 = vset.pattern.permute.xlu1 %v10571_v31  ;;  %v1734_v31 = vpop.permute.xlu0 %1733 }
 0x257   : > { %1839 = vperm.xlu1 %6651, %v7956_v38  }
 0x259   : > { %6657 = vset.pattern.permute.xlu2 %v10577_v13 }
 0x25a   : > { %1873 = vperm.xlu2 %6657, %v7956_v38  }
 0x25d   : > { %v1662_v24 = vpop.permute.xlu1 %1661 }
 0x25e   : > { %v8437_v29 = vpop.permute.xlu0 %1763 }
 0x25f   : > { %6654 = vset.pattern.permute.xlu1 %v10573_v3  ;;  %v8423_v3 = vsel %vm1203_vm3, %v8020_v11, %v7900_v35  ;;  %10697 = vst [vmem:[#allocation80_spill] sm:$0xff] %v8437_v29  ;;  %v1643_v35 = vmul.f32 %v1640_v45, %v8428_v7 }
 0x260   : > { %1857 = vperm.xlu1 %6654, %v7970_v41   ;;  %v1653_v23 = vmul.f32 %v1650_v19, %v8423_v3 }
 0x262   : > { %6660 = vset.pattern.permute.xlu2 %v10575_v0  ;;  %v1698_v0 = vpop.permute.xlu2 %1697  ;;  %v1655_v19 = vadd.f32 %v1653_v23, %v1643_v35  ;;  %v8456_v23 = vsel %vm1203_vm3, %v8053_v28, %v8179_v30  ;;  %v10581_v28 = vmov 52  }
 0x263   : > { %1893 = vperm.xlu2 %6660, %v7970_v41  }
 0x266   : > { %v8414_v32 = vpop.permute.xlu1 %1681  ;;  %v8458_v35 = vpop.permute.xlu0 %1791 }
 0x268   : > { %6656 = vset.pattern.permute.xlu1 %v10577_v13  ;;  %v8433_v13 = vsel %vm1203_vm3, %v7972_v42, %v8031_v20  ;;  %v8447_v42 = vsel %vm1203_vm3, %v8152_v60, %v7995_v48  ;;  %v8466_v60 = vsel %vm1203_vm3, %v8027_v16, %v8070_v34  ;;  %v8480_v16 = vsel %vm1203_vm3, %v8090_v57, %v8244_v5 }
 0x269   : > { %1869 = vperm.xlu1 %6656, %v7970_v41   ;;  %v1665_v11 = vmul.f32 %v1662_v24, %v8433_v13  ;;  %v1677_v20 = vmul.f32 %v1674_v36, %v8447_v42  ;;  %v8471_v36 = vsel %vm1203_vm3, %v8204_v17, %v8050_v27  ;;  %v1701_v30 = vmul.f32 %v1698_v0, %v8466_v60 }
 0x26a   : > { %v8451_v45 = vpop.permute.xlu2 %1717  ;;  %v8488_v0 = vsel %vm1203_vm3, %v8074_v51, %v8105_v2  ;;  %v10583_v5 = vmov 54  }
 0x26b   : > { %6662 = vset.pattern.permute.xlu2 %v10696_v56  ;;  %v1667_v10 = vadd.f32 %v1665_v11, %v1655_v19  ;;  %v1689_v11 = vmul.f32 %v1686_v33, %v8456_v23  ;;  %v10699_v19 = vmov 49  }
 0x26c   : > { %1905 = vperm.xlu2 %6662, %v7970_v41  }
 0x26d   : > { %v1679_v24 = vadd.f32 %v1677_v20, %v1667_v10 }
 0x26f   : > { %v8435_v56 = vpop.permute.xlu1 %1693  ;;  %v1691_v48 = vadd.f32 %v1689_v11, %v1679_v24  ;;  %v10703_v11 = vmov 55  }
 0x271   : > { %6659 = vset.pattern.permute.xlu1 %v10698_v59  ;;  %v1703_v10 = vadd.f32 %v1701_v30, %v1691_v48 }
 0x272   : > { %1885 = vperm.xlu1 %6659, %v7956_v38   ;;  %v8482_v34 = vpop.permute.xlu2 %1729 }
 0x274   : > { %6665 = vset.pattern.permute.xlu2 %v10579_v39 }
 0x275   : > { %1921 = vperm.xlu2 %6665, %v7956_v38  }
 0x278   : > { %v1710_v59 = vpop.permute.xlu1 %1709 }
 0x279   : > { %v1713_v33 = vmul.f32 %v1710_v59, %v8471_v36  ;;  %v8492_v59 = vpop.permute.xlu0 %1823 }
 0x27a   : > { %6661 = vset.pattern.permute.xlu1 %v10699_v19  ;;  %10700 = vst [vmem:[#allocation81_spill] sm:$0xff] %v8492_v59  ;;  %v8500_v2 = vpop.permute.xlu2 %1745 }
 0x27b   : > { %1897 = vperm.xlu1 %6661, %v7956_v38   ;;  %v1715_v17 = vadd.f32 %v1713_v33, %v1703_v10  ;;  %v10704_v33 = vmov 53  }
 0x27d   : > { %6667 = vset.pattern.permute.xlu2 %v10581_v28 }
 0x27e   : > { %1933 = vperm.xlu2 %6667, %v7956_v38   ;;  %v1737_v38 = vmul.f32 %v1734_v31, %v8488_v0 }
 0x281   : > { %v1722_v20 = vpop.permute.xlu1 %1721  ;;  %v8502_v31 = vpop.permute.xlu0 %1851 }
 0x282   : > { %v1725_v27 = vmul.f32 %v1722_v20, %v8480_v16  ;;  %10702 = vst [vmem:[#allocation83_spill] sm:$0xff] %v8502_v31  ;;  %v8510_v30 = vpop.permute.xlu2 %1755  ;;  %v8516_v20 = vld [vmem:[%s7953_s27 + $0x8] sm:$0xff] }
 0x283   : > { %6664 = vset.pattern.permute.xlu1 %v10579_v39  ;;  %10705 = vst [vmem:[#allocation84_spill] sm:$0xff] %v8516_v20 }
 0x284   : > { %v1727_v24 = vadd.f32 %v1725_v27, %v1715_v17  ;;  %1917 = vperm.xlu1 %6664, %v7970_v41   ;;  %v10585_v17 = vmov 56  }
 0x286   : > { %v1739_v57 = vadd.f32 %v1737_v38, %v1727_v24  ;;  %6670 = vset.pattern.permute.xlu2 %v10583_v5  ;;  %v7456_v24 = vmov 32.0  }
 0x287   : > { %1953 = vperm.xlu2 %6670, %v7970_v41   ;;  %6823 = vrcp.f32 %v7456_v24  ;;  %v10592_v24 = vmov 59  }
 0x288   : > { %2078 = vrot.lane.b32.xlu0 %v1739_v57, %s7454_s22 }
 0x289   : > { %v8513_v10 = vpop.permute.xlu0 %1881 }
 0x28a   : > { %v8498_v51 = vpop.permute.xlu1 %1741 }
 0x28b   : > { %10701 = vst [vmem:[#allocation82_spill] sm:$0xff] %v8498_v51  ;;  %v10719_v51 = vmov 61  }
 0x28c   : > { %6666 = vset.pattern.permute.xlu1 %v10581_v28  ;;  %v2163_v28 = vadd.f32 %v8221_v14, %v8212_v43  ;;  %v10587_v14 = vmov 57  }
 0x28d   : > { %1929 = vperm.xlu1 %6666, %v7970_v41   ;;  %v6824_v39 = vpop.eup %6823 }
 0x28e   : > { %v2337_v19 = vmul.f32 32.0, %v6824_v39  ;;  %vm2341_vm4 = vweird.f32 %v6824_v39 }
 0x28f   : > { %6672 = vset.pattern.permute.xlu2 %v10703_v11  ;;  %v8535_v11 = vld [vmem:[%s7953_s27] sm:$0xff] }
 0x290   : > { %1963 = vperm.xlu2 %6672, %v7970_v41   ;;  %v8524_v41 = vpop.permute.xlu2 %1775  ;;  %v2338_v59 = vsub.f32 1.0, %v2337_v19 }
 0x291   : > { %10706 = vst [vmem:[#allocation85_spill] sm:$0xff] %v8524_v41  ;;  %v8527_v38 = vpop.permute.xlu0 %1909 }
 0x292   : > { %10707 = vst [vmem:[#allocation86_spill] sm:$0xff] %v8527_v38  ;;  %v2202_v38 = vadd.f32 %v8223_v61, %v2163_v28 }
 0x293   : > { %v8508_v48 = vpop.permute.xlu1 %1751 }
 0x294   : > { %v2232_v43 = vadd.f32 %v8216_v58, %v2202_v38 }
 0x295   : > { %6669 = vset.pattern.permute.xlu1 %v10704_v33 }
 0x296   : > { %1945 = vperm.xlu1 %6669, %v8516_v20  }
 0x298   : > { %6675 = vset.pattern.permute.xlu2 %v10585_v17 }
 0x299   : > { %1979 = vperm.xlu2 %6675, %v8516_v20   ;;  %v8540_v33 = vpop.permute.xlu0 %1941 }
 0x29c   : > { %v8521_v27 = vpop.permute.xlu1 %1767 }
 0x29e   : > { %6671 = vset.pattern.permute.xlu1 %v10583_v5  ;;  %v8538_v5 = vpop.permute.xlu2 %1787 }
 0x29f   : > { %1957 = vperm.xlu1 %6671, %v8516_v20   ;;  %10708 = vst [vmem:[#allocation87_spill] sm:$0xff] %v8538_v5  ;;  %v2262_v5 = vadd.f32 %v8229_v50, %v2232_v43 }
 0x2a1   : > { %6679 = vset.pattern.permute.xlu2 %v10592_v24  ;;  %v8552_v6 = vpop.permute.xlu0 %1967  ;;  %v2295_v28 = vadd.f32 %v8237_v15, %v2262_v5  ;;  %v10589_v5 = vmov 58  }
 0x2a2   : > { %10710 = vst [vmem:[#allocation89_spill] sm:$0xff] %v8552_v6 }
 0x2a3   : > { %v8561_v38 = vadd.f32 %v8241_v49, %v2295_v28 }
 0x2a5   : > { %v8529_v57 = vpop.permute.xlu1 %1779 }
 0x2a6   : > { %v8550_v41 = vpop.permute.xlu2 %1803 }
 0x2a7   : > { %6674 = vset.pattern.permute.xlu1 %v10585_v17  ;;  %v2339_v17 = vmul.f32 %v6824_v39, %v2338_v59 }
 0x2a8   : > { %1975 = vperm.xlu1 %6674, %v8535_v11  }
 0x2a9   : > { %v2340_v61 = vadd.f32 %v6824_v39, %v2339_v17  ;;  %v2335_v59 = vpop.xlane.xlu0 %2334  ;;  %v2330_v17 = vsel %vm2109_vm2, %v8561_v38, 0.0 }
 0x2ab   : > { %v8558_v58 = vsel %vm2341_vm4, %v6824_v39, %v2340_v61 }
 0x2ac   : > { %v2344_v50 = vmul.f32 %v8558_v58, %v2335_v59 }
 0x2ae   : > { %v8544_v31 = vpop.permute.xlu1 %1799  ;;  %v8564_v43 = vpop.permute.xlu2 %1815  ;;  %v8571_v15 = vsub.f32 %v8259_v25, %v2344_v50 }
 0x2af   : > { %10709 = vst [vmem:[#allocation88_spill] sm:$0xff] %v8544_v31 }
 0x2b0   : > { %6676 = vset.pattern.permute.xlu1 %v10587_v14  ;;  %10712 = vst [vmem:[#allocation91_spill] sm:$0xff] %v8571_v15  ;;  %v2348_v49 = vmul.f32 %v8571_v15, %v8571_v15  ;;  %v10717_v15 = vmov 60  }
 0x2b1   : > { %1987 = vperm.xlu1 %6676, %v8535_v11  }
 0x2b2   : > { %v2352_v28 = vsel %vm2109_vm2, %v2348_v49, 0.0 }
 0x2b6   : > { %v8577_v39 = vpop.permute.xlu2 %1835 }
 0x2b7   : > { %v8555_v19 = vpop.permute.xlu1 %1811  ;;  %10713 = vst [vmem:[#allocation92_spill] sm:$0xff] %v8577_v39  ;;  %v1430_v39 = vmul.f32 %v8159_v37, %v8323_v46  ;;  %v1441_v37 = vmul.f32 %v8277_v21, %v8423_v3 }
 0x2b8   : > { %10711 = vst [vmem:[#allocation90_spill] sm:$0xff] %v8555_v19 }
 0x2b9   : > { %1991 = vperm.xlu1 %6676, %v8516_v20  }
 0x2be   : > { %v1848_v25 = vpop.permute.xlu2 %1847 }
 0x2c0   : > { %v8568_v14 = vpop.permute.xlu1 %1827 }
 0x2c1   : > { %6677 = vset.pattern.permute.xlu1 %v10589_v5  ;;  %v10594_v5 = vmov 61  }
 0x2c2   : > { %1999 = vperm.xlu1 %6677, %v8535_v11   ;;  %2331 = vadd.xlane.f32.xlu2 %v2330_v17 }
 0x2c6   : > { %v8585_v50 = vpop.permute.xlu2 %1861 }
 0x2c7   : > { %10714 = vst [vmem:[#allocation93_spill] sm:$0xff] %v8585_v50 }
 0x2c9   : > { %v8579_v61 = vpop.permute.xlu1 %1839 }
 0x2ca   : > { %2003 = vperm.xlu1 %6677, %v8516_v20   ;;  %2353 = vadd.xlane.f32.xlu2 %v2352_v28  ;;  %v1440_v28 = vmul.f32 %v8172_v18, %v8319_v12 }
 0x2cc   : > { %v1442_v18 = vadd.f32 %v1440_v28, %v1430_v39  ;;  %v1888_v39 = vmul.f32 %v8513_v10, %v8338_v54 }
 0x2ce   : > { %v8591_v49 = vpop.permute.xlu2 %1873 }
 0x2cf   : > { %10716 = vst [vmem:[#allocation95_spill] sm:$0xff] %v8591_v49 }
 0x2d2   : > { %6678 = vset.pattern.permute.xlu1 %v10592_v24  ;;  %v1858_v59 = vpop.permute.xlu1 %1857 }
 0x2d3   : > { %2011 = vperm.xlu1 %6678, %v8535_v11   ;;  %v1864_v24 = vmul.f32 %v1858_v59, %v8319_v12 }
 0x2d6   : > { %v1894_v59 = vpop.permute.xlu2 %1893 }
 0x2d7   : > { %v1900_v10 = vmul.f32 %v1894_v59, %v8346_v4  ;;  %v10726_v59 = vmov 62  }
 0x2db   : > { %v1870_v17 = vpop.permute.xlu1 %1869  ;;  %6683 = vset.pattern.permute.xlu1 %v10594_v5  ;;  %v1452_v5 = vmul.f32 %v8208_v26, %v8332_v9 }
 0x2dc   : > { %v1876_v49 = vmul.f32 %v1870_v17, %v8332_v9 }
 0x2dd   : > { %v1454_v50 = vadd.f32 %v1452_v5, %v1442_v18  ;;  %v10723_v5 = vld [vmem:[#allocation62_spill] sm:$0xff] }
 0x2e2   : > { %2015 = vperm.xlu2 %6679, %v8516_v20  }
 0x2e4   : > { %v8589_v6 = vpop.permute.xlu1 %1885 }
 0x2e5   : > { %10715 = vst [vmem:[#allocation94_spill] sm:$0xff] %v8589_v6  ;;  %v1431_v6 = vmul.f32 %v8198_v47, %v8428_v7  ;;  %v10720_v47 = vld [vmem:[#allocation57_spill] sm:$0xff] }
 0x2e7   : > { %v1443_v26 = vadd.f32 %v1441_v37, %v1431_v6  ;;  %v1642_v6 = vmul.f32 %v8394_v62, %v8323_v46  ;;  %v1652_v37 = vmul.f32 %v8391_v1, %v8319_v12  ;;  %v10728_v1 = vld [vmem:[#allocation67_spill] sm:$0xff] }
 0x2ea   : > { %6681 = vset.pattern.permute.xlu2 %v10717_v15  ;;  %v1854_v15 = vmul.f32 %v1848_v25, %v8323_v46  ;;  %v1453_v25 = vmul.f32 %v10720_v47, %v8433_v13 }
 0x2eb   : > { %2027 = vperm.xlu2 %6681, %v8516_v20   ;;  %v1464_v20 = vmul.f32 %v8232_v52, %v8338_v54  ;;  %v10721_v52 = vld [vmem:[#allocation70_spill] sm:$0xff] }
 0x2ec   : > { %v1866_v31 = vadd.f32 %v1864_v24, %v1854_v15  ;;  %v1476_v17 = vmul.f32 %v10721_v52, %v8346_v4  ;;  %v1455_v28 = vadd.f32 %v1453_v25, %v1443_v26 }
 0x2ed   : > { %v8602_v19 = vpop.permute.xlu1 %1897 }
 0x2ee   : > { %10718 = vst [vmem:[#allocation96_spill] sm:$0xff] %v8602_v19  ;;  %v1878_v29 = vadd.f32 %v1876_v49, %v1866_v31  ;;  %v1466_v19 = vadd.f32 %v1464_v20, %v1454_v50  ;;  %v10722_v31 = vld [vmem:[#allocation59_spill] sm:$0xff]  ;;  %v1477_v50 = vmul.f32 %v10723_v5, %v8456_v23  ;;  %v10724_v49 = vld [vmem:[#allocation60_spill] sm:$0xff]  ;;  %v10727_v5 = vld [vmem:[#allocation61_spill] sm:$0xff] }
 0x2ef   : > { %v1465_v20 = vmul.f32 %v10722_v31, %v8447_v42  ;;  %v1488_v18 = vmul.f32 %v10724_v49, %v8356_v40  ;;  %v1500_v49 = vmul.f32 %v10727_v5, %v8367_v55  ;;  %v1700_v5 = vmul.f32 %v8435_v56, %v8356_v40 }
 0x2f0   : > { %v1890_v21 = vadd.f32 %v1888_v39, %v1878_v29  ;;  %v1478_v15 = vadd.f32 %v1476_v17, %v1466_v19  ;;  %v1906_v29 = vpop.permute.xlu2 %1905  ;;  %v10725_v19 = vld [vmem:[#allocation64_spill] sm:$0xff]  ;;  %v1654_v39 = vadd.f32 %v1652_v37, %v1642_v6 }
 0x2f1   : > { %v1467_v26 = vadd.f32 %v1465_v20, %v1455_v28  ;;  %v1489_v47 = vmul.f32 %v10725_v19, %v8466_v60  ;;  %v1912_v17 = vmul.f32 %v1906_v29, %v8356_v40  ;;  %v1664_v28 = vmul.f32 %v8398_v8, %v8332_v9  ;;  %v10729_v20 = vld [vmem:[#allocation68_spill] sm:$0xff] }
 0x2f2   : > { %v1902_v62 = vadd.f32 %v1900_v10, %v1890_v21  ;;  %v1490_v25 = vadd.f32 %v1488_v18, %v1478_v15  ;;  %v10730_v18 = vld [vmem:[#allocation73_spill] sm:$0xff]  ;;  %v1676_v8 = vmul.f32 %v8404_v22, %v8338_v54 }
 0x2f3   : > { %6682 = vset.pattern.permute.xlu2 %v10719_v51  ;;  %v1479_v52 = vadd.f32 %v1477_v50, %v1467_v26  ;;  %v1512_v51 = vmul.f32 %v10728_v1, %v8378_v63  ;;  %v1524_v50 = vmul.f32 %v10729_v20, %v8384_v53  ;;  %v1501_v37 = vmul.f32 %v10730_v18, %v8471_v36 }
 0x2f4   : > { %2035 = vperm.xlu2 %6682, %v8535_v11   ;;  %v1914_v15 = vadd.f32 %v1912_v17, %v1902_v62  ;;  %v1502_v6 = vadd.f32 %v1500_v49, %v1490_v25  ;;  %v1948_v25 = vmul.f32 %v8540_v33, %v8384_v53  ;;  %v10731_v49 = vld [vmem:[#allocation63_spill] sm:$0xff]  ;;  %v1771_v33 = vmul.f32 %v8521_v27, %v8433_v13 }
 0x2f5   : > { %v1491_v21 = vadd.f32 %v1489_v47, %v1479_v52  ;;  %v1688_v47 = vmul.f32 %v8414_v32, %v8346_v4  ;;  %v1513_v22 = vmul.f32 %v10731_v49, %v8480_v16  ;;  %v1749_v32 = vmul.f32 %v8500_v2, %v8428_v7 }
 0x2f6   : > { %v1918_v24 = vpop.permute.xlu1 %1917  ;;  %v1514_v19 = vadd.f32 %v1512_v51, %v1502_v6  ;;  %v10732_v6 = vld [vmem:[#allocation65_spill] sm:$0xff]  ;;  %v1712_v2 = vmul.f32 %v8408_v44, %v8367_v55  ;;  %v1736_v44 = vmul.f32 %v8482_v34, %v8384_v53 }
 0x2f7   : > { %v1924_v31 = vmul.f32 %v1918_v24, %v8367_v55  ;;  %v1666_v24 = vadd.f32 %v1664_v28, %v1654_v39  ;;  %v1503_v62 = vadd.f32 %v1501_v37, %v1491_v21  ;;  %v1525_v20 = vmul.f32 %v10732_v6, %v8488_v0 }
 0x2f8   : > { %v1526_v39 = vadd.f32 %v1524_v50, %v1514_v19  ;;  %v8664_v28 = vpop.permute.xlu2 %1921  ;;  %v1795_v37 = vmul.f32 %v8458_v35, %v8456_v23  ;;  %v1819_v35 = vmul.f32 %v8564_v43, %v8471_v36 }
 0x2f9   : > { %v1926_v29 = vadd.f32 %v1924_v31, %v1914_v15  ;;  %v1678_v17 = vadd.f32 %v1676_v8, %v1666_v24  ;;  %v1759_v31 = vmul.f32 %v8510_v30, %v8423_v3  ;;  %v1515_v56 = vadd.f32 %v1513_v22, %v1503_v62 }
 0x2fa   : > { %v1783_v15 = vmul.f32 %v8529_v57, %v8447_v42  ;;  %v1807_v8 = vmul.f32 %v8550_v41, %v8466_v60 }
 0x2fb   : > { %v1690_v1 = vadd.f32 %v1688_v47, %v1678_v17  ;;  %v1761_v21 = vadd.f32 %v1759_v31, %v1749_v32  ;;  %v1527_v18 = vadd.f32 %v1525_v20, %v1515_v56 }
 0x2fc   : > { %6684 = vset.pattern.permute.xlu2 %v10726_v59 }
 0x2fd   : > { %2047 = vperm.xlu2 %6684, %v8535_v11   ;;  %v1702_v30 = vadd.f32 %v1700_v5, %v1690_v1  ;;  %v1773_v27 = vadd.f32 %v1771_v33, %v1761_v21 }
 0x2ff   : > { %v1930_v10 = vpop.permute.xlu1 %1929  ;;  %v1714_v50 = vadd.f32 %v1712_v2, %v1702_v30  ;;  %v1785_v24 = vadd.f32 %v1783_v15, %v1773_v27  ;;  %v10733_v30 = vld [vmem:[#allocation69_spill] sm:$0xff]  ;;  %v10734_v15 = vld [vmem:[#allocation72_spill] sm:$0xff]  ;;  %v10735_v2 = vld [vmem:[#allocation75_spill] sm:$0xff] }
 0x300   : > { %v1936_v26 = vmul.f32 %v1930_v10, %v8378_v63  ;;  %v8681_v19 = vpop.permute.xlu2 %1933  ;;  %v1537_v21 = vmul.f32 %v10733_v30, %v8428_v7  ;;  %v1547_v6 = vmul.f32 %v10734_v15, %v8423_v3 }
 0x302   : > { %v1938_v52 = vadd.f32 %v1936_v26, %v1926_v29  ;;  %v1724_v29 = vmul.f32 %v8451_v45, %v8378_v63  ;;  %v1797_v26 = vadd.f32 %v1795_v37, %v1785_v24  ;;  %v1831_v45 = vmul.f32 %v8568_v14, %v8480_v16  ;;  %v10736_v37 = vld [vmem:[#allocation71_spill] sm:$0xff] }
 0x303   : > { %v1549_v20 = vadd.f32 %v1547_v6, %v1537_v21  ;;  %v1758_v24 = vmul.f32 %v8508_v48, %v8319_v12  ;;  %v10740_v48 = vld [vmem:[#allocation76_spill] sm:$0xff]  ;;  %v10742_v6 = vld [vmem:[#allocation85_spill] sm:$0xff] }
 0x304   : > { %v1950_v51 = vadd.f32 %v1948_v25, %v1938_v52  ;;  %v1726_v57 = vadd.f32 %v1724_v29, %v1714_v50  ;;  %v1809_v47 = vadd.f32 %v1807_v8, %v1797_v26  ;;  %v1571_v29 = vmul.f32 %v10736_v37, %v8447_v42 }
 0x305   : > { %2060 = vrot.lane.b32.xlu2 %v1526_v39, %s7461_s1  ;;  %v1843_v39 = vmul.f32 %v8579_v61, %v8488_v0 }
 0x306   : > { %2092 = vrot.lane.b32.xlu0 %v1950_v51, %s7393_s10  ;;  %v1738_v62 = vadd.f32 %v1736_v44, %v1726_v57  ;;  %v1821_v52 = vadd.f32 %v1819_v35, %v1809_v47  ;;  %v10737_v57 = vld [vmem:[#allocation82_spill] sm:$0xff] }
 0x307   : > { %v1748_v26 = vmul.f32 %v10737_v57, %v8323_v46 }
 0x308   : > { %v8674_v10 = vpop.permute.xlu1 %1945  ;;  %v1833_v34 = vadd.f32 %v1831_v45, %v1821_v52  ;;  %v1954_v17 = vpop.permute.xlu2 %1953  ;;  %v10739_v45 = vld [vmem:[#allocation74_spill] sm:$0xff] }
 0x309   : > { %v1760_v8 = vadd.f32 %v1758_v24, %v1748_v26  ;;  %v1583_v52 = vmul.f32 %v10739_v45, %v8456_v23  ;;  %v10744_v26 = vld [vmem:[#allocation79_spill] sm:$0xff]  ;;  %v2024_v45 = vpop.permute.xlu0 %2023 }
 0x30a   : > { %v1845_v5 = vadd.f32 %v1843_v39, %v1833_v34  ;;  %v1595_v39 = vmul.f32 %v10740_v48, %v8466_v60  ;;  %v10748_v48 = vld [vmem:[#allocation95_spill] sm:$0xff] }
 0x30d   : > { %2062 = vrot.lane.b32.xlu2 %v1527_v18, %s7461_s1 }
 0x310   : > { %v1964_v31 = vpop.permute.xlu2 %1963 }
 0x311   : > { %v8691_v25 = vpop.permute.xlu1 %1957  ;;  %v1970_v47 = vmul.f32 %v1964_v31, %v8319_v12 }
 0x315   : > { %2076 = vrot.lane.b32.xlu2 %v1738_v62, %s7454_s22  ;;  %v10738_v62 = vld [vmem:[#allocation80_spill] sm:$0xff] }
 0x316   : > { %v1770_v35 = vmul.f32 %v10738_v62, %v8332_v9  ;;  %v10746_v62 = vld [vmem:[#allocation83_spill] sm:$0xff] }
 0x318   : > { %v8697_v43 = vpop.permute.xlu2 %1979  ;;  %v1772_v31 = vadd.f32 %v1770_v35, %v1760_v8  ;;  %v1855_v35 = vmul.f32 %v10746_v62, %v8428_v7  ;;  %v10754_v62 = vld [vmem:[#allocation81_spill] sm:$0xff] }
 0x31a   : > { %v1976_v41 = vpop.permute.xlu1 %1975 }
 0x31d   : > { %2086 = vrot.lane.b32.xlu2 %v1845_v5, %s7397_s0  ;;  %v1960_v5 = vmul.f32 %v1954_v17, %v8323_v46 }
 0x31f   : > { %v1972_v30 = vadd.f32 %v1970_v47, %v1960_v5 }
 0x323   : > { %v1988_v51 = vpop.permute.xlu1 %1987 }
 0x324   : > { %v1994_v21 = vmul.f32 %v1988_v51, %v8338_v54  ;;  %v10745_v51 = vld [vmem:[#allocation87_spill] sm:$0xff] }
 0x325   : > { %v1794_v8 = vmul.f32 %v10745_v51, %v8346_v4 }
 0x32b   : > { %v8699_v49 = vpop.permute.xlu1 %1991 }
 0x334   : > { %v2000_v33 = vpop.permute.xlu1 %1999 }
 0x335   : > { %v2332_v14 = vpop.xlane.xlu2 %2331 }
 0x336   : > { %v2343_v22 = vmul.f32 %v8558_v58, %v2332_v14  ;;  %v1982_v14 = vmul.f32 %v1976_v41, %v8332_v9  ;;  %v10743_v41 = vld [vmem:[#allocation93_spill] sm:$0xff] }
 0x337   : > { %v1865_v37 = vmul.f32 %v10743_v41, %v8423_v3 }
 0x338   : > { %v8703_v1 = vsub.f32 %v8561_v38, %v2343_v22  ;;  %v1559_v38 = vmul.f32 %v10735_v2, %v8433_v13 }
 0x33a   : > { %v2347_v61 = vmul.f32 %v8703_v1, %v8703_v1  ;;  %v1561_v50 = vadd.f32 %v1559_v38, %v1549_v20  ;;  %v1782_v20 = vmul.f32 %v10742_v6, %v8338_v54  ;;  %v1984_v38 = vadd.f32 %v1982_v14, %v1972_v30  ;;  %v10749_v14 = vld [vmem:[#allocation84_spill] sm:$0xff] }
 0x33c   : > { %v2349_v32 = vsel %vm2109_vm2, %v2347_v61, 0.0  ;;  %v8720_v18 = vpop.permute.xlu1 %2003  ;;  %v1573_v44 = vadd.f32 %v1571_v29, %v1561_v50  ;;  %v10741_v61 = vld [vmem:[#allocation77_spill] sm:$0xff]  ;;  %v2006_v50 = vmul.f32 %v2000_v33, %v8346_v4  ;;  %v1784_v17 = vadd.f32 %v1782_v20, %v1772_v31  ;;  %v10747_v33 = vld [vmem:[#allocation88_spill] sm:$0xff]  ;;  %v10750_v31 = vld [vmem:[#allocation90_spill] sm:$0xff] }
 0x33d   : > { %v8708_v56 = vpop.xlane.xlu2 %2353  ;;  %2350 = vadd.xlane.f32.xlu1 %v2349_v32  ;;  %v1607_v32 = vmul.f32 %v10741_v61, %v8471_v36  ;;  %v1996_v29 = vadd.f32 %v1994_v21, %v1984_v38  ;;  %v1818_v30 = vmul.f32 %v10750_v31, %v8367_v55  ;;  %v10751_v21 = vld [vmem:[#allocation94_spill] sm:$0xff]  ;;  %v2030_v38 = vmul.f32 %v2024_v45, %v8367_v55 }
 0x33e   : > { %v1585_v22 = vadd.f32 %v1583_v52, %v1573_v44  ;;  %v1619_v44 = vmul.f32 %v10744_v26, %v8480_v16  ;;  %v1806_v52 = vmul.f32 %v10747_v33, %v8356_v40  ;;  %v1796_v61 = vadd.f32 %v1794_v8, %v1784_v17  ;;  %v10752_v20 = vld [vmem:[#allocation78_spill] sm:$0xff] }
 0x33f   : > { %v2008_v5 = vadd.f32 %v2006_v50, %v1996_v29  ;;  %v10753_v50 = vld [vmem:[#allocation96_spill] sm:$0xff]  ;;  %v10755_v45 = vld [vmem:[#allocation86_spill] sm:$0xff] }
 0x340   : > { %v1597_v15 = vadd.f32 %v1595_v39, %v1585_v22  ;;  %v1877_v39 = vmul.f32 %v10748_v48, %v8433_v13  ;;  %v1808_v41 = vadd.f32 %v1806_v52, %v1796_v61  ;;  %v1901_v29 = vmul.f32 %v10753_v50, %v8456_v23 }
 0x341   : > { %v1913_v52 = vmul.f32 %v10755_v45, %v8466_v60 }
 0x342   : > { %v1609_v24 = vadd.f32 %v1607_v32, %v1597_v15  ;;  %v1867_v32 = vadd.f32 %v1865_v37, %v1855_v35  ;;  %v1889_v15 = vmul.f32 %v10751_v21, %v8447_v42  ;;  %v1820_v17 = vadd.f32 %v1818_v30, %v1808_v41 }
 0x343   : > { %v1937_v21 = vmul.f32 %v8681_v19, %v8480_v16 }
 0x344   : > { %v1621_v22 = vadd.f32 %v1619_v44, %v1609_v24  ;;  %v1879_v26 = vadd.f32 %v1877_v39, %v1867_v32 }
 0x345   : > { %v8716_v27 = vpop.permute.xlu2 %2015  ;;  %v2012_v2 = vpop.permute.xlu1 %2011 }
 0x346   : > { %v2018_v57 = vmul.f32 %v2012_v2, %v8356_v40  ;;  %v1631_v2 = vmul.f32 %v10752_v20, %v8488_v0  ;;  %v1891_v37 = vadd.f32 %v1889_v15, %v1879_v26  ;;  %v1949_v15 = vmul.f32 %v8674_v10, %v8488_v0  ;;  %v8786_v10 = vld [vmem:[#allocation11] ss:$0 sm:$0xff] }
 0x348   : > { %v2020_v6 = vadd.f32 %v2018_v57, %v2008_v5  ;;  %v1633_v51 = vadd.f32 %v1631_v2, %v1621_v22  ;;  %v1830_v57 = vmul.f32 %v10754_v62, %v8378_v63  ;;  %v1903_v35 = vadd.f32 %v1901_v29, %v1891_v37 }
 0x349   : > { %v1925_v22 = vmul.f32 %v8664_v28, %v8471_v36  ;;  %v2356_v2 = vmul.f32 %v8708_v56, %v8558_v58 }
 0x34a   : > { %v2032_v44 = vadd.f32 %v2030_v38, %v2020_v6  ;;  %v1832_v39 = vadd.f32 %v1830_v57, %v1820_v17  ;;  %v1915_v32 = vadd.f32 %v1913_v52, %v1903_v35  ;;  %v10757_v17 = vld [vmem:[#allocation91_spill] sm:$0xff]  ;;  %v1961_v35 = vmul.f32 %v8691_v25, %v8428_v7 }
 0x34b   : > { %v2358_v38 = vadd.f32 1e-05, %v2356_v2  ;;  %v2432_v2 = vld [vmem:[#allocation14 + $0x8] sm:$0xff] }
 0x34c   : > { %v1927_v30 = vadd.f32 %v1925_v22, %v1915_v32  ;;  %v2007_v32 = vmul.f32 %v8720_v18, %v8456_v23 }
 0x34d   : > { %v8733_v34 = vpop.permute.xlu2 %2027  ;;  %6825 = vrsqrt.f32 %v2358_v38  ;;  %vm2375_vm6 = vweird.f32 %v2358_v38 }
 0x34e   : > { %v1939_v6 = vadd.f32 %v1937_v21, %v1927_v30 }
 0x350   : > { %v1951_v20 = vadd.f32 %v1949_v15, %v1939_v6  ;;  %v2434_v6 = vld [vmem:[#allocation14 + $0x18] sm:$0xff] }
 0x353   : > { %v6826_v28 = vpop.eup %6825 }
 0x354   : > { %v2370_v41 = vmul.f32 %v6826_v28, %v2358_v38  ;;  %vm2376_vm5 = vweird.f32 %v6826_v28  ;;  %v8809_v38 = vand.u32 4294901760, %v2434_v6 }
 0x355   : > { %v2036_v47 = vpop.permute.xlu2 %2035  ;;  %vm2377_vm7 = vmor %vm2375_vm6, %vm2376_vm5 }
 0x356   : > { %2039 = vperm.xlu1 %6683, %v10749_v14   ;;  %v2042_v24 = vmul.f32 %v2036_v47, %v8378_v63  ;;  %v10756_v47 = vld [vmem:[#allocation92_spill] sm:$0xff]  ;;  %v2371_v26 = vmul.f32 %v6826_v28, %v2370_v41  ;;  %2458 = vmatpush.msra.mxu2 %v8809_v38 }
 0x357   : > { %v1842_v61 = vmul.f32 %v10756_v47, %v8384_v53  ;;  %v2431_v41 = vld [vmem:[#allocation14] sm:$0xff]  ;;  %2575 = vmatpush.msra.mxu1 %v8809_v38 }
 0x358   : > { %v2044_v33 = vadd.f32 %v2042_v24, %v2032_v44  ;;  %v2372_v50 = vmul.f32 0.5, %v2371_v26  ;;  %v8815_v26 = vand.u32 4294901760, %v2431_v41 }
 0x359   : > { %v1844_v31 = vadd.f32 %v1842_v61, %v1832_v39  ;;  %v1983_v39 = vmul.f32 %v8697_v43, %v8433_v13  ;;  %v2019_v43 = vmul.f32 %v8716_v27, %v8466_v60 }
 0x35a   : > { %v2373_v29 = vsub.f32 1.5, %v2372_v50 }
 0x35c   : > { %v2374_v24 = vmul.f32 %v6826_v28, %v2373_v29  ;;  %v2495_v29 = vsub.f32 %v2434_v6, %v8809_v38 }
 0x35d   : > { %v2048_v8 = vpop.permute.xlu2 %2047 }
 0x35e   : > { %v2054_v48 = vmul.f32 %v2048_v8, %v8384_v53  ;;  %2070 = vrot.lane.b32.xlu1 %v1633_v51, %s7447_s3  ;;  %v2378_v19 = vsel %vm2377_vm7, %v6826_v28, %v2374_v24  ;;  %v8790_v51 = vld [vmem:[#allocation12] ss:$0 sm:$0xff]  ;;  %v8813_v28 = vand.u32 4294901760, %v2432_v2  ;;  %2541 = vmatpush.msra.mxu0 %v2495_v29 }
 0x35f   : > { %v2380_v37 = vmul.f32 %v2378_v19, %v10757_v17  ;;  %v2031_v19 = vmul.f32 %v8733_v34, %v8471_v36 }
 0x360   : > { %v2056_v5 = vadd.f32 %v2054_v48, %v2044_v33  ;;  %v10758_v48 = vld [vmem:[#allocation89_spill] sm:$0xff]  ;;  %v2507_v27 = vsub.f32 %v2432_v2, %v8813_v28 }
 0x361   : > { %v2385_v44 = vmul.f32 %v8786_v10, %v2380_v37  ;;  %v1971_v45 = vmul.f32 %v10758_v48, %v8423_v3  ;;  %v2513_v37 = vsub.f32 %v2431_v41, %v8815_v26 }
 0x362   : > { %2100 = vrot.lane.b32.xlu2 %v2056_v5, %s7391_s4  ;;  %v1995_v5 = vmul.f32 %v8699_v49, %v8447_v42 }
 0x363   : > { %v8794_v62 = vadd.f32 %v8790_v51, %v2385_v44  ;;  %v1973_v52 = vadd.f32 %v1971_v45, %v1961_v35  ;;  %v2496_v44 = vand.u32 4294901760, %v2495_v29  ;;  %v2514_v48 = vand.u32 4294901760, %v2513_v37 }
 0x365   : > { %v6263_v33 = vmul.f32 -1.442695, %v8794_v62  ;;  %v1985_v61 = vadd.f32 %v1983_v39, %v1973_v52  ;;  %v2497_v45 = vsub.f32 %v2495_v29, %v2496_v44  ;;  %v2052_v39 = vpop.permute.xlu0 %2051 }
 0x366   : > { %2084 = vrot.lane.b32.xlu1 %v1844_v31, %s7397_s0 }
 0x367   : > { %v1997_v22 = vadd.f32 %v1995_v5, %v1985_v61 }
 0x369   : > { %v2009_v21 = vadd.f32 %v2007_v32, %v1997_v22  ;;  %v2515_v32 = vsub.f32 %v2513_v37, %v2514_v48  ;;  %v2498_v22 = vand.u32 4294901760, %v2497_v45 }
 0x36b   : > { %v2021_v35 = vadd.f32 %v2019_v43, %v2009_v21  ;;  %2499 = vmatpush.msra.mxu3 %v2498_v22 }
 0x36d   : > { %v2033_v5 = vadd.f32 %v2031_v19, %v2021_v35 }
 0x36e   : > { %2094 = vrot.lane.b32.xlu1 %v1951_v20, %s7393_s10  ;;  %v2433_v20 = vld [vmem:[#allocation14 + $0x10] sm:$0xff] }
 0x36f   : > { %v8811_v49 = vand.u32 4294901760, %v2433_v20 }
 0x371   : > { %v2501_v24 = vsub.f32 %v2433_v20, %v8811_v49  ;;  %2460 = vmatpush.msra.mxu2 %v8811_v49  ;;  %2577 = vmatpush.msra.mxu1 %v8811_v49  ;;  %v2516_v20 = vand.u32 4294901760, %v2515_v32 }
 0x373   : > { %2544 = vmatpush.msra.mxu0 %v2501_v24  ;;  %2462 = vmatpush.msra.mxu2 %v8813_v28 }
 0x374   : > { %2579 = vmatpush.msra.mxu1 %v8813_v28 }
 0x375   : > { %2547 = vmatpush.msra.mxu0 %v2507_v27  ;;  %2464 = vmatpush.msra.mxu2 %v8815_v26 }
 0x376   : > { %2581 = vmatpush.msra.mxu1 %v8815_v26 }
 0x377   : > { %2550 = vmatpush.msra.mxu0 %v2513_v37  ;;  %2610 = vmatpush.msrb.mxu2 %v2496_v44 }
 0x3b0   : > { %v2351_v56 = vpop.xlane.xlu1 %2350 }
 0x3b1   : > { %v2355_v8 = vmul.f32 %v2351_v56, %v8558_v58  ;;  %v2502_v56 = vand.u32 4294901760, %v2501_v24 }
 0x3b3   : > { %v2357_v57 = vadd.f32 1e-05, %v2355_v8  ;;  %v2508_v8 = vand.u32 4294901760, %v2507_v27  ;;  %2614 = vmatpush.msrb.mxu2 %v2502_v56 }
 0x3b5   : > { %6827 = vrsqrt.f32 %v2357_v57  ;;  %vm2365_vm9 = vweird.f32 %v2357_v57  ;;  %v2509_v52 = vsub.f32 %v2507_v27, %v2508_v8  ;;  %2618 = vmatpush.msrb.mxu2 %v2508_v8 }
 0x3b6   : > { %6829 = vpow2.f32 %v6263_v33 }
 0x3b7   : > { %v2510_v21 = vand.u32 4294901760, %v2509_v52  ;;  %2622 = vmatpush.msrb.mxu2 %v2514_v48 }
 0x3bb   : > { %v6828_v47 = vpop.eup %6827 }
 0x3bc   : > { %v2360_v25 = vmul.f32 %v6828_v47, %v2357_v57  ;;  %v6830_v30 = vpop.eup %6829  ;;  %vm2366_vm8 = vweird.f32 %v6828_v47  ;;  %v2503_v57 = vsub.f32 %v2501_v24, %v2502_v56 }
 0x3bd   : > { %v8817_v50 = vadd.f32 1.0, %v6830_v30  ;;  %vm2367_vm10 = vmor %vm2365_vm9, %vm2366_vm8 }
 0x3be   : > { %v2361_v31 = vmul.f32 %v6828_v47, %v2360_v25 }
 0x3bf   : > { %6831 = vrcp.f32 %v8817_v50  ;;  %v2425_v27 = vand.u32 2147483648, %v8817_v50  ;;  %vm2419_vm12 = vweird.f32 %v8817_v50 }
 0x3c0   : > { %v2362_v15 = vmul.f32 0.5, %v2361_v31  ;;  %v2504_v31 = vand.u32 4294901760, %v2503_v57 }
 0x3c1   : > { %v2426_v37 = vor.u32 1.1754944e-38, %v2425_v27 }
 0x3c2   : > { %v2363_v18 = vsub.f32 1.5, %v2362_v15  ;;  %2505 = vmatpush.msra.mxu3 %v2504_v31 }
 0x3c4   : > { %v2364_v17 = vmul.f32 %v6828_v47, %v2363_v18  ;;  %2511 = vmatpush.msra.mxu3 %v2510_v21  ;;  %v6817_v21 = vld [vmem:[#allocation15] ss:$0 sm:$0xff] }
 0x3c5   : > { %v6832_v6 = vpop.eup %6831 }
 0x3c6   : > { %v2368_v33 = vsel %vm2367_vm10, %v6828_v47, %v2364_v17  ;;  %v2415_v43 = vmul.f32 %v6832_v6, %v8817_v50  ;;  %2517 = vmatpush.msra.mxu3 %v2516_v20  ;;  %vm2420_vm11 = vweird.f32 %v6832_v6 }
 0x3c7   : > { %v2379_v34 = vmul.f32 %v2368_v33, %v8703_v1  ;;  %v2055_v1 = vmul.f32 %v2052_v39, %v8488_v0  ;;  %vm2421_vm13 = vmor %vm2419_vm12, %vm2420_vm11 }
 0x3c8   : > { %v2040_v61 = vpop.permute.xlu1 %2039  ;;  %2645 = vmatpush.msrb.mxu3 %v8809_v38  ;;  %v2423_v38 = vand.u32 2147483647, %v8817_v50 }
 0x3c9   : > { %v2384_v47 = vmul.f32 %v8786_v10, %v2379_v34  ;;  %v2043_v25 = vmul.f32 %v2040_v61, %v8480_v16 }
 0x3ca   : > { %2647 = vmatpush.msrb.mxu3 %v8811_v49  ;;  %vm2424_vm14 = vcmp.eq.f32.partialorder %v2423_v38, 8.507059e+37 }
 0x3cb   : > { %v2045_v30 = vadd.f32 %v2043_v25, %v2033_v5  ;;  %v2389_v15 = vadd.f32 %v8790_v51, %v2384_v47  ;;  %v2416_v51 = vsub.f32 1.0, %v2415_v43 }
 0x3cc   : > { %2649 = vmatpush.msrb.mxu3 %v8813_v28 }
 0x3cd   : > { %v2057_v10 = vadd.f32 %v2055_v1, %v2045_v30  ;;  %v6262_v2 = vmul.f32 -1.442695, %v2389_v15  ;;  %v2417_v29 = vmul.f32 %v6832_v6, %v2416_v51 }
 0x3ce   : > { %2651 = vmatpush.msrb.mxu3 %v8815_v26 }
 0x3cf   : > { %2102 = vrot.lane.b32.xlu0 %v2057_v10, %s7391_s4  ;;  %6833 = vpow2.f32 %v6262_v2  ;;  %v2418_v24 = vadd.f32 %v6832_v6, %v2417_v29 }
 0x3d1   : > { %v2422_v49 = vsel %vm2421_vm13, %v6832_v6, %v2418_v24 }
 0x3d2   : > { %v2427_v56 = vsel %vm2424_vm14, %v2426_v37, %v2422_v49 }
 0x3d3   : > { %v2430_v33 = vmul.f32 %v2427_v56, %v8794_v62 }
 0x3d5   : > { %v6834_v41 = vpop.eup %6833  ;;  %v2443_v57 = vsel %vm2109_vm2, %v2430_v33, 0 }
 0x3d6   : > { %v2397_v18 = vadd.f32 1.0, %v6834_v41  ;;  %v2473_v5 = vand.u32 4294901760, %v2443_v57 }
 0x3d8   : > { %6835 = vrcp.f32 %v2397_v18  ;;  %v2410_v28 = vand.u32 2147483648, %v2397_v18  ;;  %v2408_v26 = vand.u32 2147483647, %v2397_v18  ;;  %vm2404_vm0 = vweird.f32 %v2397_v18 }
 0x3d9   : > { %v2474_v47 = vsub.f32 %v2443_v57, %v2473_v5  ;;  %v8858_v57 = vpop.permute.xlu1 %2070 }
 0x3da   : > { %v2411_v48 = vor.u32 1.1754944e-38, %v2410_v28  ;;  %vm2409_vm5 = vcmp.eq.f32.partialorder %v2408_v26, 8.507059e+37 }
 0x3db   : > { %v2475_v22 = vand.u32 4294901760, %v2474_v47 }
 0x3dd   : > { %v2476_v31 = vsub.f32 %v2474_v47, %v2475_v22 }
 0x3de   : > { %v6836_v19 = vpop.eup %6835 }
 0x3df   : > { %v2400_v17 = vmul.f32 %v6836_v19, %v2397_v18  ;;  %vm2405_vm15 = vweird.f32 %v6836_v19  ;;  %v2477_v1 = vand.u32 4294901760, %v2476_v31 }
 0x3e0   : > { %vm2406_vm4 = vmor %vm2404_vm0, %vm2405_vm15 }
 0x3e1   : > { %v2401_v44 = vsub.f32 1.0, %v2400_v17 }
 0x3e3   : > { %v2402_v8 = vmul.f32 %v6836_v19, %v2401_v44 }
 0x3e5   : > { %v2403_v35 = vadd.f32 %v6836_v19, %v2402_v8 }
 0x3e7   : > { %v2407_v34 = vsel %vm2406_vm4, %v6836_v19, %v2403_v35 }
 0x3e8   : > { %v2412_v50 = vsel %vm2409_vm5, %v2411_v48, %v2407_v34 }
 0x3e9   : > { %v2429_v45 = vmul.f32 %v2412_v50, %v2389_v15  ;;  %v7462_v15 = vmov 0   ;;  %v8854_v50 = vpop.permute.xlu2 %2060 }
 0x3ea   : > { %6686 = vset.pattern.permute.xlu2 %v7462_v15  ;;  %6687 = vset.pattern.permute.xlu0 %v7462_v15 }
 0x3eb   : > { %v2440_v52 = vsel %vm2109_vm2, %v2429_v45, 0  ;;  %6688 = vset.pattern.permute.xlu1 %v7462_v15 }
 0x3ec   : > { %v2465_v39 = vand.u32 4294901760, %v2440_v52 }
 0x3ee   : > { %2519 = vmatmul.f32.vlgmr.msra.gmra.mxu3 %v2465_v39  ;;  %v2466_v61 = vsub.f32 %v2440_v52, %v2465_v39 }
 0x3f0   : > { %2553 = vmatmul.f32.vlgmr.msra.gmra.mxu0 %v2466_v61  ;;  %v2467_v32 = vand.u32 4294901760, %v2466_v61 }
 0x3f1   : > { %v8856_v45 = vpop.permute.xlu2 %2062 }
 0x3f2   : > { %2585 = vmatmul.f32.vlgmr.msra.gmra.mxu1 %v2467_v32  ;;  %v2468_v25 = vsub.f32 %v2466_v61, %v2467_v32 }
 0x3f4   : > { %v2469_v62 = vand.u32 4294901760, %v2468_v25 }
 0x3f6   : > { %2470 = vmatmul.f32.vlgmr.msra.gmra.mxu2 %v2469_v62  ;;  %2523 = vmatmul.f32.gmra.mxu3 %v2473_v5 }
 0x3f8   : > { %2558 = vmatmul.f32.gmra.mxu0 %v2474_v47 }
 0x3f9   : > { %v8860_v52 = vpop.permute.xlu2 %2076 }
 0x3fa   : > { %2591 = vmatmul.f32.gmra.mxu1 %v2475_v22 }
 0x3fe   : > { %2478 = vmatmul.f32.gmra.mxu2 %v2477_v1  ;;  %2653 = vmatmul.f32.vlgmr.msrb.gmra.mxu3 %v2465_v39 }
 0x406   : > { %2624 = vmatmul.f32.vlgmr.msrb.gmra.mxu2 %v2465_v39  ;;  %2657 = vmatmul.f32.gmra.mxu3 %v2473_v5  ;;  %v8862_v39 = vpop.permute.xlu1 %2084 }
 0x40e   : > { %2628 = vmatmul.f32.gmra.mxu2 %v2473_v5  ;;  %v8864_v5 = vpop.permute.xlu2 %2086  ;;  %v8866_v61 = vpop.permute.xlu1 %2094 }
 0x40f   : > { %10759 = vst [vmem:[#allocation57_spill] sm:$0xff] %v8866_v61 }
 0x416   : > { %v8868_v32 = vpop.permute.xlu2 %2100 }
 0x46d   : > { %v2554_v43 = vpop.f32.mrf.mxu0 }
 0x46f   : > { %v2586_v29 = vpop.f32.mrf.mxu1 }
 0x471   : > { %v2520_v30 = vpop.f32.mrf.mxu3 }
 0x475   : > { %v2559_v49 = vpop.f32.mrf.mxu0 }
 0x477   : > { %v2592_v56 = vpop.f32.mrf.mxu1 }
 0x479   : > { %v2471_v6 = vpop.f32.mrf.mxu2  ;;  %v2524_v20 = vpop.f32.mrf.mxu3 }
 0x47a   : > { %v2472_v10 = vadd.f32 %v6817_v21, %v2471_v6 }
 0x47c   : > { %v2521_v2 = vadd.f32 %v2520_v30, %v2472_v10  ;;  %v8886_v10 = vld [vmem:[%s8883_s25] sm:$0xff] }
 0x47e   : > { %v2555_v18 = vadd.f32 %v2554_v43, %v2521_v2  ;;  %v8892_v2 = vld [vmem:[%s8883_s25 + $0x8] sm:$0xff]  ;;  %v10762_v43 = vmov 5  }
 0x480   : > { %v2587_v27 = vadd.f32 %v2586_v29, %v2555_v18  ;;  %v8902_v18 = vpop.permute.xlu0 %2068 }
 0x481   : > { %v2479_v51 = vpop.f32.mrf.mxu2  ;;  %v2654_v38 = vpop.f32.mrf.mxu3 }
 0x482   : > { %v2480_v41 = vadd.f32 %v6817_v21, %v2479_v51  ;;  %v10763_v51 = vmov 7  }
 0x484   : > { %v2525_v24 = vadd.f32 %v2524_v20, %v2480_v41  ;;  %v10761_v20 = vmov 3   ;;  %v10764_v41 = vmov 9  }
 0x486   : > { %v2560_v44 = vadd.f32 %v2559_v49, %v2525_v24  ;;  %v10766_v24 = vmov 12  }
 0x488   : > { %v2593_v8 = vadd.f32 %v2592_v56, %v2560_v44  ;;  %v8906_v29 = vpop.permute.xlu0 %2078 }
 0x489   : > { %v2625_v19 = vpop.f32.mrf.mxu2  ;;  %v2658_v33 = vpop.f32.mrf.mxu3 }
 0x48a   : > { %v2626_v17 = vadd.f32 %v2625_v19, %v2587_v27  ;;  %v10767_v27 = vmov 14  }
 0x48c   : > { %v2655_v37 = vadd.f32 %v2654_v38, %v2626_v17 }
 0x48e   : > { %v2663_v28 = vsel %vm2109_vm2, %v2655_v37, 0.0 }
 0x48f   : > { %2664 = vadd.xlane.f32.xlu1 %v2663_v28 }
 0x491   : > { %v2629_v26 = vpop.f32.mrf.mxu2 }
 0x492   : > { %v2630_v35 = vadd.f32 %v2629_v26, %v2593_v8 }
 0x494   : > { %v2659_v48 = vadd.f32 %v2658_v33, %v2630_v35 }
 0x496   : > { %v2666_v34 = vsel %vm2109_vm2, %v2659_v48, 0.0 }
 0x497   : > { %2667 = vadd.xlane.f32.xlu2 %v2666_v34 }
 0x4af   : > { %1316 = vperm.xlu2 %6686, %v8535_v11  }
 0x502   : > { %v2665_v47 = vpop.xlane.xlu1 %2664 }
 0x503   : > { %v2669_v25 = vmul.f32 %v2665_v47, %v8558_v58 }
 0x505   : > { %v2671_v62 = vsub.f32 %v2655_v37, %v2669_v25  ;;  %v6818_v25 = vld [vmem:[#allocation17] ss:$0 sm:$0xff] }
 0x507   : > { %v2673_v22 = vmul.f32 %v2671_v62, %v2671_v62 }
 0x509   : > { %v2675_v31 = vsel %vm2109_vm2, %v2673_v22, 0.0 }
 0x50a   : > { %2676 = vadd.xlane.f32.xlu0 %v2675_v31  ;;  %v2668_v1 = vpop.xlane.xlu2 %2667 }
 0x50b   : > { %v2670_v30 = vmul.f32 %v2668_v1, %v8558_v58 }
 0x50d   : > { %v8873_v21 = vsub.f32 %v2659_v48, %v2670_v30  ;;  %v2760_v30 = vld [vmem:[#allocation20 + $0x18] sm:$0xff] }
 0x50f   : > { %v2674_v15 = vmul.f32 %v8873_v21, %v8873_v21 }
 0x511   : > { %v2678_v6 = vsel %vm2109_vm2, %v2674_v15, 0.0  ;;  %v6819_v15 = vld [vmem:[#allocation18] ss:$0 sm:$0xff] }
 0x512   : > { %2679 = vadd.xlane.f32.xlu1 %v2678_v6  ;;  %v2783_v6 = vand.u32 4294901760, %v2760_v30 }
 0x514   : > { %2784 = vmatpush.msrb.mxu0 %v2783_v6  ;;  %2901 = vmatpush.msra.mxu3 %v2783_v6 }
 0x51e   : > { %1321 = vperm.xlu0 %6687, %v10749_v14  }
 0x526   : > { %4678 = vperm.xlu0 %6687, %v8886_v10  }
 0x52e   : > { %6689 = vset.pattern.permute.xlu0 %v10761_v20 }
 0x52f   : > { %1351 = vperm.xlu0 %6689, %v8535_v11   ;;  %v10765_v11 = vmov 10  }
 0x537   : > { %4733 = vperm.xlu0 %6689, %v8892_v2  }
 0x53f   : > { %6695 = vset.pattern.permute.xlu0 %v10762_v43 }
 0x540   : > { %1379 = vperm.xlu0 %6695, %v10749_v14   ;;  %v8910_v14 = vpop.permute.xlu0 %2092 }
 0x548   : > { %4773 = vperm.xlu0 %6695, %v8892_v2   ;;  %v8913_v38 = vpop.permute.xlu0 %2102 }
 0x549   : > { %10768 = vst [vmem:[#allocation70_spill] sm:$0xff] %v8913_v38 }
 0x550   : > { %6702 = vset.pattern.permute.xlu0 %v10763_v51 }
 0x551   : > { %4813 = vperm.xlu0 %6702, %v8892_v2  }
 0x559   : > { %6705 = vset.pattern.permute.xlu0 %v10764_v41 }
 0x55a   : > { %4839 = vperm.xlu0 %6705, %v8886_v10  }
 0x562   : > { %6708 = vset.pattern.permute.xlu0 %v10765_v11 }
 0x563   : > { %4863 = vperm.xlu0 %6708, %v8892_v2  }
 0x56b   : > { %6712 = vset.pattern.permute.xlu0 %v10766_v24 }
 0x56c   : > { %4903 = vperm.xlu0 %6712, %v8892_v2  }
 0x574   : > { %6716 = vset.pattern.permute.xlu0 %v10767_v27 }
 0x57d   : > { %v2677_v19 = vpop.xlane.xlu0 %2676 }
 0x57e   : > { %v2681_v17 = vmul.f32 %v2677_v19, %v8558_v58 }
 0x580   : > { %v2683_v49 = vadd.f32 1e-05, %v2681_v17  ;;  %v2759_v17 = vld [vmem:[#allocation20 + $0x10] sm:$0xff] }
 0x582   : > { %6837 = vrsqrt.f32 %v2683_v49  ;;  %vm2691_vm7 = vweird.f32 %v2683_v49 }
 0x585   : > { %v2680_v37 = vpop.xlane.xlu1 %2679 }
 0x586   : > { %v2682_v44 = vmul.f32 %v2680_v37, %v8558_v58 }
 0x588   : > { %v6838_v28 = vpop.eup %6837  ;;  %v2684_v56 = vadd.f32 1e-05, %v2682_v44  ;;  %v2821_v44 = vsub.f32 %v2760_v30, %v2783_v6 }
 0x589   : > { %v2686_v8 = vmul.f32 %v6838_v28, %v2683_v49  ;;  %vm2692_vm6 = vweird.f32 %v6838_v28 }
 0x58a   : > { %6839 = vrsqrt.f32 %v2684_v56  ;;  %vm2693_vm8 = vmor %vm2691_vm7, %vm2692_vm6  ;;  %vm2701_vm10 = vweird.f32 %v2684_v56  ;;  %2867 = vmatpush.msra.mxu2 %v2821_v44 }
 0x58b   : > { %v2687_v26 = vmul.f32 %v6838_v28, %v2686_v8  ;;  %v2785_v8 = vand.u32 4294901760, %v2759_v17 }
 0x58d   : > { %v2688_v35 = vmul.f32 0.5, %v2687_v26  ;;  %v2758_v26 = vld [vmem:[#allocation20 + $0x8] sm:$0xff]  ;;  %2786 = vmatpush.msrb.mxu0 %v2785_v8  ;;  %2903 = vmatpush.msra.mxu3 %v2785_v8 }
 0x58f   : > { %v2689_v33 = vsub.f32 1.5, %v2688_v35 }
 0x590   : > { %v6840_v48 = vpop.eup %6839 }
 0x591   : > { %v2690_v34 = vmul.f32 %v6838_v28, %v2689_v33  ;;  %v2696_v47 = vmul.f32 %v6840_v48, %v2684_v56  ;;  %vm2702_vm9 = vweird.f32 %v6840_v48  ;;  %v2827_v33 = vsub.f32 %v2759_v17, %v2785_v8 }
 0x592   : > { %vm2703_vm11 = vmor %vm2701_vm10, %vm2702_vm9  ;;  %vm2112_vm10 = vcmask 392192  }
 0x593   : > { %v2694_v22 = vsel %vm2693_vm8, %v6838_v28, %v2690_v34  ;;  %v2697_v31 = vmul.f32 %v6840_v48, %v2696_v47  ;;  %v2822_v28 = vand.u32 4294901760, %v2821_v44  ;;  %v2757_v34 = vld [vmem:[#allocation20] sm:$0xff]  ;;  %2870 = vmatpush.msra.mxu2 %v2827_v33 }
 0x594   : > { %v2705_v1 = vmul.f32 %v2694_v22, %v2671_v62  ;;  %v2787_v62 = vand.u32 4294901760, %v2758_v26  ;;  %v2789_v30 = vand.u32 4294901760, %v2757_v34 }
 0x595   : > { %v2698_v58 = vmul.f32 0.5, %v2697_v31  ;;  %v2823_v31 = vsub.f32 %v2821_v44, %v2822_v28 }
 0x596   : > { %v2710_v19 = vmul.f32 %v6818_v25, %v2705_v1  ;;  %v2828_v1 = vand.u32 4294901760, %v2827_v33  ;;  %2788 = vmatpush.msrb.mxu0 %v2787_v62  ;;  %2905 = vmatpush.msra.mxu3 %v2787_v62 }
 0x597   : > { %v2699_v37 = vsub.f32 1.5, %v2698_v58  ;;  %v2824_v56 = vand.u32 4294901760, %v2823_v31 }
 0x598   : > { %v8917_v49 = vadd.f32 %v6819_v15, %v2710_v19  ;;  %v2833_v19 = vsub.f32 %v2758_v26, %v2787_v62  ;;  %v2829_v17 = vsub.f32 %v2827_v33, %v2828_v1  ;;  %2907 = vmatpush.msra.mxu3 %v2789_v30  ;;  %2790 = vmatpush.msrb.mxu0 %v2789_v30 }
 0x599   : > { %v2700_v35 = vmul.f32 %v6840_v48, %v2699_v37  ;;  %v2839_v37 = vsub.f32 %v2757_v34, %v2789_v30  ;;  %2825 = vmatpush.msrb.mxu1 %v2824_v56 }
 0x59a   : > { %v6264_v47 = vmul.f32 -1.442695, %v8917_v49  ;;  %v2834_v38 = vand.u32 4294901760, %v2833_v19  ;;  %2873 = vmatpush.msra.mxu2 %v2833_v19  ;;  %v2830_v61 = vand.u32 4294901760, %v2829_v17  ;;  %2936 = vmatpush.msra.mxu0 %v2822_v28 }
 0x59b   : > { %v2704_v22 = vsel %vm2703_vm11, %v6840_v48, %v2700_v35  ;;  %v2840_v48 = vand.u32 4294901760, %v2839_v37  ;;  %vm2115_vm11 = vcmask 523264  }
 0x59c   : > { %v2706_v58 = vmul.f32 %v2704_v22, %v8873_v21  ;;  %6841 = vpow2.f32 %v6264_v47  ;;  %v2835_v44 = vsub.f32 %v2833_v19, %v2834_v38  ;;  %2876 = vmatpush.msra.mxu2 %v2839_v37  ;;  %2831 = vmatpush.msrb.mxu1 %v2830_v61 }
 0x59d   : > { %v2841_v21 = vsub.f32 %v2839_v37, %v2840_v48  ;;  %2940 = vmatpush.msra.mxu0 %v2828_v1 }
 0x59e   : > { %v2711_v59 = vmul.f32 %v6818_v25, %v2706_v58  ;;  %v2836_v47 = vand.u32 4294901760, %v2835_v44 }
 0x59f   : > { %v2842_v25 = vand.u32 4294901760, %v2841_v21  ;;  %2944 = vmatpush.msra.mxu0 %v2834_v38 }
 0x5a0   : > { %v8921_v35 = vadd.f32 %v6819_v15, %v2711_v59  ;;  %2837 = vmatpush.msrb.mxu1 %v2836_v47  ;;  %v7463_v59 = vmov 5.0  }
 0x5a1   : > { %2948 = vmatpush.msra.mxu0 %v2840_v48 }
 0x5a2   : > { %v6842_v26 = vpop.eup %6841  ;;  %v6265_v33 = vmul.f32 -1.442695, %v8921_v35  ;;  %2843 = vmatpush.msrb.mxu1 %v2842_v25 }
 0x5a3   : > { %v2723_v34 = vadd.f32 1.0, %v6842_v26 }
 0x5a4   : > { %6843 = vpow2.f32 %v6265_v33  ;;  %2971 = vmatpush.msra.mxu1 %v2783_v6 }
 0x5a5   : > { %6845 = vrcp.f32 %v2723_v34  ;;  %v2736_v58 = vand.u32 2147483648, %v2723_v34  ;;  %v2734_v38 = vand.u32 2147483647, %v2723_v34  ;;  %vm2730_vm13 = vweird.f32 %v2723_v34 }
 0x5a6   : > { %2973 = vmatpush.msra.mxu1 %v2785_v8  ;;  %6847 = vrcp.f32 %v7463_v59 }
 0x5a7   : > { %v2737_v37 = vor.u32 1.1754944e-38, %v2736_v58  ;;  %vm2735_vm15 = vcmp.eq.f32.partialorder %v2734_v38, 8.507059e+37 }
 0x5a8   : > { %2975 = vmatpush.msra.mxu1 %v2787_v62 }
 0x5aa   : > { %v6844_v15 = vpop.eup %6843  ;;  %2977 = vmatpush.msra.mxu1 %v2789_v30 }
 0x5ab   : > { %v6846_v61 = vpop.eup %6845  ;;  %v2724_v28 = vadd.f32 1.0, %v6844_v15  ;;  %v4624_v15 = vld [vmem:[%s8928_s6 + $0x8] sm:$0xff] }
 0x5ac   : > { %v2726_v22 = vmul.f32 %v6846_v61, %v2723_v34  ;;  %v6848_v1 = vpop.eup %6847  ;;  %vm2731_vm12 = vweird.f32 %v6846_v61 }
 0x5ad   : > { %6849 = vrcp.f32 %v2724_v28  ;;  %v4626_v56 = vmul.f32 5.0, %v6848_v1  ;;  %vm2732_vm14 = vmor %vm2730_vm13, %vm2731_vm12  ;;  %v2749_v33 = vand.u32 2147483647, %v2724_v28  ;;  %v2751_v25 = vand.u32 2147483648, %v2724_v28 }
 0x5ae   : > { %v2727_v31 = vsub.f32 1.0, %v2726_v22  ;;  %vm4630_vm0 = vweird.f32 %v6848_v1  ;;  %vm2745_vm5 = vweird.f32 %v2724_v28  ;;  %vm2118_vm12 = vcmask 654336  }
 0x5af   : > { %v4627_v6 = vsub.f32 1.0, %v4626_v56  ;;  %v2752_v38 = vor.u32 1.1754944e-38, %v2751_v25  ;;  %vm2750_vm7 = vcmp.eq.f32.partialorder %v2749_v33, 8.507059e+37  ;;  %vm2121_vm13 = vcmask 785408  }
 0x5b0   : > { %v2728_v19 = vmul.f32 %v6846_v61, %v2727_v31 }
 0x5b1   : > { %v4628_v44 = vmul.f32 %v6848_v1, %v4627_v6 }
 0x5b2   : > { %v2729_v17 = vadd.f32 %v6846_v61, %v2728_v19 }
 0x5b3   : > { %v6850_v8 = vpop.eup %6849  ;;  %v4629_v47 = vadd.f32 %v6848_v1, %v4628_v44 }
 0x5b4   : > { %v2733_v48 = vsel %vm2732_vm14, %v6846_v61, %v2729_v17  ;;  %v2741_v62 = vmul.f32 %v6850_v8, %v2724_v28  ;;  %vm2746_vm4 = vweird.f32 %v6850_v8 }
 0x5b5   : > { %v2738_v21 = vsel %vm2735_vm15, %v2737_v37, %v2733_v48  ;;  %v4631_v61 = vsel %vm4630_vm0, %v6848_v1, %v4629_v47  ;;  %vm2747_vm6 = vmor %vm2745_vm5, %vm2746_vm4 }
 0x5b6   : > { %v2755_v30 = vmul.f32 %v2738_v21, %v8917_v49  ;;  %v2742_v26 = vsub.f32 1.0, %v2741_v62  ;;  %v4633_v31 = vmul.f32 %v4631_v61, %v4624_v15 }
 0x5b8   : > { %v2766_v34 = vsel %vm2109_vm2, %v2755_v30, 0  ;;  %v2743_v59 = vmul.f32 %v6850_v8, %v2742_v26  ;;  %v4635_v49 = vmul.f32 %v4633_v31, %v4633_v31  ;;  %vm4661_vm8 = vcmp.lt.f32.partialorder %v4633_v31, 1.0 }
 0x5b9   : > { %v2791_v22 = vand.u32 4294901760, %v2766_v34 }
 0x5ba   : > { %v2744_v58 = vadd.f32 %v6850_v8, %v2743_v59  ;;  %v4637_v37 = vmul.f32 %v4635_v49, %v4633_v31 }
 0x5bb   : > { %2845 = vmatmul.f32.vlgmr.msrb.gmra.mxu1 %v2791_v22  ;;  %v2792_v19 = vsub.f32 %v2766_v34, %v2791_v22 }
 0x5bc   : > { %v2748_v56 = vsel %vm2747_vm6, %v6850_v8, %v2744_v58  ;;  %v4639_v1 = vmul.f32 %v4637_v37, %v4633_v31 }
 0x5bd   : > { %2879 = vmatmul.f32.vlgmr.msra.gmra.mxu2 %v2792_v19  ;;  %v2793_v17 = vand.u32 4294901760, %v2792_v19  ;;  %v2753_v6 = vsel %vm2750_vm7, %v2752_v38, %v2748_v56  ;;  %v4623_v38 = vld [vmem:[%s8928_s6] sm:$0xff] }
 0x5be   : > { %v2756_v48 = vmul.f32 %v2753_v6, %v8921_v35  ;;  %v4641_v30 = vmul.f32 %v4639_v1, %v4633_v31  ;;  %v4632_v49 = vmul.f32 %v4631_v61, %v4623_v38  ;;  %v10777_v38 = vld [vmem:[#allocation48_spill] sm:$0xff] }
 0x5bf   : > { %2911 = vmatmul.f32.vlgmr.msra.gmra.mxu3 %v2793_v17  ;;  %v2794_v62 = vsub.f32 %v2792_v19, %v2793_v17 }
 0x5c0   : > { %v2769_v44 = vsel %vm2109_vm2, %v2756_v48, 0  ;;  %v4643_v8 = vmul.f32 -21.0, %v4641_v30  ;;  %v4647_v47 = vmul.f32 35.0, %v4641_v30  ;;  %v4653_v33 = vmul.f32 -15.0, %v4641_v30 }
 0x5c1   : > { %v2795_v21 = vand.u32 4294901760, %v2794_v62  ;;  %v2799_v28 = vand.u32 4294901760, %v2769_v44  ;;  %v4634_v6 = vmul.f32 %v4632_v49, %v4632_v49  ;;  %vm4660_vm9 = vcmp.lt.f32.partialorder %v4632_v49, 1.0 }
 0x5c2   : > { %v4645_v34 = vadd.f32 1.0, %v4643_v8  ;;  %v4649_v59 = vmul.f32 %v4647_v47, %v4633_v31  ;;  %v4655_v35 = vmul.f32 %v4653_v33, %v4633_v31 }
 0x5c3   : > { %2796 = vmatmul.f32.vlgmr.msrb.gmra.mxu0 %v2795_v21  ;;  %2849 = vmatmul.f32.gmra.mxu1 %v2799_v28  ;;  %v2800_v26 = vsub.f32 %v2769_v44, %v2799_v28  ;;  %v4636_v48 = vmul.f32 %v4634_v6, %v4632_v49  ;;  %v10779_v6 = vmov 13  }
 0x5c4   : > { %v4651_v58 = vadd.f32 %v4649_v59, %v4645_v34  ;;  %v4657_v19 = vmul.f32 %v4655_v35, %v4633_v31  ;;  %v10771_v59 = vmov 2  }
 0x5c5   : > { %2884 = vmatmul.f32.gmra.mxu2 %v2800_v26  ;;  %v2801_v25 = vand.u32 4294901760, %v2800_v26  ;;  %v4638_v62 = vmul.f32 %v4636_v48, %v4632_v49 }
 0x5c6   : > { %v4659_v17 = vadd.f32 %v4657_v19, %v4651_v58 }
 0x5c7   : > { %2917 = vmatmul.f32.gmra.mxu3 %v2801_v25  ;;  %v2802_v15 = vsub.f32 %v2800_v26, %v2801_v25  ;;  %v4640_v1 = vmul.f32 %v4638_v62, %v4632_v49  ;;  %v10770_v26 = vmov 1  }
 0x5c8   : > { %v4663_v37 = vsel %vm4661_vm8, %v4659_v17, 0.0 }
 0x5c9   : > { %v2803_v56 = vand.u32 4294901760, %v2802_v15  ;;  %4671 = vperm.xlu1 %6688, %v4663_v37   ;;  %v4642_v44 = vmul.f32 -21.0, %v4640_v1  ;;  %v4646_v21 = vmul.f32 35.0, %v4640_v1  ;;  %v4652_v30 = vmul.f32 -15.0, %v4640_v1 }
 0x5ca   : > { %v10776_v15 = vmov 11  }
 0x5cb   : > { %2804 = vmatmul.f32.gmra.mxu0 %v2803_v56  ;;  %2979 = vmatmul.f32.vlgmr.msra.gmra.mxu1 %v2791_v22  ;;  %v4644_v8 = vadd.f32 1.0, %v4642_v44  ;;  %v4648_v31 = vmul.f32 %v4646_v21, %v4632_v49  ;;  %v4654_v61 = vmul.f32 %v4652_v30, %v4632_v49  ;;  %v10782_v44 = vld [vmem:[#allocation47_spill] sm:$0xff]  ;;  %v10784_v30 = vld [vmem:[#allocation46_spill] sm:$0xff] }
 0x5cd   : > { %v4650_v47 = vadd.f32 %v4648_v31, %v4644_v8  ;;  %v4656_v33 = vmul.f32 %v4654_v61, %v4632_v49  ;;  %v1334_v49 = vmul.f32 %v10777_v38, %v8319_v12  ;;  %v10781_v12 = vld [vmem:[#allocation45_spill] sm:$0xff] }
 0x5ce   : > { %v1335_v62 = vmul.f32 %v10781_v12, %v8423_v3  ;;  %v2993_v3 = vld [vmem:[%s10783_s17 + $0x20] sm:$0xff]  ;;  %v10785_v31 = vld [vmem:[#allocation49_spill] sm:$0xff] }
 0x5cf   : > { %v4658_v25 = vadd.f32 %v4656_v33, %v4650_v47  ;;  %v1382_v61 = vmul.f32 %v10785_v31, %v8356_v40  ;;  %v10786_v33 = vmov 15   ;;  %v10787_v40 = vld [vmem:[#allocation52_spill] sm:$0xff] }
 0x5d1   : > { %6690 = vset.pattern.permute.xlu1 %v10770_v26  ;;  %v4662_v34 = vsel %vm4660_vm9, %v4658_v25, 0.0 }
 0x5d2   : > { %4689 = vperm.xlu1 %6690, %v8886_v10   ;;  %4666 = vperm.xlu2 %6686, %v4662_v34  }
 0x5d3   : > { %2950 = vmatmul.f32.vlgmr.msra.gmra.mxu0 %v2791_v22  ;;  %2983 = vmatmul.f32.gmra.mxu1 %v2799_v28  ;;  %v10772_v22 = vmov 4  }
 0x5da   : > { %6693 = vset.pattern.permute.xlu1 %v10771_v59  ;;  %4683 = vperm.xlu2 %6686, %v8892_v2  }
 0x5db   : > { %2954 = vmatmul.f32.gmra.mxu0 %v2799_v28  ;;  %4713 = vperm.xlu1 %6693, %v8892_v2   ;;  %v1322_v28 = vpop.permute.xlu0 %1321 }
 0x5dc   : > { %v1325_v37 = vmul.f32 %v1322_v28, %v8428_v7  ;;  %v2991_v28 = vld [vmem:[%s10783_s17 + $0x10] sm:$0xff] }
 0x5de   : > { %v1337_v21 = vadd.f32 %v1335_v62, %v1325_v37 }
 0x5e2   : > { %6691 = vset.pattern.permute.xlu2 %v10770_v26  ;;  %v1347_v26 = vmul.f32 %v10784_v30, %v8433_v13  ;;  %v2992_v13 = vld [vmem:[%s10783_s17 + $0x18] sm:$0xff] }
 0x5e3   : > { %6694 = vset.pattern.permute.xlu1 %v10761_v20  ;;  %4693 = vperm.xlu2 %6691, %v8892_v2   ;;  %v10773_v20 = vmov 6   ;;  %v8963_v35 = vpop.permute.xlu0 %4678 }
 0x5e4   : > { %4729 = vperm.xlu1 %6694, %v8886_v10   ;;  %10775 = vst [vmem:[#allocation59_spill] sm:$0xff] %v8963_v35  ;;  %v1349_v47 = vadd.f32 %v1347_v26, %v1337_v21 }
 0x5eb   : > { %6692 = vset.pattern.permute.xlu2 %v10771_v59  ;;  %v1352_v58 = vpop.permute.xlu0 %1351  ;;  %v9018_v59 = vand.u32 4294901760, %v2992_v13 }
 0x5ec   : > { %6697 = vset.pattern.permute.xlu1 %v10772_v22  ;;  %4709 = vperm.xlu2 %6692, %v8886_v10   ;;  %v1358_v17 = vmul.f32 %v1352_v58, %v8338_v54  ;;  %v2994_v54 = vld [vmem:[%s10783_s17 + $0x28] sm:$0xff] }
 0x5ed   : > { %4753 = vperm.xlu1 %6697, %v8892_v2   ;;  %v8993_v7 = vand.u32 4294901760, %v2994_v54  ;;  %v9032_v58 = vsub.f32 %v2992_v13, %v9018_v59 }
 0x5ef   : > { %3149 = vmatpush.msrb.mxu1 %v8993_v7  ;;  %3016 = vmatpush.msrb.mxu2 %v8993_v7 }
 0x5f4   : > { %6696 = vset.pattern.permute.xlu2 %v10772_v22  ;;  %v1359_v22 = vmul.f32 %v10787_v40, %v8447_v42  ;;  %v9035_v42 = vand.u32 4294901760, %v2991_v28 }
 0x5f5   : > { %6698 = vset.pattern.permute.xlu1 %v10762_v43  ;;  %4749 = vperm.xlu2 %6696, %v8886_v10   ;;  %v10774_v43 = vmov 8  }
 0x5f6   : > { %4769 = vperm.xlu1 %6698, %v8886_v10   ;;  %v3073_v37 = vsub.f32 %v2991_v28, %v9035_v42  ;;  %v10792_v28 = vld [vmem:[#allocation66_spill] sm:$0xff] }
 0x5f8   : > { %v3074_v21 = vand.u32 4294901760, %v3073_v37 }
 0x5fa   : > { %v3075_v31 = vsub.f32 %v3073_v37, %v3074_v21 }
 0x5fd   : > { %6699 = vset.pattern.permute.xlu2 %v10773_v20 }
 0x5fe   : > { %6700 = vset.pattern.permute.xlu1 %v10773_v20  ;;  %4789 = vperm.xlu2 %6699, %v8886_v10  }
 0x5ff   : > { %4793 = vperm.xlu1 %6700, %v8892_v2  }
 0x606   : > { %6703 = vset.pattern.permute.xlu2 %v10774_v43 }
 0x607   : > { %6701 = vset.pattern.permute.xlu1 %v10763_v51  ;;  %4819 = vperm.xlu2 %6703, %v8886_v10   ;;  %v1317_v51 = vpop.permute.xlu2 %1316 }
 0x608   : > { %4809 = vperm.xlu1 %6701, %v8886_v10   ;;  %v1324_v19 = vmul.f32 %v1317_v51, %v8323_v46  ;;  %v8982_v46 = vpop.permute.xlu0 %4733 }
 0x609   : > { %10780 = vst [vmem:[#allocation62_spill] sm:$0xff] %v8982_v46 }
 0x60f   : > { %6706 = vset.pattern.permute.xlu2 %v10764_v41  ;;  %v1336_v41 = vadd.f32 %v1334_v49, %v1324_v19  ;;  %v10788_v19 = vld [vmem:[#allocation55_spill] sm:$0xff]  ;;  %v1361_v49 = vadd.f32 %v1359_v22, %v1349_v47 }
 0x610   : > { %6704 = vset.pattern.permute.xlu1 %v10774_v43  ;;  %4843 = vperm.xlu2 %6706, %v8892_v2   ;;  %v1380_v43 = vpop.permute.xlu0 %1379  ;;  %v1394_v38 = vmul.f32 %v10788_v19, %v8367_v55  ;;  %v10789_v55 = vld [vmem:[#allocation54_spill] sm:$0xff]  ;;  %v10791_v22 = vld [vmem:[#allocation51_spill] sm:$0xff] }
 0x611   : > { %4823 = vperm.xlu1 %6704, %v8892_v2   ;;  %v1383_v12 = vmul.f32 %v1380_v43, %v8466_v60  ;;  %v10790_v60 = vld [vmem:[#allocation56_spill] sm:$0xff]  ;;  %v1418_v43 = vmul.f32 %v10792_v28, %v8384_v53 }
 0x618   : > { %6709 = vset.pattern.permute.xlu2 %v10776_v15 }
 0x619   : > { %6707 = vset.pattern.permute.xlu1 %v10765_v11  ;;  %4879 = vperm.xlu2 %6709, %v8886_v10   ;;  %v10778_v11 = vld [vmem:[#allocation50_spill] sm:$0xff] }
 0x61a   : > { %4859 = vperm.xlu1 %6707, %v8886_v10   ;;  %v1346_v56 = vmul.f32 %v10778_v11, %v8332_v9  ;;  %v1370_v9 = vmul.f32 %v10782_v44, %v8346_v4  ;;  %v9003_v4 = vand.u32 4294901760, %v2993_v3 }
 0x61c   : > { %v1348_v48 = vadd.f32 %v1346_v56, %v1336_v41  ;;  %v9015_v34 = vsub.f32 %v2993_v3, %v9003_v4  ;;  %3151 = vmatpush.msrb.mxu1 %v9003_v4  ;;  %3018 = vmatpush.msrb.mxu2 %v9003_v4  ;;  %v2990_v41 = vld [vmem:[%s10783_s17 + $0x8] sm:$0xff] }
 0x61d   : > { %v9053_v62 = vand.u32 4294901760, %v2990_v41 }
 0x61e   : > { %v1360_v1 = vadd.f32 %v1358_v17, %v1348_v48  ;;  %3153 = vmatpush.msrb.mxu1 %v9018_v59  ;;  %3020 = vmatpush.msrb.mxu2 %v9018_v59  ;;  %v3068_v17 = vand.u32 4294901760, %v9032_v58 }
 0x61f   : > { %v3079_v26 = vsub.f32 %v2990_v41, %v9053_v62 }
 0x620   : > { %v1372_v8 = vadd.f32 %v1370_v9, %v1360_v1  ;;  %v2989_v1 = vld [vmem:[%s10783_s17] sm:$0xff]  ;;  %3155 = vmatpush.msrb.mxu1 %v9035_v42  ;;  %3022 = vmatpush.msrb.mxu2 %v9035_v42  ;;  %v3069_v9 = vsub.f32 %v9032_v58, %v3068_v17 }
 0x621   : > { %6713 = vset.pattern.permute.xlu2 %v10779_v6 }
 0x622   : > { %6710 = vset.pattern.permute.xlu1 %v10776_v15  ;;  %4919 = vperm.xlu2 %6713, %v8886_v10   ;;  %v1384_v20 = vadd.f32 %v1382_v61, %v1372_v8  ;;  %v3062_v15 = vand.u32 4294901760, %v9015_v34  ;;  %v3070_v3 = vand.u32 4294901760, %v3069_v9 }
 0x623   : > { %4883 = vperm.xlu1 %6710, %v8892_v2   ;;  %3157 = vmatpush.msrb.mxu1 %v9053_v62 }
 0x624   : > { %v3063_v56 = vsub.f32 %v9015_v34, %v3062_v15  ;;  %v1396_v48 = vadd.f32 %v1394_v38, %v1384_v20  ;;  %3024 = vmatpush.msrb.mxu2 %v9053_v62  ;;  %v1395_v20 = vmul.f32 %v10791_v22, %v8471_v36  ;;  %v10793_v36 = vld [vmem:[#allocation53_spill] sm:$0xff] }
 0x626   : > { %v3064_v44 = vand.u32 4294901760, %v3063_v56 }
 0x62a   : > { %6717 = vset.pattern.permute.xlu2 %v10786_v33 }
 0x62b   : > { %6711 = vset.pattern.permute.xlu1 %v10766_v24  ;;  %v9001_v24 = vsub.f32 %v2994_v54, %v8993_v7  ;;  %v1406_v54 = vmul.f32 %v10790_v60, %v8378_v63  ;;  %v3076_v63 = vand.u32 4294901760, %v3075_v31 }
 0x62c   : > { %4899 = vperm.xlu1 %6711, %v8886_v10  }
 0x62d   : > { %v3056_v25 = vand.u32 4294901760, %v9001_v24  ;;  %3111 = vmatpush.msrb.mxu0 %v9001_v24  ;;  %v1408_v47 = vadd.f32 %v1406_v54, %v1396_v48 }
 0x62f   : > { %v3057_v51 = vsub.f32 %v9001_v24, %v3056_v25  ;;  %3114 = vmatpush.msrb.mxu0 %v9015_v34  ;;  %v3080_v34 = vand.u32 4294901760, %v3079_v26 }
 0x631   : > { %v3058_v11 = vand.u32 4294901760, %v3057_v51  ;;  %3117 = vmatpush.msrb.mxu0 %v9032_v58  ;;  %v6820_v51 = vld [vmem:[#allocation21] ss:$0 sm:$0xff]  ;;  %v3081_v58 = vsub.f32 %v3079_v26, %v3080_v34 }
 0x633   : > { %3059 = vmatpush.msrb.mxu3 %v3058_v11  ;;  %3120 = vmatpush.msrb.mxu0 %v3073_v37  ;;  %v3082_v11 = vand.u32 4294901760, %v3081_v58  ;;  %v1407_v37 = vmul.f32 %v10793_v36, %v8480_v16 }
 0x634   : > { %6714 = vset.pattern.permute.xlu1 %v10779_v6  ;;  %v1371_v6 = vmul.f32 %v10789_v55, %v8456_v23  ;;  %v9061_v23 = vand.u32 4294901760, %v2989_v1 }
 0x635   : > { %4923 = vperm.xlu1 %6714, %v8892_v2   ;;  %3065 = vmatpush.msrb.mxu3 %v3064_v44 }
 0x636   : > { %v1373_v30 = vadd.f32 %v1371_v6, %v1361_v49  ;;  %v3085_v61 = vsub.f32 %v2989_v1, %v9061_v23  ;;  %3123 = vmatpush.msrb.mxu0 %v3079_v26  ;;  %3159 = vmatpush.msrb.mxu1 %v9061_v23  ;;  %v1420_v49 = vadd.f32 %v1418_v43, %v1408_v47 }
 0x637   : > { %3071 = vmatpush.msrb.mxu3 %v3070_v3  ;;  %3026 = vmatpush.msrb.mxu2 %v9061_v23 }
 0x638   : > { %v2846_v8 = vpop.f32.mrf.mxu1  ;;  %v1385_v13 = vadd.f32 %v1383_v12, %v1373_v30  ;;  %v3086_v40 = vand.u32 4294901760, %v3085_v61  ;;  %3126 = vmatpush.msrb.mxu0 %v3085_v61  ;;  %v2107_v24 = vsel %vm2106_vm1, %v1420_v49, %v8854_v50 }
 0x639   : > { %3186 = vmatpush.msra.mxu2 %v3056_v25  ;;  %3077 = vmatpush.msrb.mxu3 %v3076_v63 }
 0x63a   : > { %v3087_v38 = vsub.f32 %v3085_v61, %v3086_v40  ;;  %v1397_v41 = vadd.f32 %v1395_v20, %v1385_v13 }
 0x63b   : > { %3190 = vmatpush.msra.mxu2 %v3062_v15  ;;  %3083 = vmatpush.msrb.mxu3 %v3082_v11  ;;  %v9082_v25 = vpop.permute.xlu1 %4671  ;;  %v10795_v15 = vld [vmem:[#allocation58_spill] sm:$0xff] }
 0x63c   : > { %v3088_v56 = vand.u32 4294901760, %v3087_v38  ;;  %v1409_v55 = vadd.f32 %v1407_v37, %v1397_v41  ;;  %10794 = vst [vmem:[#allocation60_spill] sm:$0xff] %v9082_v25  ;;  %v1419_v6 = vmul.f32 %v10795_v15, %v8488_v0 }
 0x63d   : > { %6715 = vset.pattern.permute.xlu1 %v10767_v27  ;;  %3194 = vmatpush.msra.mxu2 %v3068_v17  ;;  %v2110_v17 = vsel %vm2109_vm2, %v2107_v24, %v8902_v18  ;;  %v9096_v18 = vpop.permute.xlu2 %4666 }
 0x63e   : > { %3089 = vmatpush.msrb.mxu3 %v3088_v56  ;;  %v1421_v50 = vadd.f32 %v1419_v6, %v1409_v55  ;;  %v10801_v55 = vmov 16   ;;  %v3288_v6 = vld [vmem:[%s10452_s18 + $0x18] sm:$0xff] }
 0x63f   : > { %3198 = vmatpush.msra.mxu2 %v3074_v21 }
 0x640   : > { %v2797_v19 = vpop.f32.mrf.mxu0  ;;  %v2850_v27 = vpop.f32.mrf.mxu1  ;;  %3227 = vmatpush.msra.mxu3 %v8993_v7  ;;  %v2113_v7 = vsel %vm2112_vm10, %v2110_v17, %v8860_v52  ;;  %v2108_v9 = vsel %vm2106_vm1, %v1421_v50, %v8856_v45 }
 0x641   : > { %v2798_v53 = vadd.f32 %v6820_v51, %v2797_v19  ;;  %3202 = vmatpush.msra.mxu2 %v3080_v34  ;;  %v2880_v16 = vpop.f32.mrf.mxu2  ;;  %v10797_v34 = vld [vmem:[#allocation57_spill] sm:$0xff] }
 0x642   : > { %3229 = vmatpush.msra.mxu3 %v9003_v4  ;;  %v2912_v0 = vpop.f32.mrf.mxu3  ;;  %v2116_v4 = vsel %vm2115_vm11, %v2113_v7, %v8862_v39 }
 0x643   : > { %v2847_v48 = vadd.f32 %v2846_v8, %v2798_v53  ;;  %3206 = vmatpush.msra.mxu2 %v3086_v40  ;;  %v2119_v45 = vsel %vm2118_vm12, %v2116_v4, %v8910_v14  ;;  %v10805_v4 = vmov 20  }
 0x644   : > { %3231 = vmatpush.msra.mxu3 %v9018_v59  ;;  %v9101_v60 = vpop.permute.xlu1 %4689  ;;  %v9112_v3 = vsel %vm2121_vm13, %v2119_v45, %v8868_v32 }
 0x645   : > { %v2881_v1 = vadd.f32 %v2880_v16, %v2847_v48  ;;  %v9120_v47 = vpop.permute.xlu2 %4683  ;;  %v9155_v48 = vand.u32 4294901760, %v3288_v6  ;;  %v10804_v16 = vmov 18  }
 0x646   : > { %3233 = vmatpush.msra.mxu3 %v9035_v42  ;;  %v2111_v42 = vsel %vm2109_vm2, %v2108_v9, %v8858_v57  ;;  %10796 = vst [vmem:[#allocation64_spill] sm:$0xff] %v9120_v47 }
 0x647   : > { %v2913_v59 = vadd.f32 %v2912_v0, %v2881_v1  ;;  %3310 = vmatpush.msra.mxu0 %v9155_v48  ;;  %v3287_v0 = vld [vmem:[%s10452_s18 + $0x10] sm:$0xff] }
 0x648   : > { %v2805_v12 = vpop.f32.mrf.mxu0  ;;  %3235 = vmatpush.msra.mxu3 %v9053_v62  ;;  %v2980_v52 = vpop.f32.mrf.mxu1  ;;  %v2114_v62 = vsel %vm2112_vm10, %v2111_v42, %v8906_v29  ;;  %v9181_v9 = vand.u32 4294901760, %v3287_v0  ;;  %v10806_v42 = vmov 19  }
 0x649   : > { %v2806_v44 = vadd.f32 %v6820_v51, %v2805_v12  ;;  %v2885_v39 = vpop.f32.mrf.mxu2  ;;  %v2117_v14 = vsel %vm2115_vm11, %v2114_v62, %v8864_v5  ;;  %v10799_v5 = vld [vmem:[#allocation70_spill] sm:$0xff]  ;;  %v9160_v12 = vsub.f32 %v3288_v6, %v9155_v48  ;;  %v10810_v62 = vmov 21  }
 0x64a   : > { %3237 = vmatpush.msra.mxu3 %v9061_v23  ;;  %v2918_v57 = vpop.f32.mrf.mxu3  ;;  %v2120_v32 = vsel %vm2118_vm12, %v2117_v14, %v10797_v34  ;;  %3312 = vmatpush.msra.mxu0 %v9181_v9  ;;  %v3285_v14 = vld [vmem:[%s10452_s18] sm:$0xff]  ;;  %v10813_v34 = vmov 23  }
 0x64b   : > { %v2851_v21 = vadd.f32 %v2850_v27, %v2806_v44  ;;  %v9128_v43 = vsel %vm2121_vm13, %v2120_v32, %v10799_v5  ;;  %v9165_v17 = vand.u32 4294901760, %v9160_v12 }
 0x64d   : > { %v2886_v26 = vadd.f32 %v2885_v39, %v2851_v21  ;;  %v9124_v40 = vpop.permute.xlu1 %4713  ;;  %v9135_v11 = vpop.permute.xlu2 %4693  ;;  %v3349_v1 = vsub.f32 %v9160_v12, %v9165_v17  ;;  %v10808_v39 = vmov 22  }
 0x64e   : > { %10798 = vst [vmem:[#allocation61_spill] sm:$0xff] %v9124_v40 }
 0x64f   : > { %v2919_v23 = vadd.f32 %v2918_v57, %v2886_v26  ;;  %10800 = vst [vmem:[#allocation67_spill] sm:$0xff] %v9135_v11  ;;  %v3350_v7 = vand.u32 4294901760, %v3349_v1  ;;  %v10819_v1 = vmov 28  }
 0x650   : > { %v2951_v54 = vpop.f32.mrf.mxu0  ;;  %v2984_v22 = vpop.f32.mrf.mxu1 }
 0x651   : > { %v2952_v30 = vadd.f32 %v2951_v54, %v2913_v59  ;;  %3351 = vmatpush.msra.mxu1 %v3350_v7  ;;  %v9185_v59 = vsub.f32 %v3287_v0, %v9181_v9 }
 0x653   : > { %v2981_v8 = vadd.f32 %v2980_v52, %v2952_v30  ;;  %v9191_v21 = vand.u32 4294901760, %v9185_v59 }
 0x655   : > { %v2987_v31 = vmul.f32 %v2981_v8, %v9112_v3  ;;  %3515 = vrot.lane.b32.xlu1 %v2981_v8, %s7447_s3  ;;  %v9144_v27 = vpop.permute.xlu2 %4709  ;;  %v3355_v54 = vsub.f32 %v9185_v59, %v9191_v21 }
 0x656   : > { %v9137_v36 = vpop.permute.xlu1 %4729 }
 0x657   : > { %v3000_v61 = vsel %vm2112_vm10, %v2987_v31, 0  ;;  %3289 = vrot.lane.b32.xlu2 %v2987_v31, %s7393_s10  ;;  %v3356_v30 = vand.u32 4294901760, %v3355_v54 }
 0x658   : > { %v2955_v29 = vpop.f32.mrf.mxu0  ;;  %v3027_v13 = vand.u32 4294901760, %v3000_v61 }
 0x659   : > { %v2956_v63 = vadd.f32 %v2955_v29, %v2919_v23  ;;  %3357 = vmatpush.msra.mxu1 %v3356_v30 }
 0x65a   : > { %3091 = vmatmul.f32.vlgmr.msrb.gmra.mxu3 %v3027_v13  ;;  %v3028_v20 = vsub.f32 %v3000_v61, %v3027_v13 }
 0x65b   : > { %v2985_v28 = vadd.f32 %v2984_v22, %v2956_v63  ;;  %3427 = vmatpush.msrb.mxu3 %v9155_v48  ;;  %v9251_v22 = vld [vmem:[%s8883_s25] sm:$0xff] }
 0x65c   : > { %3129 = vmatmul.f32.vlgmr.msrb.gmra.mxu0 %v3028_v20  ;;  %v3029_v51 = vand.u32 4294901760, %v3028_v20 }
 0x65d   : > { %v2988_v58 = vmul.f32 %v2985_v28, %v9128_v43  ;;  %3517 = vrot.lane.b32.xlu0 %v2985_v28, %s7447_s3  ;;  %4939 = vperm.xlu1 %6715, %v8886_v10   ;;  %v9168_v50 = vpop.permute.xlu2 %4749 }
 0x65e   : > { %3163 = vmatmul.f32.vlgmr.msrb.gmra.mxu1 %v3029_v51  ;;  %v3030_v19 = vsub.f32 %v3028_v20, %v3029_v51  ;;  %3429 = vmatpush.msrb.mxu3 %v9181_v9 }
 0x65f   : > { %v3003_v38 = vsel %vm2112_vm10, %v2988_v58, 0  ;;  %4949 = vperm.xlu2 %6717, %v8886_v10   ;;  %v9147_v15 = vpop.permute.xlu1 %4753 }
 0x660   : > { %v3031_v49 = vand.u32 4294901760, %v3030_v19  ;;  %v3035_v41 = vand.u32 4294901760, %v3003_v38  ;;  %10802 = vst [vmem:[#allocation68_spill] sm:$0xff] %v9147_v15 }
 0x662   : > { %3032 = vmatmul.f32.vlgmr.msrb.gmra.mxu2 %v3031_v49  ;;  %3095 = vmatmul.f32.gmra.mxu3 %v3035_v41  ;;  %v3036_v56 = vsub.f32 %v3003_v38, %v3035_v41  ;;  %v10815_v38 = vmov 24   ;;  %v9272_v49 = vld [vmem:[%s8883_s25 + $0x8] sm:$0xff] }
 0x663   : > { %3393 = vmatpush.msrb.mxu2 %v9160_v12 }
 0x664   : > { %3134 = vmatmul.f32.gmra.mxu0 %v3036_v56  ;;  %v3037_v37 = vand.u32 4294901760, %v3036_v56 }
 0x665   : > { %4943 = vperm.xlu0 %6716, %v8892_v2   ;;  %6718 = vset.pattern.permute.xlu1 %v10786_v33  ;;  %v10803_v33 = vmov 17   ;;  %v9195_v52 = vpop.permute.xlu2 %4789 }
 0x666   : > { %3169 = vmatmul.f32.gmra.mxu1 %v3037_v37  ;;  %v3038_v53 = vsub.f32 %v3036_v56, %v3037_v37  ;;  %4953 = vperm.xlu1 %6718, %v8892_v2  }
 0x667   : > { %6720 = vset.pattern.permute.xlu2 %v10801_v55  ;;  %3396 = vmatpush.msrb.mxu2 %v9185_v59 }
 0x668   : > { %v3039_v24 = vand.u32 4294901760, %v3038_v53  ;;  %4973 = vperm.xlu2 %6720, %v8892_v2   ;;  %v9173_v44 = vpop.permute.xlu1 %4769  ;;  %v10818_v53 = vmov 26  }
 0x66a   : > { %3040 = vmatmul.f32.gmra.mxu2 %v3039_v24  ;;  %3239 = vmatmul.f32.vlgmr.msra.gmra.mxu3 %v3027_v13 }
 0x66d   : > { %6719 = vset.pattern.permute.xlu0 %v10801_v55  ;;  %v9206_v26 = vpop.permute.xlu2 %4819 }
 0x66e   : > { %4969 = vperm.xlu0 %6719, %v8886_v10   ;;  %6721 = vset.pattern.permute.xlu1 %v10803_v33 }
 0x66f   : > { %4989 = vperm.xlu1 %6721, %v8886_v10  }
 0x670   : > { %6723 = vset.pattern.permute.xlu2 %v10804_v16 }
 0x671   : > { %5009 = vperm.xlu2 %6723, %v8886_v10   ;;  %v9200_v45 = vpop.permute.xlu1 %4793 }
 0x672   : > { %3208 = vmatmul.f32.vlgmr.msra.gmra.mxu2 %v3027_v13  ;;  %3243 = vmatmul.f32.gmra.mxu3 %v3035_v41  ;;  %10807 = vst [vmem:[#allocation73_spill] sm:$0xff] %v9200_v45 }
 0x675   : > { %v9218_v31 = vpop.permute.xlu2 %4843 }
 0x676   : > { %3291 = vrot.lane.b32.xlu0 %v2988_v58, %s7393_s10  ;;  %10811 = vst [vmem:[#allocation65_spill] sm:$0xff] %v9218_v31  ;;  %v9263_v58 = vpop.permute.xlu0 %4773 }
 0x677   : > { %6722 = vset.pattern.permute.xlu0 %v10803_v33  ;;  %6724 = vset.pattern.permute.xlu1 %v10804_v16  ;;  %10814 = vst [vmem:[#allocation72_spill] sm:$0xff] %v9263_v58 }
 0x678   : > { %5013 = vperm.xlu1 %6724, %v8892_v2  }
 0x679   : > { %6727 = vset.pattern.permute.xlu2 %v10805_v4 }
 0x67a   : > { %3212 = vmatmul.f32.gmra.mxu2 %v3035_v41  ;;  %5049 = vperm.xlu2 %6727, %v8886_v10   ;;  %v9210_v8 = vpop.permute.xlu1 %4809 }
 0x67b   : > { %10809 = vst [vmem:[#allocation63_spill] sm:$0xff] %v9210_v8 }
 0x67d   : > { %v9259_v5 = vpop.permute.xlu2 %4879 }
 0x67e   : > { %4993 = vperm.xlu0 %6722, %v8892_v2   ;;  %v9281_v56 = vpop.permute.xlu0 %4813 }
 0x67f   : > { %10816 = vst [vmem:[#allocation75_spill] sm:$0xff] %v9281_v56 }
 0x680   : > { %6725 = vset.pattern.permute.xlu1 %v10806_v42 }
 0x681   : > { %5029 = vperm.xlu1 %6725, %v8886_v10   ;;  %v3286_v10 = vld [vmem:[%s10452_s18 + $0x8] sm:$0xff] }
 0x682   : > { %6731 = vset.pattern.permute.xlu2 %v10808_v39  ;;  %v9220_v57 = vand.u32 4294901760, %v3286_v10 }
 0x683   : > { %v9225_v23 = vpop.permute.xlu1 %4823 }
 0x684   : > { %10812 = vst [vmem:[#allocation69_spill] sm:$0xff] %v9225_v23  ;;  %v9228_v61 = vsub.f32 %v3286_v10, %v9220_v57  ;;  %3431 = vmatpush.msrb.mxu3 %v9220_v57  ;;  %3314 = vmatpush.msra.mxu0 %v9220_v57 }
 0x685   : > { %v9279_v41 = vpop.permute.xlu2 %4919 }
 0x686   : > { %6726 = vset.pattern.permute.xlu0 %v10806_v42  ;;  %v9235_v29 = vand.u32 4294901760, %v9228_v61  ;;  %3399 = vmatpush.msrb.mxu2 %v9228_v61  ;;  %v9287_v24 = vpop.permute.xlu0 %4839 }
 0x687   : > { %5033 = vperm.xlu0 %6726, %v8892_v2  }
 0x688   : > { %v3361_v32 = vsub.f32 %v9228_v61, %v9235_v29 }
 0x689   : > { %6728 = vset.pattern.permute.xlu1 %v10805_v4 }
 0x68a   : > { %5053 = vperm.xlu1 %6728, %v8892_v2   ;;  %v3362_v20 = vand.u32 4294901760, %v3361_v32 }
 0x68c   : > { %3363 = vmatpush.msra.mxu1 %v3362_v20  ;;  %v9265_v19 = vpop.permute.xlu1 %4859 }
 0x68e   : > { %v9303_v42 = vpop.permute.xlu0 %4863 }
 0x68f   : > { %6730 = vset.pattern.permute.xlu0 %v10810_v62  ;;  %10820 = vst [vmem:[#allocation82_spill] sm:$0xff] %v9303_v42 }
 0x690   : > { %5073 = vperm.xlu0 %6730, %v8892_v2   ;;  %v9230_v2 = vand.u32 4294901760, %v3285_v14 }
 0x692   : > { %6729 = vset.pattern.permute.xlu1 %v10810_v62  ;;  %v9238_v13 = vsub.f32 %v3285_v14, %v9230_v2  ;;  %3433 = vmatpush.msrb.mxu3 %v9230_v2  ;;  %v10827_v14 = vmov 35  }
 0x693   : > { %3316 = vmatpush.msra.mxu0 %v9230_v2 }
 0x694   : > { %v9247_v63 = vand.u32 4294901760, %v9238_v13  ;;  %3402 = vmatpush.msrb.mxu2 %v9238_v13  ;;  %3587 = vmatpush.msra.mxu3 %v3350_v7 }
 0x695   : > { %3462 = vmatpush.msrb.mxu0 %v9165_v17  ;;  %v9283_v37 = vpop.permute.xlu1 %4883 }
 0x696   : > { %v3367_v28 = vsub.f32 %v9238_v13, %v9247_v63  ;;  %3546 = vmatpush.msra.mxu2 %v9155_v48  ;;  %3593 = vmatpush.msra.mxu3 %v3356_v30  ;;  %10817 = vst [vmem:[#allocation71_spill] sm:$0xff] %v9283_v37  ;;  %v10821_v30 = vmov 30  }
 0x697   : > { %3466 = vmatpush.msrb.mxu0 %v9191_v21 }
 0x698   : > { %6733 = vset.pattern.permute.xlu0 %v10813_v34  ;;  %v3368_v51 = vand.u32 4294901760, %v3367_v28  ;;  %3548 = vmatpush.msra.mxu2 %v9181_v9 }
 0x699   : > { %5099 = vperm.xlu0 %6733, %v9251_v22   ;;  %3470 = vmatpush.msrb.mxu0 %v9235_v29 }
 0x69a   : > { %3599 = vmatpush.msra.mxu3 %v3362_v20  ;;  %3369 = vmatpush.msra.mxu1 %v3368_v51 }
 0x69b   : > { %3550 = vmatpush.msra.mxu2 %v9220_v57  ;;  %3474 = vmatpush.msrb.mxu0 %v9247_v63 }
 0x69c   : > { %3497 = vmatpush.msrb.mxu1 %v9155_v48  ;;  %3605 = vmatpush.msra.mxu3 %v3368_v51 }
 0x69d   : > { %3552 = vmatpush.msra.mxu2 %v9230_v2 }
 0x69e   : > { %3499 = vmatpush.msrb.mxu1 %v9181_v9  ;;  %v9292_v16 = vpop.permute.xlu1 %4899 }
 0x6a0   : > { %3501 = vmatpush.msrb.mxu1 %v9220_v57 }
 0x6a1   : > { %6736 = vset.pattern.permute.xlu0 %v10815_v38 }
 0x6a2   : > { %5123 = vperm.xlu0 %6736, %v9272_v49   ;;  %3503 = vmatpush.msrb.mxu1 %v9230_v2 }
 0x6a7   : > { %v9308_v62 = vpop.permute.xlu1 %4923 }
 0x6a8   : > { %10822 = vst [vmem:[#allocation80_spill] sm:$0xff] %v9308_v62 }
 0x6aa   : > { %6740 = vset.pattern.permute.xlu0 %v10818_v53 }
 0x6ab   : > { %5163 = vperm.xlu0 %6740, %v9272_v49  }
 0x6b1   : > { %v3290_v55 = vpop.permute.xlu2 %3289 }
 0x6b2   : > { %v3293_v33 = vsel %vm2109_vm2, %v3290_v55, 0 }
 0x6b3   : > { %v9290_v6 = vand.u32 4294901760, %v3293_v33  ;;  %6744 = vset.pattern.permute.xlu0 %v10819_v1 }
 0x6b4   : > { %5203 = vperm.xlu0 %6744, %v9272_v49  }
 0x6b5   : > { %v3318_v7 = vsub.f32 %v3293_v33, %v9290_v6  ;;  %3371 = vmatmul.f32.vlgmr.msra.gmra.mxu1 %v9290_v6 }
 0x6b6   : > { %3663 = vmatpush.msra.mxu1 %v9155_v48 }
 0x6b7   : > { %v3319_v0 = vand.u32 4294901760, %v3318_v7  ;;  %3405 = vmatmul.f32.vlgmr.msrb.gmra.mxu2 %v3318_v7 }
 0x6b8   : > { %3665 = vmatpush.msra.mxu1 %v9181_v9  ;;  %3698 = vmatpush.msrb.mxu2 %v9165_v17  ;;  %v10824_v17 = vmov 31  }
 0x6b9   : > { %v3320_v4 = vsub.f32 %v3318_v7, %v3319_v0  ;;  %3437 = vmatmul.f32.vlgmr.msrb.gmra.mxu3 %v3319_v0 }
 0x6ba   : > { %3667 = vmatpush.msra.mxu1 %v9220_v57  ;;  %3733 = vmatpush.msrb.mxu3 %v9155_v48  ;;  %v9320_v48 = vpop.permute.xlu0 %4903 }
 0x6bb   : > { %v3321_v54 = vand.u32 4294901760, %v3320_v4  ;;  %3702 = vmatpush.msrb.mxu2 %v9191_v21  ;;  %10823 = vst [vmem:[#allocation74_spill] sm:$0xff] %v9320_v48 }
 0x6bc   : > { %6747 = vset.pattern.permute.xlu0 %v10821_v30  ;;  %3669 = vmatpush.msra.mxu1 %v9230_v2 }
 0x6bd   : > { %3322 = vmatmul.f32.vlgmr.msra.gmra.mxu0 %v3321_v54  ;;  %5229 = vperm.xlu0 %6747, %v9251_v22  }
 0x6be   : > { %3629 = vmatpush.msra.mxu0 %v9160_v12  ;;  %3735 = vmatpush.msrb.mxu3 %v9181_v9 }
 0x6bf   : > { %3706 = vmatpush.msrb.mxu2 %v9235_v29  ;;  %v6821_v29 = vld [vmem:[#allocation23] ss:$0 sm:$0xff] }
 0x6c0   : > { %3632 = vmatpush.msra.mxu0 %v9185_v59  ;;  %3737 = vmatpush.msrb.mxu3 %v9220_v57  ;;  %v10825_v59 = vmov 33  }
 0x6c1   : > { %3710 = vmatpush.msrb.mxu2 %v9247_v63 }
 0x6c2   : > { %3635 = vmatpush.msra.mxu0 %v9228_v61  ;;  %3739 = vmatpush.msrb.mxu3 %v9230_v2  ;;  %v10828_v61 = vmov 37   ;;  %v10829_v2 = vmov 25  }
 0x6c4   : > { %3638 = vmatpush.msra.mxu0 %v9238_v13 }
 0x6c5   : > { %6750 = vset.pattern.permute.xlu0 %v10824_v17 }
 0x6c6   : > { %5253 = vperm.xlu0 %6750, %v9272_v49  }
 0x6c7   : > { %v3516_v12 = vpop.permute.xlu1 %3515 }
 0x6c8   : > { %v3521_v9 = vmul.f32 %v3516_v12, %v9112_v3 }
 0x6ca   : > { %3525 = vrot.lane.b32.xlu2 %v3521_v9, %s7454_s22 }
 0x6ce   : > { %6754 = vset.pattern.permute.xlu0 %v10825_v59 }
 0x6cf   : > { %v3518_v21 = vpop.permute.xlu0 %3517  ;;  %5293 = vperm.xlu0 %6754, %v9272_v49  }
 0x6d0   : > { %v3522_v10 = vmul.f32 %v3518_v21, %v9128_v43 }
 0x6d2   : > { %3527 = vrot.lane.b32.xlu1 %v3522_v10, %s7454_s22  ;;  %5079 = vperm.xlu2 %6731, %v9251_v22  }
 0x6d7   : > { %v9331_v57 = vpop.permute.xlu0 %4943  ;;  %6758 = vset.pattern.permute.xlu0 %v10827_v14 }
 0x6d8   : > { %10826 = vst [vmem:[#allocation76_spill] sm:$0xff] %v9331_v57  ;;  %5333 = vperm.xlu0 %6758, %v9272_v49  }
 0x6d9   : > { %v3130_v33 = vpop.f32.mrf.mxu0 }
 0x6da   : > { %5069 = vperm.xlu1 %6729, %v9251_v22   ;;  %6734 = vset.pattern.permute.xlu2 %v10813_v34 }
 0x6db   : > { %5103 = vperm.xlu2 %6734, %v9272_v49   ;;  %v3164_v9 = vpop.f32.mrf.mxu1 }
 0x6dd   : > { %v3092_v43 = vpop.f32.mrf.mxu3 }
 0x6e0   : > { %v9338_v3 = vpop.permute.xlu0 %4969  ;;  %6761 = vset.pattern.permute.xlu0 %v10828_v61 }
 0x6e2   : > { %6732 = vset.pattern.permute.xlu1 %v10808_v39  ;;  %v10830_v39 = vmov 27  }
 0x6e3   : > { %5083 = vperm.xlu1 %6732, %v9272_v49   ;;  %6737 = vset.pattern.permute.xlu2 %v10829_v2 }
 0x6e4   : > { %5139 = vperm.xlu2 %6737, %v9251_v22  }
 0x6e5   : > { %v3033_v13 = vpop.f32.mrf.mxu2  ;;  %v3096_v51 = vpop.f32.mrf.mxu3 }
 0x6e6   : > { %v3034_v32 = vadd.f32 %v6821_v29, %v3033_v13 }
 0x6e8   : > { %v3292_v63 = vpop.permute.xlu0 %3291  ;;  %v3093_v28 = vadd.f32 %v3092_v43, %v3034_v32  ;;  %v10831_v32 = vmov 29  }
 0x6e9   : > { %v3295_v34 = vsel %vm2109_vm2, %v3292_v63, 0 }
 0x6ea   : > { %v3325_v20 = vand.u32 4294901760, %v3295_v34  ;;  %v3131_v12 = vadd.f32 %v3130_v33, %v3093_v28  ;;  %v9359_v33 = vpop.permute.xlu2 %4949 }
 0x6eb   : > { %6735 = vset.pattern.permute.xlu1 %v10815_v38 }
 0x6ec   : > { %v3326_v55 = vsub.f32 %v3295_v34, %v3325_v20  ;;  %5119 = vperm.xlu1 %6735, %v9251_v22   ;;  %6741 = vset.pattern.permute.xlu2 %v10830_v39  ;;  %v3165_v10 = vadd.f32 %v3164_v9, %v3131_v12 }
 0x6ed   : > { %3375 = vmatmul.f32.gmra.mxu1 %v3325_v20  ;;  %5179 = vperm.xlu2 %6741, %v9251_v22   ;;  %v3041_v7 = vpop.f32.mrf.mxu2  ;;  %v3240_v13 = vpop.f32.mrf.mxu3 }
 0x6ee   : > { %3410 = vmatmul.f32.gmra.mxu2 %v3326_v55  ;;  %v3327_v0 = vand.u32 4294901760, %v3326_v55  ;;  %v3042_v4 = vadd.f32 %v6821_v29, %v3041_v7  ;;  %v3135_v29 = vpop.f32.mrf.mxu0 }
 0x6f0   : > { %3443 = vmatmul.f32.gmra.mxu3 %v3327_v0  ;;  %v3328_v54 = vsub.f32 %v3326_v55, %v3327_v0  ;;  %v3097_v21 = vadd.f32 %v3096_v51, %v3042_v4 }
 0x6f2   : > { %v3329_v38 = vand.u32 4294901760, %v3328_v54  ;;  %v3136_v28 = vadd.f32 %v3135_v29, %v3097_v21 }
 0x6f4   : > { %6738 = vset.pattern.permute.xlu1 %v10829_v2  ;;  %3330 = vmatmul.f32.gmra.mxu0 %v3329_v38  ;;  %v3170_v2 = vpop.f32.mrf.mxu1  ;;  %v10833_v38 = vmov 32  }
 0x6f5   : > { %3505 = vmatmul.f32.vlgmr.msrb.gmra.mxu1 %v9290_v6  ;;  %5143 = vperm.xlu1 %6738, %v9272_v49   ;;  %v3209_v43 = vpop.f32.mrf.mxu2  ;;  %v3171_v55 = vadd.f32 %v3170_v2, %v3136_v28  ;;  %v3244_v4 = vpop.f32.mrf.mxu3  ;;  %v10835_v28 = vmov 34  }
 0x6f6   : > { %6745 = vset.pattern.permute.xlu2 %v10831_v32  ;;  %v3210_v63 = vadd.f32 %v3209_v43, %v3165_v10 }
 0x6f7   : > { %5209 = vperm.xlu2 %6745, %v9251_v22  }
 0x6f8   : > { %v9355_v34 = vadd.f32 %v3240_v13, %v3210_v63 }
 0x6fa   : > { %v6266_v51 = vmul.f32 -1.442695, %v9355_v34 }
 0x6fc   : > { %6851 = vpow2.f32 %v6266_v51  ;;  %3476 = vmatmul.f32.vlgmr.msrb.gmra.mxu0 %v9290_v6 }
 0x6fd   : > { %3509 = vmatmul.f32.gmra.mxu1 %v3325_v20  ;;  %6739 = vset.pattern.permute.xlu1 %v10818_v53  ;;  %v3213_v7 = vpop.f32.mrf.mxu2  ;;  %v9369_v53 = vpop.permute.xlu2 %4973 }
 0x6fe   : > { %v3214_v0 = vadd.f32 %v3213_v7, %v3171_v55  ;;  %5159 = vperm.xlu1 %6739, %v9251_v22   ;;  %10832 = vst [vmem:[#allocation77_spill] sm:$0xff] %v9369_v53 }
 0x6ff   : > { %6748 = vset.pattern.permute.xlu2 %v10821_v30  ;;  %v9373_v30 = vpop.permute.xlu1 %4939 }
 0x700   : > { %5233 = vperm.xlu2 %6748, %v9272_v49   ;;  %v9365_v54 = vadd.f32 %v3244_v4, %v3214_v0  ;;  %10834 = vst [vmem:[#allocation85_spill] sm:$0xff] %v9373_v30  ;;  %v10837_v4 = vmov 36  }
 0x702   : > { %v6852_v12 = vpop.eup %6851  ;;  %v6267_v6 = vmul.f32 -1.442695, %v9365_v54 }
 0x703   : > { %v3253_v9 = vadd.f32 1.0, %v6852_v12 }
 0x704   : > { %3480 = vmatmul.f32.gmra.mxu0 %v3325_v20 }
 0x705   : > { %6853 = vrcp.f32 %v3253_v9  ;;  %v3266_v13 = vand.u32 2147483648, %v3253_v9  ;;  %v3264_v29 = vand.u32 2147483647, %v3253_v9  ;;  %vm3260_vm15 = vweird.f32 %v3253_v9 }
 0x706   : > { %6742 = vset.pattern.permute.xlu1 %v10830_v39  ;;  %6855 = vpow2.f32 %v6267_v6  ;;  %v9378_v39 = vpop.permute.xlu2 %5009 }
 0x707   : > { %5183 = vperm.xlu1 %6742, %v9272_v49   ;;  %v9382_v55 = vpop.permute.xlu1 %4953  ;;  %v3267_v7 = vor.u32 1.1754944e-38, %v3266_v13  ;;  %vm3265_vm4 = vcmp.eq.f32.partialorder %v3264_v29, 8.507059e+37 }
 0x708   : > { %6751 = vset.pattern.permute.xlu2 %v10833_v38  ;;  %10836 = vst [vmem:[#allocation93_spill] sm:$0xff] %v9382_v55 }
 0x709   : > { %5269 = vperm.xlu2 %6751, %v9251_v22  }
 0x70b   : > { %v6854_v21 = vpop.eup %6853 }
 0x70c   : > { %v3256_v10 = vmul.f32 %v6854_v21, %v3253_v9  ;;  %v6856_v20 = vpop.eup %6855  ;;  %vm3261_vm14 = vweird.f32 %v6854_v21  ;;  %v9393_v9 = vpop.permute.xlu0 %4993 }
 0x70d   : > { %v3254_v51 = vadd.f32 1.0, %v6856_v20  ;;  %vm3262_vm0 = vmor %vm3260_vm15, %vm3261_vm14  ;;  %10838 = vst [vmem:[#allocation79_spill] sm:$0xff] %v9393_v9 }
 0x70e   : > { %v3257_v43 = vsub.f32 1.0, %v3256_v10  ;;  %v9391_v12 = vpop.permute.xlu2 %5049 }
 0x70f   : > { %6743 = vset.pattern.permute.xlu1 %v10819_v1  ;;  %6857 = vrcp.f32 %v3254_v51  ;;  %vm3275_vm6 = vweird.f32 %v3254_v51 }
 0x710   : > { %5199 = vperm.xlu1 %6743, %v9251_v22   ;;  %v3258_v63 = vmul.f32 %v6854_v21, %v3257_v43 }
 0x711   : > { %6755 = vset.pattern.permute.xlu2 %v10835_v28 }
 0x712   : > { %5309 = vperm.xlu2 %6755, %v9251_v22   ;;  %v3259_v2 = vadd.f32 %v6854_v21, %v3258_v63 }
 0x714   : > { %v3263_v1 = vsel %vm3262_vm0, %v6854_v21, %v3259_v2  ;;  %v9396_v21 = vpop.permute.xlu1 %4989  ;;  %v9402_v20 = vpop.permute.xlu0 %5033 }
 0x715   : > { %v9384_v0 = vsel %vm3265_vm4, %v3267_v7, %v3263_v1  ;;  %v6858_v6 = vpop.eup %6857  ;;  %10839 = vst [vmem:[#allocation87_spill] sm:$0xff] %v9402_v20  ;;  %v3281_v1 = vand.u32 2147483648, %v3254_v51 }
 0x716   : > { %3805 = vrot.lane.b32.xlu0 %v9384_v0, %s7397_s0  ;;  %v3271_v10 = vmul.f32 %v6858_v6, %v3254_v51  ;;  %vm3276_vm5 = vweird.f32 %v6858_v6 }
 0x717   : > { %vm3277_vm7 = vmor %vm3275_vm6, %vm3276_vm5  ;;  %v3282_v56 = vor.u32 1.1754944e-38, %v3281_v1  ;;  %vm4617_vm6 = vcmask 195584  }
 0x718   : > { %6746 = vset.pattern.permute.xlu1 %v10831_v32  ;;  %v3272_v32 = vsub.f32 1.0, %v3271_v10 }
 0x719   : > { %5213 = vperm.xlu1 %6746, %v9272_v49  }
 0x71a   : > { %6759 = vset.pattern.permute.xlu2 %v10837_v4  ;;  %v3273_v2 = vmul.f32 %v6858_v6, %v3272_v32  ;;  %v3279_v32 = vand.u32 2147483647, %v3254_v51 }
 0x71b   : > { %5339 = vperm.xlu2 %6759, %v9251_v22  }
 0x71c   : > { %v9406_v29 = vpop.permute.xlu1 %5013  ;;  %vm3280_vm8 = vcmp.eq.f32.partialorder %v3279_v32, 8.507059e+37 }
 0x71d   : > { %10840 = vst [vmem:[#allocation83_spill] sm:$0xff] %v9406_v29 }
 0x721   : > { %6749 = vset.pattern.permute.xlu1 %v10824_v17 }
 0x722   : > { %5249 = vperm.xlu1 %6749, %v9251_v22  }
 0x723   : > { %3771 = vrot.lane.b32.xlu2 %v9355_v34, %s7391_s4  ;;  %v3274_v34 = vadd.f32 %v6858_v6, %v3273_v2 }
 0x724   : > { %v3526_v43 = vpop.permute.xlu2 %3525  ;;  %6762 = vset.pattern.permute.xlu2 %v10828_v61  ;;  %v9416_v47 = vpop.permute.xlu1 %5029 }
 0x725   : > { %v3529_v13 = vsel %vm2109_vm2, %v3526_v43, 0 }
 0x726   : > { %v3553_v63 = vand.u32 4294901760, %v3529_v13 }
 0x728   : > { %v3554_v7 = vsub.f32 %v3529_v13, %v3553_v63  ;;  %3607 = vmatmul.f32.vlgmr.msra.gmra.mxu3 %v3553_v63  ;;  %v9414_v13 = vpop.permute.xlu0 %5073 }
 0x729   : > { %10841 = vst [vmem:[#allocation88_spill] sm:$0xff] %v9414_v13 }
 0x72a   : > { %v3555_v17 = vand.u32 4294901760, %v3554_v7  ;;  %6752 = vset.pattern.permute.xlu1 %v10833_v38  ;;  %3641 = vmatmul.f32.vlgmr.msra.gmra.mxu0 %v3554_v7  ;;  %v3278_v38 = vsel %vm3277_vm7, %v6858_v6, %v3274_v34  ;;  %vm4620_vm7 = vcmask 326656  }
 0x72b   : > { %3799 = vrot.lane.b32.xlu2 %v9384_v0, %s7447_s3  ;;  %5273 = vperm.xlu1 %6752, %v9272_v49   ;;  %v9418_v29 = vsel %vm3280_vm8, %v3282_v56, %v3278_v38  ;;  %vm5924_vm8 = vcmask 457728  }
 0x72c   : > { %v3556_v61 = vsub.f32 %v3554_v7, %v3555_v17  ;;  %3673 = vmatmul.f32.vlgmr.msra.gmra.mxu1 %v3555_v17  ;;  %v9412_v10 = vpop.permute.xlu2 %5079  ;;  %v9428_v7 = vpop.permute.xlu1 %5053  ;;  %v10845_v17 = vmov 39  }
 0x72d   : > { %10843 = vst [vmem:[#allocation84_spill] sm:$0xff] %v9428_v7 }
 0x72e   : > { %v3557_v43 = vand.u32 4294901760, %v3556_v61 }
 0x730   : > { %3558 = vmatmul.f32.vlgmr.msra.gmra.mxu2 %v3557_v43  ;;  %v9426_v2 = vpop.permute.xlu0 %5099 }
 0x733   : > { %3807 = vrot.lane.b32.xlu2 %v9418_v29, %s7397_s0  ;;  %6753 = vset.pattern.permute.xlu1 %v10825_v59 }
 0x734   : > { %5289 = vperm.xlu1 %6753, %v9251_v22  }
 0x735   : > { %v9424_v51 = vpop.permute.xlu2 %5103 }
 0x736   : > { %10842 = vst [vmem:[#allocation95_spill] sm:$0xff] %v9424_v51 }
 0x738   : > { %v9435_v6 = vpop.permute.xlu0 %5123 }
 0x739   : > { %10844 = vst [vmem:[#allocation90_spill] sm:$0xff] %v9435_v6 }
 0x73a   : > { %v3406_v31 = vpop.f32.mrf.mxu2 }
 0x73b   : > { %5363 = vperm.xlu2 %6762, %v9272_v49  }
 0x73c   : > { %6756 = vset.pattern.permute.xlu1 %v10835_v28  ;;  %v3438_v40 = vpop.f32.mrf.mxu3 }
 0x73d   : > { %5313 = vperm.xlu1 %6756, %v9272_v49  }
 0x73e   : > { %v9433_v56 = vpop.permute.xlu2 %5139 }
 0x740   : > { %v9445_v13 = vpop.permute.xlu0 %5163 }
 0x741   : > { %10847 = vst [vmem:[#allocation78_spill] sm:$0xff] %v9445_v13 }
 0x743   : > { %6765 = vset.pattern.permute.xlu2 %v10845_v17 }
 0x744   : > { %v3528_v59 = vpop.permute.xlu1 %3527 }
 0x745   : > { %v3531_v34 = vsel %vm2109_vm2, %v3528_v59, 0  ;;  %6757 = vset.pattern.permute.xlu1 %v10827_v14 }
 0x746   : > { %v3561_v61 = vand.u32 4294901760, %v3531_v34  ;;  %5329 = vperm.xlu1 %6757, %v9251_v22  }
 0x747   : > { %v9441_v1 = vpop.permute.xlu2 %5179 }
 0x748   : > { %v3562_v32 = vsub.f32 %v3531_v34, %v3561_v61  ;;  %3611 = vmatmul.f32.gmra.mxu3 %v3561_v61  ;;  %v9453_v34 = vpop.permute.xlu0 %5203 }
 0x749   : > { %10850 = vst [vmem:[#allocation86_spill] sm:$0xff] %v9453_v34  ;;  %v3372_v34 = vpop.f32.mrf.mxu1 }
 0x74a   : > { %3646 = vmatmul.f32.gmra.mxu0 %v3562_v32  ;;  %v3563_v28 = vand.u32 4294901760, %v3562_v32 }
 0x74c   : > { %3679 = vmatmul.f32.gmra.mxu1 %v3563_v28  ;;  %v9443_v43 = vpop.permute.xlu1 %5069  ;;  %v3564_v38 = vsub.f32 %v3562_v32, %v3563_v28  ;;  %v10851_v32 = vmov 38  }
 0x74d   : > { %10846 = vst [vmem:[#allocation94_spill] sm:$0xff] %v9443_v43 }
 0x74e   : > { %6760 = vset.pattern.permute.xlu1 %v10837_v4  ;;  %v3565_v59 = vand.u32 4294901760, %v3564_v38 }
 0x74f   : > { %5343 = vperm.xlu1 %6760, %v9272_v49  }
 0x750   : > { %3566 = vmatmul.f32.gmra.mxu2 %v3565_v59  ;;  %3741 = vmatmul.f32.vlgmr.msrb.gmra.mxu3 %v3553_v63  ;;  %v9464_v38 = vpop.permute.xlu0 %5229 }
 0x751   : > { %v9449_v14 = vpop.permute.xlu2 %5209 }
 0x752   : > { %10848 = vst [vmem:[#allocation96_spill] sm:$0xff] %v9449_v14 }
 0x755   : > { %v9451_v51 = vpop.permute.xlu1 %5083 }
 0x756   : > { %10849 = vst [vmem:[#allocation81_spill] sm:$0xff] %v9451_v51 }
 0x757   : > { %3773 = vrot.lane.b32.xlu1 %v9365_v54, %s7391_s4  ;;  %v3323_v54 = vpop.f32.mrf.mxu0 }
 0x758   : > { %3712 = vmatmul.f32.vlgmr.msrb.gmra.mxu2 %v3553_v63  ;;  %3745 = vmatmul.f32.gmra.mxu3 %v3561_v61  ;;  %v9470_v63 = vpop.permute.xlu0 %5253 }
 0x759   : > { %6763 = vset.pattern.permute.xlu1 %v10851_v32  ;;  %10854 = vst [vmem:[#allocation89_spill] sm:$0xff] %v9470_v63 }
 0x75a   : > { %v9458_v28 = vpop.permute.xlu2 %5233 }
 0x75b   : > { %10852 = vst [vmem:[#allocation92_spill] sm:$0xff] %v9458_v28  ;;  %v3373_v28 = vadd.f32 %v3372_v34, %v3323_v54 }
 0x75d   : > { %v3407_v45 = vadd.f32 %v3406_v31, %v3373_v28 }
 0x75e   : > { %v9460_v4 = vpop.permute.xlu1 %5119 }
 0x75f   : > { %3801 = vrot.lane.b32.xlu1 %v9418_v29, %s7447_s3  ;;  %v3439_v13 = vadd.f32 %v3438_v40, %v3407_v45 }
 0x760   : > { %3716 = vmatmul.f32.gmra.mxu2 %v3561_v61  ;;  %v9476_v61 = vpop.permute.xlu0 %5293 }
 0x761   : > { %10857 = vst [vmem:[#allocation45_spill] sm:$0xff] %v9476_v61 }
 0x763   : > { %v9466_v59 = vpop.permute.xlu2 %5269 }
 0x767   : > { %v9468_v7 = vpop.permute.xlu1 %5143 }
 0x768   : > { %10853 = vst [vmem:[#allocation91_spill] sm:$0xff] %v9468_v7  ;;  %v9488_v31 = vpop.permute.xlu0 %5333 }
 0x769   : > { %10860 = vst [vmem:[#allocation49_spill] sm:$0xff] %v9488_v31 }
 0x76a   : > { %v3376_v53 = vpop.f32.mrf.mxu1 }
 0x76c   : > { %v9472_v57 = vpop.permute.xlu2 %5309 }
 0x76d   : > { %10855 = vst [vmem:[#allocation48_spill] sm:$0xff] %v9472_v57 }
 0x770   : > { %v9474_v62 = vpop.permute.xlu1 %5159 }
 0x771   : > { %10856 = vst [vmem:[#allocation50_spill] sm:$0xff] %v9474_v62  ;;  %v3331_v37 = vpop.f32.mrf.mxu0  ;;  %v3411_v51 = vpop.f32.mrf.mxu2 }
 0x772   : > { %v3377_v6 = vadd.f32 %v3376_v53, %v3331_v37  ;;  %v3506_v7 = vpop.f32.mrf.mxu1 }
 0x773   : > { %v3444_v28 = vpop.f32.mrf.mxu3 }
 0x774   : > { %v3412_v20 = vadd.f32 %v3411_v51, %v3377_v6 }
 0x775   : > { %v9478_v15 = vpop.permute.xlu2 %5339 }
 0x776   : > { %10858 = vst [vmem:[#allocation47_spill] sm:$0xff] %v9478_v15  ;;  %v3445_v61 = vadd.f32 %v3444_v28, %v3412_v20 }
 0x779   : > { %v3477_v30 = vpop.f32.mrf.mxu0  ;;  %v9480_v43 = vpop.permute.xlu1 %5183 }
 0x77a   : > { %10859 = vst [vmem:[#allocation46_spill] sm:$0xff] %v9480_v43  ;;  %v3478_v63 = vadd.f32 %v3477_v30, %v3439_v13  ;;  %v3510_v53 = vpop.f32.mrf.mxu1 }
 0x77c   : > { %v9482_v34 = vadd.f32 %v3506_v7, %v3478_v63 }
 0x77d   : > { %v9484_v54 = vpop.permute.xlu2 %3771 }
 0x77e   : > { %3761 = vrot.lane.b32.xlu1 %v9482_v34, %s7391_s4 }
 0x781   : > { %v3481_v40 = vpop.f32.mrf.mxu0 }
 0x782   : > { %v3482_v45 = vadd.f32 %v3481_v40, %v3445_v61  ;;  %v9490_v37 = vpop.permute.xlu1 %5199 }
 0x783   : > { %10861 = vst [vmem:[#allocation52_spill] sm:$0xff] %v9490_v37 }
 0x784   : > { %v9492_v43 = vadd.f32 %v3510_v53, %v3482_v45 }
 0x785   : > { %v3800_v30 = vpop.permute.xlu2 %3799 }
 0x786   : > { %v3811_v13 = vsel %vm2109_vm2, %v9384_v0, %v3800_v30  ;;  %3763 = vrot.lane.b32.xlu0 %v9492_v43, %s7391_s4 }
 0x787   : > { %v3813_v51 = vsel %vm2112_vm10, %v3811_v13, %v3800_v30 }
 0x788   : > { %v3806_v7 = vpop.permute.xlu0 %3805 }
 0x789   : > { %v3815_v6 = vsel %vm2115_vm11, %v3813_v51, %v3806_v7 }
 0x78a   : > { %v3817_v20 = vsel %vm2118_vm12, %v3815_v6, %v3806_v7 }
 0x78b   : > { %3861 = vrot.lane.b32.xlu1 %v3817_v20, %s7461_s1  ;;  %v9502_v63 = vpop.permute.xlu1 %5213 }
 0x78c   : > { %10862 = vst [vmem:[#allocation55_spill] sm:$0xff] %v9502_v63 }
 0x78d   : > { %v3808_v31 = vpop.permute.xlu2 %3807 }
 0x793   : > { %5379 = vperm.xlu1 %6763, %v9251_v22  }
 0x794   : > { %v9505_v61 = vpop.permute.xlu1 %5249 }
 0x795   : > { %10863 = vst [vmem:[#allocation54_spill] sm:$0xff] %v9505_v61 }
 0x79b   : > { %6766 = vset.pattern.permute.xlu1 %v10845_v17 }
 0x79d   : > { %v9508_v0 = vpop.permute.xlu1 %5273 }
 0x79e   : > { %10864 = vst [vmem:[#allocation56_spill] sm:$0xff] %v9508_v0 }
 0x7a6   : > { %v9510_v28 = vpop.permute.xlu1 %5289 }
 0x7a7   : > { %10865 = vst [vmem:[#allocation51_spill] sm:$0xff] %v9510_v28  ;;  %v3642_v63 = vpop.f32.mrf.mxu0 }
 0x7a9   : > { %v3674_v11 = vpop.f32.mrf.mxu1 }
 0x7ab   : > { %v3608_v30 = vpop.f32.mrf.mxu3 }
 0x7af   : > { %v9512_v40 = vpop.permute.xlu1 %5313 }
 0x7b0   : > { %10866 = vst [vmem:[#allocation66_spill] sm:$0xff] %v9512_v40 }
 0x7b3   : > { %v3559_v51 = vpop.f32.mrf.mxu2 }
 0x7b4   : > { %v3609_v20 = vadd.f32 %v3608_v30, %v3559_v51 }
 0x7b8   : > { %v9514_v45 = vpop.permute.xlu1 %5329 }
 0x7b9   : > { %10867 = vst [vmem:[#allocation53_spill] sm:$0xff] %v9514_v45 }
 0x7c1   : > { %v9516_v53 = vpop.permute.xlu1 %5343 }
 0x7c2   : > { %10868 = vst [vmem:[#allocation58_spill] sm:$0xff] %v9516_v53  ;;  %v3643_v53 = vadd.f32 %v3642_v63, %v3609_v20  ;;  %v10875_v63 = vmov 48  }
 0x7c4   : > { %v3675_v55 = vadd.f32 %v3674_v11, %v3643_v53  ;;  %v9557_v53 = vpop.permute.xlu2 %5363 }
 0x7c5   : > { %10878 = vst [vmem:[#allocation57_spill] sm:$0xff] %v9557_v53 }
 0x7c7   : > { %v3647_v48 = vpop.f32.mrf.mxu0 }
 0x7c9   : > { %v9518_v13 = vpop.permute.xlu1 %3773 }
 0x7cb   : > { %v3612_v7 = vpop.f32.mrf.mxu3 }
 0x7d1   : > { %v3802_v6 = vpop.permute.xlu1 %3801 }
 0x7d2   : > { %v3812_v17 = vsel %vm2109_vm2, %v9418_v29, %v3802_v6 }
 0x7d3   : > { %v3814_v0 = vsel %vm2112_vm10, %v3812_v17, %v3802_v6  ;;  %v3567_v37 = vpop.f32.mrf.mxu2  ;;  %v3742_v8 = vpop.f32.mrf.mxu3 }
 0x7d4   : > { %v3816_v40 = vsel %vm2115_vm11, %v3814_v0, %v3808_v31  ;;  %v3613_v9 = vadd.f32 %v3612_v7, %v3567_v37  ;;  %v3680_v6 = vpop.f32.mrf.mxu1  ;;  %v10879_v7 = vmov 47  }
 0x7d5   : > { %v3818_v45 = vsel %vm2118_vm12, %v3816_v40, %v3808_v31  ;;  %v10876_v40 = vmov 50  }
 0x7d6   : > { %3863 = vrot.lane.b32.xlu0 %v3818_v45, %s7461_s1  ;;  %v3648_v29 = vadd.f32 %v3647_v48, %v3613_v9  ;;  %v10869_v48 = vmov 41   ;;  %v10873_v9 = vmov 46   ;;  %v10877_v45 = vmov 45  }
 0x7d8   : > { %v3681_v17 = vadd.f32 %v3680_v6, %v3648_v29  ;;  %v10880_v29 = vmov 49  }
 0x7db   : > { %v3713_v30 = vpop.f32.mrf.mxu2  ;;  %v3746_v15 = vpop.f32.mrf.mxu3 }
 0x7dc   : > { %v3714_v51 = vadd.f32 %v3713_v30, %v3675_v55 }
 0x7de   : > { %v3743_v35 = vadd.f32 %v3742_v8, %v3714_v51 }
 0x7e0   : > { %3751 = vrot.lane.b32.xlu0 %v3743_v35, %s7391_s4 }
 0x7e3   : > { %v3717_v0 = vpop.f32.mrf.mxu2 }
 0x7e4   : > { %v3718_v42 = vadd.f32 %v3717_v0, %v3681_v17 }
 0x7e6   : > { %v3747_v31 = vadd.f32 %v3746_v15, %v3718_v42  ;;  %v10870_v15 = vmov 43   ;;  %v10871_v42 = vmov 40  }
 0x7e8   : > { %3753 = vrot.lane.b32.xlu2 %v3747_v31, %s7391_s4  ;;  %5359 = vperm.xlu0 %6761, %v9251_v22  }
 0x7f0   : > { %v3762_v37 = vpop.permute.xlu1 %3761  ;;  %5399 = vperm.xlu2 %6765, %v9251_v22   ;;  %6764 = vset.pattern.permute.xlu0 %v10851_v32  ;;  %v10874_v32 = vmov 42  }
 0x7f1   : > { %v3767_v11 = vadd.f32 %v3762_v37, %v3743_v35  ;;  %v10872_v35 = vmov 44   ;;  %v10885_v37 = vmov 54  }
 0x7f3   : > { %3787 = vrot.lane.b32.xlu1 %v3767_v11, %s7393_s10 }
 0x7f8   : > { %v3764_v8 = vpop.permute.xlu0 %3763  ;;  %6769 = vset.pattern.permute.xlu2 %v10869_v48 }
 0x7f9   : > { %v3768_v55 = vadd.f32 %v3764_v8, %v3747_v31  ;;  %5439 = vperm.xlu2 %6769, %v9251_v22   ;;  %v10883_v31 = vmov 53  }
 0x7fb   : > { %3789 = vrot.lane.b32.xlu0 %v3768_v55, %s7393_s10  ;;  %5403 = vperm.xlu1 %6766, %v9272_v49  }
 0x7fd   : > { %v9588_v11 = vpop.permute.xlu1 %3861 }
 0x801   : > { %6773 = vset.pattern.permute.xlu2 %v10870_v15 }
 0x802   : > { %5469 = vperm.xlu2 %6773, %v9251_v22  }
 0x803   : > { %6767 = vset.pattern.permute.xlu1 %v10871_v42 }
 0x804   : > { %5419 = vperm.xlu1 %6767, %v9251_v22  }
 0x805   : > { %v9596_v55 = vpop.permute.xlu1 %5379 }
 0x806   : > { %10888 = vst [vmem:[#allocation99_spill] sm:$0xff] %v9596_v55 }
 0x80a   : > { %6776 = vset.pattern.permute.xlu2 %v10872_v35 }
 0x80b   : > { %5493 = vperm.xlu2 %6776, %v9272_v49  }
 0x80c   : > { %6770 = vset.pattern.permute.xlu1 %v10869_v48  ;;  %v10887_v48 = vmov 55  }
 0x80d   : > { %5443 = vperm.xlu1 %6770, %v9272_v49  }
 0x813   : > { %6779 = vset.pattern.permute.xlu2 %v10873_v9 }
 0x814   : > { %5529 = vperm.xlu2 %6779, %v9251_v22  }
 0x815   : > { %6771 = vset.pattern.permute.xlu1 %v10874_v32 }
 0x816   : > { %5459 = vperm.xlu1 %6771, %v9251_v22  }
 0x81c   : > { %6783 = vset.pattern.permute.xlu2 %v10875_v63 }
 0x81d   : > { %5569 = vperm.xlu2 %6783, %v9251_v22  }
 0x81e   : > { %6774 = vset.pattern.permute.xlu1 %v10870_v15 }
 0x81f   : > { %5473 = vperm.xlu1 %6774, %v9272_v49  }
 0x825   : > { %6787 = vset.pattern.permute.xlu2 %v10876_v40 }
 0x827   : > { %6777 = vset.pattern.permute.xlu1 %v10877_v45 }
 0x828   : > { %5509 = vperm.xlu1 %6777, %v9251_v22  }
 0x830   : > { %6780 = vset.pattern.permute.xlu1 %v10873_v9 }
 0x831   : > { %5533 = vperm.xlu1 %6780, %v9272_v49  }
 0x839   : > { %6781 = vset.pattern.permute.xlu1 %v10879_v7 }
 0x83a   : > { %5549 = vperm.xlu1 %6781, %v9251_v22  }
 0x842   : > { %v3754_v20 = vpop.permute.xlu2 %3753  ;;  %6784 = vset.pattern.permute.xlu1 %v10875_v63 }
 0x843   : > { %v3758_v30 = vsub.f32 %v9492_v43, %v3754_v20  ;;  %5573 = vperm.xlu1 %6784, %v9272_v49   ;;  %v10881_v43 = vmov 52  }
 0x845   : > { %3781 = vrot.lane.b32.xlu2 %v3758_v30, %s7454_s22  ;;  %v10897_v30 = vmov 61  }
 0x848   : > { %v9565_v51 = vpop.permute.xlu0 %3863 }
 0x84a   : > { %v9576_v0 = vpop.permute.xlu2 %5399 }
 0x84b   : > { %6785 = vset.pattern.permute.xlu1 %v10880_v29  ;;  %10882 = vst [vmem:[#allocation70_spill] sm:$0xff] %v9576_v0 }
 0x84c   : > { %5589 = vperm.xlu1 %6785, %v9251_v22  }
 0x852   : > { %v3752_v6 = vpop.permute.xlu0 %3751 }
 0x853   : > { %v3757_v17 = vsub.f32 %v9482_v34, %v3752_v6  ;;  %v9582_v34 = vpop.permute.xlu2 %5439 }
 0x854   : > { %6788 = vset.pattern.permute.xlu1 %v10876_v40  ;;  %10884 = vst [vmem:[#allocation97_spill] sm:$0xff] %v9582_v34  ;;  %v10894_v40 = vmov 60  }
 0x855   : > { %3779 = vrot.lane.b32.xlu0 %v3757_v17, %s7454_s22  ;;  %5603 = vperm.xlu1 %6788, %v9272_v49  }
 0x85a   : > { %v9619_v20 = vpop.permute.xlu0 %5359 }
 0x85c   : > { %v9590_v8 = vpop.permute.xlu2 %5469 }
 0x85d   : > { %6791 = vset.pattern.permute.xlu1 %v10881_v43  ;;  %5383 = vperm.xlu0 %6764, %v9272_v49   ;;  %10886 = vst [vmem:[#allocation98_spill] sm:$0xff] %v9590_v8 }
 0x85e   : > { %5639 = vperm.xlu1 %6791, %v9251_v22  }
 0x865   : > { %6768 = vset.pattern.permute.xlu0 %v10871_v42  ;;  %v9599_v15 = vpop.permute.xlu2 %5493  ;;  %v10890_v42 = vmov 57   ;;  %v9604_v9 = vpop.permute.xlu1 %3787 }
 0x866   : > { %6794 = vset.pattern.permute.xlu1 %v10883_v31  ;;  %5423 = vperm.xlu0 %6768, %v9272_v49   ;;  %10889 = vst [vmem:[#allocation100_spill] sm:$0xff] %v9599_v15 }
 0x867   : > { %5663 = vperm.xlu1 %6794, %v9272_v49  }
 0x86d   : > { %v9612_v63 = vpop.permute.xlu1 %5403  ;;  %v3790_v15 = vpop.permute.xlu0 %3789 }
 0x86e   : > { %6772 = vset.pattern.permute.xlu0 %v10874_v32  ;;  %v9609_v32 = vpop.permute.xlu2 %5529  ;;  %10893 = vst [vmem:[#allocation102_spill] sm:$0xff] %v9612_v63 }
 0x86f   : > { %6795 = vset.pattern.permute.xlu1 %v10885_v37  ;;  %5463 = vperm.xlu0 %6772, %v9272_v49   ;;  %10892 = vst [vmem:[#allocation101_spill] sm:$0xff] %v9609_v32 }
 0x870   : > { %5679 = vperm.xlu1 %6795, %v9251_v22  }
 0x877   : > { %6775 = vset.pattern.permute.xlu0 %v10872_v35  ;;  %v10891_v35 = vmov 59  }
 0x878   : > { %6798 = vset.pattern.permute.xlu1 %v10887_v48  ;;  %5489 = vperm.xlu0 %6775, %v9251_v22  }
 0x879   : > { %5703 = vperm.xlu1 %6798, %v9272_v49  }
 0x880   : > { %6778 = vset.pattern.permute.xlu0 %v10877_v45  ;;  %v9617_v45 = vpop.permute.xlu2 %5569 }
 0x881   : > { %6800 = vset.pattern.permute.xlu1 %v10890_v42  ;;  %5513 = vperm.xlu0 %6778, %v9272_v49   ;;  %10895 = vst [vmem:[#allocation103_spill] sm:$0xff] %v9617_v45 }
 0x882   : > { %5733 = vperm.xlu1 %6800, %v9272_v49  }
 0x889   : > { %6782 = vset.pattern.permute.xlu0 %v10879_v7  ;;  %v9621_v7 = vpop.permute.xlu1 %5419 }
 0x88a   : > { %6803 = vset.pattern.permute.xlu1 %v10891_v35  ;;  %5553 = vperm.xlu0 %6782, %v9272_v49   ;;  %10896 = vst [vmem:[#allocation104_spill] sm:$0xff] %v9621_v7 }
 0x88b   : > { %5769 = vperm.xlu1 %6803, %v9251_v22  }
 0x891   : > { %v9624_v17 = vpop.permute.xlu1 %5443 }
 0x892   : > { %6786 = vset.pattern.permute.xlu0 %v10880_v29  ;;  %10898 = vst [vmem:[#allocation105_spill] sm:$0xff] %v9624_v17 }
 0x893   : > { %6805 = vset.pattern.permute.xlu1 %v10894_v40 }
 0x894   : > { %5789 = vperm.xlu1 %6805, %v9251_v22  }
 0x899   : > { %v9629_v22 = vpop.permute.xlu1 %5459 }
 0x89a   : > { %10899 = vst [vmem:[#allocation106_spill] sm:$0xff] %v9629_v22 }
 0x89c   : > { %6808 = vset.pattern.permute.xlu1 %v10897_v30 }
 0x89f   : > { %v3782_v6 = vpop.permute.xlu2 %3781 }
 0x8a0   : > { %v3794_v63 = vsel %vm2112_vm10, %v9518_v13, %v3782_v6 }
 0x8a1   : > { %v3796_v29 = vsel %vm2118_vm12, %v3794_v63, %v3790_v15  ;;  %v9631_v7 = vpop.permute.xlu1 %5473 }
 0x8a2   : > { %v6269_v53 = vmul.f32 -1.442695, %v3796_v29  ;;  %10900 = vst [vmem:[#allocation107_spill] sm:$0xff] %v9631_v7  ;;  %v3868_v6 = vmul.f32 %v9565_v51, %v3796_v29  ;;  %v3874_v51 = vld [vmem:[%s10453_s19 + $0x18] sm:$0xff] }
 0x8a4   : > { %6859 = vpow2.f32 %v6269_v53 }
 0x8a9   : > { %v9633_v63 = vpop.permute.xlu1 %5509 }
 0x8aa   : > { %v6860_v8 = vpop.eup %6859  ;;  %10901 = vst [vmem:[#allocation108_spill] sm:$0xff] %v9633_v63 }
 0x8ab   : > { %v3826_v55 = vadd.f32 1.0, %v6860_v8 }
 0x8ad   : > { %6861 = vrcp.f32 %v3826_v55  ;;  %v3853_v28 = vand.u32 2147483648, %v3826_v55  ;;  %v3851_v58 = vand.u32 2147483647, %v3826_v55  ;;  %vm3847_vm13 = vweird.f32 %v3826_v55 }
 0x8af   : > { %v3854_v13 = vor.u32 1.1754944e-38, %v3853_v28  ;;  %vm3852_vm15 = vcmp.eq.f32.partialorder %v3851_v58, 8.507059e+37  ;;  %v3875_v58 = vld [vmem:[%s10453_s19 + $0x20] sm:$0xff] }
 0x8b3   : > { %v6862_v45 = vpop.eup %6861 }
 0x8b4   : > { %v3843_v23 = vmul.f32 %v6862_v45, %v3826_v55  ;;  %vm3848_vm9 = vweird.f32 %v6862_v45 }
 0x8b5   : > { %vm3849_vm14 = vmor %vm3847_vm13, %vm3848_vm9  ;;  %vm5929_vm9 = vcmask 588800  }
 0x8b6   : > { %v3844_v32 = vsub.f32 1.0, %v3843_v23  ;;  %v3876_v23 = vld [vmem:[%s10453_s19 + $0x28] sm:$0xff] }
 0x8b7   : > { %v9644_v55 = vand.u32 4294901760, %v3876_v23 }
 0x8b8   : > { %v3845_v17 = vmul.f32 %v6862_v45, %v3844_v32 }
 0x8b9   : > { %v3937_v28 = vsub.f32 %v3876_v23, %v9644_v55  ;;  %4031 = vmatpush.msra.mxu3 %v9644_v55  ;;  %3898 = vmatpush.msrb.mxu0 %v9644_v55 }
 0x8ba   : > { %v3846_v34 = vadd.f32 %v6862_v45, %v3845_v17  ;;  %v9658_v17 = vand.u32 4294901760, %v3874_v51 }
 0x8bb   : > { %v3938_v32 = vand.u32 4294901760, %v3937_v28  ;;  %3993 = vmatpush.msra.mxu2 %v3937_v28 }
 0x8bc   : > { %v3850_v15 = vsel %vm3849_vm14, %v6862_v45, %v3846_v34  ;;  %v9650_v34 = vand.u32 4294901760, %v3875_v58  ;;  %v3949_v63 = vsub.f32 %v3874_v51, %v9658_v17 }
 0x8bd   : > { %v3855_v53 = vsel %vm3852_vm15, %v3854_v13, %v3850_v15  ;;  %v3872_v13 = vld [vmem:[%s10453_s19 + $0x8] sm:$0xff] }
 0x8be   : > { %v3858_v8 = vmul.f32 %v3855_v53, %v3796_v29  ;;  %v3943_v45 = vsub.f32 %v3875_v58, %v9650_v34  ;;  %v3873_v29 = vld [vmem:[%s10453_s19 + $0x10] sm:$0xff]  ;;  %4033 = vmatpush.msra.mxu3 %v9650_v34  ;;  %v9667_v53 = vpop.permute.xlu1 %5533  ;;  %3900 = vmatpush.msrb.mxu0 %v9650_v34  ;;  %v3939_v58 = vsub.f32 %v3937_v28, %v3938_v32  ;;  %v3950_v51 = vand.u32 4294901760, %v3949_v63 }
 0x8bf   : > { %10902 = vst [vmem:[#allocation109_spill] sm:$0xff] %v9667_v53 }
 0x8c0   : > { %v9637_v22 = vsel %vm2106_vm1, %v3858_v8, %v3868_v6  ;;  %v9669_v8 = vand.u32 4294901760, %v3873_v29  ;;  %v9671_v6 = vand.u32 4294901760, %v3872_v13  ;;  %v3944_v7 = vand.u32 4294901760, %v3943_v45  ;;  %3996 = vmatpush.msra.mxu2 %v3943_v45  ;;  %4035 = vmatpush.msra.mxu3 %v9658_v17 }
 0x8c1   : > { %4135 = vrot.lane.b32.xlu1 %v9637_v22, %s7393_s10  ;;  %3902 = vmatpush.msrb.mxu0 %v9658_v17 }
 0x8c2   : > { %v3955_v53 = vsub.f32 %v3873_v29, %v9669_v8  ;;  %v3961_v46 = vsub.f32 %v3872_v13, %v9671_v6  ;;  %v3945_v28 = vsub.f32 %v3943_v45, %v3944_v7  ;;  %3999 = vmatpush.msra.mxu2 %v3949_v63  ;;  %4037 = vmatpush.msra.mxu3 %v9669_v8 }
 0x8c3   : > { %3904 = vmatpush.msrb.mxu0 %v9669_v8  ;;  %v3951_v45 = vsub.f32 %v3949_v63, %v3950_v51 }
 0x8c4   : > { %v3962_v14 = vand.u32 4294901760, %v3961_v46  ;;  %v3946_v29 = vand.u32 4294901760, %v3945_v28  ;;  %4002 = vmatpush.msra.mxu2 %v3955_v53  ;;  %4039 = vmatpush.msra.mxu3 %v9671_v6 }
 0x8c5   : > { %3906 = vmatpush.msrb.mxu0 %v9671_v6  ;;  %v3952_v57 = vand.u32 4294901760, %v3951_v45 }
 0x8c6   : > { %4005 = vmatpush.msra.mxu2 %v3961_v46 }
 0x8c7   : > { %v3780_v15 = vpop.permute.xlu0 %3779 }
 0x8c8   : > { %v3793_v23 = vsel %vm2112_vm10, %v9484_v54, %v3780_v15  ;;  %v3940_v54 = vand.u32 4294901760, %v3939_v58  ;;  %v3956_v15 = vand.u32 4294901760, %v3955_v53  ;;  %v3963_v58 = vsub.f32 %v3961_v46, %v3962_v14 }
 0x8c9   : > { %v9680_v61 = vsel %vm2118_vm12, %v3793_v23, %v9604_v9  ;;  %v3871_v9 = vld [vmem:[%s10453_s19] sm:$0xff]  ;;  %5813 = vperm.xlu1 %6808, %v9272_v49  }
 0x8ca   : > { %v6268_v0 = vmul.f32 -1.442695, %v9680_v61  ;;  %3941 = vmatpush.msrb.mxu1 %v3940_v54  ;;  %v3907_v13 = vand.u32 4294901760, %v3871_v9  ;;  %v3957_v23 = vsub.f32 %v3955_v53, %v3956_v15  ;;  %v3964_v63 = vand.u32 4294901760, %v3963_v58 }
 0x8cb   : > { %v3885_v58 = vsel %vm2112_vm10, %v9637_v22, 0 }
 0x8cc   : > { %6863 = vpow2.f32 %v6268_v0  ;;  %3947 = vmatpush.msrb.mxu1 %v3946_v29  ;;  %v3967_v25 = vsub.f32 %v3871_v9, %v3907_v13  ;;  %v3958_v62 = vand.u32 4294901760, %v3957_v23  ;;  %4041 = vmatpush.msra.mxu3 %v3907_v13  ;;  %v9694_v0 = vpop.permute.xlu1 %5549  ;;  %v10903_v29 = vmov 62   ;;  %v9698_v9 = vld [vmem:[%s8883_s25 + $0x8] sm:$0xff] }
 0x8cd   : > { %3908 = vmatpush.msrb.mxu0 %v3907_v13 }
 0x8ce   : > { %v3968_v49 = vand.u32 4294901760, %v3967_v25  ;;  %4008 = vmatpush.msra.mxu2 %v3967_v25  ;;  %3953 = vmatpush.msrb.mxu1 %v3952_v57 }
 0x8cf   : > { %4068 = vmatpush.msra.mxu0 %v3938_v32 }
 0x8d0   : > { %v3969_v54 = vsub.f32 %v3967_v25, %v3968_v49  ;;  %3959 = vmatpush.msrb.mxu1 %v3958_v62 }
 0x8d1   : > { %4072 = vmatpush.msra.mxu0 %v3944_v7  ;;  %6810 = vset.pattern.permute.xlu1 %v10903_v29 }
 0x8d2   : > { %v6864_v53 = vpop.eup %6863  ;;  %v3970_v46 = vand.u32 4294901760, %v3969_v54  ;;  %5833 = vperm.xlu1 %6810, %v9698_v9   ;;  %3965 = vmatpush.msrb.mxu1 %v3964_v63 }
 0x8d3   : > { %v3825_v28 = vadd.f32 1.0, %v6864_v53  ;;  %4076 = vmatpush.msra.mxu0 %v3950_v51 }
 0x8d4   : > { %3971 = vmatpush.msrb.mxu1 %v3970_v46  ;;  %v9703_v62 = vpop.permute.xlu1 %5573  ;;  %v9722_v46 = vld [vmem:[%s8883_s25] sm:$0xff]  ;;  %s7464_s25 = smov 40  }
 0x8d5   : > { %6865 = vrcp.f32 %v3825_v28  ;;  %4080 = vmatpush.msra.mxu0 %v3956_v15  ;;  %10904 = vst [vmem:[#allocation110_spill] sm:$0xff] %v9703_v62  ;;  %v3838_v32 = vand.u32 2147483648, %v3825_v28  ;;  %v3836_v15 = vand.u32 2147483647, %v3825_v28  ;;  %vm3832_vm0 = vweird.f32 %v3825_v28 }
 0x8d6   : > { %4109 = vmatpush.msra.mxu1 %v9644_v55 }
 0x8d7   : > { %4084 = vmatpush.msra.mxu0 %v3962_v14  ;;  %v3839_v14 = vor.u32 1.1754944e-38, %v3838_v32  ;;  %vm3837_vm5 = vcmp.eq.f32.partialorder %v3836_v15, 8.507059e+37  ;;  %v10907_v32 = vmov 51  }
 0x8d8   : > { %4111 = vmatpush.msra.mxu1 %v9650_v34 }
 0x8d9   : > { %4088 = vmatpush.msra.mxu0 %v3968_v49  ;;  %v3917_v49 = vand.u32 4294901760, %v3885_v58 }
 0x8da   : > { %4113 = vmatpush.msra.mxu1 %v9658_v17 }
 0x8db   : > { %v6866_v25 = vpop.eup %6865 }
 0x8dc   : > { %v3828_v57 = vmul.f32 %v6866_v25, %v3825_v28  ;;  %4115 = vmatpush.msra.mxu1 %v9669_v8  ;;  %vm3833_vm12 = vweird.f32 %v6866_v25  ;;  %v9708_v23 = vpop.permute.xlu1 %5589  ;;  %v3867_v8 = vmul.f32 %v9588_v11, %v9680_v61  ;;  %v3918_v28 = vsub.f32 %v3885_v58, %v3917_v49  ;;  %v4131_v58 = vld [vmem:[#allocation26 + $0x10] sm:$0xff] }
 0x8dd   : > { %vm3834_vm4 = vmor %vm3832_vm0, %vm3833_vm12  ;;  %10905 = vst [vmem:[#allocation111_spill] sm:$0xff] %v9708_v23 }
 0x8de   : > { %v3829_v7 = vsub.f32 1.0, %v3828_v57  ;;  %4117 = vmatpush.msra.mxu1 %v9671_v6  ;;  %v3919_v57 = vand.u32 4294901760, %v3918_v28 }
 0x8e0   : > { %v3830_v51 = vmul.f32 %v6866_v25, %v3829_v7  ;;  %4119 = vmatpush.msra.mxu1 %v3907_v13  ;;  %v3920_v7 = vsub.f32 %v3918_v28, %v3919_v57 }
 0x8e2   : > { %v3831_v55 = vadd.f32 %v6866_v25, %v3830_v51  ;;  %v3921_v15 = vand.u32 4294901760, %v3920_v7 }
 0x8e4   : > { %v3835_v34 = vsel %vm3834_vm4, %v6866_v25, %v3831_v55 }
 0x8e5   : > { %v3840_v45 = vsel %vm3837_vm5, %v3839_v14, %v3835_v34 }
 0x8e6   : > { %v3857_v17 = vmul.f32 %v3840_v45, %v9680_v61  ;;  %v9719_v61 = vpop.permute.xlu1 %5603  ;;  %v9763_v45 = vpop.permute.xlu0 %5383 }
 0x8e7   : > { %10906 = vst [vmem:[#allocation112_spill] sm:$0xff] %v9719_v61 }
 0x8e8   : > { %v3869_v6 = vsel %vm2106_vm1, %v3857_v17, %v3867_v8  ;;  %10912 = vst [vmem:[#allocation116_spill] sm:$0xff] %v9763_v45 }
 0x8e9   : > { %4357 = vrot.lane.b32.xlu0 %v3869_v6, %s7454_s22  ;;  %v3882_v13 = vsel %vm2112_vm10, %v3869_v6, 0  ;;  %4133 = vrot.lane.b32.xlu2 %v3869_v6, %s7393_s10 }
 0x8ea   : > { %v3909_v63 = vand.u32 4294901760, %v3882_v13 }
 0x8ec   : > { %v3910_v53 = vsub.f32 %v3882_v13, %v3909_v63  ;;  %3973 = vmatmul.f32.vlgmr.msrb.gmra.mxu1 %v3909_v63  ;;  %v9771_v13 = vand.u32 4294901760, %v4131_v58 }
 0x8ee   : > { %4011 = vmatmul.f32.vlgmr.msra.gmra.mxu2 %v3910_v53  ;;  %v3911_v54 = vand.u32 4294901760, %v3910_v53  ;;  %v9727_v51 = vpop.permute.xlu1 %5639 }
 0x8f0   : > { %4045 = vmatmul.f32.vlgmr.msra.gmra.mxu3 %v3911_v54  ;;  %v3912_v11 = vsub.f32 %v3910_v53, %v3911_v54  ;;  %v4129_v54 = vld [vmem:[#allocation26] sm:$0xff] }
 0x8f1   : > { %5599 = vperm.xlu2 %6787, %v9722_v46   ;;  %5593 = vperm.xlu0 %6786, %v9698_v9  }
 0x8f2   : > { %v3913_v25 = vand.u32 4294901760, %v3912_v11  ;;  %v9789_v11 = vand.u32 4294901760, %v4129_v54 }
 0x8f4   : > { %3914 = vmatmul.f32.vlgmr.msrb.gmra.mxu0 %v3913_v25  ;;  %3977 = vmatmul.f32.gmra.mxu1 %v3917_v49 }
 0x8f6   : > { %4016 = vmatmul.f32.gmra.mxu2 %v3918_v28  ;;  %v9734_v55 = vpop.permute.xlu1 %5663 }
 0x8f7   : > { %10908 = vst [vmem:[#allocation113_spill] sm:$0xff] %v9734_v55 }
 0x8f8   : > { %4051 = vmatmul.f32.gmra.mxu3 %v3919_v57  ;;  %v9796_v57 = vpop.permute.xlu0 %5423 }
 0x8f9   : > { %6790 = vset.pattern.permute.xlu2 %v10907_v32  ;;  %6789 = vset.pattern.permute.xlu0 %v10907_v32  ;;  %10915 = vst [vmem:[#allocation118_spill] sm:$0xff] %v9796_v57  ;;  %v9802_v32 = vsub.f32 %v4129_v54, %v9789_v11 }
 0x8fa   : > { %5623 = vperm.xlu2 %6790, %v9698_v9   ;;  %5619 = vperm.xlu0 %6789, %v9722_v46  }
 0x8fc   : > { %3922 = vmatmul.f32.gmra.mxu0 %v3921_v15  ;;  %4121 = vmatmul.f32.vlgmr.msra.gmra.mxu1 %v3909_v63 }
 0x8fe   : > { %v9741_v14 = vpop.permute.xlu1 %5679 }
 0x8ff   : > { %10909 = vst [vmem:[#allocation114_spill] sm:$0xff] %v9741_v14 }
 0x900   : > { %v9826_v54 = vpop.permute.xlu0 %5463 }
 0x901   : > { %10917 = vst [vmem:[#allocation120_spill] sm:$0xff] %v9826_v54 }
 0x902   : > { %6793 = vset.pattern.permute.xlu2 %v10883_v31  ;;  %6792 = vset.pattern.permute.xlu0 %v10881_v43  ;;  %v10910_v43 = vmov 58  }
 0x903   : > { %5659 = vperm.xlu2 %6793, %v9722_v46   ;;  %5643 = vperm.xlu0 %6792, %v9698_v9  }
 0x904   : > { %4090 = vmatmul.f32.vlgmr.msra.gmra.mxu0 %v3909_v63  ;;  %4125 = vmatmul.f32.gmra.mxu1 %v3917_v49  ;;  %v4130_v63 = vld [vmem:[#allocation26 + $0x8] sm:$0xff] }
 0x905   : > { %v9777_v53 = vand.u32 4294901760, %v4130_v63 }
 0x906   : > { %v9748_v31 = vpop.permute.xlu1 %5703 }
 0x907   : > { %10911 = vst [vmem:[#allocation115_spill] sm:$0xff] %v9748_v31  ;;  %v9787_v28 = vsub.f32 %v4130_v63, %v9777_v53 }
 0x909   : > { %v9799_v7 = vand.u32 4294901760, %v9787_v28 }
 0x90b   : > { %6797 = vset.pattern.permute.xlu2 %v10887_v48  ;;  %6796 = vset.pattern.permute.xlu0 %v10885_v37  ;;  %v4132_v48 = vld [vmem:[#allocation26 + $0x18] sm:$0xff] }
 0x90c   : > { %5699 = vperm.xlu2 %6797, %v9722_v46   ;;  %4094 = vmatmul.f32.gmra.mxu0 %v3917_v49  ;;  %v9750_v34 = vand.u32 4294901760, %v4132_v48  ;;  %v9774_v49 = vsub.f32 %v4131_v58, %v9771_v13 }
 0x90d   : > { %5683 = vperm.xlu0 %6796, %v9698_v9  }
 0x90e   : > { %v9753_v37 = vsub.f32 %v4132_v48, %v9750_v34  ;;  %4271 = vmatpush.msrb.mxu1 %v9750_v34  ;;  %4154 = vmatpush.msrb.mxu2 %v9750_v34  ;;  %v9769_v8 = vpop.permute.xlu1 %5733  ;;  %v4205_v48 = vsub.f32 %v9787_v28, %v9799_v7 }
 0x90f   : > { %10913 = vst [vmem:[#allocation117_spill] sm:$0xff] %v9769_v8 }
 0x910   : > { %4237 = vmatpush.msrb.mxu0 %v9753_v37  ;;  %4273 = vmatpush.msrb.mxu1 %v9771_v13  ;;  %v4206_v58 = vand.u32 4294901760, %v4205_v48 }
 0x911   : > { %4156 = vmatpush.msrb.mxu2 %v9771_v13 }
 0x912   : > { %4240 = vmatpush.msrb.mxu0 %v9774_v49  ;;  %4275 = vmatpush.msrb.mxu1 %v9777_v53 }
 0x913   : > { %4158 = vmatpush.msrb.mxu2 %v9777_v53 }
 0x914   : > { %6799 = vset.pattern.permute.xlu2 %v10890_v42  ;;  %v9760_v42 = vand.u32 4294901760, %v9753_v37  ;;  %4243 = vmatpush.msrb.mxu0 %v9787_v28 }
 0x915   : > { %5729 = vperm.xlu2 %6799, %v9722_v46   ;;  %6801 = vset.pattern.permute.xlu0 %v10910_v43 }
 0x916   : > { %5749 = vperm.xlu0 %6801, %v9722_v46   ;;  %v4193_v17 = vsub.f32 %v9753_v37, %v9760_v42  ;;  %4277 = vmatpush.msrb.mxu1 %v9789_v11 }
 0x917   : > { %4160 = vmatpush.msrb.mxu2 %v9789_v11  ;;  %4246 = vmatpush.msrb.mxu0 %v9802_v32 }
 0x918   : > { %v4194_v6 = vand.u32 4294901760, %v4193_v17  ;;  %v9812_v17 = vand.u32 4294901760, %v9802_v32 }
 0x919   : > { %4306 = vmatpush.msra.mxu2 %v9760_v42  ;;  %4378 = vmatpush.msra.mxu0 %v9750_v34 }
 0x91a   : > { %4195 = vmatpush.msrb.mxu3 %v4194_v6  ;;  %4419 = vmatpush.msra.mxu1 %v4194_v6  ;;  %v4211_v63 = vsub.f32 %v9802_v32, %v9812_v17 }
 0x91b   : > { %4380 = vmatpush.msra.mxu0 %v9771_v13 }
 0x91c   : > { %v4212_v6 = vand.u32 4294901760, %v4211_v63 }
 0x91d   : > { %6802 = vset.pattern.permute.xlu2 %v10910_v43  ;;  %v9807_v43 = vpop.permute.xlu1 %5769  ;;  %4382 = vmatpush.msra.mxu0 %v9777_v53 }
 0x91e   : > { %5753 = vperm.xlu2 %6802, %v9698_v9   ;;  %6806 = vset.pattern.permute.xlu0 %v10894_v40  ;;  %v9782_v40 = vand.u32 4294901760, %v9774_v49  ;;  %10916 = vst [vmem:[#allocation119_spill] sm:$0xff] %v9807_v43 }
 0x91f   : > { %5793 = vperm.xlu0 %6806, %v9698_v9   ;;  %4384 = vmatpush.msra.mxu0 %v9789_v11 }
 0x920   : > { %v4199_v25 = vsub.f32 %v9774_v49, %v9782_v40  ;;  %4310 = vmatpush.msra.mxu2 %v9782_v40 }
 0x922   : > { %v4200_v15 = vand.u32 4294901760, %v4199_v25  ;;  %4314 = vmatpush.msra.mxu2 %v9799_v7  ;;  %v9839_v25 = vpop.permute.xlu0 %5489 }
 0x924   : > { %4201 = vmatpush.msrb.mxu3 %v4200_v15  ;;  %4425 = vmatpush.msra.mxu1 %v4200_v15 }
 0x925   : > { %4318 = vmatpush.msra.mxu2 %v9812_v17 }
 0x926   : > { %6804 = vset.pattern.permute.xlu2 %v10891_v35  ;;  %v10914_v35 = vmov 56   ;;  %4207 = vmatpush.msrb.mxu3 %v4206_v58 }
 0x927   : > { %5773 = vperm.xlu2 %6804, %v9698_v9   ;;  %6811 = vset.pattern.permute.xlu0 %v10914_v35 }
 0x928   : > { %5719 = vperm.xlu0 %6811, %v9722_v46   ;;  %4213 = vmatpush.msrb.mxu3 %v4212_v6 }
 0x929   : > { %4431 = vmatpush.msra.mxu1 %v4206_v58 }
 0x92a   : > { %4341 = vmatpush.msra.mxu3 %v9750_v34 }
 0x92b   : > { %4437 = vmatpush.msra.mxu1 %v4212_v6 }
 0x92c   : > { %4343 = vmatpush.msra.mxu3 %v9771_v13 }
 0x92e   : > { %4345 = vmatpush.msra.mxu3 %v9777_v53 }
 0x92f   : > { %6807 = vset.pattern.permute.xlu2 %v10897_v30  ;;  %v9830_v30 = vpop.permute.xlu1 %5789 }
 0x930   : > { %5809 = vperm.xlu2 %6807, %v9722_v46   ;;  %6813 = vset.pattern.permute.xlu0 %v10903_v29 }
 0x931   : > { %4347 = vmatpush.msra.mxu3 %v9789_v11 }
 0x937   : > { %v4136_v15 = vpop.permute.xlu1 %4135 }
 0x938   : > { %6809 = vset.pattern.permute.xlu2 %v10903_v29  ;;  %v4139_v48 = vsel %vm2109_vm2, %v4136_v15, 0  ;;  %v9845_v29 = vpop.permute.xlu0 %5513 }
 0x939   : > { %5829 = vperm.xlu2 %6809, %v9722_v46   ;;  %v4169_v6 = vand.u32 4294901760, %v4139_v48  ;;  %10918 = vst [vmem:[#allocation121_spill] sm:$0xff] %v9845_v29 }
 0x93b   : > { %v4170_v46 = vsub.f32 %v4139_v48, %v4169_v6 }
 0x941   : > { %6812 = vset.pattern.permute.xlu2 %v10914_v35 }
 0x942   : > { %5723 = vperm.xlu2 %6812, %v9698_v9  }
 0x943   : > { %v4134_v58 = vpop.permute.xlu2 %4133 }
 0x944   : > { %v4137_v63 = vsel %vm2109_vm2, %v4134_v58, 0  ;;  %v4171_v58 = vand.u32 4294901760, %v4170_v46 }
 0x945   : > { %v4161_v54 = vand.u32 4294901760, %v4137_v63 }
 0x947   : > { %v4162_v31 = vsub.f32 %v4137_v63, %v4161_v54  ;;  %4215 = vmatmul.f32.vlgmr.msrb.gmra.mxu3 %v4161_v54 }
 0x948   : > { %4495 = vmatpush.msrb.mxu3 %v9750_v34 }
 0x949   : > { %v4163_v8 = vand.u32 4294901760, %v4162_v31  ;;  %4249 = vmatmul.f32.vlgmr.msrb.gmra.mxu0 %v4162_v31 }
 0x94a   : > { %4359 = vrot.lane.b32.xlu2 %v9637_v22, %s7454_s22  ;;  %4497 = vmatpush.msrb.mxu3 %v9771_v13  ;;  %v9861_v22 = vpop.permute.xlu0 %5553 }
 0x94b   : > { %v4164_v9 = vsub.f32 %v4162_v31, %v4163_v8  ;;  %4281 = vmatmul.f32.vlgmr.msrb.gmra.mxu1 %v4163_v8  ;;  %v9851_v35 = vpop.permute.xlu2 %5599  ;;  %4530 = vmatpush.msrb.mxu0 %v9760_v42  ;;  %10919 = vst [vmem:[#allocation122_spill] sm:$0xff] %v9861_v22  ;;  %v4172_v31 = vsub.f32 %v4170_v46, %v4171_v58 }
 0x94c   : > { %4499 = vmatpush.msrb.mxu3 %v9777_v53  ;;  %4565 = vmatpush.msrb.mxu1 %v9750_v34 }
 0x94d   : > { %v4165_v15 = vand.u32 4294901760, %v4164_v9  ;;  %4534 = vmatpush.msrb.mxu0 %v9782_v40  ;;  %v4173_v42 = vand.u32 4294901760, %v4172_v31 }
 0x94e   : > { %4501 = vmatpush.msrb.mxu3 %v9789_v11  ;;  %4567 = vmatpush.msrb.mxu1 %v9771_v13 }
 0x94f   : > { %4166 = vmatmul.f32.vlgmr.msrb.gmra.mxu2 %v4165_v15  ;;  %4219 = vmatmul.f32.gmra.mxu3 %v4169_v6 }
 0x950   : > { %4461 = vmatpush.msrb.mxu2 %v9753_v37  ;;  %4569 = vmatpush.msrb.mxu1 %v9777_v53 }
 0x951   : > { %4254 = vmatmul.f32.gmra.mxu0 %v4170_v46 }
 0x952   : > { %4464 = vmatpush.msrb.mxu2 %v9774_v49  ;;  %4571 = vmatpush.msrb.mxu1 %v9789_v11 }
 0x953   : > { %4287 = vmatmul.f32.gmra.mxu1 %v4171_v58  ;;  %4538 = vmatpush.msrb.mxu0 %v9799_v7 }
 0x954   : > { %v9866_v34 = vpop.permute.xlu2 %5623  ;;  %4467 = vmatpush.msrb.mxu2 %v9787_v28 }
 0x955   : > { %10920 = vst [vmem:[#allocation123_spill] sm:$0xff] %v9866_v34  ;;  %4542 = vmatpush.msrb.mxu0 %v9812_v17  ;;  %v6822_v17 = vld [vmem:[#allocation24] ss:$0 sm:$0xff] }
 0x956   : > { %4470 = vmatpush.msrb.mxu2 %v9802_v32 }
 0x957   : > { %4174 = vmatmul.f32.gmra.mxu2 %v4173_v42  ;;  %4349 = vmatmul.f32.vlgmr.msra.gmra.mxu3 %v4161_v54 }
 0x95b   : > { %v4358_v37 = vpop.permute.xlu0 %4357 }
 0x95c   : > { %v4361_v8 = vsel %vm2109_vm2, %v4358_v37, 0 }
 0x95d   : > { %v4385_v13 = vand.u32 4294901760, %v4361_v8  ;;  %v9872_v49 = vpop.permute.xlu2 %5659 }
 0x95f   : > { %v4386_v53 = vsub.f32 %v4361_v8, %v4385_v13  ;;  %4320 = vmatmul.f32.vlgmr.msra.gmra.mxu2 %v4161_v54  ;;  %4353 = vmatmul.f32.gmra.mxu3 %v4169_v6 }
 0x960   : > { %4439 = vmatmul.f32.vlgmr.msra.gmra.mxu1 %v4385_v13 }
 0x961   : > { %v4387_v40 = vand.u32 4294901760, %v4386_v53 }
 0x963   : > { %v4388_v11 = vsub.f32 %v4386_v53, %v4387_v40 }
 0x965   : > { %v4389_v28 = vand.u32 4294901760, %v4388_v11 }
 0x966   : > { %v9874_v7 = vpop.permute.xlu2 %5699 }
 0x967   : > { %4324 = vmatmul.f32.gmra.mxu2 %v4169_v6  ;;  %4390 = vmatmul.f32.vlgmr.msra.gmra.mxu0 %v4389_v28 }
 0x968   : > { %4505 = vmatmul.f32.vlgmr.msrb.gmra.mxu3 %v4387_v40 }
 0x969   : > { %v3974_v32 = vpop.f32.mrf.mxu1 }
 0x96f   : > { %4473 = vmatmul.f32.vlgmr.msrb.gmra.mxu2 %v4386_v53  ;;  %v9876_v48 = vpop.permute.xlu2 %5729 }
 0x971   : > { %v3915_v63 = vpop.f32.mrf.mxu0  ;;  %v4012_v15 = vpop.f32.mrf.mxu2 }
 0x972   : > { %v3916_v46 = vadd.f32 %v6822_v17, %v3915_v63  ;;  %v3978_v58 = vpop.f32.mrf.mxu1 }
 0x973   : > { %v4046_v31 = vpop.f32.mrf.mxu3 }
 0x974   : > { %v3975_v9 = vadd.f32 %v3974_v32, %v3916_v46 }
 0x976   : > { %v4013_v54 = vadd.f32 %v4012_v15, %v3975_v9 }
 0x978   : > { %v4047_v42 = vadd.f32 %v4046_v31, %v4013_v54  ;;  %v9878_v37 = vpop.permute.xlu2 %5753 }
 0x979   : > { %v3923_v8 = vpop.f32.mrf.mxu0  ;;  %v4017_v53 = vpop.f32.mrf.mxu2 }
 0x97a   : > { %v3924_v11 = vadd.f32 %v6822_v17, %v3923_v8  ;;  %v4122_v28 = vpop.f32.mrf.mxu1 }
 0x97b   : > { %v4052_v32 = vpop.f32.mrf.mxu3 }
 0x97c   : > { %v3979_v6 = vadd.f32 %v3978_v58, %v3924_v11 }
 0x97e   : > { %v4018_v62 = vadd.f32 %v4017_v53, %v3979_v6 }
 0x980   : > { %v4053_v63 = vadd.f32 %v4052_v32, %v4018_v62 }
 0x981   : > { %v4091_v40 = vpop.f32.mrf.mxu0  ;;  %v9880_v34 = vpop.permute.xlu2 %5773 }
 0x982   : > { %v4092_v55 = vadd.f32 %v4091_v40, %v4047_v42  ;;  %10921 = vst [vmem:[#allocation124_spill] sm:$0xff] %v9880_v34  ;;  %v4126_v54 = vpop.f32.mrf.mxu1 }
 0x984   : > { %v9882_v23 = vadd.f32 %v4122_v28, %v4092_v55 }
 0x989   : > { %v4095_v46 = vpop.f32.mrf.mxu0 }
 0x98a   : > { %v4096_v9 = vadd.f32 %v4095_v46, %v4053_v63  ;;  %v9884_v15 = vpop.permute.xlu2 %5809 }
 0x98c   : > { %v9886_v31 = vadd.f32 %v4126_v54, %v4096_v9 }
 0x993   : > { %v9888_v17 = vpop.permute.xlu2 %5829 }
 0x994   : > { %10922 = vst [vmem:[#allocation125_spill] sm:$0xff] %v9888_v17 }
 0x99c   : > { %v9890_v58 = vpop.permute.xlu2 %5723 }
 0x99d   : > { %10923 = vst [vmem:[#allocation126_spill] sm:$0xff] %v9890_v58 }
 0x9a4   : > { %v4360_v42 = vpop.permute.xlu2 %4359 }
 0x9a5   : > { %v4363_v8 = vsel %vm2109_vm2, %v4360_v42, 0 }
 0x9a6   : > { %v4393_v11 = vand.u32 4294901760, %v4363_v8 }
 0x9a8   : > { %v4394_v6 = vsub.f32 %v4363_v8, %v4393_v11  ;;  %4443 = vmatmul.f32.gmra.mxu1 %v4393_v11 }
 0x9aa   : > { %4478 = vmatmul.f32.gmra.mxu2 %v4394_v6  ;;  %v4395_v55 = vand.u32 4294901760, %v4394_v6 }
 0x9ac   : > { %4511 = vmatmul.f32.gmra.mxu3 %v4395_v55  ;;  %v4396_v62 = vsub.f32 %v4394_v6, %v4395_v55 }
 0x9ae   : > { %v4397_v28 = vand.u32 4294901760, %v4396_v62 }
 0x9b0   : > { %4398 = vmatmul.f32.gmra.mxu0 %v4397_v28  ;;  %4573 = vmatmul.f32.vlgmr.msrb.gmra.mxu1 %v4385_v13 }
 0x9b8   : > { %4544 = vmatmul.f32.vlgmr.msrb.gmra.mxu0 %v4385_v13  ;;  %4577 = vmatmul.f32.gmra.mxu1 %v4393_v11 }
 0x9c0   : > { %4548 = vmatmul.f32.gmra.mxu0 %v4393_v11 }
 0x9c6   : > { %v4250_v46 = vpop.f32.mrf.mxu0 }
 0x9c8   : > { %v4282_v42 = vpop.f32.mrf.mxu1 }
 0x9ca   : > { %v4216_v40 = vpop.f32.mrf.mxu3 }
 0x9ce   : > { %v4255_v6 = vpop.f32.mrf.mxu0 }
 0x9d0   : > { %v4288_v13 = vpop.f32.mrf.mxu1 }
 0x9d2   : > { %v4167_v53 = vpop.f32.mrf.mxu2  ;;  %v4220_v32 = vpop.f32.mrf.mxu3 }
 0x9d3   : > { %v4217_v63 = vadd.f32 %v4216_v40, %v4167_v53 }
 0x9d5   : > { %v4251_v54 = vadd.f32 %v4250_v46, %v4217_v63 }
 0x9d7   : > { %v4283_v58 = vadd.f32 %v4282_v42, %v4251_v54 }
 0x9da   : > { %v4175_v9 = vpop.f32.mrf.mxu2  ;;  %v4350_v17 = vpop.f32.mrf.mxu3 }
 0x9db   : > { %v4221_v8 = vadd.f32 %v4220_v32, %v4175_v9 }
 0x9dd   : > { %v4256_v55 = vadd.f32 %v4255_v6, %v4221_v8  ;;  %v4440_v53 = vpop.f32.mrf.mxu1 }
 0x9df   : > { %v4289_v11 = vadd.f32 %v4288_v13, %v4256_v55 }
 0x9e2   : > { %v4321_v34 = vpop.f32.mrf.mxu2  ;;  %v4354_v29 = vpop.f32.mrf.mxu3 }
 0x9e3   : > { %v4322_v61 = vadd.f32 %v4321_v34, %v4283_v58 }
 0x9e4   : > { %v4391_v63 = vpop.f32.mrf.mxu0 }
 0x9e5   : > { %v4351_v62 = vadd.f32 %v4350_v17, %v4322_v61  ;;  %v4441_v54 = vadd.f32 %v4440_v53, %v4391_v63  ;;  %v9898_v63 = vpop.permute.xlu1 %5813 }
 0x9e7   : > { %4593 = vrot.lane.b32.xlu2 %v4351_v62, %s7387_s23 }
 0x9ea   : > { %v4325_v28 = vpop.f32.mrf.mxu2 }
 0x9eb   : > { %v4326_v22 = vadd.f32 %v4325_v28, %v4289_v11  ;;  %v4506_v58 = vpop.f32.mrf.mxu3 }
 0x9ed   : > { %v4355_v40 = vadd.f32 %v4354_v29, %v4326_v22 }
 0x9ef   : > { %4595 = vrot.lane.b32.xlu1 %v4355_v40, %s7387_s23 }
 0x9f2   : > { %v4474_v46 = vpop.f32.mrf.mxu2 }
 0x9f3   : > { %v4475_v34 = vadd.f32 %v4474_v46, %v4441_v54  ;;  %v9903_v54 = vpop.permute.xlu0 %5593 }
 0x9f5   : > { %v4507_v61 = vadd.f32 %v4506_v58, %v4475_v34 }
 0x9fb   : > { %v9905_v34 = vpop.permute.xlu0 %5619 }
 0xa25   : > { %v4444_v32 = vpop.f32.mrf.mxu1 }
 0xa2d   : > { %v4399_v9 = vpop.f32.mrf.mxu0  ;;  %v4574_v17 = vpop.f32.mrf.mxu1 }
 0xa2e   : > { %v4445_v42 = vadd.f32 %v4444_v32, %v4399_v9  ;;  %v4479_v55 = vpop.f32.mrf.mxu2  ;;  %v9900_v32 = vpop.permute.xlu1 %5833 }
 0xa2f   : > { %v4512_v29 = vpop.f32.mrf.mxu3 }
 0xa30   : > { %v4480_v13 = vadd.f32 %v4479_v55, %v4445_v42 }
 0xa32   : > { %v4513_v22 = vadd.f32 %v4512_v29, %v4480_v13 }
 0xa35   : > { %v4545_v8 = vpop.f32.mrf.mxu0  ;;  %v4578_v45 = vpop.f32.mrf.mxu1 }
 0xa36   : > { %v4546_v6 = vadd.f32 %v4545_v8, %v4507_v61 }
 0xa38   : > { %v4575_v11 = vadd.f32 %v4574_v17, %v4546_v6 }
 0xa3a   : > { %4583 = vrot.lane.b32.xlu1 %v4575_v11, %s7387_s23 }
 0xa3d   : > { %v4549_v28 = vpop.f32.mrf.mxu0 }
 0xa3e   : > { %v4550_v57 = vadd.f32 %v4549_v28, %v4513_v22 }
 0xa40   : > { %v4579_v43 = vadd.f32 %v4578_v45, %v4550_v57  ;;  %v9907_v45 = vpop.permute.xlu0 %5643 }
 0xa41   : > { %v4594_v14 = vpop.permute.xlu2 %4593 }
 0xa42   : > { %v4599_v53 = vadd.f32 %v4594_v14, %v4575_v11  ;;  %4585 = vrot.lane.b32.xlu0 %v4579_v43, %s7387_s23 }
 0xa44   : > { %4611 = vrot.lane.b32.xlu1 %v4599_v53, %s7464_s25 }
 0xa48   : > { %v9909_v14 = vpop.permute.xlu0 %5683 }
 0xa50   : > { %v9911_v57 = vpop.permute.xlu0 %5749 }
 0xa58   : > { %v9913_v58 = vpop.permute.xlu0 %5793 }
 0xa60   : > { %v9915_v42 = vpop.permute.xlu0 %5719 }
 0xa61   : > { %v4596_v46 = vpop.permute.xlu1 %4595 }
 0xa62   : > { %v4600_v9 = vadd.f32 %v4596_v46, %v4579_v43 }
 0xa64   : > { %4613 = vrot.lane.b32.xlu0 %v4600_v9, %s7464_s25 }
 0xaac   : > { %v4584_v61 = vpop.permute.xlu1 %4583 }
 0xaad   : > { %v4589_v17 = vsub.f32 %v4351_v62, %v4584_v61 }
 0xaaf   : > { %4603 = vrot.lane.b32.xlu0 %v4589_v17, %s7465_s9  ;;  %v10927_v17 = vld [vmem:[#allocation96_spill] sm:$0xff] }
 0xab4   : > { %v4586_v43 = vpop.permute.xlu0 %4585 }
 0xab5   : > { %v4590_v8 = vsub.f32 %v4355_v40, %v4586_v43 }
 0xab6   : > { %v4612_v22 = vpop.permute.xlu1 %4611 }
 0xab7   : > { %4605 = vrot.lane.b32.xlu2 %v4590_v8, %s7465_s9  ;;  %v10928_v8 = vld [vmem:[#allocation70_spill] sm:$0xff] }
 0xad6   : > { %v4614_v55 = vpop.permute.xlu0 %4613 }
 0xb11   : > { %v4606_v6 = vpop.permute.xlu2 %4605 }
 0xb12   : > { %v4619_v13 = vsel %vm4617_vm6, %v9886_v31, %v4606_v6 }
 0xb13   : > { %v9922_v11 = vsel %vm4620_vm7, %v4619_v13, %v4614_v55  ;;  %v10929_v55 = vld [vmem:[#allocation62_spill] sm:$0xff] }
 0xb21   : > { %v4604_v29 = vpop.permute.xlu0 %4603 }
 0xb22   : > { %v4618_v62 = vsel %vm4617_vm6, %v9882_v23, %v4604_v29  ;;  %v10930_v29 = vld [vmem:[#allocation54_spill] sm:$0xff] }
 0xb23   : > { %v4621_v28 = vsel %vm4620_vm7, %v4618_v62, %v4612_v22  ;;  %v10931_v22 = vld [vmem:[#allocation97_spill] sm:$0xff] }
 0xb24   : > { %v9928_v40 = vmul.f32 %v9096_v18, %v4621_v28  ;;  %v10932_v28 = vld [vmem:[#allocation72_spill] sm:$0xff] }
 0xb26   : > { %v4696_v53 = vmul.f32 %v9101_v60, %v9928_v40  ;;  %v4716_v46 = vmul.f32 %v9144_v27, %v9928_v40  ;;  %v4736_v31 = vmul.f32 %v9137_v36, %v9928_v40  ;;  %v4776_v23 = vmul.f32 %v9173_v44, %v9928_v40 }
 0xb27   : > { %v4756_v18 = vmul.f32 %v9168_v50, %v9928_v40  ;;  %v4846_v60 = vmul.f32 %v9287_v24, %v9928_v40  ;;  %v4826_v36 = vmul.f32 %v9206_v26, %v9928_v40  ;;  %v4796_v27 = vmul.f32 %v9195_v52, %v9928_v40 }
 0xb28   : > { %4740 = vrot.lane.b32.xlu2 %v4736_v31, %s7390_s21  ;;  %4720 = vrot.lane.b32.xlu0 %v4716_v46, %s7387_s23  ;;  %v4976_v44 = vmul.f32 %v9338_v3, %v9928_v40  ;;  %v4866_v50 = vmul.f32 %v9265_v19, %v9928_v40  ;;  %v4886_v24 = vmul.f32 %v9259_v5, %v9928_v40  ;;  %v10933_v31 = vld [vmem:[#allocation51_spill] sm:$0xff] }
 0xb29   : > { %4700 = vrot.lane.b32.xlu1 %v4696_v53, %s7388_s13  ;;  %v5106_v26 = vmul.f32 %v9426_v2, %v9928_v40  ;;  %v4906_v52 = vmul.f32 %v9292_v16, %v9928_v40  ;;  %v4926_v3 = vmul.f32 %v9279_v41, %v9928_v40  ;;  %v5236_v19 = vmul.f32 %v9464_v38, %v9928_v40 }
 0xb2a   : > { %v4956_v5 = vmul.f32 %v9359_v33, %v9928_v40  ;;  %v5016_v2 = vmul.f32 %v9378_v39, %v9928_v40  ;;  %v5366_v16 = vmul.f32 %v9619_v20, %v9928_v40  ;;  %v4996_v41 = vmul.f32 %v9396_v21, %v9928_v40 }
 0xb2b   : > { %v5056_v38 = vmul.f32 %v9391_v12, %v9928_v40  ;;  %v5496_v33 = vmul.f32 %v9839_v25, %v9928_v40  ;;  %v5036_v39 = vmul.f32 %v9416_v47, %v9928_v40  ;;  %v5146_v20 = vmul.f32 %v9433_v56, %v9928_v40 }
 0xb2c   : > { %v5626_v21 = vmul.f32 %v9905_v34, %v9928_v40  ;;  %v5086_v12 = vmul.f32 %v9412_v10, %v9928_v40  ;;  %v5186_v25 = vmul.f32 %v9441_v1, %v9928_v40  ;;  %v5736_v47 = vmul.f32 %v9876_v48, %v9928_v40  ;;  %v10924_v1 = vld [vmem:[#allocation50_spill] sm:$0xff]  ;;  %v10925_v34 = vld [vmem:[#allocation48_spill] sm:$0xff] }
 0xb2d   : > { %v5126_v56 = vmul.f32 %v9460_v4, %v9928_v40  ;;  %v5276_v9 = vmul.f32 %v9466_v59, %v9928_v40  ;;  %v5756_v10 = vmul.f32 %v9911_v57, %v9928_v40  ;;  %v5166_v48 = vmul.f32 %v10924_v1, %v9928_v40  ;;  %v10926_v59 = vld [vmem:[#allocation60_spill] sm:$0xff] }
 0xb2e   : > { %v5316_v61 = vmul.f32 %v10925_v34, %v9928_v40  ;;  %v5816_v4 = vmul.f32 %v9884_v15, %v9928_v40  ;;  %v10031_v57 = vmul.f32 %v10926_v59, %v9922_v11  ;;  %v5216_v43 = vmul.f32 %v10927_v17, %v9928_v40  ;;  %v10943_v59 = vld [vmem:[#allocation104_spill] sm:$0xff] }
 0xb2f   : > { %v5406_v6 = vmul.f32 %v10928_v8, %v9928_v40  ;;  %v5256_v11 = vmul.f32 %v10930_v29, %v9928_v40  ;;  %v5446_v62 = vmul.f32 %v10931_v22, %v9928_v40  ;;  %v5426_v17 = vmul.f32 %v10943_v59, %v9928_v40  ;;  %v10944_v8 = vld [vmem:[#allocation93_spill] sm:$0xff]  ;;  %v10945_v22 = vld [vmem:[#allocation98_spill] sm:$0xff] }
 0xb30   : > { %4780 = vrot.lane.b32.xlu2 %v4776_v23, %s7392_s29  ;;  %4760 = vrot.lane.b32.xlu0 %v4756_v18, %s7391_s4  ;;  %v4737_v13 = vmul.f32 %v10929_v55, %v10031_v57  ;;  %v4777_v53 = vmul.f32 %v10932_v28, %v10031_v57  ;;  %v5296_v23 = vmul.f32 %v10933_v31, %v9928_v40  ;;  %v10934_v18 = vld [vmem:[#allocation101_spill] sm:$0xff]  ;;  %v10946_v28 = vld [vmem:[#allocation79_spill] sm:$0xff] }
 0xb31   : > { %4850 = vrot.lane.b32.xlu1 %v4846_v60, %s7387_s23  ;;  %v5536_v60 = vmul.f32 %v10934_v18, %v9928_v40  ;;  %v5837_v59 = vmul.f32 %v9900_v32, %v10031_v57 }
 0xb38   : > { %4830 = vrot.lane.b32.xlu2 %v4826_v36, %s7388_s13  ;;  %4800 = vrot.lane.b32.xlu0 %v4796_v27, %s7393_s10  ;;  %v10935_v36 = vld [vmem:[#allocation69_spill] sm:$0xff] }
 0xb39   : > { %4980 = vrot.lane.b32.xlu1 %v4976_v44, %s7387_s23  ;;  %v4827_v27 = vmul.f32 %v10935_v36, %v10031_v57  ;;  %v10947_v36 = vld [vmem:[#allocation108_spill] sm:$0xff] }
 0xb40   : > { %4870 = vrot.lane.b32.xlu2 %v4866_v50, %s7390_s21  ;;  %4890 = vrot.lane.b32.xlu0 %v4886_v24, %s7391_s4  ;;  %v10936_v50 = vld [vmem:[#allocation47_spill] sm:$0xff] }
 0xb41   : > { %5110 = vrot.lane.b32.xlu1 %v5106_v26, %s7387_s23  ;;  %v5346_v24 = vmul.f32 %v10936_v50, %v9928_v40  ;;  %v10937_v26 = vld [vmem:[#allocation103_spill] sm:$0xff] }
 0xb42   : > { %v10949_v50 = vld [vmem:[#allocation87_spill] sm:$0xff] }
 0xb48   : > { %4910 = vrot.lane.b32.xlu2 %v4906_v52, %s7392_s29  ;;  %4930 = vrot.lane.b32.xlu0 %v4926_v3, %s7393_s10  ;;  %v5576_v52 = vmul.f32 %v10937_v26, %v9928_v40  ;;  %v10938_v3 = vld [vmem:[#allocation82_spill] sm:$0xff] }
 0xb49   : > { %5240 = vrot.lane.b32.xlu1 %v5236_v19, %s7387_s23  ;;  %v4867_v19 = vmul.f32 %v10938_v3, %v10031_v57 }
 0xb50   : > { %4960 = vrot.lane.b32.xlu2 %v4956_v5, %s7388_s13  ;;  %5020 = vrot.lane.b32.xlu0 %v5016_v2, %s7391_s4  ;;  %v10939_v2 = vld [vmem:[#allocation59_spill] sm:$0xff] }
 0xb51   : > { %5370 = vrot.lane.b32.xlu1 %v5366_v16, %s7387_s23  ;;  %v4686_v16 = vmul.f32 %v10939_v2, %v9928_v40  ;;  %v5556_v2 = vmul.f32 %v9694_v0, %v9928_v40 }
 0xb58   : > { %5000 = vrot.lane.b32.xlu2 %v4996_v41, %s7390_s21  ;;  %5060 = vrot.lane.b32.xlu0 %v5056_v38, %s7393_s10 }
 0xb59   : > { %5500 = vrot.lane.b32.xlu1 %v5496_v33, %s7387_s23 }
 0xb60   : > { %5040 = vrot.lane.b32.xlu2 %v5036_v39, %s7392_s29  ;;  %5150 = vrot.lane.b32.xlu0 %v5146_v20, %s7391_s4  ;;  %v10940_v39 = vld [vmem:[#allocation99_spill] sm:$0xff] }
 0xb61   : > { %5630 = vrot.lane.b32.xlu1 %v5626_v21, %s7387_s23  ;;  %v5386_v20 = vmul.f32 %v10940_v39, %v9928_v40  ;;  %v5666_v21 = vmul.f32 %v9872_v49, %v9928_v40 }
 0xb68   : > { %5090 = vrot.lane.b32.xlu2 %v5086_v12, %s7388_s13  ;;  %5190 = vrot.lane.b32.xlu0 %v5186_v25, %s7393_s10  ;;  %v10941_v25 = vld [vmem:[#allocation74_spill] sm:$0xff] }
 0xb69   : > { %5740 = vrot.lane.b32.xlu1 %v5736_v47, %s7388_s13  ;;  %v4907_v47 = vmul.f32 %v10941_v25, %v10031_v57 }
 0xb70   : > { %5130 = vrot.lane.b32.xlu2 %v5126_v56, %s7390_s21  ;;  %5280 = vrot.lane.b32.xlu0 %v5276_v9, %s7391_s4  ;;  %v10942_v56 = vld [vmem:[#allocation63_spill] sm:$0xff] }
 0xb71   : > { %5760 = vrot.lane.b32.xlu1 %v5756_v10, %s7387_s23  ;;  %v4816_v9 = vmul.f32 %v10942_v56, %v9928_v40  ;;  %v10952_v56 = vld [vmem:[#allocation85_spill] sm:$0xff] }
 0xb78   : > { %5170 = vrot.lane.b32.xlu2 %v5166_v48, %s7392_s29  ;;  %5320 = vrot.lane.b32.xlu0 %v5316_v61, %s7393_s10 }
 0xb79   : > { %5820 = vrot.lane.b32.xlu1 %v5816_v4, %s7392_s29 }
 0xb80   : > { %5220 = vrot.lane.b32.xlu2 %v5216_v43, %s7388_s13  ;;  %5410 = vrot.lane.b32.xlu0 %v5406_v6, %s7391_s4  ;;  %v5706_v43 = vmul.f32 %v9874_v7, %v9928_v40  ;;  %v4957_v6 = vmul.f32 %v10944_v8, %v10031_v57  ;;  %v5796_v7 = vmul.f32 %v9830_v30, %v9928_v40 }
 0xb81   : > { %4742 = vrot.lane.b32.xlu1 %v4737_v13, %s7390_s21 }
 0xb82   : > { %v4741_v15 = vpop.permute.xlu2 %4740 }
 0xb88   : > { %5260 = vrot.lane.b32.xlu2 %v5256_v11, %s7390_s21  ;;  %5450 = vrot.lane.b32.xlu0 %v5446_v62, %s7393_s10  ;;  %v5476_v62 = vmul.f32 %v10945_v22, %v9928_v40  ;;  %v10955_v22 = vld [vmem:[#allocation114_spill] sm:$0xff] }
 0xb89   : > { %4782 = vrot.lane.b32.xlu1 %v4777_v53, %s7392_s29  ;;  %v4997_v53 = vmul.f32 %v10946_v28, %v10031_v57  ;;  %v5686_v32 = vmul.f32 %v10955_v22, %v9928_v40  ;;  %v10956_v28 = vld [vmem:[#allocation55_spill] sm:$0xff] }
 0xb8a   : > { %v4781_v46 = vpop.permute.xlu2 %4780 }
 0xb90   : > { %5300 = vrot.lane.b32.xlu2 %v5296_v23, %s7392_s29  ;;  %5540 = vrot.lane.b32.xlu0 %v5536_v60, %s7391_s4 }
 0xb91   : > { %4832 = vrot.lane.b32.xlu1 %v4827_v27, %s7388_s13  ;;  %v5516_v27 = vmul.f32 %v10947_v36, %v9928_v40 }
 0xb92   : > { %v4831_v44 = vpop.permute.xlu2 %4830 }
 0xb93   : > { %v4836_v48 = vadd.f32 %v4831_v44, %v4816_v9  ;;  %v10948_v44 = vld [vmem:[#allocation67_spill] sm:$0xff]  ;;  %v4946_v9 = vmul.f32 %v10952_v56, %v9928_v40 }
 0xb94   : > { %v4697_v30 = vmul.f32 %v10948_v44, %v10031_v57 }
 0xb98   : > { %5350 = vrot.lane.b32.xlu2 %v5346_v24, %s7388_s13  ;;  %5580 = vrot.lane.b32.xlu0 %v5576_v52, %s7393_s10  ;;  %v5037_v24 = vmul.f32 %v10949_v50, %v10031_v57 }
 0xb99   : > { %4872 = vrot.lane.b32.xlu1 %v4867_v19, %s7390_s21 }
 0xb9a   : > { %v4871_v5 = vpop.permute.xlu2 %4870  ;;  %v4721_v41 = vpop.permute.xlu0 %4720 }
 0xb9b   : > { %v4701_v38 = vpop.permute.xlu1 %4700 }
 0xb9c   : > { %v4706_v33 = vadd.f32 %v4701_v38, %v4686_v16  ;;  %v5757_v16 = vmul.f32 %v9878_v37, %v10031_v57  ;;  %v5606_v37 = vmul.f32 %v9851_v35, %v9928_v40 }
 0xb9e   : > { %v4726_v12 = vadd.f32 %v4721_v41, %v4706_v33  ;;  %v10950_v41 = vld [vmem:[#allocation81_spill] sm:$0xff]  ;;  %v10951_v33 = vld [vmem:[#allocation94_spill] sm:$0xff] }
 0xb9f   : > { %v5087_v38 = vmul.f32 %v10950_v41, %v10031_v57  ;;  %v5076_v39 = vmul.f32 %v10951_v33, %v9928_v40 }
 0xba0   : > { %5390 = vrot.lane.b32.xlu2 %v5386_v20, %s7390_s21  ;;  %5670 = vrot.lane.b32.xlu0 %v5666_v21, %s7391_s4  ;;  %v4746_v10 = vadd.f32 %v4741_v15, %v4726_v12 }
 0xba1   : > { %4912 = vrot.lane.b32.xlu1 %v4907_v47, %s7392_s29  ;;  %v5817_v47 = vmul.f32 %v9898_v63, %v10031_v57  ;;  %v5646_v63 = vmul.f32 %v9727_v51, %v9928_v40 }
 0xba2   : > { %v4911_v1 = vpop.permute.xlu2 %4910  ;;  %v4761_v34 = vpop.permute.xlu0 %4760 }
 0xba3   : > { %v4766_v61 = vadd.f32 %v4761_v34, %v4746_v10  ;;  %v4851_v4 = vpop.permute.xlu1 %4850  ;;  %v10953_v10 = vld [vmem:[#allocation90_spill] sm:$0xff] }
 0xba4   : > { %v4856_v49 = vadd.f32 %v4851_v4, %v4836_v48 }
 0xba5   : > { %v4786_v55 = vadd.f32 %v4781_v46, %v4766_v61 }
 0xba6   : > { %v4876_v46 = vadd.f32 %v4871_v5, %v4856_v49 }
 0xba8   : > { %5430 = vrot.lane.b32.xlu2 %v5426_v17, %s7392_s29  ;;  %5710 = vrot.lane.b32.xlu0 %v5706_v43, %s7393_s10  ;;  %v10954_v43 = vld [vmem:[#allocation78_spill] sm:$0xff] }
 0xba9   : > { %4962 = vrot.lane.b32.xlu1 %v4957_v6, %s7388_s13  ;;  %v5167_v8 = vmul.f32 %v10954_v43, %v10031_v57 }
 0xbaa   : > { %v4961_v13 = vpop.permute.xlu2 %4960  ;;  %v4801_v15 = vpop.permute.xlu0 %4800 }
 0xbab   : > { %v10091_v29 = vadd.f32 %v4801_v15, %v4786_v55  ;;  %v4981_v11 = vpop.permute.xlu1 %4980  ;;  %v4966_v48 = vadd.f32 %v4961_v13, %v4946_v9  ;;  %v10962_v9 = vld [vmem:[#allocation68_spill] sm:$0xff] }
 0xbad   : > { %v4986_v49 = vadd.f32 %v4981_v11, %v4966_v48 }
 0xbb0   : > { %5480 = vrot.lane.b32.xlu2 %v5476_v62, %s7388_s13  ;;  %5800 = vrot.lane.b32.xlu0 %v5796_v7, %s7391_s4 }
 0xbb1   : > { %5002 = vrot.lane.b32.xlu1 %v4997_v53, %s7390_s21  ;;  %v5217_v53 = vmul.f32 %v10956_v28, %v10031_v57 }
 0xbb2   : > { %v5001_v31 = vpop.permute.xlu2 %5000  ;;  %v4891_v23 = vpop.permute.xlu0 %4890 }
 0xbb3   : > { %v4896_v18 = vadd.f32 %v4891_v23, %v4876_v46  ;;  %v5111_v60 = vpop.permute.xlu1 %5110  ;;  %v5006_v17 = vadd.f32 %v5001_v31, %v4986_v49  ;;  %v10957_v46 = vld [vmem:[#allocation52_spill] sm:$0xff]  ;;  %v10964_v49 = vld [vmem:[#allocation53_spill] sm:$0xff] }
 0xbb4   : > { %v5206_v31 = vmul.f32 %v10957_v46, %v9928_v40 }
 0xbb5   : > { %v4916_v26 = vadd.f32 %v4911_v1, %v4896_v18  ;;  %v5127_v1 = vmul.f32 %v10953_v10, %v10031_v57  ;;  %v5726_v18 = vmul.f32 %v9915_v42, %v9928_v40  ;;  %v4757_v10 = vmul.f32 %v10962_v9, %v10031_v57 }
 0xbb8   : > { %5520 = vrot.lane.b32.xlu2 %v5516_v27, %s7390_s21  ;;  %4702 = vrot.lane.b32.xlu0 %v4697_v30, %s7388_s13 }
 0xbb9   : > { %5042 = vrot.lane.b32.xlu1 %v5037_v24, %s7392_s29  ;;  %v10958_v24 = vld [vmem:[#allocation119_spill] sm:$0xff] }
 0xbba   : > { %v5041_v52 = vpop.permute.xlu2 %5040  ;;  %v4931_v3 = vpop.permute.xlu0 %4930 }
 0xbbb   : > { %v10111_v19 = vadd.f32 %v4931_v3, %v4916_v26  ;;  %v5241_v5 = vpop.permute.xlu1 %5240  ;;  %v5776_v26 = vmul.f32 %v10958_v24, %v9928_v40 }
 0xbc0   : > { %5560 = vrot.lane.b32.xlu2 %v5556_v2, %s7392_s29  ;;  %5762 = vrot.lane.b32.xlu0 %v5757_v16, %s7387_s23 }
 0xbc1   : > { %5092 = vrot.lane.b32.xlu1 %v5087_v38, %s7388_s13 }
 0xbc2   : > { %v5091_v20 = vpop.permute.xlu2 %5090  ;;  %v5021_v21 = vpop.permute.xlu0 %5020 }
 0xbc3   : > { %v5096_v12 = vadd.f32 %v5091_v20, %v5076_v39  ;;  %v10124_v25 = vpop.permute.xlu1 %5370  ;;  %v5026_v6 = vadd.f32 %v5021_v21, %v5006_v17  ;;  %v10960_v39 = vld [vmem:[#allocation61_spill] sm:$0xff] }
 0xbc4   : > { %v10961_v20 = vld [vmem:[#allocation45_spill] sm:$0xff] }
 0xbc5   : > { %v5116_v0 = vadd.f32 %v5111_v60, %v5096_v12  ;;  %v5046_v51 = vadd.f32 %v5041_v52, %v5026_v6  ;;  %v10959_v52 = vld [vmem:[#allocation89_spill] sm:$0xff]  ;;  %v5297_v21 = vmul.f32 %v10961_v20, %v10031_v57 }
 0xbc6   : > { %v5257_v3 = vmul.f32 %v10959_v52, %v10031_v57 }
 0xbc8   : > { %5610 = vrot.lane.b32.xlu2 %v5606_v37, %s7388_s13  ;;  %5822 = vrot.lane.b32.xlu0 %v5817_v47, %s7392_s29 }
 0xbc9   : > { %5132 = vrot.lane.b32.xlu1 %v5127_v1, %s7390_s21  ;;  %v10963_v1 = vld [vmem:[#allocation58_spill] sm:$0xff] }
 0xbca   : > { %v5131_v34 = vpop.permute.xlu2 %5130  ;;  %v5061_v61 = vpop.permute.xlu0 %5060  ;;  %v5347_v48 = vmul.f32 %v10963_v1, %v10031_v57 }
 0xbcb   : > { %v5136_v4 = vadd.f32 %v5131_v34, %v5116_v0  ;;  %v10137_v35 = vpop.permute.xlu1 %5500  ;;  %v5066_v7 = vadd.f32 %v5061_v61, %v5046_v51 }
 0xbd0   : > { %5650 = vrot.lane.b32.xlu2 %v5646_v63, %s7390_s21  ;;  %5842 = vrot.lane.b32.xlu0 %v5837_v59, %s7393_s10  ;;  %v5336_v63 = vmul.f32 %v10964_v49, %v9928_v40  ;;  %v10965_v59 = vld [vmem:[#allocation73_spill] sm:$0xff]  ;;  %v10977_v49 = vld [vmem:[#allocation83_spill] sm:$0xff] }
 0xbd1   : > { %5172 = vrot.lane.b32.xlu1 %v5167_v8, %s7392_s29  ;;  %v4797_v17 = vmul.f32 %v10965_v59, %v10031_v57  ;;  %v10966_v8 = vld [vmem:[#allocation116_spill] sm:$0xff] }
 0xbd2   : > { %v5171_v55 = vpop.permute.xlu2 %5170  ;;  %v5151_v13 = vpop.permute.xlu0 %5150  ;;  %v5387_v6 = vmul.f32 %v10966_v8, %v10031_v57  ;;  %v10978_v59 = vld [vmem:[#allocation112_spill] sm:$0xff] }
 0xbd3   : > { %v5156_v15 = vadd.f32 %v5151_v13, %v5136_v4  ;;  %v10148_v11 = vpop.permute.xlu1 %5630 }
 0xbd5   : > { %v5176_v62 = vadd.f32 %v5171_v55, %v5156_v15 }
 0xbd8   : > { %5690 = vrot.lane.b32.xlu2 %v5686_v32, %s7392_s29  ;;  %5858 = vrot.lane.b32.xlu0 %v5066_v7, %s7461_s1  ;;  %v10967_v32 = vld [vmem:[#allocation65_spill] sm:$0xff]  ;;  %v10968_v7 = vld [vmem:[#allocation118_spill] sm:$0xff] }
 0xbd9   : > { %5222 = vrot.lane.b32.xlu1 %v5217_v53, %s7388_s13  ;;  %v5427_v28 = vmul.f32 %v10968_v7, %v10031_v57  ;;  %v10981_v7 = vld [vmem:[#allocation64_spill] sm:$0xff] }
 0xbda   : > { %v5221_v23 = vpop.permute.xlu2 %5220  ;;  %v5191_v60 = vpop.permute.xlu0 %5190 }
 0xbdb   : > { %v5226_v36 = vadd.f32 %v5221_v23, %v5206_v31  ;;  %v10161_v27 = vadd.f32 %v5191_v60, %v5176_v62  ;;  %v5741_v44 = vpop.permute.xlu1 %5740  ;;  %v4847_v62 = vmul.f32 %v10967_v32, %v10031_v57  ;;  %v10969_v60 = vld [vmem:[#allocation71_spill] sm:$0xff]  ;;  %v5647_v32 = vmul.f32 %v9907_v45, %v10031_v57 }
 0xbdc   : > { %v5746_v30 = vadd.f32 %v5741_v44, %v5726_v18  ;;  %v10970_v44 = vld [vmem:[#allocation107_spill] sm:$0xff] }
 0xbdd   : > { %v5246_v50 = vadd.f32 %v5241_v5, %v5226_v36  ;;  %v4717_v5 = vmul.f32 %v10960_v39, %v10031_v57  ;;  %v4887_v36 = vmul.f32 %v10969_v60, %v10031_v57  ;;  %v10982_v60 = vld [vmem:[#allocation95_spill] sm:$0xff] }
 0xbe0   : > { %5780 = vrot.lane.b32.xlu2 %v5776_v26, %s7390_s21 }
 0xbe1   : > { %5262 = vrot.lane.b32.xlu1 %v5257_v3, %s7390_s21 }
 0xbe2   : > { %v5261_v2 = vpop.permute.xlu2 %5260  ;;  %v5281_v16 = vpop.permute.xlu0 %5280 }
 0xbe3   : > { %v5266_v42 = vadd.f32 %v5261_v2, %v5246_v50  ;;  %v5761_v41 = vpop.permute.xlu1 %5760  ;;  %v10971_v50 = vld [vmem:[#allocation106_spill] sm:$0xff] }
 0xbe4   : > { %v10169_v38 = vadd.f32 %v5761_v41, %v5746_v30  ;;  %v5477_v30 = vmul.f32 %v10970_v44, %v10031_v57  ;;  %v5466_v24 = vmul.f32 %v10971_v50, %v9928_v40  ;;  %v5687_v44 = vmul.f32 %v9909_v14, %v10031_v57 }
 0xbe5   : > { %v5286_v33 = vadd.f32 %v5281_v16, %v5266_v42  ;;  %v10972_v42 = vld [vmem:[#allocation80_spill] sm:$0xff] }
 0xbe6   : > { %v4927_v41 = vmul.f32 %v10972_v42, %v10031_v57 }
 0xbe8   : > { %4722 = vrot.lane.b32.xlu2 %v4717_v5, %s7387_s23 }
 0xbe9   : > { %5302 = vrot.lane.b32.xlu1 %v5297_v21, %s7392_s29 }
 0xbea   : > { %v5301_v12 = vpop.permute.xlu2 %5300  ;;  %v5321_v0 = vpop.permute.xlu0 %5320 }
 0xbeb   : > { %v5306_v37 = vadd.f32 %v5301_v12, %v5286_v33  ;;  %v10177_v47 = vpop.permute.xlu1 %5820  ;;  %v10973_v33 = vld [vmem:[#allocation121_spill] sm:$0xff] }
 0xbec   : > { %v5517_v39 = vmul.f32 %v10973_v33, %v10031_v57  ;;  %v10974_v12 = vld [vmem:[#allocation77_spill] sm:$0xff]  ;;  %v10985_v33 = vld [vmem:[#allocation46_spill] sm:$0xff] }
 0xbed   : > { %v10179_v56 = vadd.f32 %v5321_v0, %v5306_v37  ;;  %v4977_v0 = vmul.f32 %v10974_v12, %v10031_v57  ;;  %v10975_v37 = vld [vmem:[#allocation122_spill] sm:$0xff]  ;;  %v10986_v12 = vld [vmem:[#allocation125_spill] sm:$0xff] }
 0xbf0   : > { %4762 = vrot.lane.b32.xlu2 %v4757_v10, %s7391_s4  ;;  %v10976_v10 = vld [vmem:[#allocation76_spill] sm:$0xff] }
 0xbf1   : > { %5352 = vrot.lane.b32.xlu1 %v5347_v48, %s7388_s13  ;;  %v4947_v1 = vmul.f32 %v10976_v10, %v10031_v57  ;;  %v10987_v10 = vld [vmem:[#allocation92_spill] sm:$0xff] }
 0xbf2   : > { %v5351_v34 = vpop.permute.xlu2 %5350  ;;  %v5411_v61 = vpop.permute.xlu0 %5410 }
 0xbf3   : > { %v10187_v4 = vpop.permute.xlu1 %4742  ;;  %v5356_v43 = vadd.f32 %v5351_v34, %v5336_v63  ;;  %v5017_v63 = vmul.f32 %v10977_v49, %v10031_v57 }
 0xbf5   : > { %v5376_v15 = vadd.f32 %v10124_v25, %v5356_v43  ;;  %v10979_v43 = vld [vmem:[#allocation111_spill] sm:$0xff] }
 0xbf6   : > { %v5596_v8 = vmul.f32 %v10979_v43, %v9928_v40  ;;  %v10988_v43 = vld [vmem:[#allocation56_spill] sm:$0xff] }
 0xbf8   : > { %4802 = vrot.lane.b32.xlu2 %v4797_v17, %s7393_s10  ;;  %v5607_v17 = vmul.f32 %v10978_v59, %v10031_v57 }
 0xbf9   : > { %5392 = vrot.lane.b32.xlu1 %v5387_v6, %s7390_s21 }
 0xbfa   : > { %v5391_v55 = vpop.permute.xlu2 %5390  ;;  %v5451_v13 = vpop.permute.xlu0 %5450 }
 0xbfb   : > { %v10198_v51 = vpop.permute.xlu1 %4782  ;;  %v5396_v22 = vadd.f32 %v5391_v55, %v5376_v15  ;;  %v10980_v15 = vld [vmem:[#allocation84_spill] sm:$0xff] }
 0xbfd   : > { %v5416_v53 = vadd.f32 %v5411_v61, %v5396_v22  ;;  %v5057_v22 = vmul.f32 %v10980_v15, %v10031_v57  ;;  %v10990_v15 = vld [vmem:[#allocation75_spill] sm:$0xff] }
 0xc00   : > { %4852 = vrot.lane.b32.xlu2 %v4847_v62, %s7387_s23 }
 0xc01   : > { %5432 = vrot.lane.b32.xlu1 %v5427_v28, %s7392_s29  ;;  %v4687_v28 = vmul.f32 %v10981_v7, %v10031_v57 }
 0xc02   : > { %v5431_v46 = vpop.permute.xlu2 %5430  ;;  %v10206_v31 = vpop.permute.xlu0 %5540 }
 0xc03   : > { %v5436_v23 = vadd.f32 %v5431_v46, %v5416_v53  ;;  %v10208_v18 = vpop.permute.xlu1 %4832 }
 0xc05   : > { %v5456_v25 = vadd.f32 %v5451_v13, %v5436_v23 }
 0xc07   : > { %5882 = vrot.lane.b32.xlu0 %v5456_v25, %s7464_s25 }
 0xc08   : > { %4892 = vrot.lane.b32.xlu2 %v4887_v36, %s7391_s4  ;;  %v5107_v36 = vmul.f32 %v10982_v60, %v10031_v57 }
 0xc09   : > { %5482 = vrot.lane.b32.xlu1 %v5477_v30, %s7388_s13 }
 0xc0a   : > { %v5481_v26 = vpop.permute.xlu2 %5480  ;;  %v10219_v52 = vpop.permute.xlu0 %5580 }
 0xc0b   : > { %v5486_v3 = vadd.f32 %v5481_v26, %v5466_v24  ;;  %v10221_v2 = vpop.permute.xlu1 %4872  ;;  %v10983_v24 = vld [vmem:[#allocation91_spill] sm:$0xff] }
 0xc0c   : > { %v5147_v26 = vmul.f32 %v10983_v24, %v10031_v57 }
 0xc0d   : > { %v5506_v16 = vadd.f32 %v10137_v35, %v5486_v3  ;;  %v5557_v35 = vmul.f32 %v10975_v37, %v10031_v57  ;;  %v10984_v3 = vld [vmem:[#allocation124_spill] sm:$0xff] }
 0xc0e   : > { %v5777_v42 = vmul.f32 %v10984_v3, %v10031_v57  ;;  %v10994_v3 = vld [vmem:[#allocation100_spill] sm:$0xff] }
 0xc10   : > { %4932 = vrot.lane.b32.xlu2 %v4927_v41, %s7393_s10 }
 0xc11   : > { %5522 = vrot.lane.b32.xlu1 %v5517_v39, %s7390_s21  ;;  %v5187_v39 = vmul.f32 %v10985_v33, %v10031_v57 }
 0xc12   : > { %v5521_v5 = vpop.permute.xlu2 %5520  ;;  %v5671_v20 = vpop.permute.xlu0 %5670 }
 0xc13   : > { %v10230_v21 = vpop.permute.xlu1 %4912 }
 0xc18   : > { %4982 = vrot.lane.b32.xlu2 %v4977_v0, %s7387_s23  ;;  %v5836_v0 = vmul.f32 %v10986_v12, %v9928_v40  ;;  %v10995_v12 = vld [vmem:[#allocation109_spill] sm:$0xff] }
 0xc19   : > { %5562 = vrot.lane.b32.xlu1 %v5557_v35, %s7392_s29 }
 0xc1a   : > { %v5561_v9 = vpop.permute.xlu2 %5560  ;;  %v10240_v48 = vpop.permute.xlu0 %5710 }
 0xc1b   : > { %v4963_v34 = vpop.permute.xlu1 %4962 }
 0xc1c   : > { %v10242_v61 = vadd.f32 %v4963_v34, %v4947_v1  ;;  %v5237_v1 = vmul.f32 %v10987_v10, %v10031_v57  ;;  %v5526_v34 = vadd.f32 %v5521_v5, %v5506_v16 }
 0xc20   : > { %5022 = vrot.lane.b32.xlu2 %v5017_v63, %s7391_s4  ;;  %v5546_v63 = vadd.f32 %v10206_v31, %v5526_v34 }
 0xc21   : > { %5612 = vrot.lane.b32.xlu1 %v5607_v17, %s7388_s13 }
 0xc22   : > { %v5611_v6 = vpop.permute.xlu2 %5610  ;;  %v10252_v55 = vpop.permute.xlu0 %5800  ;;  %v5566_v17 = vadd.f32 %v5561_v9, %v5546_v63 }
 0xc23   : > { %v5616_v13 = vadd.f32 %v5611_v6, %v5596_v8  ;;  %v5003_v50 = vpop.permute.xlu1 %5002  ;;  %v5277_v8 = vmul.f32 %v10988_v43, %v10031_v57 }
 0xc24   : > { %v5586_v6 = vadd.f32 %v10219_v52, %v5566_v17 }
 0xc25   : > { %v5636_v62 = vadd.f32 %v10148_v11, %v5616_v13 }
 0xc28   : > { %5062 = vrot.lane.b32.xlu2 %v5057_v22, %s7393_s10  ;;  %v4817_v22 = vmul.f32 %v10990_v15, %v10031_v57 }
 0xc29   : > { %5652 = vrot.lane.b32.xlu1 %v5647_v32, %s7390_s21 }
 0xc2a   : > { %v5651_v53 = vpop.permute.xlu2 %5650  ;;  %v4703_v46 = vpop.permute.xlu0 %4702  ;;  %v4837_v32 = vadd.f32 %v10208_v18, %v4817_v22 }
 0xc2b   : > { %v5656_v23 = vadd.f32 %v5651_v53, %v5636_v62  ;;  %v4707_v25 = vadd.f32 %v4703_v46, %v4687_v28 }
 0xc2d   : > { %v5676_v45 = vadd.f32 %v5671_v20, %v5656_v23  ;;  %v5043_v20 = vpop.permute.xlu1 %5042  ;;  %v10992_v23 = vld [vmem:[#allocation102_spill] sm:$0xff] }
 0xc30   : > { %5112 = vrot.lane.b32.xlu2 %v5107_v36, %s7387_s23 }
 0xc31   : > { %5692 = vrot.lane.b32.xlu1 %v5687_v44, %s7392_s29 }
 0xc32   : > { %v5691_v11 = vpop.permute.xlu2 %5690 }
 0xc33   : > { %v10269_v30 = vadd.f32 %v5691_v11, %v5676_v45  ;;  %v10993_v45 = vld [vmem:[#allocation105_spill] sm:$0xff] }
 0xc34   : > { %v5447_v11 = vmul.f32 %v10993_v45, %v10031_v57 }
 0xc35   : > { %v5093_v49 = vpop.permute.xlu1 %5092 }
 0xc38   : > { %5152 = vrot.lane.b32.xlu2 %v5147_v26, %s7391_s4 }
 0xc39   : > { %5782 = vrot.lane.b32.xlu1 %v5777_v42, %s7390_s21  ;;  %v5497_v42 = vmul.f32 %v10994_v3, %v10031_v57  ;;  %v11003_v3 = vld [vmem:[#allocation49_spill] sm:$0xff] }
 0xc3a   : > { %v5781_v14 = vpop.permute.xlu2 %5780 }
 0xc3b   : > { %v10278_v41 = vadd.f32 %v5781_v14, %v10169_v38 }
 0xc3d   : > { %v5133_v5 = vpop.permute.xlu1 %5132 }
 0xc40   : > { %5192 = vrot.lane.b32.xlu2 %v5187_v39, %s7393_s10 }
 0xc41   : > { %5840 = vrot.lane.b32.xlu1 %v5836_v0, %s7393_s10  ;;  %v5537_v0 = vmul.f32 %v10995_v12, %v10031_v57 }
 0xc42   : > { %v4723_v37 = vpop.permute.xlu2 %4722 }
 0xc43   : > { %v4727_v35 = vadd.f32 %v4723_v37, %v4707_v25  ;;  %v5407_v25 = vmul.f32 %v10992_v23, %v10031_v57 }
 0xc45   : > { %v4747_v38 = vadd.f32 %v10187_v4, %v4727_v35  ;;  %v5173_v52 = vpop.permute.xlu1 %5172 }
 0xc48   : > { %5242 = vrot.lane.b32.xlu2 %v5237_v1, %s7387_s23 }
 0xc49   : > { %5866 = vrot.lane.b32.xlu1 %v10161_v27, %s7465_s9  ;;  %v10989_v27 = vld [vmem:[#allocation66_spill] sm:$0xff] }
 0xc4a   : > { %v4763_v40 = vpop.permute.xlu2 %4762  ;;  %v5317_v13 = vmul.f32 %v10989_v27, %v10031_v57 }
 0xc4b   : > { %v4767_v59 = vadd.f32 %v4763_v40, %v4747_v38 }
 0xc4d   : > { %v4787_v16 = vadd.f32 %v10198_v51, %v4767_v59  ;;  %v10991_v51 = vld [vmem:[#allocation57_spill] sm:$0xff]  ;;  %v5223_v60 = vpop.permute.xlu1 %5222  ;;  %v10998_v59 = vld [vmem:[#allocation123_spill] sm:$0xff] }
 0xc4e   : > { %v5367_v62 = vmul.f32 %v10991_v51, %v10031_v57  ;;  %v5627_v17 = vmul.f32 %v10998_v59, %v10031_v57 }
 0xc50   : > { %5282 = vrot.lane.b32.xlu2 %v5277_v8, %s7391_s4 }
 0xc51   : > { %5890 = vrot.lane.b32.xlu1 %v5586_v6, %s7454_s22 }
 0xc52   : > { %v4803_v4 = vpop.permute.xlu2 %4802 }
 0xc53   : > { %v10299_v31 = vadd.f32 %v4803_v4, %v4787_v16  ;;  %v10999_v4 = vld [vmem:[#allocation113_spill] sm:$0xff] }
 0xc54   : > { %v5667_v27 = vmul.f32 %v10999_v4, %v10031_v57  ;;  %v5763_v4 = vpop.permute.xlu0 %5762 }
 0xc55   : > { %v5263_v24 = vpop.permute.xlu1 %5262 }
 0xc58   : > { %5322 = vrot.lane.b32.xlu2 %v5317_v13, %s7393_s10 }
 0xc5a   : > { %v4853_v9 = vpop.permute.xlu2 %4852 }
 0xc5b   : > { %v4857_v7 = vadd.f32 %v4853_v9, %v4837_v32 }
 0xc5d   : > { %v4877_v53 = vadd.f32 %v10221_v2, %v4857_v7 }
 0xc60   : > { %5372 = vrot.lane.b32.xlu2 %v5367_v62, %s7387_s23 }
 0xc62   : > { %v4893_v28 = vpop.permute.xlu2 %4892 }
 0xc63   : > { %v4897_v46 = vadd.f32 %v4893_v28, %v4877_v53  ;;  %v5797_v53 = vmul.f32 %v9913_v58, %v10031_v57 }
 0xc65   : > { %v4917_v36 = vadd.f32 %v10230_v21, %v4897_v46  ;;  %v5303_v21 = vpop.permute.xlu1 %5302 }
 0xc68   : > { %5412 = vrot.lane.b32.xlu2 %v5407_v25, %s7391_s4 }
 0xc6a   : > { %v4933_v44 = vpop.permute.xlu2 %4932 }
 0xc6b   : > { %v4937_v18 = vadd.f32 %v4933_v44, %v4917_v36  ;;  %v11002_v44 = vld [vmem:[#allocation115_spill] sm:$0xff] }
 0xc6d   : > { %5852 = vrot.lane.b32.xlu1 %v4937_v18, %s7389_s8  ;;  %v5353_v1 = vpop.permute.xlu1 %5352  ;;  %v5707_v18 = vmul.f32 %v11002_v44, %v10031_v57 }
 0xc70   : > { %5452 = vrot.lane.b32.xlu2 %v5447_v11, %s7393_s10 }
 0xc72   : > { %v4983_v2 = vpop.permute.xlu2 %4982 }
 0xc73   : > { %v4987_v26 = vadd.f32 %v4983_v2, %v10242_v61  ;;  %v10996_v61 = vld [vmem:[#allocation110_spill] sm:$0xff] }
 0xc74   : > { %v5577_v34 = vmul.f32 %v10996_v61, %v10031_v57 }
 0xc75   : > { %v5007_v14 = vadd.f32 %v5003_v50, %v4987_v26  ;;  %v10997_v50 = vld [vmem:[#allocation88_spill] sm:$0xff]  ;;  %v5393_v43 = vpop.permute.xlu1 %5392 }
 0xc76   : > { %v5077_v63 = vmul.f32 %v10997_v50, %v10031_v57 }
 0xc78   : > { %5502 = vrot.lane.b32.xlu2 %v5497_v42, %s7387_s23  ;;  %v5097_v40 = vadd.f32 %v5093_v49, %v5077_v63  ;;  %v11000_v49 = vld [vmem:[#allocation117_spill] sm:$0xff]  ;;  %v5337_v42 = vmul.f32 %v11003_v3, %v10031_v57 }
 0xc79   : > { %v5737_v32 = vmul.f32 %v11000_v49, %v10031_v57 }
 0xc7a   : > { %v5023_v33 = vpop.permute.xlu2 %5022 }
 0xc7b   : > { %v5027_v39 = vadd.f32 %v5023_v33, %v5007_v14  ;;  %v5716_v14 = vadd.f32 %v10240_v48, %v10269_v30 }
 0xc7d   : > { %v5047_v37 = vadd.f32 %v5043_v20, %v5027_v39  ;;  %v5433_v13 = vpop.permute.xlu1 %5432 }
 0xc80   : > { %5542 = vrot.lane.b32.xlu2 %v5537_v0, %s7391_s4 }
 0xc82   : > { %v5063_v35 = vpop.permute.xlu2 %5062 }
 0xc83   : > { %v5067_v10 = vadd.f32 %v5063_v35, %v5047_v37 }
 0xc85   : > { %v5483_v51 = vpop.permute.xlu1 %5482 }
 0xc88   : > { %5582 = vrot.lane.b32.xlu2 %v5577_v34, %s7393_s10 }
 0xc8a   : > { %v5113_v38 = vpop.permute.xlu2 %5112 }
 0xc8b   : > { %v5117_v8 = vadd.f32 %v5113_v38, %v5097_v40 }
 0xc8d   : > { %v5137_v6 = vadd.f32 %v5133_v5, %v5117_v8  ;;  %v11001_v5 = vld [vmem:[#allocation86_spill] sm:$0xff]  ;;  %v5523_v25 = vpop.permute.xlu1 %5522 }
 0xc8e   : > { %v5207_v7 = vmul.f32 %v11001_v5, %v10031_v57 }
 0xc90   : > { %5632 = vrot.lane.b32.xlu2 %v5627_v17, %s7387_s23  ;;  %v5227_v28 = vadd.f32 %v5223_v60, %v5207_v7  ;;  %s7466_s23 = smov 56  }
 0xc92   : > { %v5153_v20 = vpop.permute.xlu2 %5152 }
 0xc93   : > { %v5157_v16 = vadd.f32 %v5153_v20, %v5137_v6 }
 0xc95   : > { %v5177_v9 = vadd.f32 %v5173_v52, %v5157_v16  ;;  %v5563_v60 = vpop.permute.xlu1 %5562 }
 0xc98   : > { %5672 = vrot.lane.b32.xlu2 %v5667_v27, %s7391_s4 }
 0xc9a   : > { %v5193_v15 = vpop.permute.xlu2 %5192 }
 0xc9b   : > { %v5197_v22 = vadd.f32 %v5193_v15, %v5177_v9 }
 0xc9d   : > { %5868 = vrot.lane.b32.xlu0 %v5197_v22, %s7465_s9  ;;  %v5613_v26 = vpop.permute.xlu1 %5612  ;;  %v5597_v22 = vmul.f32 %v9903_v54, %v10031_v57 }
 0xca0   : > { %5742 = vrot.lane.b32.xlu2 %v5737_v32, %s7388_s13  ;;  %s11006_s13 = sld [smem:[#allocation38_spill]] }
 0xca2   : > { %v5243_v62 = vpop.permute.xlu2 %5242 }
 0xca3   : > { %v5247_v46 = vadd.f32 %v5243_v62, %v5227_v28 }
 0xca5   : > { %v5267_v23 = vadd.f32 %v5263_v24, %v5247_v46  ;;  %v5653_v33 = vpop.permute.xlu1 %5652 }
 0xca6   : > { %s902_s21 = sand.u32 1, %s11006_s13  }
 0xca8   : > { %5802 = vrot.lane.b32.xlu2 %v5797_v53, %s7391_s4  ;;  %s6236_s4 = sshll.u32 %s902_s21, 4 }
 0xca9   : > { %s904_s29 = scalar_lea.vmem [#allocation27], %s6236_s4 }
 0xcaa   : > { %v5283_v52 = vpop.permute.xlu2 %5282 }
 0xcab   : > { %v5287_v36 = vadd.f32 %v5283_v52, %v5267_v23 }
 0xcad   : > { %v5307_v45 = vadd.f32 %v5303_v21, %v5287_v36  ;;  %v5357_v21 = vadd.f32 %v5353_v1, %v5337_v42  ;;  %v5693_v61 = vpop.permute.xlu1 %5692 }
 0xcb0   : > { %5712 = vrot.lane.b32.xlu2 %v5707_v18, %s7393_s10 }
 0xcb2   : > { %v5323_v11 = vpop.permute.xlu2 %5322 }
 0xcb3   : > { %v5327_v2 = vadd.f32 %v5323_v11, %v5307_v45 }
 0xcb5   : > { %5876 = vrot.lane.b32.xlu1 %v5327_v2, %s7447_s3  ;;  %v5783_v40 = vpop.permute.xlu1 %5782 }
 0xcb8   : > { %5850 = vrot.lane.b32.xlu2 %v10111_v19, %s7389_s8 }
 0xcba   : > { %v5373_v58 = vpop.permute.xlu2 %5372 }
 0xcbb   : > { %v5377_v39 = vadd.f32 %v5373_v58, %v5357_v21 }
 0xcbd   : > { %v5397_v19 = vadd.f32 %v5393_v43, %v5377_v39  ;;  %v5841_v8 = vpop.permute.xlu1 %5840 }
 0xcc0   : > { %5874 = vrot.lane.b32.xlu2 %v10179_v56, %s7447_s3  ;;  %v11004_v56 = vld [vmem:[#allocation120_spill] sm:$0xff]  ;;  %s11007_s3 = sld [smem:[#allocation146_spill]] }
 0xcc1   : > { %v5467_v35 = vmul.f32 %v11004_v56, %v10031_v57 }
 0xcc2   : > { %v5413_v24 = vpop.permute.xlu2 %5412 }
 0xcc3   : > { %v5417_v0 = vadd.f32 %v5413_v24, %v5397_v19  ;;  %v5487_v38 = vadd.f32 %v5483_v51, %v5467_v35 }
 0xcc5   : > { %v5437_v34 = vadd.f32 %v5433_v13, %v5417_v0  ;;  %v11005_v13 = vld [vmem:[#allocation126_spill] sm:$0xff]  ;;  %v5867_v2 = vpop.permute.xlu1 %5866 }
 0xcc6   : > { %v5727_v9 = vmul.f32 %v11005_v13, %v10031_v57  ;;  %s7297_s12 = scalar_lea.hbm %s11007_s3, 48 }
 0xcc8   : > { %5898 = vrot.lane.b32.xlu2 %v5716_v14, %s7466_s23 }
 0xcca   : > { %v5453_v12 = vpop.permute.xlu2 %5452 }
 0xccb   : > { %v5457_v50 = vadd.f32 %v5453_v12, %v5437_v34 }
 0xccd   : > { %v5891_v14 = vpop.permute.xlu1 %5890 }
 0xcd0   : > { %5860 = vrot.lane.b32.xlu2 %v5067_v10, %s7461_s1  ;;  %v5806_v10 = vadd.f32 %v10252_v55, %v10278_v41  ;;  %v5823_v55 = vpop.permute.xlu0 %5822  ;;  %v5617_v41 = vadd.f32 %v5613_v26, %v5597_v22  ;;  %s5947_s1 = sshll.u32 %s904_s29, 4  ;;  %s5948_s1 = int_to_ptr.vmem [resolvable:$true] %s5947_s1 }
 0xcd2   : > { %v5503_v37 = vpop.permute.xlu2 %5502  ;;  %v5826_v20 = vadd.f32 %v10177_v47, %v5806_v10 }
 0xcd3   : > { %v5507_v48 = vadd.f32 %v5503_v37, %v5487_v38 }
 0xcd4   : > { %v5846_v16 = vadd.f32 %v5841_v8, %v5826_v20 }
 0xcd5   : > { %v5527_v1 = vadd.f32 %v5523_v25, %v5507_v48 }
 0xcd8   : > { %5884 = vrot.lane.b32.xlu2 %v5457_v50, %s7464_s25  ;;  %v5843_v46 = vpop.permute.xlu0 %5842 }
 0xcda   : > { %v5543_v30 = vpop.permute.xlu2 %5542 }
 0xcdb   : > { %v5547_v63 = vadd.f32 %v5543_v30, %v5527_v1 }
 0xcdd   : > { %v5567_v59 = vadd.f32 %v5563_v60, %v5547_v63 }
 0xcdf   : > { %v5853_v0 = vpop.permute.xlu1 %5852 }
 0xce0   : > { %v5859_v54 = vpop.permute.xlu0 %5858  ;;  %v5913_v37 = vsel %vm1203_vm3, %v10299_v31, %v5853_v0 }
 0xce2   : > { %v5583_v17 = vpop.permute.xlu2 %5582 }
 0xce3   : > { %v5587_v43 = vadd.f32 %v5583_v17, %v5567_v59 }
 0xce5   : > { %5892 = vrot.lane.b32.xlu0 %v5587_v43, %s7454_s22  ;;  %s5946_s22 = scalar_lea.hbm %s11007_s3, %s7755_s26  ;;  %s5935_s26 = scalar_lea.sflag [#allocation8], %s902_s21 }
 0xce6   : > { %s10397_s24 = sshll.u32 %s5946_s22, 4  ;;  %s5950_s24 = int_to_ptr.hbm [resolvable:$true] %s10397_s24 }
 0xce7   : > { %s7291_s28 = sshra.s32 %s5950_s24, 4  ;;  %s7292_s28 = int_to_ptr.hbm [resolvable:$true] %s7291_s28 }
 0xce8   : > { %v5883_v57 = vpop.permute.xlu0 %5882  ;;  %s7293_s14 = scalar_lea.hbm %s7292_s28, 16  ;;  %p7298_p3 = scmp.lt.s32.totalorder %s7292_s28, %s11007_s3 }
 0xce9   : > { %p7294_p0 = scmp.ne.s32.totalorder %s7292_s28, %s7293_s14  ;;  %p7299_p4 = scmp.lt.s32.totalorder %s7297_s12, %s7293_s14 }
 0xcea   : > { %v5633_v6 = vpop.permute.xlu2 %5632 }
 0xceb   : > { %v5637_v51 = vadd.f32 %v5633_v6, %v5617_v41  ;;  %p7295_p1 = pnand %p7294_p0, %p7624_p5  ;;  %p7300_p7 = por %p7299_p4, %p7298_p3 }
 0xced   : > { %5906 = vrot.lane.b32.xlu0 %v5846_v16, %s7397_s0  ;;  %v5657_v5 = vadd.f32 %v5653_v33, %v5637_v51  ;;  %p7296_p2 = pneg %p7295_p1 }
 0xcef   : > { %p7301_p8 = pnand %p7300_p7, %p7296_p2 }
 0xcf2   : > { %v5673_v27 = vpop.permute.xlu2 %5672 }
 0xcf3   : > { %v5677_v28 = vadd.f32 %v5673_v27, %v5657_v5 }
 0xcf5   : > { %v5697_v23 = vadd.f32 %v5693_v61, %v5677_v28 }
 0xcfa   : > { %v5743_v15 = vpop.permute.xlu2 %5742 }
 0xcfb   : > { %v5747_v49 = vadd.f32 %v5743_v15, %v5727_v9 }
 0xcfd   : > { %v5767_v32 = vadd.f32 %v5763_v4, %v5747_v49 }
 0xcff   : > { %v5787_v62 = vadd.f32 %v5783_v40, %v5767_v32 }
 0xd02   : > { %v5803_v47 = vpop.permute.xlu2 %5802 }
 0xd03   : > { %v5807_v7 = vadd.f32 %v5803_v47, %v5787_v62 }
 0xd05   : > { %v5827_v53 = vadd.f32 %v5823_v55, %v5807_v7 }
 0xd07   : > { %v5847_v52 = vadd.f32 %v5843_v46, %v5827_v53 }
 0xd09   : > { %5908 = vrot.lane.b32.xlu2 %v5847_v52, %s7397_s0 }
 0xd0a   : > { %v5713_v25 = vpop.permute.xlu2 %5712 }
 0xd0b   : > { %v5717_v36 = vadd.f32 %v5713_v25, %v5697_v23 }
 0xd0d   : > { %5900 = vrot.lane.b32.xlu1 %v5717_v36, %s7466_s23 }
 0xd0f   : > { %v5869_v18 = vpop.permute.xlu0 %5868 }
 0xd12   : > { %v5851_v44 = vpop.permute.xlu2 %5850 }
 0xd13   : > { %v5912_v45 = vsel %vm1203_vm3, %v10091_v29, %v5851_v44 }
 0xd14   : > { %v5914_v60 = vsel %vm2106_vm1, %v5912_v45, %v5859_v54 }
 0xd15   : > { %v5916_v58 = vsel %vm4617_vm6, %v5914_v60, %v5867_v2 }
 0xd1a   : > { %v5875_v11 = vpop.permute.xlu2 %5874 }
 0xd1b   : > { %v5918_v24 = vsel %vm2109_vm2, %v5916_v58, %v5875_v11 }
 0xd1c   : > { %v5920_v3 = vsel %vm4620_vm7, %v5918_v24, %v5883_v57 }
 0xd1d   : > { %v5922_v29 = vsel %vm2112_vm10, %v5920_v3, %v5891_v14 }
 0xd22   : > { %v5899_v42 = vpop.permute.xlu2 %5898 }
 0xd23   : > { %v5925_v21 = vsel %vm5924_vm8, %v5922_v29, %v5899_v42 }
 0xd27   : > { %v5877_v56 = vpop.permute.xlu1 %5876 }
 0xd2a   : > { %v5861_v19 = vpop.permute.xlu2 %5860 }
 0xd2b   : > { %v5915_v35 = vsel %vm2106_vm1, %v5913_v37, %v5861_v19 }
 0xd2c   : > { %v5917_v34 = vsel %vm4617_vm6, %v5915_v35, %v5869_v18 }
 0xd2d   : > { %v5919_v38 = vsel %vm2109_vm2, %v5917_v34, %v5877_v56 }
 0xd32   : > { %v5885_v61 = vpop.permute.xlu2 %5884 }
 0xd33   : > { %v5921_v50 = vsel %vm4620_vm7, %v5919_v38, %v5885_v61 }
 0xd57   : > { %v5893_v26 = vpop.permute.xlu0 %5892 }
 0xd58   : > { %v5923_v31 = vsel %vm2112_vm10, %v5921_v50, %v5893_v26 }
 0xd5f   : > { %v5907_v33 = vpop.permute.xlu0 %5906 }
 0xd60   : > { %v5927_v39 = vsel %vm2115_vm11, %v5925_v21, %v5907_v33 }
 0xd61   : > { %v5930_v12 = vsel %vm5929_vm9, %v5927_v39, 0.0 }
 0xd62   : > { %5932 = vst [vmem:[%s904_s29] sm:$0xff] %v5930_v12 }
 0xd63   : > { %v5909_v30 = vpop.permute.xlu2 %5908 }
 0xd7f   : > { %v5901_v48 = vpop.permute.xlu1 %5900 }
 0xd80   : > { %v5926_v1 = vsel %vm5924_vm8, %v5923_v31, %v5901_v48 }
 0xd81   : > { %v5928_v63 = vsel %vm2115_vm11, %v5926_v1, %v5909_v30 }
 0xd82   : > { %v5931_v40 = vsel %vm5929_vm9, %v5928_v63, 0.0 }
 0xd83   : > { %5933 = vst [vmem:[%s904_s29 + $0x8] sm:$0xff] %v5931_v40 }
 0xd84   : > { %7304 = shalt.err (!%p7301_p8)
}
 0xd85   : > { %s7467_s16 = smov 128  }
 0xd86   : > { %6364 = dma.vmem_to_hbm [thread:$0]  (%p7624_p5), %s5948_s1, 256, %s5950_s24, %s5935_s26, %s7467_s16, %s7467_s16, %s7389_s8  }
 0xd87 PF: > { %s11009_s27 = sld [smem:[#allocation40_spill]] }
 0xd88   : > { %s11010_s15 = sld [smem:[#allocation37_spill]] }
 0xd8d   : > { %p6436_p9 = scmp.ge.s32.totalorder %s11009_s27, 2 }
 0xd8e   : > { %s5964_s25 = sand.u32 1, %s11010_s15  }
 0xd8f   : > { %p6407_p10 = pnand %p6436_p9, %p7628_p6  ;;  %s5965_s9 = scalar_lea.sflag [#allocation8], %s5964_s25 }
 0xd91   : > { %p6408_p11 = pneg %p6407_p10 }
 0xd93   : > { %7352 = dma.done.wait (%p6408_p11), %s5965_s9, 256  }
 0xd94   : > { %7354 = vsyncadd (%p6408_p11), %s5965_s9, 4294967040  ;;  %s11012_s1 = sld [smem:[#allocation41_spill]] }
 0xd95   : > { %s11013_s4 = sld [smem:[#allocation38_spill]] }
 0xd96   : > { %s11014_s0 = sld [smem:[#allocation39_spill]] }
 0xd97   : > { %s11015_s23 = sld [smem:[#allocation42_spill]] }
 0xd9a   : > { %p47_p12 = scmp.ge.s32.totalorder %s11012_s1, 5  }
 0xd9c   :  { %49 = sbr.rel (!%p47_p12) target bundleno = 42 (0x2a), region = 233 }
 0xda1   :  { %5971 = vsyncpa [#allocation7], 1 }
 0xda2   :  { %5973 = vsyncpa [#allocation7 + $0x1], 1 }
 0xda3   :  { %5974 = vsyncpa [#allocation10], 1 }
 0xda4   :  { %5975 = vsyncpa [#allocation13], 1 }
 0xda5   :  { %5976 = vsyncpa [#allocation16], 1 }
 0xda6   :  { %5977 = vsyncpa [#allocation19], 1 }
 0xda7   :  { %5978 = vsyncpa [#allocation22], 1 }
 0xda8   :  { %5979 = vsyncpa [#allocation25], 1 }
 0xda9   :  { %5980 = vsyncpa [#allocation8], 1 }
 0xdaa   :  { %5982 = vsyncpa [#allocation8 + $0x1], 1 }

</bundles_post_ra>
